<compile_context>
chip_gen: v6e
topology: v6e:2x2x1
jax: 0.10.0
libtpu: 0.0.40
codegen_flags: <defaults>
</compile_context>

<pallas_src>
import functools

import jax
import jax.numpy as jnp
from jax.experimental import pallas as pl
from jax.experimental.pallas import tpu as pltpu


LANES = 128      # lane-dense width of the logits output slab
COL_OFF = 8      # sublane offset of the image interior inside the padded scratch
                 # (8-aligned so the interior store needs no sublane shift)


def _im2col_3x3(xp, H, W):
    """xp: (H+2, W_scratch, C) zero-padded image (value, VMEM resident).
    Valid pixels occupy rows 1..H, cols COL_OFF..COL_OFF+W-1.
    Returns the im2col slab (H*W, 9*C): tap order (kh, kw), channel-minor."""
    C = xp.shape[-1]
    patches = [
        xp[kh:kh + H, COL_OFF - 1 + kw:COL_OFF - 1 + kw + W, :]
        for kh in range(3) for kw in range(3)
    ]
    cols = jnp.concatenate(patches, axis=-1)        # (H, W, 9*C) lane concat
    return cols.reshape(H * W, 9 * C)               # W multiple of 8 -> cheap


def fused_forward_kernel(x_ref, w1_ref, b1_ref, w2_ref, b2_ref, wl_ref, bl_ref,
                         o_ref, xp_s, f1p_s):
    # x_ref : (1, H, W, Cin)          w1_ref: (9*Cin, C1)   b1_ref: (1, C1)
    # w2_ref: (9*C1, C2)              b2_ref: (1, C2)
    # wl_ref: (C2, 128)               bl_ref: (1, 128)
    # o_ref : (1, 1, 128)
    # xp_s  : VMEM (H+2, W+2*COL_OFF, Cin)   f1p_s: VMEM (H+2, W+2*COL_OFF, C1)
    H = x_ref.shape[1]
    W = x_ref.shape[2]

    # ---- conv1: zero-pad in VMEM, one K=9*Cin MXU contraction, bias + ReLU ----
    xp_s[...] = jnp.zeros_like(xp_s)
    xp_s[1:H + 1, COL_OFF:COL_OFF + W, :] = x_ref[0]
    cols1 = _im2col_3x3(xp_s[...], H, W)                          # (H*W, 9*Cin)
    f1 = jnp.dot(cols1, w1_ref[...], preferred_element_type=jnp.float32)
    f1 = jnp.maximum(f1 + b1_ref[...], 0.0)                       # (H*W, C1)

    # ---- conv2: f1 stays in VMEM, pad + one K=9*C1 contraction ----
    f1p_s[...] = jnp.zeros_like(f1p_s)
    f1p_s[1:H + 1, COL_OFF:COL_OFF + W, :] = f1.reshape(H, W, f1.shape[-1])
    cols2 = _im2col_3x3(f1p_s[...], H, W)                         # (H*W, 9*C1)
    f2 = jnp.dot(cols2, w2_ref[...], preferred_element_type=jnp.float32)
    f2 = jnp.maximum(f2 + b2_ref[...], 0.0)                       # (H*W, C2)

    # ---- fused head epilogue: global average pool + linear (lane-dense out) ----
    pooled = jnp.mean(f2, axis=0, keepdims=True)                  # (1, C2)
    logits = jnp.dot(pooled, wl_ref[...],
                     preferred_element_type=jnp.float32) + bl_ref[...]
    o_ref[0] = logits                                             # (1, 128)


def _fused_pallas_forward(x_nhwc, w1r, b1, w2r, b2, wl_pad, bl_pad):
    N, H, W, Cin = x_nhwc.shape
    C1 = w1r.shape[-1]
    C2 = w2r.shape[-1]
    W_S = W + 2 * COL_OFF   # scratch width: zero border + 8-aligned interior

    return pl.pallas_call(
        fused_forward_kernel,
        out_shape=jax.ShapeDtypeStruct((N, 1, LANES), jnp.float32),
        grid=(N,),
        in_specs=[
            pl.BlockSpec((1, H, W, Cin), lambda n: (n, 0, 0, 0)),
            pl.BlockSpec((9 * Cin, C1), lambda n: (0, 0)),
            pl.BlockSpec((1, C1), lambda n: (0, 0)),
            pl.BlockSpec((9 * C1, C2), lambda n: (0, 0)),
            pl.BlockSpec((1, C2), lambda n: (0, 0)),
            pl.BlockSpec((C2, LANES), lambda n: (0, 0)),
            pl.BlockSpec((1, LANES), lambda n: (0, 0)),
        ],
        out_specs=pl.BlockSpec((1, 1, LANES), lambda n: (n, 0, 0)),
        scratch_shapes=[
            pltpu.VMEM((H + 2, W_S, Cin), jnp.float32),   # padded input image
            pltpu.VMEM((H + 2, W_S, C1), jnp.float32),    # padded f1
        ],
        compiler_params=pltpu.CompilerParams(
            dimension_semantics=("parallel",)),  # batch -> 2 TCs on v7x
    )(x_nhwc, w1r, b1, w2r, b2, wl_pad, bl_pad)


@functools.partial(jax.jit, static_argnames=("core_output_index",))
def model_wrapper_forward(x_nchw, params, core_output_index=1):
    # layout: NCHW (PyTorch) -> NHWC so channels map to the TPU lane axis
    x = jnp.transpose(x_nchw, (0, 2, 3, 1)).astype(jnp.float32)

    cin, c1 = params["w1"].shape[2], params["w1"].shape[3]
    c2 = params["w2"].shape[3]
    num_classes = params["wl"].shape[-1]

    # one-time weight re-layout (XLA side, outside the kernel):
    #  * conv taps flattened so each conv is a single K=9*Cin contraction
    #  * head weight/bias padded to a lane-dense 128-wide logits slab
    w1r = params["w1"].reshape(9 * cin, c1)
    w2r = params["w2"].reshape(9 * c1, c2)
    wl_pad = jnp.pad(params["wl"], ((0, 0), (0, LANES - num_classes)))
    bl_pad = jnp.pad(params["bl"], ((0, 0), (0, LANES - num_classes)))

    # The fused kernel is specialized for the module's default configuration:
    # attached_part reads core(x)[1] (the deeper feature map f2).
    if core_output_index not in (1, -1):
        # TODO(synk): non-default core_output_index (including the list-valued
        # form out[i][j-1]) needs a differently-shaped attached head; only the
        # constructed default (index=1) is implemented as a fused kernel.
        raise NotImplementedError("fused kernel is built for core_output_index=1")

    logits_pad = _fused_pallas_forward(x, w1r, params["b1"], w2r, params["b2"],
                                       wl_pad, bl_pad)
    return logits_pad.reshape(x.shape[0], LANES)[:, :num_classes]


def init_params(key, cin=4, c1=8, c2=16, num_classes=10):
    k1, k2, k3, k4, k5, k6 = jax.random.split(key, 6)
    return {
        # conv weights stored as (KH, KW, Cin, Cout)  (PyTorch (O,I,KH,KW) -> (2,3,1,0))
        "w1": jax.random.normal(k1, (3, 3, cin, c1), jnp.float32) * 0.1,
        "b1": jax.random.normal(k2, (1, c1), jnp.float32) * 0.1,
        "w2": jax.random.normal(k3, (3, 3, c1, c2), jnp.float32) * 0.1,
        "b2": jax.random.normal(k4, (1, c2), jnp.float32) * 0.1,
        "wl": jax.random.normal(k5, (c2, num_classes), jnp.float32) * 0.1,
        "bl": jax.random.normal(k6, (1, num_classes), jnp.float32) * 0.1,
    }


def _reference_forward(x_nchw, params, core_output_index=1):
    # pure-JAX reference (same math, HIGHEST precision) for a correctness check
    x = jnp.transpose(x_nchw, (0, 2, 3, 1)).astype(jnp.float32)

    def conv(inp, w, b):
        y = jax.lax.conv_general_dilated(
            inp, w, window_strides=(1, 1), padding="SAME",
            dimension_numbers=("NHWC", "HWIO", "NHWC"),
            precision=jax.lax.Precision.HIGHEST)
        return jnp.maximum(y + b.reshape(1, 1, 1, -1), 0.0)

    f1 = conv(x, params["w1"], params["b1"])
    f2 = conv(f1, params["w2"], params["b2"])
    mid = (f1, f2)[core_output_index]
    pooled = jnp.mean(mid, axis=(1, 2))
    return jnp.dot(pooled, params["wl"],
                   precision=jax.lax.Precision.HIGHEST) + params["bl"]


if __name__ == "__main__":
    key = jax.random.PRNGKey(0)
    kx, kp = jax.random.split(key)

    # small shapes consistent with the module: batch=2, channels=4, spatial=16 (NCHW)
    x = jax.random.normal(kx, (2, 4, 16, 16), jnp.float32)
    params = init_params(kp)

    logits = model_wrapper_forward(x, params, core_output_index=1)
    jax.block_until_ready(logits)
    assert logits.shape == (2, 10), logits.shape

    ref = _reference_forward(x, params, core_output_index=1)
    err = float(jnp.max(jnp.abs(logits - ref)))
    assert err < 1e-2, f"max abs error vs reference: {err}"

    print("KERNEL_OK")
</pallas_src>

<mosaic_0001>
module attributes {stable_mosaic.version = 11 : i64} {
  func.func @fused_forward_kernel(%arg0: i32, %arg1: memref<1x16x16x4xf32, #tpu.memory_space<vmem>>, %arg2: memref<36x8xf32, #tpu.memory_space<vmem>>, %arg3: memref<1x8xf32, #tpu.memory_space<vmem>>, %arg4: memref<72x16xf32, #tpu.memory_space<vmem>>, %arg5: memref<1x16xf32, #tpu.memory_space<vmem>>, %arg6: memref<16x128xf32, #tpu.memory_space<vmem>>, %arg7: memref<1x128xf32, #tpu.memory_space<vmem>>, %arg8: memref<1x1x128xf32, #tpu.memory_space<vmem>>, %arg9: memref<18x32x4xf32, #tpu.memory_space<vmem>>, %arg10: memref<18x32x8xf32, #tpu.memory_space<vmem>>) attributes {dimension_semantics = [#tpu.dimension_semantics<parallel>], iteration_bounds = array<i64: 2>, scalar_prefetch = 0 : i64, scratch_operands = 2 : i64, tpu.core_type = #tpu.core_type<tc>, window_params = [{transform_indices = @transform_0, window_bounds = array<i64: 1, 16, 16, 4>}, {pipeline_mode = #tpu.pipeline_mode<synchronous>, transform_indices = @transform_1, window_bounds = array<i64: 36, 8>}, {pipeline_mode = #tpu.pipeline_mode<synchronous>, transform_indices = @transform_2, window_bounds = array<i64: 1, 8>}, {pipeline_mode = #tpu.pipeline_mode<synchronous>, transform_indices = @transform_3, window_bounds = array<i64: 72, 16>}, {pipeline_mode = #tpu.pipeline_mode<synchronous>, transform_indices = @transform_4, window_bounds = array<i64: 1, 16>}, {pipeline_mode = #tpu.pipeline_mode<synchronous>, transform_indices = @transform_5, window_bounds = array<i64: 16, 128>}, {pipeline_mode = #tpu.pipeline_mode<synchronous>, transform_indices = @transform_6, window_bounds = array<i64: 1, 128>}, {transform_indices = @transform_7, window_bounds = array<i64: 1, 1, 128>}]} {
    %cst = arith.constant 0.000000e+00 : f32
    %0 = vector.broadcast %cst : f32 to vector<18x32x4xf32>
    %c0 = arith.constant 0 : index
    %c0_0 = arith.constant 0 : index
    %c0_1 = arith.constant 0 : index
    %1 = vector.load %arg9[%c0, %c0_0, %c0_1] : memref<18x32x4xf32, #tpu.memory_space<vmem>>, vector<18x32x4xf32>
    tpu.vector_store %arg9[%c0, %c0_0, %c0_1], %0 {strides = array<i32>} : memref<18x32x4xf32, #tpu.memory_space<vmem>>, vector<18x32x4xf32>,
    %c0_2 = arith.constant 0 : index
    %c0_3 = arith.constant 0 : index
    %c0_4 = arith.constant 0 : index
    %c0_5 = arith.constant 0 : index
    %2 = vector.load %arg1[%c0_2, %c0_3, %c0_4, %c0_5] : memref<1x16x16x4xf32, #tpu.memory_space<vmem>>, vector<1x16x16x4xf32>
    %3 = vector.shape_cast %2 : vector<1x16x16x4xf32> to vector<16x16x4xf32>
    %c1 = arith.constant 1 : index
    %c8 = arith.constant 8 : index
    %c0_6 = arith.constant 0 : index
    %4 = vector.load %arg9[%c1, %c8, %c0_6] : memref<18x32x4xf32, #tpu.memory_space<vmem>>, vector<16x16x4xf32>
    tpu.vector_store %arg9[%c1, %c8, %c0_6], %3 {strides = array<i32>} : memref<18x32x4xf32, #tpu.memory_space<vmem>>, vector<16x16x4xf32>,
    %c0_7 = arith.constant 0 : index
    %c0_8 = arith.constant 0 : index
    %c0_9 = arith.constant 0 : index
    %5 = vector.load %arg9[%c0_7, %c0_8, %c0_9] : memref<18x32x4xf32, #tpu.memory_space<vmem>>, vector<18x32x4xf32>
    %6 = vector.extract_strided_slice %5 {offsets = [0, 7, 0], sizes = [16, 16, 4], strides = [1, 1, 1]} : vector<18x32x4xf32> to vector<16x16x4xf32>
    %7 = vector.extract_strided_slice %5 {offsets = [0, 8, 0], sizes = [16, 16, 4], strides = [1, 1, 1]} : vector<18x32x4xf32> to vector<16x16x4xf32>
    %8 = vector.extract_strided_slice %5 {offsets = [0, 9, 0], sizes = [16, 16, 4], strides = [1, 1, 1]} : vector<18x32x4xf32> to vector<16x16x4xf32>
    %9 = vector.extract_strided_slice %5 {offsets = [1, 7, 0], sizes = [16, 16, 4], strides = [1, 1, 1]} : vector<18x32x4xf32> to vector<16x16x4xf32>
    %10 = vector.extract_strided_slice %5 {offsets = [1, 8, 0], sizes = [16, 16, 4], strides = [1, 1, 1]} : vector<18x32x4xf32> to vector<16x16x4xf32>
    %11 = vector.extract_strided_slice %5 {offsets = [1, 9, 0], sizes = [16, 16, 4], strides = [1, 1, 1]} : vector<18x32x4xf32> to vector<16x16x4xf32>
    %12 = vector.extract_strided_slice %5 {offsets = [2, 7, 0], sizes = [16, 16, 4], strides = [1, 1, 1]} : vector<18x32x4xf32> to vector<16x16x4xf32>
    %13 = vector.extract_strided_slice %5 {offsets = [2, 8, 0], sizes = [16, 16, 4], strides = [1, 1, 1]} : vector<18x32x4xf32> to vector<16x16x4xf32>
    %14 = vector.extract_strided_slice %5 {offsets = [2, 9, 0], sizes = [16, 16, 4], strides = [1, 1, 1]} : vector<18x32x4xf32> to vector<16x16x4xf32>
    %15 = tpu.concatenate %6, %7, %8, %9, %10, %11, %12, %13, %14 in 2 : vector<16x16x4xf32>, vector<16x16x4xf32>, vector<16x16x4xf32>, vector<16x16x4xf32>, vector<16x16x4xf32>, vector<16x16x4xf32>, vector<16x16x4xf32>, vector<16x16x4xf32>, vector<16x16x4xf32> -> vector<16x16x36xf32>
    %16 = vector.shape_cast %15 : vector<16x16x36xf32> to vector<256x36xf32>
    %c0_10 = arith.constant 0 : index
    %c0_11 = arith.constant 0 : index
    %17 = vector.load %arg2[%c0_10, %c0_11] : memref<36x8xf32, #tpu.memory_space<vmem>>, vector<36x8xf32>
    %cst_12 = arith.constant dense<0.000000e+00> : vector<256x8xf32>
    %18 = tpu.matmul %16, %17, %cst_12 {dimension_numbers = #tpu.dot_dimension_numbers<[1], [0], [0], [1], [0, 0, 1, 1], [], []>} : vector<256x36xf32>, vector<36x8xf32>, vector<256x8xf32> -> vector<256x8xf32>
    %c0_13 = arith.constant 0 : index
    %c0_14 = arith.constant 0 : index
    %19 = vector.load %arg3[%c0_13, %c0_14] : memref<1x8xf32, #tpu.memory_space<vmem>>, vector<1x8xf32>
    %20 = vector.broadcast %19 : vector<1x8xf32> to vector<256x8xf32>
    %21 = arith.addf %18, %20 : vector<256x8xf32>
    %cst_15 = arith.constant 0.000000e+00 : f32
    %22 = vector.broadcast %cst_15 : f32 to vector<256x8xf32>
    %23 = arith.maximumf %21, %22 : vector<256x8xf32>
    %cst_16 = arith.constant 0.000000e+00 : f32
    %24 = vector.broadcast %cst_16 : f32 to vector<18x32x8xf32>
    %c0_17 = arith.constant 0 : index
    %c0_18 = arith.constant 0 : index
    %c0_19 = arith.constant 0 : index
    %25 = vector.load %arg10[%c0_17, %c0_18, %c0_19] : memref<18x32x8xf32, #tpu.memory_space<vmem>>, vector<18x32x8xf32>
    tpu.vector_store %arg10[%c0_17, %c0_18, %c0_19], %24 {strides = array<i32>} : memref<18x32x8xf32, #tpu.memory_space<vmem>>, vector<18x32x8xf32>,
    %26 = vector.shape_cast %23 : vector<256x8xf32> to vector<16x16x8xf32>
    %c1_20 = arith.constant 1 : index
    %c8_21 = arith.constant 8 : index
    %c0_22 = arith.constant 0 : index
    %27 = vector.load %arg10[%c1_20, %c8_21, %c0_22] : memref<18x32x8xf32, #tpu.memory_space<vmem>>, vector<16x16x8xf32>
    tpu.vector_store %arg10[%c1_20, %c8_21, %c0_22], %26 {strides = array<i32>} : memref<18x32x8xf32, #tpu.memory_space<vmem>>, vector<16x16x8xf32>,
    %c0_23 = arith.constant 0 : index
    %c0_24 = arith.constant 0 : index
    %c0_25 = arith.constant 0 : index
    %28 = vector.load %arg10[%c0_23, %c0_24, %c0_25] : memref<18x32x8xf32, #tpu.memory_space<vmem>>, vector<18x32x8xf32>
    %29 = vector.extract_strided_slice %28 {offsets = [0, 7, 0], sizes = [16, 16, 8], strides = [1, 1, 1]} : vector<18x32x8xf32> to vector<16x16x8xf32>
    %30 = vector.extract_strided_slice %28 {offsets = [0, 8, 0], sizes = [16, 16, 8], strides = [1, 1, 1]} : vector<18x32x8xf32> to vector<16x16x8xf32>
    %31 = vector.extract_strided_slice %28 {offsets = [0, 9, 0], sizes = [16, 16, 8], strides = [1, 1, 1]} : vector<18x32x8xf32> to vector<16x16x8xf32>
    %32 = vector.extract_strided_slice %28 {offsets = [1, 7, 0], sizes = [16, 16, 8], strides = [1, 1, 1]} : vector<18x32x8xf32> to vector<16x16x8xf32>
    %33 = vector.extract_strided_slice %28 {offsets = [1, 8, 0], sizes = [16, 16, 8], strides = [1, 1, 1]} : vector<18x32x8xf32> to vector<16x16x8xf32>
    %34 = vector.extract_strided_slice %28 {offsets = [1, 9, 0], sizes = [16, 16, 8], strides = [1, 1, 1]} : vector<18x32x8xf32> to vector<16x16x8xf32>
    %35 = vector.extract_strided_slice %28 {offsets = [2, 7, 0], sizes = [16, 16, 8], strides = [1, 1, 1]} : vector<18x32x8xf32> to vector<16x16x8xf32>
    %36 = vector.extract_strided_slice %28 {offsets = [2, 8, 0], sizes = [16, 16, 8], strides = [1, 1, 1]} : vector<18x32x8xf32> to vector<16x16x8xf32>
    %37 = vector.extract_strided_slice %28 {offsets = [2, 9, 0], sizes = [16, 16, 8], strides = [1, 1, 1]} : vector<18x32x8xf32> to vector<16x16x8xf32>
    %38 = tpu.concatenate %29, %30, %31, %32, %33, %34, %35, %36, %37 in 2 : vector<16x16x8xf32>, vector<16x16x8xf32>, vector<16x16x8xf32>, vector<16x16x8xf32>, vector<16x16x8xf32>, vector<16x16x8xf32>, vector<16x16x8xf32>, vector<16x16x8xf32>, vector<16x16x8xf32> -> vector<16x16x72xf32>
    %39 = vector.shape_cast %38 : vector<16x16x72xf32> to vector<256x72xf32>
    %c0_26 = arith.constant 0 : index
    %c0_27 = arith.constant 0 : index
    %40 = vector.load %arg4[%c0_26, %c0_27] : memref<72x16xf32, #tpu.memory_space<vmem>>, vector<72x16xf32>
    %cst_28 = arith.constant dense<0.000000e+00> : vector<256x16xf32>
    %41 = tpu.matmul %39, %40, %cst_28 {dimension_numbers = #tpu.dot_dimension_numbers<[1], [0], [0], [1], [0, 0, 1, 1], [], []>} : vector<256x72xf32>, vector<72x16xf32>, vector<256x16xf32> -> vector<256x16xf32>
    %c0_29 = arith.constant 0 : index
    %c0_30 = arith.constant 0 : index
    %42 = vector.load %arg5[%c0_29, %c0_30] : memref<1x16xf32, #tpu.memory_space<vmem>>, vector<1x16xf32>
    %43 = vector.broadcast %42 : vector<1x16xf32> to vector<256x16xf32>
    %44 = arith.addf %41, %43 : vector<256x16xf32>
    %cst_31 = arith.constant 0.000000e+00 : f32
    %45 = vector.broadcast %cst_31 : f32 to vector<256x16xf32>
    %46 = arith.maximumf %44, %45 : vector<256x16xf32>
    %cst_32 = arith.constant dense<0.000000e+00> : vector<16xf32>
    %47 = vector.multi_reduction <add>, %46, %cst_32 [0] : vector<256x16xf32> to vector<16xf32>
    %48 = vector.shape_cast %47 : vector<16xf32> to vector<1x16xf32>
    %cst_33 = arith.constant 2.560000e+02 : f32
    %49 = vector.broadcast %cst_33 : f32 to vector<1x16xf32>
    %50 = arith.divf %48, %49 : vector<1x16xf32>
    %c0_34 = arith.constant 0 : index
    %c0_35 = arith.constant 0 : index
    %51 = vector.load %arg6[%c0_34, %c0_35] : memref<16x128xf32, #tpu.memory_space<vmem>>, vector<16x128xf32>
    %cst_36 = arith.constant dense<0.000000e+00> : vector<1x128xf32>
    %52 = tpu.matmul %50, %51, %cst_36 {dimension_numbers = #tpu.dot_dimension_numbers<[1], [0], [0], [1], [0, 0, 1, 1], [], []>} : vector<1x16xf32>, vector<16x128xf32>, vector<1x128xf32> -> vector<1x128xf32>
    %c0_37 = arith.constant 0 : index
    %c0_38 = arith.constant 0 : index
    %53 = vector.load %arg7[%c0_37, %c0_38] : memref<1x128xf32, #tpu.memory_space<vmem>>, vector<1x128xf32>
    %54 = arith.addf %52, %53 : vector<1x128xf32>
    %c0_39 = arith.constant 0 : index
    %c0_40 = arith.constant 0 : index
    %c0_41 = arith.constant 0 : index
    %55 = vector.load %arg8[%c0_39, %c0_40, %c0_41] : memref<1x1x128xf32, #tpu.memory_space<vmem>>, vector<1x1x128xf32>
    %56 = vector.shape_cast %55 : vector<1x1x128xf32> to vector<1x128xf32>
    %57 = vector.shape_cast %54 : vector<1x128xf32> to vector<1x1x128xf32>
    tpu.vector_store %arg8[%c0_39, %c0_40, %c0_41], %57 {strides = array<i32>} : memref<1x1x128xf32, #tpu.memory_space<vmem>>, vector<1x1x128xf32>,
    return
  }
  func.func @transform_0(%arg0: i32) -> (i32, i32, i32, i32) {
    %c0_i32 = arith.constant 0 : i32
    %c0_i32_0 = arith.constant 0 : i32
    %c0_i32_1 = arith.constant 0 : i32
    %c0_i32_2 = arith.constant 0 : i32
    return %arg0, %c0_i32, %c0_i32_0, %c0_i32_1 : i32, i32, i32, i32
  }
  func.func @transform_1(%arg0: i32) -> (i32, i32) {
    %c0_i32 = arith.constant 0 : i32
    %c0_i32_0 = arith.constant 0 : i32
    %c0_i32_1 = arith.constant 0 : i32
    return %c0_i32, %c0_i32_0 : i32, i32
  }
  func.func @transform_2(%arg0: i32) -> (i32, i32) {
    %c0_i32 = arith.constant 0 : i32
    %c0_i32_0 = arith.constant 0 : i32
    %c0_i32_1 = arith.constant 0 : i32
    return %c0_i32, %c0_i32_0 : i32, i32
  }
  func.func @transform_3(%arg0: i32) -> (i32, i32) {
    %c0_i32 = arith.constant 0 : i32
    %c0_i32_0 = arith.constant 0 : i32
    %c0_i32_1 = arith.constant 0 : i32
    return %c0_i32, %c0_i32_0 : i32, i32
  }
  func.func @transform_4(%arg0: i32) -> (i32, i32) {
    %c0_i32 = arith.constant 0 : i32
    %c0_i32_0 = arith.constant 0 : i32
    %c0_i32_1 = arith.constant 0 : i32
    return %c0_i32, %c0_i32_0 : i32, i32
  }
  func.func @transform_5(%arg0: i32) -> (i32, i32) {
    %c0_i32 = arith.constant 0 : i32
    %c0_i32_0 = arith.constant 0 : i32
    %c0_i32_1 = arith.constant 0 : i32
    return %c0_i32, %c0_i32_0 : i32, i32
  }
  func.func @transform_6(%arg0: i32) -> (i32, i32) {
    %c0_i32 = arith.constant 0 : i32
    %c0_i32_0 = arith.constant 0 : i32
    %c0_i32_1 = arith.constant 0 : i32
    return %c0_i32, %c0_i32_0 : i32, i32
  }
  func.func @transform_7(%arg0: i32) -> (i32, i32, i32) {
    %c0_i32 = arith.constant 0 : i32
    %c0_i32_0 = arith.constant 0 : i32
    %c0_i32_1 = arith.constant 0 : i32
    return %arg0, %c0_i32, %c0_i32_0 : i32, i32, i32
  }
}

</mosaic_0001>

<bundles_post_ra>
// kernel: model_wrapper_forward.1
= control target key start
LH: loop header
LB: loop body
LE: loop exit
PB: predicated region body
PF: predicated region fallthrough
CT: control target
= control target key end

     0   :  { %12 = vsyncpa [#allocation5], 0  ;;  %s11781_s0 = inlined_call_operand.vmem [shape: f32[2,16,16,4], index: 0, kind: input, shape index: {}]   ;;  %s11782_s1 = inlined_call_operand.vmem [shape: f32[36,8], index: 1, kind: input, shape index: {}]   ;;  %s11783_s2 = inlined_call_operand.vmem [shape: f32[1,8], index: 2, kind: input, shape index: {}]   ;;  %s11784_s3 = inlined_call_operand.vmem [shape: f32[72,16], index: 3, kind: input, shape index: {}]   ;;  %s11785_s4 = inlined_call_operand.vmem [shape: f32[1,16], index: 4, kind: input, shape index: {}]   ;;  %s11786_s5 = inlined_call_operand.vmem [shape: f32[16,128], index: 5, kind: input, shape index: {}]   ;;  %s11787_s6 = inlined_call_operand.vmem [shape: f32[1,128], index: 6, kind: input, shape index: {}]   ;;  %s11788_s7 = inlined_call_operand.hbm [shape: f32[2,1,128], index: 7, kind: output, shape index: {}]  }
   0x1   :  { %14 = vsyncpa [#allocation5 + $0x1], 0  ;;  %s5867_s24 = smov 0   ;;  %s5869_s25 = smov 0  }
   0x2   :  { %s5871_s26 = smov 0   ;;  %s5873_s27 = smov 0  }
   0x3 LB: > { %s5888_s28 = sadd.s32 4294967295, %s5810_s27   ;;  %s5327_s29 = sadd.s32 4294967294, %s5810_s27   ;;  %s5810_s27 = sphi %s5873_s27, %s13237_s27   ;;  %s5806_s26 = sphi %s5871_s26, %s13236_s26   ;;  %s5802_s25 = sphi %s5869_s25, %s13235_s25   ;;  %s5798_s24 = sphi %s5867_s24, %s13234_s24  }
   0x4   : > { %s5892_s30 = sadd.s32 1, %s5810_s27   ;;  %s179_s8 = sadd.s32 1, %s5806_s26 }
   0x5   : > { %s176_s9 = ssub.s32 %s5810_s27, %s5892_s30  ;;  %p189_p0 = scmp.ne.s32.totalorder %s5806_s26, %s5802_s25 }
   0x6   : > { %p177_p1 = scmp.eq.s32.totalorder %s176_s9, 0  ;;  %p190_p2 = scmp.eq.s32.totalorder %s5888_s28, 1 }
   0x7   : > { %p195_p3 = scmp.ne.s32.totalorder %s5802_s25, %s5798_s24  ;;  %p196_p4 = scmp.eq.s32.totalorder %s5327_s29, 1 }
   0x8   : > { %s5903_s10 = scalar_select %p177_p1, %s5806_s26, %s179_s8  }
   0x9   : > { %p5905_p5 = por %p190_p2, %p189_p0  ;;  %p5909_p6 = por %p196_p4, %p195_p3 }
   0xa   : > { %p5330_p7 = scmp.ge.s32.totalorder %s5810_s27, 1  ;;  %p240_p8 = scmp.lt.s32.totalorder %s5810_s27, 3 }
   0xc   : > { %p241_p9 = pnand %p5330_p7, %p240_p8 }
   0xe   : > { %244 = sbr.rel (%p241_p9) target bundleno = 2386 (0x952), region = 48 }
  0x13   : > { %vm276_vm0 = vcmask 31744   ;;  %p271_p10 = scmp.lt.s32.totalorder %s5888_s28, 1  ;;  %v11789_v0 = vmov 0.0   ;;  %vm518_vm1 = vcmask 1046528   ;;  %s5813_s18 = smov 4   ;;  %vm1903_vm2 = vcmask 64512  }
  0x14   : > { %278 = vst.msk [vmem:[#allocation2 + $0x8] sm:$0xff] %vm276_vm0, %v11789_v0  ;;  %277 = vst.msk [vmem:[#allocation2] sm:$0xff] %vm276_vm0, %v11789_v0  ;;  %vm727_vm3 = vcmask 1045504   ;;  %s5814_s19 = smov 8   ;;  %s5815_s20 = smov 12   ;;  %vm2452_vm4 = vcmask 1043456  }
  0x15   : > { %279 = vst.msk [vmem:[#allocation2 + $0x10] sm:$0xff] %vm276_vm0, %v11789_v0  ;;  %280 = vst.msk [vmem:[#allocation2 + $0x18] sm:$0xff] %vm276_vm0, %v11789_v0  ;;  %s272_s13 = scalar_select %p271_p10, %s5888_s28, 1  ;;  %vm1952_vm5 = vcmask 97280   ;;  %vm2001_vm6 = vcmask 130048   ;;  %vm2050_vm7 = vcmask 162816  }
  0x16   : > { %281 = vst.msk [vmem:[#allocation2 + $0x20] sm:$0xff] %vm276_vm0, %v11789_v0  ;;  %282 = vst.msk [vmem:[#allocation2 + $0x28] sm:$0xff] %vm276_vm0, %v11789_v0  ;;  %s5816_s21 = smov 16   ;;  %s5817_s22 = smov 20   ;;  %vm2099_vm8 = vcmask 195584   ;;  %vm2148_vm9 = vcmask 228352  }
  0x17   : > { %283 = vst.msk [vmem:[#allocation2 + $0x30] sm:$0xff] %vm276_vm0, %v11789_v0  ;;  %284 = vst.msk [vmem:[#allocation2 + $0x38] sm:$0xff] %vm276_vm0, %v11789_v0  ;;  %s5404_s14 = sshll.u32 %s272_s13, 8  ;;  %s5818_s23 = smov 24   ;;  %vm2197_vm10 = vcmask 261120   ;;  %vm2294_vm11 = vcmask 1040384  }
  0x18   : > { %285 = vst.msk [vmem:[#allocation2 + $0x40] sm:$0xff] %vm276_vm0, %v11789_v0  ;;  %286 = vst.msk [vmem:[#allocation2 + $0x48] sm:$0xff] %vm276_vm0, %v11789_v0  ;;  %s6066_s17 = scalar_lea.vmem %s11781_s0, %s5404_s14  ;;  %s5819_s29 = smov 28   ;;  %vm2387_vm12 = vcmask 293888   ;;  %vm4449_vm13 = vcmask 326656   ;;  %vm4498_vm14 = vcmask 392192  }
  0x19   : > { %287 = vst.msk [vmem:[#allocation2 + $0x50] sm:$0xff] %vm276_vm0, %v11789_v0  ;;  %288 = vst.msk [vmem:[#allocation2 + $0x58] sm:$0xff] %vm276_vm0, %v11789_v0  ;;  %v349_v1 = vld [vmem:[%s6066_s17] sm:$0xff]  ;;  %v351_v2 = vld [vmem:[%s6066_s17 + $0x10] sm:$0xff]  ;;  %s5820_s8 = smov 32   ;;  %s5822_s14 = smov 48  }
  0x1a   : > { %289 = vst.msk [vmem:[#allocation2 + $0x60] sm:$0xff] %vm276_vm0, %v11789_v0  ;;  %290 = vst.msk [vmem:[#allocation2 + $0x68] sm:$0xff] %vm276_vm0, %v11789_v0  ;;  %v350_v3 = vld [vmem:[%s6066_s17 + $0x8] sm:$0xff]  ;;  %v352_v4 = vld [vmem:[%s6066_s17 + $0x18] sm:$0xff]  ;;  %vm4547_vm15 = vcmask 457728   ;;  %s269_s15 = sand.u32 1, %s5802_s25  }
  0x1b   : > { %291 = vst.msk [vmem:[#allocation2 + $0x70] sm:$0xff] %vm276_vm0, %v11789_v0  ;;  %292 = vst.msk [vmem:[#allocation2 + $0x78] sm:$0xff] %vm276_vm0, %v11789_v0  ;;  %v353_v5 = vld [vmem:[%s6066_s17 + $0x20] sm:$0xff]  ;;  %v354_v6 = vld [vmem:[%s6066_s17 + $0x28] sm:$0xff] }
  0x1c   : > { %293 = vst.msk [vmem:[#allocation2 + $0x80] sm:$0xff] %vm276_vm0, %v11789_v0  ;;  %294 = vst.msk [vmem:[#allocation2 + $0x88] sm:$0xff] %vm276_vm0, %v11789_v0  ;;  %v6077_v7 = vld [vmem:[#allocation2 + $0x8] sm:$0xff]  ;;  %v6079_v8 = vld [vmem:[#allocation2 + $0x10] sm:$0xff] }
  0x1d   : > { %295 = vst.msk [vmem:[#allocation2 + $0x90] sm:$0xff] %vm276_vm0, %v11789_v0  ;;  %296 = vst.msk [vmem:[#allocation2 + $0x98] sm:$0xff] %vm276_vm0, %v11789_v0  ;;  %v355_v9 = vld [vmem:[%s6066_s17 + $0x30] sm:$0xff]  ;;  %v519_v10 = vrot.slane %v6077_v7, 1  ;;  %v520_v11 = vrot.slane %v6079_v8, 1  ;;  %v356_v12 = vld [vmem:[%s6066_s17 + $0x38] sm:$0xff] }
  0x1e   : > { %297 = vst.msk [vmem:[#allocation2 + $0xa0] sm:$0xff] %vm276_vm0, %v11789_v0  ;;  %298 = vst.msk [vmem:[#allocation2 + $0xa8] sm:$0xff] %vm276_vm0, %v11789_v0  ;;  %v357_v13 = vld [vmem:[%s6066_s17 + $0x40] sm:$0xff]  ;;  %v358_v14 = vld [vmem:[%s6066_s17 + $0x48] sm:$0xff] }
  0x1f   : > { %299 = vst.msk [vmem:[#allocation2 + $0xb0] sm:$0xff] %vm276_vm0, %v11789_v0  ;;  %300 = vst.msk [vmem:[#allocation2 + $0xb8] sm:$0xff] %vm276_vm0, %v11789_v0  ;;  %v359_v15 = vld [vmem:[%s6066_s17 + $0x50] sm:$0xff]  ;;  %v360_v16 = vld [vmem:[%s6066_s17 + $0x58] sm:$0xff]  ;;  %567 = vrot.lane.b32.xlu0 %v519_v10, %s5813_s18  ;;  %571 = vrot.lane.b32.xlu1 %v520_v11, %s5813_s18  ;;  %v521_v20 = vsel %vm518_vm1, %v519_v10, %v520_v11 }
  0x20   : > { %301 = vst.msk [vmem:[#allocation2 + $0xc0] sm:$0xff] %vm276_vm0, %v11789_v0  ;;  %302 = vst.msk [vmem:[#allocation2 + $0xc8] sm:$0xff] %vm276_vm0, %v11789_v0  ;;  %v361_v17 = vld [vmem:[%s6066_s17 + $0x60] sm:$0xff]  ;;  %v362_v18 = vld [vmem:[%s6066_s17 + $0x68] sm:$0xff] }
  0x21   : > { %303 = vst.msk [vmem:[#allocation2 + $0xd0] sm:$0xff] %vm276_vm0, %v11789_v0  ;;  %304 = vst.msk [vmem:[#allocation2 + $0xd8] sm:$0xff] %vm276_vm0, %v11789_v0  ;;  %v363_v19 = vld [vmem:[%s6066_s17 + $0x70] sm:$0xff]  ;;  %v364_v21 = vld [vmem:[%s6066_s17 + $0x78] sm:$0xff] }
  0x22   : > { %305 = vst.msk [vmem:[#allocation2 + $0xe0] sm:$0xff] %vm276_vm0, %v11789_v0  ;;  %306 = vst.msk [vmem:[#allocation2 + $0xe8] sm:$0xff] %vm276_vm0, %v11789_v0  ;;  %v365_v22 = vld [vmem:[%s6066_s17 + $0x80] sm:$0xff]  ;;  %v366_v23 = vld [vmem:[%s6066_s17 + $0x88] sm:$0xff] }
  0x23   : > { %307 = vst.msk [vmem:[#allocation2 + $0xf0] sm:$0xff] %vm276_vm0, %v11789_v0  ;;  %308 = vst.msk [vmem:[#allocation2 + $0xf8] sm:$0xff] %vm276_vm0, %v11789_v0  ;;  %v367_v24 = vld [vmem:[%s6066_s17 + $0x90] sm:$0xff]  ;;  %v368_v25 = vld [vmem:[%s6066_s17 + $0x98] sm:$0xff]  ;;  %569 = vrot.lane.b32.xlu0 %v521_v20, %s5813_s18 }
  0x24   : > { %309 = vst.msk [vmem:[#allocation2 + $0x100] sm:$0xff] %vm276_vm0, %v11789_v0  ;;  %310 = vst.msk [vmem:[#allocation2 + $0x108] sm:$0xff] %vm276_vm0, %v11789_v0  ;;  %v369_v26 = vld [vmem:[%s6066_s17 + $0xa0] sm:$0xff]  ;;  %v370_v33 = vld [vmem:[%s6066_s17 + $0xa8] sm:$0xff] }
  0x25   : > { %311 = vst.msk [vmem:[#allocation2 + $0x110] sm:$0xff] %vm276_vm0, %v11789_v0  ;;  %312 = vst.msk [vmem:[#allocation2 + $0x118] sm:$0xff] %vm276_vm0, %v11789_v0  ;;  %v371_v34 = vld [vmem:[%s6066_s17 + $0xb0] sm:$0xff]  ;;  %v372_v40 = vld [vmem:[%s6066_s17 + $0xb8] sm:$0xff] }
  0x26   : > { %313 = vst.msk [vmem:[#allocation2 + $0x120] sm:$0xff] %vm276_vm0, %v11789_v0  ;;  %314 = vst.msk [vmem:[#allocation2 + $0x128] sm:$0xff] %vm276_vm0, %v11789_v0  ;;  %v373_v41 = vld [vmem:[%s6066_s17 + $0xc0] sm:$0xff]  ;;  %v374_v42 = vld [vmem:[%s6066_s17 + $0xc8] sm:$0xff] }
  0x27   : > { %315 = vst.msk [vmem:[#allocation2 + $0x130] sm:$0xff] %vm276_vm0, %v11789_v0  ;;  %316 = vst.msk [vmem:[#allocation2 + $0x138] sm:$0xff] %vm276_vm0, %v11789_v0  ;;  %v375_v43 = vld [vmem:[%s6066_s17 + $0xd0] sm:$0xff]  ;;  %v376_v44 = vld [vmem:[%s6066_s17 + $0xd8] sm:$0xff] }
  0x28   : > { %317 = vst.msk [vmem:[#allocation2 + $0x140] sm:$0xff] %vm276_vm0, %v11789_v0  ;;  %318 = vst.msk [vmem:[#allocation2 + $0x148] sm:$0xff] %vm276_vm0, %v11789_v0  ;;  %v377_v45 = vld [vmem:[%s6066_s17 + $0xe0] sm:$0xff]  ;;  %v378_v48 = vld [vmem:[%s6066_s17 + $0xe8] sm:$0xff] }
  0x29   : > { %319 = vst.msk [vmem:[#allocation2 + $0x150] sm:$0xff] %vm276_vm0, %v11789_v0  ;;  %320 = vst.msk [vmem:[#allocation2 + $0x158] sm:$0xff] %vm276_vm0, %v11789_v0 }
  0x2a   : > { %321 = vst.msk [vmem:[#allocation2 + $0x160] sm:$0xff] %vm276_vm0, %v11789_v0  ;;  %322 = vst.msk [vmem:[#allocation2 + $0x168] sm:$0xff] %vm276_vm0, %v11789_v0 }
  0x2b   : > { %323 = vst.msk [vmem:[#allocation2 + $0x170] sm:$0xff] %vm276_vm0, %v11789_v0  ;;  %324 = vst.msk [vmem:[#allocation2 + $0x178] sm:$0xff] %vm276_vm0, %v11789_v0 }
  0x2c   : > { %325 = vst.msk [vmem:[#allocation2 + $0x180] sm:$0xff] %vm276_vm0, %v11789_v0  ;;  %326 = vst.msk [vmem:[#allocation2 + $0x188] sm:$0xff] %vm276_vm0, %v11789_v0 }
  0x2d   : > { %327 = vst.msk [vmem:[#allocation2 + $0x190] sm:$0xff] %vm276_vm0, %v11789_v0  ;;  %328 = vst.msk [vmem:[#allocation2 + $0x198] sm:$0xff] %vm276_vm0, %v11789_v0 }
  0x2e   : > { %329 = vst.msk [vmem:[#allocation2 + $0x1a0] sm:$0xff] %vm276_vm0, %v11789_v0  ;;  %330 = vst.msk [vmem:[#allocation2 + $0x1a8] sm:$0xff] %vm276_vm0, %v11789_v0 }
  0x2f   : > { %331 = vst.msk [vmem:[#allocation2 + $0x1b0] sm:$0xff] %vm276_vm0, %v11789_v0  ;;  %332 = vst.msk [vmem:[#allocation2 + $0x1b8] sm:$0xff] %vm276_vm0, %v11789_v0 }
  0x30   : > { %333 = vst.msk [vmem:[#allocation2 + $0x1c0] sm:$0xff] %vm276_vm0, %v11789_v0  ;;  %334 = vst.msk [vmem:[#allocation2 + $0x1c8] sm:$0xff] %vm276_vm0, %v11789_v0 }
  0x31   : > { %335 = vst.msk [vmem:[#allocation2 + $0x1d0] sm:$0xff] %vm276_vm0, %v11789_v0  ;;  %336 = vst.msk [vmem:[#allocation2 + $0x1d8] sm:$0xff] %vm276_vm0, %v11789_v0 }
  0x32   : > { %337 = vst.msk [vmem:[#allocation2 + $0x1e0] sm:$0xff] %vm276_vm0, %v11789_v0  ;;  %338 = vst.msk [vmem:[#allocation2 + $0x1e8] sm:$0xff] %vm276_vm0, %v11789_v0 }
  0x33   : > { %339 = vst.msk [vmem:[#allocation2 + $0x1f0] sm:$0xff] %vm276_vm0, %v11789_v0  ;;  %340 = vst.msk [vmem:[#allocation2 + $0x1f8] sm:$0xff] %vm276_vm0, %v11789_v0 }
  0x34   : > { %341 = vst.msk [vmem:[#allocation2 + $0x200] sm:$0xff] %vm276_vm0, %v11789_v0  ;;  %342 = vst.msk [vmem:[#allocation2 + $0x208] sm:$0xff] %vm276_vm0, %v11789_v0 }
  0x35   : > { %343 = vst.msk [vmem:[#allocation2 + $0x210] sm:$0xff] %vm276_vm0, %v11789_v0  ;;  %344 = vst.msk [vmem:[#allocation2 + $0x218] sm:$0xff] %vm276_vm0, %v11789_v0 }
  0x36   : > { %345 = vst.msk [vmem:[#allocation2 + $0x220] sm:$0xff] %vm276_vm0, %v11789_v0  ;;  %346 = vst.msk [vmem:[#allocation2 + $0x228] sm:$0xff] %vm276_vm0, %v11789_v0 }
  0x37   : > { %347 = vst.msk [vmem:[#allocation2 + $0x230] sm:$0xff] %vm276_vm0, %v11789_v0  ;;  %348 = vst.msk [vmem:[#allocation2 + $0x238] sm:$0xff] %vm276_vm0, %v11789_v0 }
  0x38   : > { %382 = vst.msk [vmem:[#allocation2 + $0x28] sm:$0xff] %vm276_vm0, %v349_v1  ;;  %384 = vst.msk [vmem:[#allocation2 + $0x48] sm:$0xff] %vm276_vm0, %v351_v2 }
  0x39   : > { %383 = vst.msk [vmem:[#allocation2 + $0x30] sm:$0xff] %vm276_vm0, %v350_v3  ;;  %385 = vst.msk [vmem:[#allocation2 + $0x50] sm:$0xff] %vm276_vm0, %v352_v4 }
  0x3a   : > { %386 = vst.msk [vmem:[#allocation2 + $0x68] sm:$0xff] %vm276_vm0, %v353_v5  ;;  %387 = vst.msk [vmem:[#allocation2 + $0x70] sm:$0xff] %vm276_vm0, %v354_v6 }
  0x3b   : > { %388 = vst.msk [vmem:[#allocation2 + $0x88] sm:$0xff] %vm276_vm0, %v355_v9  ;;  %389 = vst.msk [vmem:[#allocation2 + $0x90] sm:$0xff] %vm276_vm0, %v356_v12 }
  0x3c   : > { %390 = vst.msk [vmem:[#allocation2 + $0xa8] sm:$0xff] %vm276_vm0, %v357_v13  ;;  %391 = vst.msk [vmem:[#allocation2 + $0xb0] sm:$0xff] %vm276_vm0, %v358_v14 }
  0x3d   : > { %392 = vst.msk [vmem:[#allocation2 + $0xc8] sm:$0xff] %vm276_vm0, %v359_v15  ;;  %393 = vst.msk [vmem:[#allocation2 + $0xd0] sm:$0xff] %vm276_vm0, %v360_v16 }
  0x3e   : > { %394 = vst.msk [vmem:[#allocation2 + $0xe8] sm:$0xff] %vm276_vm0, %v361_v17  ;;  %395 = vst.msk [vmem:[#allocation2 + $0xf0] sm:$0xff] %vm276_vm0, %v362_v18 }
  0x3f   : > { %396 = vst.msk [vmem:[#allocation2 + $0x108] sm:$0xff] %vm276_vm0, %v363_v19  ;;  %397 = vst.msk [vmem:[#allocation2 + $0x110] sm:$0xff] %vm276_vm0, %v364_v21  ;;  %v6116_v27 = vld [vmem:[#allocation2 + $0x28] sm:$0xff] }
  0x40   : > { %398 = vst.msk [vmem:[#allocation2 + $0x128] sm:$0xff] %vm276_vm0, %v365_v22  ;;  %399 = vst.msk [vmem:[#allocation2 + $0x130] sm:$0xff] %vm276_vm0, %v366_v23  ;;  %v6118_v28 = vld [vmem:[#allocation2 + $0x48] sm:$0xff]  ;;  %v6120_v29 = vld [vmem:[#allocation2 + $0x30] sm:$0xff]  ;;  %v6127_v30 = vrot.slane %v6116_v27, 1 }
  0x41   : > { %400 = vst.msk [vmem:[#allocation2 + $0x148] sm:$0xff] %vm276_vm0, %v367_v24  ;;  %401 = vst.msk [vmem:[#allocation2 + $0x150] sm:$0xff] %vm276_vm0, %v368_v25  ;;  %v6130_v31 = vrot.slane %v6118_v28, 1  ;;  %v6132_v32 = vld [vmem:[#allocation2 + $0x50] sm:$0xff]  ;;  %v6139_v35 = vrot.slane %v6120_v29, 1  ;;  %v6143_v36 = vld [vmem:[#allocation2 + $0x68] sm:$0xff] }
  0x42   : > { %402 = vst.msk [vmem:[#allocation2 + $0x168] sm:$0xff] %vm276_vm0, %v369_v26  ;;  %573 = vrot.lane.b32.xlu1 %v6127_v30, %s5813_s18  ;;  %403 = vst.msk [vmem:[#allocation2 + $0x170] sm:$0xff] %vm276_vm0, %v370_v33  ;;  %v6148_v37 = vrot.slane %v6132_v32, 1  ;;  %v6153_v38 = vrot.slane %v6143_v36, 1  ;;  %v6155_v39 = vld [vmem:[#allocation2 + $0x70] sm:$0xff]  ;;  %v6190_v50 = vld [vmem:[#allocation2 + $0x88] sm:$0xff] }
  0x43   : > { %404 = vst.msk [vmem:[#allocation2 + $0x188] sm:$0xff] %vm276_vm0, %v371_v34  ;;  %579 = vrot.lane.b32.xlu0 %v6130_v31, %s5813_s18  ;;  %405 = vst.msk [vmem:[#allocation2 + $0x190] sm:$0xff] %vm276_vm0, %v372_v40  ;;  %v6171_v46 = vsel %vm518_vm1, %v6127_v30, %v6139_v35  ;;  %v6174_v47 = vrot.slane %v6155_v39, 1  ;;  %v6192_v51 = vld [vmem:[#allocation2 + $0x90] sm:$0xff]  ;;  %v6202_v53 = vrot.slane %v6190_v50, 1  ;;  %v6211_v55 = vld [vmem:[#allocation2 + $0xa8] sm:$0xff] }
  0x44   : > { %406 = vst.msk [vmem:[#allocation2 + $0x1a8] sm:$0xff] %vm276_vm0, %v373_v41  ;;  %407 = vst.msk [vmem:[#allocation2 + $0x1b0] sm:$0xff] %vm276_vm0, %v374_v42  ;;  %v6186_v49 = vsel %vm518_vm1, %v6130_v31, %v6148_v37  ;;  %v6205_v54 = vrot.slane %v6192_v51, 1  ;;  %v6213_v56 = vld [vmem:[#allocation2 + $0xb0] sm:$0xff]  ;;  %v6223_v58 = vrot.slane %v6211_v55, 1  ;;  %v6232_v60 = vld [vmem:[#allocation2 + $0xc8] sm:$0xff] }
  0x45   : > { %408 = vst.msk [vmem:[#allocation2 + $0x1c8] sm:$0xff] %vm276_vm0, %v375_v43  ;;  %409 = vst.msk [vmem:[#allocation2 + $0x1d0] sm:$0xff] %vm276_vm0, %v376_v44  ;;  %v6197_v52 = vsel %vm518_vm1, %v6153_v38, %v6174_v47  ;;  %v6226_v59 = vrot.slane %v6213_v56, 1  ;;  %v6234_v61 = vld [vmem:[#allocation2 + $0xd0] sm:$0xff]  ;;  %v6244_v63 = vrot.slane %v6232_v60, 1  ;;  %v6253_v2 = vld [vmem:[#allocation2 + $0xe8] sm:$0xff] }
  0x46   : > { %577 = vrot.lane.b32.xlu1 %v6139_v35, %s5813_s18  ;;  %410 = vst.msk [vmem:[#allocation2 + $0x1e8] sm:$0xff] %vm276_vm0, %v377_v45  ;;  %411 = vst.msk [vmem:[#allocation2 + $0x1f0] sm:$0xff] %vm276_vm0, %v378_v48  ;;  %v6218_v57 = vsel %vm518_vm1, %v6202_v53, %v6205_v54  ;;  %v6247_v1 = vrot.slane %v6234_v61, 1  ;;  %v6255_v3 = vld [vmem:[#allocation2 + $0xf0] sm:$0xff]  ;;  %v6265_v5 = vrot.slane %v6253_v2, 1  ;;  %v6274_v9 = vld [vmem:[#allocation2 + $0x108] sm:$0xff] }
  0x47   : > { %583 = vrot.lane.b32.xlu0 %v6148_v37, %s5813_s18  ;;  %v6239_v62 = vsel %vm518_vm1, %v6223_v58, %v6226_v59  ;;  %v6268_v6 = vrot.slane %v6255_v3, 1  ;;  %v6276_v10 = vld [vmem:[#allocation2 + $0x110] sm:$0xff]  ;;  %v6286_v12 = vrot.slane %v6274_v9, 1  ;;  %v6295_v14 = vld [vmem:[#allocation2 + $0x128] sm:$0xff] }
  0x48   : > { %v6260_v4 = vsel %vm518_vm1, %v6244_v63, %v6247_v1  ;;  %v6289_v13 = vrot.slane %v6276_v10, 1  ;;  %v6297_v15 = vld [vmem:[#allocation2 + $0x130] sm:$0xff]  ;;  %v6307_v17 = vrot.slane %v6295_v14, 1  ;;  %v6316_v19 = vld [vmem:[#allocation2 + $0x148] sm:$0xff] }
  0x49   : > { %v6281_v11 = vsel %vm518_vm1, %v6265_v5, %v6268_v6  ;;  %v6310_v18 = vrot.slane %v6297_v15, 1  ;;  %v6318_v20 = vld [vmem:[#allocation2 + $0x150] sm:$0xff]  ;;  %v6328_v22 = vrot.slane %v6316_v19, 1  ;;  %v6337_v24 = vld [vmem:[#allocation2 + $0x168] sm:$0xff] }
  0x4a   : > { %585 = vrot.lane.b32.xlu1 %v6153_v38, %s5813_s18  ;;  %12060 = vst [vmem:[#allocation7_spill] sm:$0xff] %v6289_v13  ;;  %v6302_v16 = vsel %vm518_vm1, %v6286_v12, %v6289_v13  ;;  %12062 = vst [vmem:[#allocation9_spill] sm:$0xff] %v6307_v17  ;;  %v6331_v23 = vrot.slane %v6318_v20, 1  ;;  %v6339_v25 = vld [vmem:[#allocation2 + $0x170] sm:$0xff]  ;;  %v6349_v33 = vrot.slane %v6337_v24, 1  ;;  %v6358_v40 = vld [vmem:[#allocation2 + $0x188] sm:$0xff] }
  0x4b   : > { %575 = vrot.lane.b32.xlu0 %v6171_v46, %s5813_s18  ;;  %12061 = vst [vmem:[#allocation8_spill] sm:$0xff] %v6302_v16  ;;  %12063 = vst [vmem:[#allocation10_spill] sm:$0xff] %v6310_v18  ;;  %v6323_v21 = vsel %vm518_vm1, %v6307_v17, %v6310_v18  ;;  %v6352_v34 = vrot.slane %v6339_v25, 1  ;;  %v6360_v41 = vld [vmem:[#allocation2 + $0x190] sm:$0xff]  ;;  %v6370_v43 = vrot.slane %v6358_v40, 1  ;;  %v6379_v45 = vld [vmem:[#allocation2 + $0x1a8] sm:$0xff] }
  0x4c   : > { %12064 = vst [vmem:[#allocation11_spill] sm:$0xff] %v6323_v21  ;;  %12065 = vst [vmem:[#allocation12_spill] sm:$0xff] %v6328_v22  ;;  %v6344_v26 = vsel %vm518_vm1, %v6328_v22, %v6331_v23  ;;  %v6373_v44 = vrot.slane %v6360_v41, 1  ;;  %v6381_v48 = vld [vmem:[#allocation2 + $0x1b0] sm:$0xff] }
  0x4d   : > { %12066 = vst [vmem:[#allocation13_spill] sm:$0xff] %v6331_v23  ;;  %12067 = vst [vmem:[#allocation14_spill] sm:$0xff] %v6344_v26  ;;  %v6365_v42 = vsel %vm518_vm1, %v6349_v33, %v6352_v34 }
  0x4e   : > { %581 = vrot.lane.b32.xlu1 %v6186_v49, %s5813_s18  ;;  %12068 = vst [vmem:[#allocation15_spill] sm:$0xff] %v6349_v33  ;;  %12069 = vst [vmem:[#allocation16_spill] sm:$0xff] %v6352_v34  ;;  %v6386_v0 = vsel %vm518_vm1, %v6370_v43, %v6373_v44 }
  0x4f   : > { %587 = vrot.lane.b32.xlu0 %v6197_v52, %s5813_s18  ;;  %12070 = vst [vmem:[#allocation17_spill] sm:$0xff] %v6365_v42  ;;  %12071 = vst [vmem:[#allocation18_spill] sm:$0xff] %v6370_v43 }
  0x50   : > { %12072 = vst [vmem:[#allocation19_spill] sm:$0xff] %v6373_v44  ;;  %12073 = vst [vmem:[#allocation20_spill] sm:$0xff] %v6386_v0 }
  0x52   : > { %589 = vrot.lane.b32.xlu1 %v6174_v47, %s5813_s18 }
  0x53   : > { %591 = vrot.lane.b32.xlu0 %v6202_v53, %s5813_s18 }
  0x56   : > { %593 = vrot.lane.b32.xlu1 %v6218_v57, %s5813_s18 }
  0x57   : > { %595 = vrot.lane.b32.xlu0 %v6205_v54, %s5813_s18 }
  0x5a   : > { %597 = vrot.lane.b32.xlu1 %v6223_v58, %s5813_s18 }
  0x5b   : > { %599 = vrot.lane.b32.xlu0 %v6239_v62, %s5813_s18 }
  0x5e   : > { %601 = vrot.lane.b32.xlu1 %v6226_v59, %s5813_s18 }
  0x5f   : > { %603 = vrot.lane.b32.xlu0 %v6244_v63, %s5813_s18 }
  0x62   : > { %605 = vrot.lane.b32.xlu1 %v6260_v4, %s5813_s18 }
  0x63   : > { %607 = vrot.lane.b32.xlu0 %v6247_v1, %s5813_s18 }
  0x66   : > { %609 = vrot.lane.b32.xlu1 %v6265_v5, %s5813_s18 }
  0x67   : > { %611 = vrot.lane.b32.xlu0 %v6281_v11, %s5813_s18 }
  0x6a   : > { %613 = vrot.lane.b32.xlu1 %v6268_v6, %s5813_s18 }
  0x6b   : > { %615 = vrot.lane.b32.xlu0 %v6286_v12, %s5813_s18 }
  0x6e   : > { %617 = vrot.lane.b32.xlu1 %v6302_v16, %s5813_s18 }
  0x6f   : > { %619 = vrot.lane.b32.xlu0 %v6289_v13, %s5813_s18  ;;  %v421_v13 = vld [vmem:[#allocation2 + $0x38] sm:$0xff] }
  0x72   : > { %621 = vrot.lane.b32.xlu1 %v6307_v17, %s5813_s18  ;;  %v728_v17 = vrot.slane %v6077_v7, 2  ;;  %v734_v7 = vrot.slane %v6120_v29, 2 }
  0x73   : > { %623 = vrot.lane.b32.xlu0 %v6323_v21, %s5813_s18 }
  0x76   : > { %625 = vrot.lane.b32.xlu1 %v6310_v18, %s5813_s18  ;;  %v12080_v18 = vmov 0.0  }
  0x77   : > { %627 = vrot.lane.b32.xlu0 %v6328_v22, %s5813_s18  ;;  %v6423_v22 = vld [vmem:[#allocation2 + $0x1f0] sm:$0xff]  ;;  %2713 = vst.msk [vmem:[#allocation3] sm:$0xff] %vm1903_vm2, %v12080_v18  ;;  %2714 = vst.msk [vmem:[#allocation3 + $0x8] sm:$0xff] %vm1903_vm2, %v12080_v18 }
  0x78   : > { %2715 = vst.msk [vmem:[#allocation3 + $0x10] sm:$0xff] %vm1903_vm2, %v12080_v18  ;;  %2716 = vst.msk [vmem:[#allocation3 + $0x18] sm:$0xff] %vm1903_vm2, %v12080_v18 }
  0x79   : > { %2717 = vst.msk [vmem:[#allocation3 + $0x20] sm:$0xff] %vm1903_vm2, %v12080_v18  ;;  %2718 = vst.msk [vmem:[#allocation3 + $0x28] sm:$0xff] %vm1903_vm2, %v12080_v18 }
  0x7a   : > { %629 = vrot.lane.b32.xlu1 %v6344_v26, %s5813_s18  ;;  %2719 = vst.msk [vmem:[#allocation3 + $0x30] sm:$0xff] %vm1903_vm2, %v12080_v18  ;;  %2720 = vst.msk [vmem:[#allocation3 + $0x38] sm:$0xff] %vm1903_vm2, %v12080_v18 }
  0x7b   : > { %631 = vrot.lane.b32.xlu0 %v6331_v23, %s5813_s18  ;;  %v6402_v23 = vld [vmem:[#allocation2 + $0x1d0] sm:$0xff]  ;;  %2721 = vst.msk [vmem:[#allocation3 + $0x40] sm:$0xff] %vm1903_vm2, %v12080_v18  ;;  %2722 = vst.msk [vmem:[#allocation3 + $0x48] sm:$0xff] %vm1903_vm2, %v12080_v18 }
  0x7c   : > { %2723 = vst.msk [vmem:[#allocation3 + $0x50] sm:$0xff] %vm1903_vm2, %v12080_v18  ;;  %2724 = vst.msk [vmem:[#allocation3 + $0x58] sm:$0xff] %vm1903_vm2, %v12080_v18 }
  0x7d   : > { %2725 = vst.msk [vmem:[#allocation3 + $0x60] sm:$0xff] %vm1903_vm2, %v12080_v18  ;;  %2726 = vst.msk [vmem:[#allocation3 + $0x68] sm:$0xff] %vm1903_vm2, %v12080_v18 }
  0x7e   : > { %633 = vrot.lane.b32.xlu1 %v6349_v33, %s5813_s18  ;;  %v6391_v33 = vrot.slane %v6379_v45, 1  ;;  %2727 = vst.msk [vmem:[#allocation3 + $0x70] sm:$0xff] %vm1903_vm2, %v12080_v18  ;;  %2728 = vst.msk [vmem:[#allocation3 + $0x78] sm:$0xff] %vm1903_vm2, %v12080_v18 }
  0x7f   : > { %635 = vrot.lane.b32.xlu0 %v6365_v42, %s5813_s18  ;;  %v6394_v42 = vrot.slane %v6381_v48, 1  ;;  %2729 = vst.msk [vmem:[#allocation3 + $0x80] sm:$0xff] %vm1903_vm2, %v12080_v18  ;;  %2730 = vst.msk [vmem:[#allocation3 + $0x88] sm:$0xff] %vm1903_vm2, %v12080_v18 }
  0x80   : > { %12074 = vst [vmem:[#allocation21_spill] sm:$0xff] %v6391_v33  ;;  %2731 = vst.msk [vmem:[#allocation3 + $0x90] sm:$0xff] %vm1903_vm2, %v12080_v18 }
  0x81   : > { %12075 = vst [vmem:[#allocation22_spill] sm:$0xff] %v6394_v42  ;;  %2732 = vst.msk [vmem:[#allocation3 + $0x98] sm:$0xff] %vm1903_vm2, %v12080_v18 }
  0x82   : > { %637 = vrot.lane.b32.xlu1 %v6352_v34, %s5813_s18  ;;  %v6400_v34 = vld [vmem:[#allocation2 + $0x1c8] sm:$0xff]  ;;  %2733 = vst.msk [vmem:[#allocation3 + $0xa0] sm:$0xff] %vm1903_vm2, %v12080_v18  ;;  %2734 = vst.msk [vmem:[#allocation3 + $0xa8] sm:$0xff] %vm1903_vm2, %v12080_v18 }
  0x83   : > { %639 = vrot.lane.b32.xlu0 %v6370_v43, %s5813_s18  ;;  %v6407_v43 = vsel %vm518_vm1, %v6391_v33, %v6394_v42  ;;  %v6412_v26 = vrot.slane %v6400_v34, 1  ;;  %2735 = vst.msk [vmem:[#allocation3 + $0xb0] sm:$0xff] %vm1903_vm2, %v12080_v18  ;;  %2736 = vst.msk [vmem:[#allocation3 + $0xb8] sm:$0xff] %vm1903_vm2, %v12080_v18 }
  0x84   : > { %12076 = vst [vmem:[#allocation23_spill] sm:$0xff] %v6407_v43  ;;  %2737 = vst.msk [vmem:[#allocation3 + $0xc0] sm:$0xff] %vm1903_vm2, %v12080_v18 }
  0x85   : > { %12077 = vst [vmem:[#allocation24_spill] sm:$0xff] %v6412_v26  ;;  %2738 = vst.msk [vmem:[#allocation3 + $0xc8] sm:$0xff] %vm1903_vm2, %v12080_v18 }
  0x86   : > { %641 = vrot.lane.b32.xlu1 %v6386_v0, %s5813_s18  ;;  %v6415_v0 = vrot.slane %v6402_v23, 1  ;;  %2739 = vst.msk [vmem:[#allocation3 + $0xd0] sm:$0xff] %vm1903_vm2, %v12080_v18  ;;  %2740 = vst.msk [vmem:[#allocation3 + $0xd8] sm:$0xff] %vm1903_vm2, %v12080_v18 }
  0x87   : > { %643 = vrot.lane.b32.xlu0 %v6373_v44, %s5813_s18  ;;  %v6421_v44 = vld [vmem:[#allocation2 + $0x1e8] sm:$0xff]  ;;  %2741 = vst.msk [vmem:[#allocation3 + $0xe0] sm:$0xff] %vm1903_vm2, %v12080_v18  ;;  %2742 = vst.msk [vmem:[#allocation3 + $0xe8] sm:$0xff] %vm1903_vm2, %v12080_v18 }
  0x88   : > { %12078 = vst [vmem:[#allocation25_spill] sm:$0xff] %v6415_v0  ;;  %2743 = vst.msk [vmem:[#allocation3 + $0xf0] sm:$0xff] %vm1903_vm2, %v12080_v18 }
  0x89   : > { %2744 = vst.msk [vmem:[#allocation3 + $0xf8] sm:$0xff] %vm1903_vm2, %v12080_v18  ;;  %2745 = vst.msk [vmem:[#allocation3 + $0x100] sm:$0xff] %vm1903_vm2, %v12080_v18 }
  0x8a   : > { %645 = vrot.lane.b32.xlu1 %v6391_v33, %s5813_s18  ;;  %v6428_v33 = vsel %vm518_vm1, %v6412_v26, %v6415_v0  ;;  %2746 = vst.msk [vmem:[#allocation3 + $0x108] sm:$0xff] %vm1903_vm2, %v12080_v18  ;;  %2747 = vst.msk [vmem:[#allocation3 + $0x110] sm:$0xff] %vm1903_vm2, %v12080_v18 }
  0x8b   : > { %647 = vrot.lane.b32.xlu0 %v6407_v43, %s5813_s18  ;;  %12079 = vst [vmem:[#allocation26_spill] sm:$0xff] %v6428_v33  ;;  %2748 = vst.msk [vmem:[#allocation3 + $0x118] sm:$0xff] %vm1903_vm2, %v12080_v18  ;;  %v6580_v43 = vrot.slane %v6423_v22, 1 }
  0x8c   : > { %2749 = vst.msk [vmem:[#allocation3 + $0x120] sm:$0xff] %vm1903_vm2, %v12080_v18  ;;  %2750 = vst.msk [vmem:[#allocation3 + $0x128] sm:$0xff] %vm1903_vm2, %v12080_v18 }
  0x8d   : > { %2751 = vst.msk [vmem:[#allocation3 + $0x130] sm:$0xff] %vm1903_vm2, %v12080_v18  ;;  %2752 = vst.msk [vmem:[#allocation3 + $0x138] sm:$0xff] %vm1903_vm2, %v12080_v18 }
  0x8e   : > { %649 = vrot.lane.b32.xlu1 %v6394_v42, %s5813_s18  ;;  %2753 = vst.msk [vmem:[#allocation3 + $0x140] sm:$0xff] %vm1903_vm2, %v12080_v18  ;;  %2754 = vst.msk [vmem:[#allocation3 + $0x148] sm:$0xff] %vm1903_vm2, %v12080_v18  ;;  %v6577_v42 = vrot.slane %v6421_v44, 1 }
  0x8f   : > { %2755 = vst.msk [vmem:[#allocation3 + $0x150] sm:$0xff] %vm1903_vm2, %v12080_v18  ;;  %2756 = vst.msk [vmem:[#allocation3 + $0x158] sm:$0xff] %vm1903_vm2, %v12080_v18  ;;  %651 = vrot.lane.b32.xlu0 %v6412_v26, %s5813_s18  ;;  %v729_v26 = vrot.slane %v6079_v8, 2  ;;  %v6603_v8 = vrot.slane %v6116_v27, 2 }
  0x90   : > { %2757 = vst.msk [vmem:[#allocation3 + $0x160] sm:$0xff] %vm1903_vm2, %v12080_v18  ;;  %2758 = vst.msk [vmem:[#allocation3 + $0x168] sm:$0xff] %vm1903_vm2, %v12080_v18  ;;  %v6589_v21 = vsel %vm518_vm1, %v6577_v42, %v6580_v43 }
  0x91   : > { %2759 = vst.msk [vmem:[#allocation3 + $0x170] sm:$0xff] %vm1903_vm2, %v12080_v18  ;;  %2760 = vst.msk [vmem:[#allocation3 + $0x178] sm:$0xff] %vm1903_vm2, %v12080_v18 }
  0x92   : > { %2761 = vst.msk [vmem:[#allocation3 + $0x180] sm:$0xff] %vm1903_vm2, %v12080_v18  ;;  %2762 = vst.msk [vmem:[#allocation3 + $0x188] sm:$0xff] %vm1903_vm2, %v12080_v18  ;;  %653 = vrot.lane.b32.xlu1 %v6428_v33, %s5813_s18 }
  0x93   : > { %2763 = vst.msk [vmem:[#allocation3 + $0x190] sm:$0xff] %vm1903_vm2, %v12080_v18  ;;  %2764 = vst.msk [vmem:[#allocation3 + $0x198] sm:$0xff] %vm1903_vm2, %v12080_v18  ;;  %655 = vrot.lane.b32.xlu0 %v6415_v0, %s5813_s18  ;;  %v730_v0 = vsel %vm727_vm3, %v728_v17, %v729_v26 }
  0x94   : > { %2765 = vst.msk [vmem:[#allocation3 + $0x1a0] sm:$0xff] %vm1903_vm2, %v12080_v18  ;;  %2766 = vst.msk [vmem:[#allocation3 + $0x1a8] sm:$0xff] %vm1903_vm2, %v12080_v18 }
  0x95   : > { %2767 = vst.msk [vmem:[#allocation3 + $0x1b0] sm:$0xff] %vm1903_vm2, %v12080_v18  ;;  %2768 = vst.msk [vmem:[#allocation3 + $0x1b8] sm:$0xff] %vm1903_vm2, %v12080_v18 }
  0x96   : > { %2769 = vst.msk [vmem:[#allocation3 + $0x1c0] sm:$0xff] %vm1903_vm2, %v12080_v18  ;;  %2770 = vst.msk [vmem:[#allocation3 + $0x1c8] sm:$0xff] %vm1903_vm2, %v12080_v18  ;;  %657 = vrot.lane.b32.xlu1 %v6577_v42, %s5813_s18 }
  0x97   : > { %2771 = vst.msk [vmem:[#allocation3 + $0x1d0] sm:$0xff] %vm1903_vm2, %v12080_v18  ;;  %2772 = vst.msk [vmem:[#allocation3 + $0x1d8] sm:$0xff] %vm1903_vm2, %v12080_v18  ;;  %659 = vrot.lane.b32.xlu0 %v6589_v21, %s5813_s18 }
  0x98   : > { %2773 = vst.msk [vmem:[#allocation3 + $0x1e0] sm:$0xff] %vm1903_vm2, %v12080_v18  ;;  %2774 = vst.msk [vmem:[#allocation3 + $0x1e8] sm:$0xff] %vm1903_vm2, %v12080_v18 }
  0x99   : > { %2775 = vst.msk [vmem:[#allocation3 + $0x1f0] sm:$0xff] %vm1903_vm2, %v12080_v18  ;;  %2776 = vst.msk [vmem:[#allocation3 + $0x1f8] sm:$0xff] %vm1903_vm2, %v12080_v18 }
  0x9a   : > { %2777 = vst.msk [vmem:[#allocation3 + $0x200] sm:$0xff] %vm1903_vm2, %v12080_v18  ;;  %2778 = vst.msk [vmem:[#allocation3 + $0x208] sm:$0xff] %vm1903_vm2, %v12080_v18  ;;  %661 = vrot.lane.b32.xlu1 %v6580_v43, %s5813_s18  ;;  %s5401_s18 = sshll.u32 %s5888_s28, 4 }
  0x9b   : > { %2779 = vst.msk [vmem:[#allocation3 + $0x210] sm:$0xff] %vm1903_vm2, %v12080_v18  ;;  %2780 = vst.msk [vmem:[#allocation3 + $0x218] sm:$0xff] %vm1903_vm2, %v12080_v18  ;;  %808 = vrot.lane.b32.xlu0 %v728_v17, %s5814_s19  ;;  %v425_v17 = vld [vmem:[#allocation2 + $0x58] sm:$0xff] }
  0x9c   : > { %2781 = vst.msk [vmem:[#allocation3 + $0x220] sm:$0xff] %vm1903_vm2, %v12080_v18  ;;  %2782 = vst.msk [vmem:[#allocation3 + $0x228] sm:$0xff] %vm1903_vm2, %v12080_v18 }
  0x9d   : > { %2783 = vst.msk [vmem:[#allocation3 + $0x230] sm:$0xff] %vm1903_vm2, %v12080_v18  ;;  %2784 = vst.msk [vmem:[#allocation3 + $0x238] sm:$0xff] %vm1903_vm2, %v12080_v18  ;;  %v417_v18 = vld [vmem:[#allocation2 + $0x18] sm:$0xff] }
  0x9e   : > { %12081 = vst [vmem:[#allocation27_spill] sm:$0xff] %v6577_v42  ;;  %12082 = vst [vmem:[#allocation28_spill] sm:$0xff] %v6580_v43  ;;  %v731_v33 = vrot.slane %v417_v18, 2  ;;  %810 = vrot.lane.b32.xlu1 %v730_v0, %s5814_s19  ;;  %v6610_v18 = vsel %vm727_vm3, %v6603_v8, %v734_v7  ;;  %v739_v43 = vrot.slane %v6132_v32, 2  ;;  %v741_v0 = vrot.slane %v425_v17, 2 }
  0x9f   : > { %12083 = vst [vmem:[#allocation29_spill] sm:$0xff] %v6589_v21  ;;  %12084 = vst [vmem:[#allocation30_spill] sm:$0xff] %v6603_v8  ;;  %v736_v21 = vrot.slane %v421_v13, 2 }
  0xa0   : > { %v732_v42 = vsel %vm727_vm3, %v729_v26, %v731_v33  ;;  %12085 = vst [vmem:[#allocation31_spill] sm:$0xff] %v6610_v18  ;;  %v6618_v33 = vrot.slane %v6118_v28, 2 }
  0xa1   : > { %812 = vrot.lane.b32.xlu0 %v732_v42, %s5814_s19  ;;  %v6615_v26 = vsel %vm727_vm3, %v734_v7, %v736_v21  ;;  %v429_v21 = vld [vmem:[#allocation2 + $0x78] sm:$0xff]  ;;  %v6632_v42 = vsel %vm727_vm3, %v739_v43, %v741_v0  ;;  %v6635_v7 = vrot.slane %v6143_v36, 2 }
  0xa2   : > { %814 = vrot.lane.b32.xlu1 %v6603_v8, %s5814_s19  ;;  %12086 = vst [vmem:[#allocation32_spill] sm:$0xff] %v6615_v26  ;;  %12087 = vst [vmem:[#allocation33_spill] sm:$0xff] %v6618_v33  ;;  %v6627_v13 = vsel %vm727_vm3, %v6618_v33, %v739_v43  ;;  %v746_v17 = vrot.slane %v429_v21, 2  ;;  %v6650_v43 = vpop.permute.xlu1 %571  ;;  %v433_v0 = vld [vmem:[#allocation2 + $0x98] sm:$0xff]  ;;  %v6656_v21 = vrot.slane %v6190_v50, 2 }
  0xa3   : > { %12088 = vst [vmem:[#allocation34_spill] sm:$0xff] %v6627_v13  ;;  %12089 = vst [vmem:[#allocation35_spill] sm:$0xff] %v6632_v42 }
  0xa4   : > { %12090 = vst [vmem:[#allocation36_spill] sm:$0xff] %v6635_v7  ;;  %12093 = vst [vmem:[#allocation39_spill] sm:$0xff] %v6650_v43 }
  0xa5   : > { %816 = vrot.lane.b32.xlu0 %v6610_v18, %s5814_s19  ;;  %v744_v18 = vrot.slane %v6155_v39, 2  ;;  %12095 = vst [vmem:[#allocation41_spill] sm:$0xff] %v6656_v21 }
  0xa6   : > { %818 = vrot.lane.b32.xlu1 %v6615_v26, %s5814_s19 }
  0xa7   : > { %v6644_v26 = vsel %vm727_vm3, %v6635_v7, %v744_v18  ;;  %v6653_v8 = vsel %vm727_vm3, %v744_v18, %v746_v17  ;;  %v437_v17 = vld [vmem:[#allocation2 + $0xb8] sm:$0xff] }
  0xa8   : > { %12091 = vst [vmem:[#allocation37_spill] sm:$0xff] %v6644_v26  ;;  %12094 = vst [vmem:[#allocation40_spill] sm:$0xff] %v6653_v8 }
  0xa9   : > { %820 = vrot.lane.b32.xlu0 %v6618_v33, %s5814_s19  ;;  %v6646_v33 = vpop.permute.xlu0 %567 }
  0xaa   : > { %822 = vrot.lane.b32.xlu1 %v6627_v13, %s5814_s19  ;;  %12092 = vst [vmem:[#allocation38_spill] sm:$0xff] %v6646_v33  ;;  %v751_v13 = vrot.slane %v433_v0, 2  ;;  %v6677_v0 = vrot.slane %v6211_v55, 2 }
  0xac   : > { %12100 = vst [vmem:[#allocation46_spill] sm:$0xff] %v6677_v0 }
  0xad   : > { %824 = vrot.lane.b32.xlu0 %v6632_v42, %s5814_s19  ;;  %v749_v42 = vrot.slane %v6192_v51, 2  ;;  %v6661_v16 = vpop.permute.xlu0 %569 }
  0xae   : > { %826 = vrot.lane.b32.xlu1 %v6635_v7, %s5814_s19  ;;  %12096 = vst [vmem:[#allocation42_spill] sm:$0xff] %v6661_v16  ;;  %v754_v16 = vrot.slane %v6213_v56, 2 }
  0xaf   : > { %v6667_v43 = vsel %vm727_vm3, %v6656_v21, %v749_v42  ;;  %v6674_v33 = vsel %vm727_vm3, %v749_v42, %v751_v13 }
  0xb0   : > { %12097 = vst [vmem:[#allocation43_spill] sm:$0xff] %v6667_v43  ;;  %12099 = vst [vmem:[#allocation45_spill] sm:$0xff] %v6674_v33  ;;  %v6690_v13 = vsel %vm727_vm3, %v6677_v0, %v754_v16 }
  0xb1   : > { %828 = vrot.lane.b32.xlu0 %v6644_v26, %s5814_s19  ;;  %12103 = vst [vmem:[#allocation49_spill] sm:$0xff] %v6690_v13 }
  0xb2   : > { %830 = vrot.lane.b32.xlu1 %v6653_v8, %s5814_s19  ;;  %v756_v8 = vrot.slane %v437_v17, 2  ;;  %v6700_v17 = vrot.slane %v6232_v60, 2 }
  0xb4   : > { %v6669_v18 = vpop.permute.xlu1 %573  ;;  %12106 = vst [vmem:[#allocation52_spill] sm:$0xff] %v6700_v17 }
  0xb5   : > { %12098 = vst [vmem:[#allocation44_spill] sm:$0xff] %v6669_v18  ;;  %832 = vrot.lane.b32.xlu0 %v6656_v21, %s5814_s19  ;;  %v6680_v26 = vpop.permute.xlu0 %579  ;;  %v441_v18 = vld [vmem:[#allocation2 + $0xd8] sm:$0xff] }
  0xb6   : > { %12101 = vst [vmem:[#allocation47_spill] sm:$0xff] %v6680_v26  ;;  %834 = vrot.lane.b32.xlu1 %v6667_v43, %s5814_s19  ;;  %v6697_v26 = vsel %vm727_vm3, %v754_v16, %v756_v8 }
  0xb7   : > { %12105 = vst [vmem:[#allocation51_spill] sm:$0xff] %v6697_v26 }
  0xb8   : > { %v6684_v7 = vpop.permute.xlu1 %577 }
  0xb9   : > { %12102 = vst [vmem:[#allocation48_spill] sm:$0xff] %v6684_v7  ;;  %836 = vrot.lane.b32.xlu0 %v6674_v33, %s5814_s19  ;;  %v6692_v42 = vpop.permute.xlu0 %583  ;;  %v759_v7 = vrot.slane %v6234_v61, 2  ;;  %v761_v33 = vrot.slane %v441_v18, 2  ;;  %v6723_v18 = vrot.slane %v6253_v2, 2 }
  0xba   : > { %12104 = vst [vmem:[#allocation50_spill] sm:$0xff] %v6692_v42  ;;  %838 = vrot.lane.b32.xlu1 %v6677_v0, %s5814_s19  ;;  %v445_v0 = vld [vmem:[#allocation2 + $0xf8] sm:$0xff] }
  0xbb   : > { %v6713_v16 = vsel %vm727_vm3, %v6700_v17, %v759_v7  ;;  %12112 = vst [vmem:[#allocation58_spill] sm:$0xff] %v6723_v18 }
  0xbc   : > { %v6703_v43 = vpop.permute.xlu1 %585  ;;  %12109 = vst [vmem:[#allocation55_spill] sm:$0xff] %v6713_v16 }
  0xbd   : > { %12107 = vst [vmem:[#allocation53_spill] sm:$0xff] %v6703_v43  ;;  %840 = vrot.lane.b32.xlu0 %v6690_v13, %s5814_s19  ;;  %v6709_v42 = vpop.permute.xlu0 %575  ;;  %v6720_v43 = vsel %vm727_vm3, %v759_v7, %v761_v33  ;;  %v766_v13 = vrot.slane %v445_v0, 2  ;;  %v6746_v0 = vrot.slane %v6274_v9, 2 }
  0xbe   : > { %842 = vrot.lane.b32.xlu1 %v6697_v26, %s5814_s19  ;;  %12108 = vst [vmem:[#allocation54_spill] sm:$0xff] %v6709_v42  ;;  %12111 = vst [vmem:[#allocation57_spill] sm:$0xff] %v6720_v43  ;;  %v764_v26 = vrot.slane %v6255_v3, 2 }
  0xbf   : > { %12118 = vst [vmem:[#allocation64_spill] sm:$0xff] %v6746_v0 }
  0xc0   : > { %v6715_v8 = vpop.permute.xlu1 %581  ;;  %v6736_v33 = vsel %vm727_vm3, %v6723_v18, %v764_v26 }
  0xc1   : > { %12110 = vst [vmem:[#allocation56_spill] sm:$0xff] %v6715_v8  ;;  %844 = vrot.lane.b32.xlu0 %v6700_v17, %s5814_s19  ;;  %v6728_v42 = vpop.permute.xlu0 %587  ;;  %12115 = vst [vmem:[#allocation61_spill] sm:$0xff] %v6736_v33  ;;  %v449_v8 = vld [vmem:[#allocation2 + $0x118] sm:$0xff]  ;;  %v379_v17 = vld [vmem:[%s6066_s17 + $0xf0] sm:$0xff] }
  0xc2   : > { %846 = vrot.lane.b32.xlu1 %v6713_v16, %s5814_s19  ;;  %12113 = vst [vmem:[#allocation59_spill] sm:$0xff] %v6728_v42  ;;  %v6743_v16 = vsel %vm727_vm3, %v764_v26, %v766_v13  ;;  %412 = vst.msk [vmem:[#allocation2 + $0x208] sm:$0xff] %vm276_vm0, %v379_v17  ;;  %v779_v17 = vrot.slane %v6318_v20, 2 }
  0xc3   : > { %12117 = vst [vmem:[#allocation63_spill] sm:$0xff] %v6743_v16 }
  0xc4   : > { %v6730_v21 = vpop.permute.xlu1 %589 }
  0xc5   : > { %12114 = vst [vmem:[#allocation60_spill] sm:$0xff] %v6730_v21  ;;  %848 = vrot.lane.b32.xlu0 %v6720_v43, %s5814_s19  ;;  %v6740_v7 = vpop.permute.xlu0 %591  ;;  %v769_v21 = vrot.slane %v6276_v10, 2  ;;  %v771_v43 = vrot.slane %v449_v8, 2  ;;  %v6769_v8 = vrot.slane %v6295_v14, 2 }
  0xc6   : > { %850 = vrot.lane.b32.xlu1 %v6723_v18, %s5814_s19  ;;  %12116 = vst [vmem:[#allocation62_spill] sm:$0xff] %v6740_v7 }
  0xc7   : > { %v6759_v26 = vsel %vm727_vm3, %v6746_v0, %v769_v21  ;;  %v6766_v18 = vsel %vm727_vm3, %v769_v21, %v771_v43  ;;  %12124 = vst [vmem:[#allocation70_spill] sm:$0xff] %v6769_v8  ;;  %v380_v21 = vld [vmem:[%s6066_s17 + $0xf8] sm:$0xff] }
  0xc8   : > { %v6749_v42 = vpop.permute.xlu1 %593  ;;  %12121 = vst [vmem:[#allocation67_spill] sm:$0xff] %v6759_v26  ;;  %12123 = vst [vmem:[#allocation69_spill] sm:$0xff] %v6766_v18 }
  0xc9   : > { %12119 = vst [vmem:[#allocation65_spill] sm:$0xff] %v6749_v42  ;;  %852 = vrot.lane.b32.xlu0 %v6736_v33, %s5814_s19  ;;  %v6755_v7 = vpop.permute.xlu0 %595  ;;  %v453_v42 = vld [vmem:[#allocation2 + $0x138] sm:$0xff]  ;;  %413 = vst.msk [vmem:[#allocation2 + $0x210] sm:$0xff] %vm276_vm0, %v380_v21 }
  0xca   : > { %854 = vrot.lane.b32.xlu1 %v6743_v16, %s5814_s19  ;;  %12120 = vst [vmem:[#allocation66_spill] sm:$0xff] %v6755_v7  ;;  %v774_v16 = vrot.slane %v6297_v15, 2  ;;  %v776_v33 = vrot.slane %v453_v42, 2  ;;  %v461_v21 = vld [vmem:[#allocation2 + $0x178] sm:$0xff] }
  0xcc   : > { %v6761_v13 = vpop.permute.xlu1 %597  ;;  %v6784_v43 = vsel %vm727_vm3, %v6769_v8, %v774_v16  ;;  %v6793_v42 = vsel %vm727_vm3, %v774_v16, %v776_v33 }
  0xcd   : > { %12122 = vst [vmem:[#allocation68_spill] sm:$0xff] %v6761_v13  ;;  %856 = vrot.lane.b32.xlu0 %v6746_v0, %s5814_s19  ;;  %v6774_v7 = vpop.permute.xlu0 %599  ;;  %12127 = vst [vmem:[#allocation73_spill] sm:$0xff] %v6784_v43 }
  0xce   : > { %858 = vrot.lane.b32.xlu1 %v6759_v26, %s5814_s19  ;;  %12125 = vst [vmem:[#allocation71_spill] sm:$0xff] %v6774_v7  ;;  %v457_v7 = vld [vmem:[#allocation2 + $0x158] sm:$0xff]  ;;  %12129 = vst [vmem:[#allocation75_spill] sm:$0xff] %v6793_v42 }
  0xcf   : > { %v781_v0 = vrot.slane %v457_v7, 2  ;;  %v6819_v7 = vrot.slane %v6337_v24, 2 }
  0xd0   : > { %v6777_v13 = vpop.permute.xlu1 %601 }
  0xd1   : > { %12126 = vst [vmem:[#allocation72_spill] sm:$0xff] %v6777_v13  ;;  %860 = vrot.lane.b32.xlu0 %v6766_v18, %s5814_s19  ;;  %v6789_v26 = vpop.permute.xlu0 %603  ;;  %v6796_v13 = vrot.slane %v6316_v19, 2  ;;  %12136 = vst [vmem:[#allocation82_spill] sm:$0xff] %v6819_v7 }
  0xd2   : > { %862 = vrot.lane.b32.xlu1 %v6769_v8, %s5814_s19  ;;  %12128 = vst [vmem:[#allocation74_spill] sm:$0xff] %v6789_v26 }
  0xd3   : > { %12130 = vst [vmem:[#allocation76_spill] sm:$0xff] %v6796_v13  ;;  %v6809_v16 = vsel %vm727_vm3, %v6796_v13, %v779_v17 }
  0xd4   : > { %v6799_v18 = vpop.permute.xlu1 %605  ;;  %12133 = vst [vmem:[#allocation79_spill] sm:$0xff] %v6809_v16 }
  0xd5   : > { %12131 = vst [vmem:[#allocation77_spill] sm:$0xff] %v6799_v18  ;;  %864 = vrot.lane.b32.xlu0 %v6784_v43, %s5814_s19  ;;  %v6805_v26 = vpop.permute.xlu0 %607  ;;  %v6816_v18 = vsel %vm727_vm3, %v779_v17, %v781_v0  ;;  %v786_v43 = vrot.slane %v461_v21, 2  ;;  %v6842_v21 = vrot.slane %v6358_v40, 2 }
  0xd6   : > { %866 = vrot.lane.b32.xlu1 %v6793_v42, %s5814_s19  ;;  %12132 = vst [vmem:[#allocation78_spill] sm:$0xff] %v6805_v26  ;;  %12135 = vst [vmem:[#allocation81_spill] sm:$0xff] %v6816_v18  ;;  %v784_v42 = vrot.slane %v6339_v25, 2 }
  0xd7   : > { %12142 = vst [vmem:[#allocation88_spill] sm:$0xff] %v6842_v21 }
  0xd8   : > { %v6811_v33 = vpop.permute.xlu1 %609  ;;  %v6832_v0 = vsel %vm727_vm3, %v6819_v7, %v784_v42 }
  0xd9   : > { %12134 = vst [vmem:[#allocation80_spill] sm:$0xff] %v6811_v33  ;;  %868 = vrot.lane.b32.xlu0 %v6796_v13, %s5814_s19  ;;  %v6824_v26 = vpop.permute.xlu0 %611  ;;  %12139 = vst [vmem:[#allocation85_spill] sm:$0xff] %v6832_v0  ;;  %v465_v33 = vld [vmem:[#allocation2 + $0x198] sm:$0xff] }
  0xda   : > { %870 = vrot.lane.b32.xlu1 %v6809_v16, %s5814_s19  ;;  %12137 = vst [vmem:[#allocation83_spill] sm:$0xff] %v6824_v26  ;;  %v6839_v16 = vsel %vm727_vm3, %v784_v42, %v786_v43 }
  0xdb   : > { %12141 = vst [vmem:[#allocation87_spill] sm:$0xff] %v6839_v16 }
  0xdc   : > { %v6826_v8 = vpop.permute.xlu1 %613 }
  0xdd   : > { %12138 = vst [vmem:[#allocation84_spill] sm:$0xff] %v6826_v8  ;;  %872 = vrot.lane.b32.xlu0 %v6816_v18, %s5814_s19  ;;  %v6836_v17 = vpop.permute.xlu0 %615  ;;  %v789_v8 = vrot.slane %v6360_v41, 2  ;;  %v791_v18 = vrot.slane %v465_v33, 2  ;;  %v6865_v33 = vrot.slane %v6379_v45, 2 }
  0xde   : > { %874 = vrot.lane.b32.xlu1 %v6819_v7, %s5814_s19  ;;  %12140 = vst [vmem:[#allocation86_spill] sm:$0xff] %v6836_v17  ;;  %v469_v17 = vld [vmem:[#allocation2 + $0x1b8] sm:$0xff] }
  0xdf   : > { %v6855_v43 = vsel %vm727_vm3, %v6842_v21, %v789_v8  ;;  %12148 = vst [vmem:[#allocation94_spill] sm:$0xff] %v6865_v33 }
  0xe0   : > { %v6845_v26 = vpop.permute.xlu1 %617  ;;  %12145 = vst [vmem:[#allocation91_spill] sm:$0xff] %v6855_v43 }
  0xe1   : > { %12143 = vst [vmem:[#allocation89_spill] sm:$0xff] %v6845_v26  ;;  %876 = vrot.lane.b32.xlu0 %v6832_v0, %s5814_s19  ;;  %v6851_v7 = vpop.permute.xlu0 %619  ;;  %v6862_v26 = vsel %vm727_vm3, %v789_v8, %v791_v18  ;;  %v796_v0 = vrot.slane %v469_v17, 2  ;;  %v6888_v17 = vrot.slane %v6400_v34, 2 }
  0xe2   : > { %878 = vrot.lane.b32.xlu1 %v6839_v16, %s5814_s19  ;;  %12144 = vst [vmem:[#allocation90_spill] sm:$0xff] %v6851_v7  ;;  %12147 = vst [vmem:[#allocation93_spill] sm:$0xff] %v6862_v26  ;;  %v794_v16 = vrot.slane %v6381_v48, 2 }
  0xe3   : > { %12154 = vst [vmem:[#allocation100_spill] sm:$0xff] %v6888_v17 }
  0xe4   : > { %v6857_v42 = vpop.permute.xlu1 %621  ;;  %v6878_v18 = vsel %vm727_vm3, %v6865_v33, %v794_v16 }
  0xe5   : > { %12146 = vst [vmem:[#allocation92_spill] sm:$0xff] %v6857_v42  ;;  %880 = vrot.lane.b32.xlu0 %v6842_v21, %s5814_s19  ;;  %v6870_v7 = vpop.permute.xlu0 %623  ;;  %12151 = vst [vmem:[#allocation97_spill] sm:$0xff] %v6878_v18  ;;  %v473_v42 = vld [vmem:[#allocation2 + $0x1d8] sm:$0xff] }
  0xe6   : > { %882 = vrot.lane.b32.xlu1 %v6855_v43, %s5814_s19  ;;  %12149 = vst [vmem:[#allocation95_spill] sm:$0xff] %v6870_v7  ;;  %v6885_v43 = vsel %vm727_vm3, %v794_v16, %v796_v0 }
  0xe7   : > { %12153 = vst [vmem:[#allocation99_spill] sm:$0xff] %v6885_v43 }
  0xe8   : > { %v6872_v13 = vpop.permute.xlu1 %625 }
  0xe9   : > { %12150 = vst [vmem:[#allocation96_spill] sm:$0xff] %v6872_v13  ;;  %884 = vrot.lane.b32.xlu0 %v6862_v26, %s5814_s19  ;;  %v6882_v8 = vpop.permute.xlu0 %627  ;;  %v799_v13 = vrot.slane %v6402_v23, 2  ;;  %v801_v26 = vrot.slane %v473_v42, 2  ;;  %v6911_v42 = vrot.slane %v6421_v44, 2 }
  0xea   : > { %886 = vrot.lane.b32.xlu1 %v6865_v33, %s5814_s19  ;;  %12152 = vst [vmem:[#allocation98_spill] sm:$0xff] %v6882_v8  ;;  %v477_v8 = vld [vmem:[#allocation2 + $0x1f8] sm:$0xff] }
  0xeb   : > { %v6901_v16 = vsel %vm727_vm3, %v6888_v17, %v799_v13  ;;  %12160 = vst [vmem:[#allocation106_spill] sm:$0xff] %v6911_v42 }
  0xec   : > { %v6891_v7 = vpop.permute.xlu1 %629  ;;  %12157 = vst [vmem:[#allocation103_spill] sm:$0xff] %v6901_v16 }
  0xed   : > { %12155 = vst [vmem:[#allocation101_spill] sm:$0xff] %v6891_v7  ;;  %888 = vrot.lane.b32.xlu0 %v6878_v18, %s5814_s19  ;;  %v6897_v33 = vpop.permute.xlu0 %631  ;;  %v6908_v7 = vsel %vm727_vm3, %v799_v13, %v801_v26  ;;  %v806_v18 = vrot.slane %v477_v8, 2 }
  0xee   : > { %890 = vrot.lane.b32.xlu1 %v6885_v43, %s5814_s19  ;;  %12156 = vst [vmem:[#allocation102_spill] sm:$0xff] %v6897_v33  ;;  %12159 = vst [vmem:[#allocation105_spill] sm:$0xff] %v6908_v7  ;;  %v804_v43 = vrot.slane %v6423_v22, 2 }
  0xf0   : > { %v6903_v0 = vpop.permute.xlu1 %633  ;;  %v6924_v26 = vsel %vm727_vm3, %v6911_v42, %v804_v43 }
  0xf1   : > { %12158 = vst [vmem:[#allocation104_spill] sm:$0xff] %v6903_v0  ;;  %892 = vrot.lane.b32.xlu0 %v6888_v17, %s5814_s19  ;;  %v6916_v33 = vpop.permute.xlu0 %635  ;;  %12163 = vst [vmem:[#allocation109_spill] sm:$0xff] %v6924_v26  ;;  %v6931_v0 = vsel %vm727_vm3, %v804_v43, %v806_v18 }
  0xf2   : > { %894 = vrot.lane.b32.xlu1 %v6901_v16, %s5814_s19  ;;  %12161 = vst [vmem:[#allocation107_spill] sm:$0xff] %v6916_v33 }
  0xf4   : > { %v6918_v21 = vpop.permute.xlu1 %637 }
  0xf5   : > { %12162 = vst [vmem:[#allocation108_spill] sm:$0xff] %v6918_v21  ;;  %896 = vrot.lane.b32.xlu0 %v6908_v7, %s5814_s19  ;;  %v6928_v13 = vpop.permute.xlu0 %639  ;;  %v418_v21 = vld [vmem:[#allocation2 + $0x20] sm:$0xff] }
  0xf6   : > { %898 = vrot.lane.b32.xlu1 %v6911_v42, %s5814_s19  ;;  %12164 = vst [vmem:[#allocation110_spill] sm:$0xff] %v6928_v13 }
  0xf8   : > { %v6933_v16 = vpop.permute.xlu1 %641 }
  0xf9   : > { %12165 = vst [vmem:[#allocation111_spill] sm:$0xff] %v6933_v16  ;;  %900 = vrot.lane.b32.xlu0 %v6924_v26, %s5814_s19  ;;  %v6939_v8 = vpop.permute.xlu0 %643  ;;  %v6952_v16 = vld [vmem:[#allocation2 + $0x40] sm:$0xff] }
  0xfa   : > { %902 = vrot.lane.b32.xlu1 %v6931_v0, %s5814_s19  ;;  %12166 = vst [vmem:[#allocation112_spill] sm:$0xff] %v6939_v8 }
  0xfc   : > { %v6941_v33 = vpop.permute.xlu1 %645 }
  0xfd   : > { %12167 = vst [vmem:[#allocation113_spill] sm:$0xff] %v6941_v33  ;;  %970 = vrot.lane.b32.xlu0 %v418_v21, %s5815_s20  ;;  %v6946_v43 = vpop.permute.xlu0 %647  ;;  %v6966_v21 = vld [vmem:[#allocation2 + $0x60] sm:$0xff] }
  0xfe   : > { %972 = vrot.lane.b32.xlu1 %v6116_v27, %s5815_s20  ;;  %12168 = vst [vmem:[#allocation114_spill] sm:$0xff] %v6946_v43  ;;  %v12271_v43 = vld [vmem:[#allocation24_spill] sm:$0xff] }
 0x100   : > { %v6948_v18 = vpop.permute.xlu1 %649 }
 0x101   : > { %12169 = vst [vmem:[#allocation115_spill] sm:$0xff] %v6948_v18  ;;  %974 = vrot.lane.b32.xlu0 %v6120_v29, %s5815_s20  ;;  %v6956_v8 = vpop.permute.xlu0 %651 }
 0x102   : > { %976 = vrot.lane.b32.xlu1 %v6952_v16, %s5815_s20  ;;  %12170 = vst [vmem:[#allocation116_spill] sm:$0xff] %v6956_v8 }
 0x104   : > { %v6958_v33 = vpop.permute.xlu1 %653 }
 0x105   : > { %12171 = vst [vmem:[#allocation117_spill] sm:$0xff] %v6958_v33  ;;  %978 = vrot.lane.b32.xlu0 %v6118_v28, %s5815_s20  ;;  %v6964_v27 = vpop.permute.xlu0 %655  ;;  %v6980_v28 = vld [vmem:[#allocation2 + $0x80] sm:$0xff] }
 0x106   : > { %980 = vrot.lane.b32.xlu1 %v6132_v32, %s5815_s20  ;;  %12172 = vst [vmem:[#allocation118_spill] sm:$0xff] %v6964_v27  ;;  %v12267_v27 = vld [vmem:[#allocation23_spill] sm:$0xff] }
 0x108   : > { %v6968_v29 = vpop.permute.xlu1 %657 }
 0x109   : > { %12173 = vst [vmem:[#allocation119_spill] sm:$0xff] %v6968_v29  ;;  %982 = vrot.lane.b32.xlu0 %v6966_v21, %s5815_s20  ;;  %v6974_v8 = vpop.permute.xlu0 %659 }
 0x10a   : > { %984 = vrot.lane.b32.xlu1 %v6143_v36, %s5815_s20  ;;  %12174 = vst [vmem:[#allocation120_spill] sm:$0xff] %v6974_v8 }
 0x10c   : > { %v6976_v33 = vpop.permute.xlu1 %661 }
 0x10d   : > { %12175 = vst [vmem:[#allocation121_spill] sm:$0xff] %v6976_v33  ;;  %986 = vrot.lane.b32.xlu0 %v6155_v39, %s5815_s20  ;;  %v6984_v32 = vpop.permute.xlu0 %808  ;;  %v6994_v33 = vld [vmem:[#allocation2 + $0xa0] sm:$0xff] }
 0x10e   : > { %988 = vrot.lane.b32.xlu1 %v6980_v28, %s5815_s20  ;;  %12176 = vst [vmem:[#allocation122_spill] sm:$0xff] %v6984_v32 }
 0x110   : > { %v6986_v29 = vpop.permute.xlu1 %810 }
 0x111   : > { %12177 = vst [vmem:[#allocation123_spill] sm:$0xff] %v6986_v29  ;;  %990 = vrot.lane.b32.xlu0 %v6190_v50, %s5815_s20  ;;  %v7008_v50 = vld [vmem:[#allocation2 + $0xc0] sm:$0xff] }
 0x112   : > { %992 = vrot.lane.b32.xlu1 %v6192_v51, %s5815_s20 }
 0x113   : > { %v6992_v36 = vpop.permute.xlu0 %812 }
 0x114   : > { %12178 = vst [vmem:[#allocation124_spill] sm:$0xff] %v6992_v36  ;;  %v6996_v39 = vpop.permute.xlu1 %814  ;;  %v12263_v36 = vld [vmem:[#allocation19_spill] sm:$0xff] }
 0x115   : > { %12179 = vst [vmem:[#allocation125_spill] sm:$0xff] %v6996_v39  ;;  %994 = vrot.lane.b32.xlu0 %v6994_v33, %s5815_s20 }
 0x116   : > { %996 = vrot.lane.b32.xlu1 %v6211_v55, %s5815_s20 }
 0x117   : > { %v7002_v32 = vpop.permute.xlu0 %816 }
 0x118   : > { %12180 = vst [vmem:[#allocation126_spill] sm:$0xff] %v7002_v32  ;;  %v7004_v29 = vpop.permute.xlu1 %818 }
 0x119   : > { %12181 = vst [vmem:[#allocation127_spill] sm:$0xff] %v7004_v29  ;;  %998 = vrot.lane.b32.xlu0 %v6213_v56, %s5815_s20  ;;  %v7022_v29 = vld [vmem:[#allocation2 + $0xe0] sm:$0xff] }
 0x11a   : > { %1000 = vrot.lane.b32.xlu1 %v7008_v50, %s5815_s20 }
 0x11b   : > { %v7012_v51 = vpop.permute.xlu0 %820 }
 0x11c   : > { %12182 = vst [vmem:[#allocation128_spill] sm:$0xff] %v7012_v51  ;;  %v7014_v39 = vpop.permute.xlu1 %822 }
 0x11d   : > { %12183 = vst [vmem:[#allocation129_spill] sm:$0xff] %v7014_v39  ;;  %1002 = vrot.lane.b32.xlu0 %v6232_v60, %s5815_s20  ;;  %v7036_v60 = vld [vmem:[#allocation2 + $0x100] sm:$0xff] }
 0x11e   : > { %1004 = vrot.lane.b32.xlu1 %v6234_v61, %s5815_s20 }
 0x11f   : > { %v7020_v55 = vpop.permute.xlu0 %824 }
 0x120   : > { %12184 = vst [vmem:[#allocation130_spill] sm:$0xff] %v7020_v55  ;;  %v7024_v56 = vpop.permute.xlu1 %826  ;;  %v12259_v55 = vld [vmem:[#allocation18_spill] sm:$0xff] }
 0x121   : > { %12185 = vst [vmem:[#allocation131_spill] sm:$0xff] %v7024_v56  ;;  %1006 = vrot.lane.b32.xlu0 %v7022_v29, %s5815_s20 }
 0x122   : > { %1008 = vrot.lane.b32.xlu1 %v6253_v2, %s5815_s20 }
 0x123   : > { %v7030_v51 = vpop.permute.xlu0 %828 }
 0x124   : > { %12186 = vst [vmem:[#allocation132_spill] sm:$0xff] %v7030_v51  ;;  %v7032_v39 = vpop.permute.xlu1 %830 }
 0x125   : > { %12187 = vst [vmem:[#allocation133_spill] sm:$0xff] %v7032_v39  ;;  %1010 = vrot.lane.b32.xlu0 %v6255_v3, %s5815_s20  ;;  %v7050_v39 = vld [vmem:[#allocation2 + $0x120] sm:$0xff] }
 0x126   : > { %1012 = vrot.lane.b32.xlu1 %v7036_v60, %s5815_s20 }
 0x127   : > { %v7040_v61 = vpop.permute.xlu0 %832 }
 0x128   : > { %12188 = vst [vmem:[#allocation134_spill] sm:$0xff] %v7040_v61  ;;  %v7042_v56 = vpop.permute.xlu1 %834 }
 0x129   : > { %12189 = vst [vmem:[#allocation135_spill] sm:$0xff] %v7042_v56  ;;  %1014 = vrot.lane.b32.xlu0 %v6274_v9, %s5815_s20  ;;  %v7064_v9 = vld [vmem:[#allocation2 + $0x140] sm:$0xff] }
 0x12a   : > { %1016 = vrot.lane.b32.xlu1 %v6276_v10, %s5815_s20 }
 0x12b   : > { %v7048_v2 = vpop.permute.xlu0 %836 }
 0x12c   : > { %12190 = vst [vmem:[#allocation136_spill] sm:$0xff] %v7048_v2  ;;  %v7052_v3 = vpop.permute.xlu1 %838  ;;  %v12255_v2 = vld [vmem:[#allocation17_spill] sm:$0xff] }
 0x12d   : > { %12191 = vst [vmem:[#allocation137_spill] sm:$0xff] %v7052_v3  ;;  %1018 = vrot.lane.b32.xlu0 %v7050_v39, %s5815_s20 }
 0x12e   : > { %1020 = vrot.lane.b32.xlu1 %v6295_v14, %s5815_s20 }
 0x12f   : > { %v7058_v61 = vpop.permute.xlu0 %840 }
 0x130   : > { %12192 = vst [vmem:[#allocation138_spill] sm:$0xff] %v7058_v61  ;;  %v7060_v56 = vpop.permute.xlu1 %842 }
 0x131   : > { %12193 = vst [vmem:[#allocation139_spill] sm:$0xff] %v7060_v56  ;;  %1022 = vrot.lane.b32.xlu0 %v6297_v15, %s5815_s20  ;;  %v7078_v56 = vld [vmem:[#allocation2 + $0x160] sm:$0xff] }
 0x132   : > { %1024 = vrot.lane.b32.xlu1 %v7064_v9, %s5815_s20 }
 0x133   : > { %v7068_v10 = vpop.permute.xlu0 %844 }
 0x134   : > { %12194 = vst [vmem:[#allocation140_spill] sm:$0xff] %v7068_v10  ;;  %v7070_v3 = vpop.permute.xlu1 %846 }
 0x135   : > { %12195 = vst [vmem:[#allocation141_spill] sm:$0xff] %v7070_v3  ;;  %1026 = vrot.lane.b32.xlu0 %v6316_v19, %s5815_s20  ;;  %v7092_v19 = vld [vmem:[#allocation2 + $0x180] sm:$0xff] }
 0x136   : > { %1028 = vrot.lane.b32.xlu1 %v6318_v20, %s5815_s20 }
 0x137   : > { %v7076_v14 = vpop.permute.xlu0 %848 }
 0x138   : > { %12196 = vst [vmem:[#allocation142_spill] sm:$0xff] %v7076_v14  ;;  %v7080_v15 = vpop.permute.xlu1 %850  ;;  %v12251_v14 = vld [vmem:[#allocation13_spill] sm:$0xff] }
 0x139   : > { %12197 = vst [vmem:[#allocation143_spill] sm:$0xff] %v7080_v15  ;;  %1030 = vrot.lane.b32.xlu0 %v7078_v56, %s5815_s20 }
 0x13a   : > { %1032 = vrot.lane.b32.xlu1 %v6337_v24, %s5815_s20 }
 0x13b   : > { %v7086_v10 = vpop.permute.xlu0 %852 }
 0x13c   : > { %12198 = vst [vmem:[#allocation144_spill] sm:$0xff] %v7086_v10  ;;  %v7088_v3 = vpop.permute.xlu1 %854 }
 0x13d   : > { %12199 = vst [vmem:[#allocation145_spill] sm:$0xff] %v7088_v3  ;;  %1034 = vrot.lane.b32.xlu0 %v6339_v25, %s5815_s20  ;;  %v7106_v3 = vld [vmem:[#allocation2 + $0x1a0] sm:$0xff] }
 0x13e   : > { %1036 = vrot.lane.b32.xlu1 %v7092_v19, %s5815_s20 }
 0x13f   : > { %v7096_v20 = vpop.permute.xlu0 %856 }
 0x140   : > { %12200 = vst [vmem:[#allocation146_spill] sm:$0xff] %v7096_v20  ;;  %v7098_v15 = vpop.permute.xlu1 %858 }
 0x141   : > { %12201 = vst [vmem:[#allocation147_spill] sm:$0xff] %v7098_v15  ;;  %1038 = vrot.lane.b32.xlu0 %v6358_v40, %s5815_s20  ;;  %v7120_v40 = vld [vmem:[#allocation2 + $0x1c0] sm:$0xff] }
 0x142   : > { %1040 = vrot.lane.b32.xlu1 %v6360_v41, %s5815_s20 }
 0x143   : > { %v7104_v24 = vpop.permute.xlu0 %860 }
 0x144   : > { %12202 = vst [vmem:[#allocation148_spill] sm:$0xff] %v7104_v24  ;;  %v7108_v25 = vpop.permute.xlu1 %862  ;;  %v12247_v24 = vld [vmem:[#allocation12_spill] sm:$0xff] }
 0x145   : > { %12203 = vst [vmem:[#allocation149_spill] sm:$0xff] %v7108_v25  ;;  %1042 = vrot.lane.b32.xlu0 %v7106_v3, %s5815_s20 }
 0x146   : > { %1044 = vrot.lane.b32.xlu1 %v6379_v45, %s5815_s20 }
 0x147   : > { %v7114_v20 = vpop.permute.xlu0 %864 }
 0x148   : > { %12204 = vst [vmem:[#allocation150_spill] sm:$0xff] %v7114_v20  ;;  %v7116_v15 = vpop.permute.xlu1 %866 }
 0x149   : > { %12205 = vst [vmem:[#allocation151_spill] sm:$0xff] %v7116_v15  ;;  %1046 = vrot.lane.b32.xlu0 %v6381_v48, %s5815_s20  ;;  %v7134_v15 = vld [vmem:[#allocation2 + $0x1e0] sm:$0xff] }
 0x14a   : > { %1048 = vrot.lane.b32.xlu1 %v7120_v40, %s5815_s20 }
 0x14b   : > { %v7124_v41 = vpop.permute.xlu0 %868 }
 0x14c   : > { %12206 = vst [vmem:[#allocation152_spill] sm:$0xff] %v7124_v41  ;;  %v7126_v25 = vpop.permute.xlu1 %870 }
 0x14d   : > { %12207 = vst [vmem:[#allocation153_spill] sm:$0xff] %v7126_v25  ;;  %1050 = vrot.lane.b32.xlu0 %v6400_v34, %s5815_s20  ;;  %v7144_v25 = vld [vmem:[#allocation2 + $0x200] sm:$0xff] }
 0x14e   : > { %1052 = vrot.lane.b32.xlu1 %v6402_v23, %s5815_s20  ;;  %v7150_v23 = vld [vmem:[#allocation2 + $0x208] sm:$0xff] }
 0x14f   : > { %v7132_v45 = vpop.permute.xlu0 %872 }
 0x150   : > { %12208 = vst [vmem:[#allocation154_spill] sm:$0xff] %v7132_v45  ;;  %v7136_v48 = vpop.permute.xlu1 %874  ;;  %v7156_v45 = vld [vmem:[#allocation2 + $0x210] sm:$0xff] }
 0x151   : > { %12209 = vst [vmem:[#allocation155_spill] sm:$0xff] %v7136_v48  ;;  %1054 = vrot.lane.b32.xlu0 %v7134_v15, %s5815_s20 }
 0x152   : > { %1056 = vrot.lane.b32.xlu1 %v6421_v44, %s5815_s20 }
 0x153   : > { %v7142_v41 = vpop.permute.xlu0 %876 }
 0x154   : > { %12210 = vst [vmem:[#allocation156_spill] sm:$0xff] %v7142_v41  ;;  %v7146_v34 = vpop.permute.xlu1 %878  ;;  %v12243_v41 = vld [vmem:[#allocation11_spill] sm:$0xff] }
 0x155   : > { %12211 = vst [vmem:[#allocation157_spill] sm:$0xff] %v7146_v34  ;;  %1058 = vrot.lane.b32.xlu0 %v6423_v22, %s5815_s20  ;;  %v12239_v34 = vld [vmem:[#allocation7_spill] sm:$0xff] }
 0x156   : > { %1060 = vrot.lane.b32.xlu1 %v7144_v25, %s5815_s20 }
 0x157   : > { %v7154_v48 = vpop.permute.xlu0 %880 }
 0x158   : > { %12212 = vst [vmem:[#allocation158_spill] sm:$0xff] %v7154_v48  ;;  %v7158_v20 = vpop.permute.xlu1 %882 }
 0x159   : > { %12213 = vst [vmem:[#allocation159_spill] sm:$0xff] %v7158_v20  ;;  %1062 = vrot.lane.b32.xlu0 %v7150_v23, %s5815_s20 }
 0x15a   : > { %1064 = vrot.lane.b32.xlu1 %v7156_v45, %s5815_s20  ;;  %s270_s20 = scalar_lea.vmem [#allocation4], %s269_s15 }
 0x15b   : > { %v7164_v44 = vpop.permute.xlu0 %884 }
 0x15c   : > { %12214 = vst [vmem:[#allocation160_spill] sm:$0xff] %v7164_v44  ;;  %v7166_v22 = vpop.permute.xlu1 %886 }
 0x15d   : > { %12215 = vst [vmem:[#allocation161_spill] sm:$0xff] %v7166_v22  ;;  %1117 = vrot.lane.b32.xlu0 %v6127_v30, %s5816_s21 }
 0x15e   : > { %1119 = vrot.lane.b32.xlu1 %v6171_v46, %s5816_s21 }
 0x15f   : > { %v7172_v48 = vpop.permute.xlu0 %888 }
 0x160   : > { %12216 = vst [vmem:[#allocation162_spill] sm:$0xff] %v7172_v48  ;;  %v7174_v20 = vpop.permute.xlu1 %890 }
 0x161   : > { %12217 = vst [vmem:[#allocation163_spill] sm:$0xff] %v7174_v20  ;;  %1121 = vrot.lane.b32.xlu0 %v6139_v35, %s5816_s21 }
 0x162   : > { %1123 = vrot.lane.b32.xlu1 %v6130_v31, %s5816_s21 }
 0x163   : > { %v7180_v44 = vpop.permute.xlu0 %892 }
 0x164   : > { %12218 = vst [vmem:[#allocation164_spill] sm:$0xff] %v7180_v44  ;;  %v7182_v22 = vpop.permute.xlu1 %894 }
 0x165   : > { %12219 = vst [vmem:[#allocation165_spill] sm:$0xff] %v7182_v22  ;;  %1125 = vrot.lane.b32.xlu0 %v6186_v49, %s5816_s21 }
 0x166   : > { %1127 = vrot.lane.b32.xlu1 %v6148_v37, %s5816_s21 }
 0x167   : > { %v7188_v30 = vpop.permute.xlu0 %896 }
 0x168   : > { %12220 = vst [vmem:[#allocation166_spill] sm:$0xff] %v7188_v30  ;;  %v7190_v46 = vpop.permute.xlu1 %898 }
 0x169   : > { %12221 = vst [vmem:[#allocation167_spill] sm:$0xff] %v7190_v46  ;;  %1129 = vrot.lane.b32.xlu0 %v6153_v38, %s5816_s21 }
 0x16a   : > { %1131 = vrot.lane.b32.xlu1 %v6197_v52, %s5816_s21 }
 0x16b   : > { %v7196_v35 = vpop.permute.xlu0 %900 }
 0x16c   : > { %12222 = vst [vmem:[#allocation168_spill] sm:$0xff] %v7196_v35  ;;  %v7198_v44 = vpop.permute.xlu1 %902 }
 0x16d   : > { %12223 = vst [vmem:[#allocation169_spill] sm:$0xff] %v7198_v44  ;;  %1133 = vrot.lane.b32.xlu0 %v6174_v47, %s5816_s21 }
 0x16e   : > { %1135 = vrot.lane.b32.xlu1 %v6202_v53, %s5816_s21 }
 0x16f   : > { %v7204_v22 = vpop.permute.xlu0 %970 }
 0x170   : > { %12224 = vst [vmem:[#allocation170_spill] sm:$0xff] %v7204_v22  ;;  %v7206_v30 = vpop.permute.xlu1 %972 }
 0x171   : > { %12225 = vst [vmem:[#allocation171_spill] sm:$0xff] %v7206_v30  ;;  %1137 = vrot.lane.b32.xlu0 %v6218_v57, %s5816_s21 }
 0x172   : > { %1139 = vrot.lane.b32.xlu1 %v6205_v54, %s5816_s21 }
 0x173   : > { %v7212_v46 = vpop.permute.xlu0 %974 }
 0x174   : > { %12226 = vst [vmem:[#allocation172_spill] sm:$0xff] %v7212_v46  ;;  %v7214_v35 = vpop.permute.xlu1 %976 }
 0x175   : > { %12227 = vst [vmem:[#allocation173_spill] sm:$0xff] %v7214_v35  ;;  %1141 = vrot.lane.b32.xlu0 %v6223_v58, %s5816_s21 }
 0x176   : > { %1143 = vrot.lane.b32.xlu1 %v6239_v62, %s5816_s21 }
 0x177   : > { %v7220_v44 = vpop.permute.xlu0 %978 }
 0x178   : > { %12228 = vst [vmem:[#allocation174_spill] sm:$0xff] %v7220_v44  ;;  %v7222_v20 = vpop.permute.xlu1 %980 }
 0x179   : > { %12229 = vst [vmem:[#allocation175_spill] sm:$0xff] %v7222_v20  ;;  %1145 = vrot.lane.b32.xlu0 %v6226_v59, %s5816_s21 }
 0x17a   : > { %1147 = vrot.lane.b32.xlu1 %v6244_v63, %s5816_s21 }
 0x17b   : > { %v7228_v48 = vpop.permute.xlu0 %982 }
 0x17c   : > { %12230 = vst [vmem:[#allocation176_spill] sm:$0xff] %v7228_v48  ;;  %v7230_v46 = vpop.permute.xlu1 %984 }
 0x17d   : > { %12231 = vst [vmem:[#allocation177_spill] sm:$0xff] %v7230_v46  ;;  %1149 = vrot.lane.b32.xlu0 %v6260_v4, %s5816_s21 }
 0x17e   : > { %1151 = vrot.lane.b32.xlu1 %v6247_v1, %s5816_s21 }
 0x17f   : > { %v7236_v35 = vpop.permute.xlu0 %986 }
 0x180   : > { %12232 = vst [vmem:[#allocation178_spill] sm:$0xff] %v7236_v35  ;;  %v7238_v44 = vpop.permute.xlu1 %988 }
 0x181   : > { %12233 = vst [vmem:[#allocation179_spill] sm:$0xff] %v7238_v44  ;;  %1153 = vrot.lane.b32.xlu0 %v6265_v5, %s5816_s21  ;;  %v12238_v44 = vld [vmem:[#allocation8_spill] sm:$0xff] }
 0x182   : > { %1155 = vrot.lane.b32.xlu1 %v6281_v11, %s5816_s21 }
 0x183   : > { %v7244_v20 = vpop.permute.xlu0 %990 }
 0x184   : > { %12234 = vst [vmem:[#allocation180_spill] sm:$0xff] %v7244_v20  ;;  %v7246_v48 = vpop.permute.xlu1 %992 }
 0x185   : > { %12235 = vst [vmem:[#allocation181_spill] sm:$0xff] %v7246_v48  ;;  %1157 = vrot.lane.b32.xlu0 %v6268_v6, %s5816_s21  ;;  %v12242_v48 = vld [vmem:[#allocation9_spill] sm:$0xff] }
 0x186   : > { %1159 = vrot.lane.b32.xlu1 %v6286_v12, %s5816_s21 }
 0x187   : > { %v7252_v46 = vpop.permute.xlu0 %994 }
 0x188   : > { %12236 = vst [vmem:[#allocation182_spill] sm:$0xff] %v7252_v46  ;;  %v7254_v35 = vpop.permute.xlu1 %996 }
 0x189   : > { %12237 = vst [vmem:[#allocation183_spill] sm:$0xff] %v7254_v35  ;;  %1161 = vrot.lane.b32.xlu0 %v12238_v44, %s5816_s21  ;;  %v12246_v35 = vld [vmem:[#allocation10_spill] sm:$0xff] }
 0x18a   : > { %1163 = vrot.lane.b32.xlu1 %v12239_v34, %s5816_s21 }
 0x18b   : > { %v7260_v30 = vpop.permute.xlu0 %998 }
 0x18c   : > { %12240 = vst [vmem:[#allocation8_spill] sm:$0xff] %v7260_v30  ;;  %v7262_v20 = vpop.permute.xlu1 %1000 }
 0x18d   : > { %12241 = vst [vmem:[#allocation7_spill] sm:$0xff] %v7262_v20  ;;  %1165 = vrot.lane.b32.xlu0 %v12242_v48, %s5816_s21  ;;  %v12250_v20 = vld [vmem:[#allocation14_spill] sm:$0xff] }
 0x18e   : > { %1167 = vrot.lane.b32.xlu1 %v12243_v41, %s5816_s21 }
 0x18f   : > { %v7268_v22 = vpop.permute.xlu0 %1002 }
 0x190   : > { %12244 = vst [vmem:[#allocation9_spill] sm:$0xff] %v7268_v22  ;;  %v7270_v46 = vpop.permute.xlu1 %1004 }
 0x191   : > { %12245 = vst [vmem:[#allocation11_spill] sm:$0xff] %v7270_v46  ;;  %1169 = vrot.lane.b32.xlu0 %v12246_v35, %s5816_s21  ;;  %v12254_v46 = vld [vmem:[#allocation15_spill] sm:$0xff] }
 0x192   : > { %1171 = vrot.lane.b32.xlu1 %v12247_v24, %s5816_s21 }
 0x193   : > { %v7276_v10 = vpop.permute.xlu0 %1006 }
 0x194   : > { %12248 = vst [vmem:[#allocation10_spill] sm:$0xff] %v7276_v10  ;;  %v7278_v30 = vpop.permute.xlu1 %1008 }
 0x195   : > { %12249 = vst [vmem:[#allocation12_spill] sm:$0xff] %v7278_v30  ;;  %1173 = vrot.lane.b32.xlu0 %v12250_v20, %s5816_s21  ;;  %v12258_v30 = vld [vmem:[#allocation16_spill] sm:$0xff] }
 0x196   : > { %1175 = vrot.lane.b32.xlu1 %v12251_v14, %s5816_s21 }
 0x197   : > { %v7284_v61 = vpop.permute.xlu0 %1010 }
 0x198   : > { %12252 = vst [vmem:[#allocation14_spill] sm:$0xff] %v7284_v61  ;;  %v7286_v22 = vpop.permute.xlu1 %1012 }
 0x199   : > { %12253 = vst [vmem:[#allocation13_spill] sm:$0xff] %v7286_v22  ;;  %1177 = vrot.lane.b32.xlu0 %v12254_v46, %s5816_s21  ;;  %v12262_v22 = vld [vmem:[#allocation20_spill] sm:$0xff] }
 0x19a   : > { %1179 = vrot.lane.b32.xlu1 %v12255_v2, %s5816_s21 }
 0x19b   : > { %v7292_v51 = vpop.permute.xlu0 %1014 }
 0x19c   : > { %12256 = vst [vmem:[#allocation15_spill] sm:$0xff] %v7292_v51  ;;  %v7294_v10 = vpop.permute.xlu1 %1016 }
 0x19d   : > { %12257 = vst [vmem:[#allocation17_spill] sm:$0xff] %v7294_v10  ;;  %1181 = vrot.lane.b32.xlu0 %v12258_v30, %s5816_s21  ;;  %v12266_v10 = vld [vmem:[#allocation21_spill] sm:$0xff] }
 0x19e   : > { %1183 = vrot.lane.b32.xlu1 %v12259_v55, %s5816_s21 }
 0x19f   : > { %v7300_v32 = vpop.permute.xlu0 %1018 }
 0x1a0   : > { %12260 = vst [vmem:[#allocation16_spill] sm:$0xff] %v7300_v32  ;;  %v7302_v61 = vpop.permute.xlu1 %1020 }
 0x1a1   : > { %12261 = vst [vmem:[#allocation18_spill] sm:$0xff] %v7302_v61  ;;  %1185 = vrot.lane.b32.xlu0 %v12262_v22, %s5816_s21  ;;  %v12270_v61 = vld [vmem:[#allocation22_spill] sm:$0xff] }
 0x1a2   : > { %1187 = vrot.lane.b32.xlu1 %v12263_v36, %s5816_s21 }
 0x1a3   : > { %v7308_v8 = vpop.permute.xlu0 %1022 }
 0x1a4   : > { %12264 = vst [vmem:[#allocation20_spill] sm:$0xff] %v7308_v8  ;;  %v7310_v51 = vpop.permute.xlu1 %1024 }
 0x1a5   : > { %12265 = vst [vmem:[#allocation19_spill] sm:$0xff] %v7310_v51  ;;  %1189 = vrot.lane.b32.xlu0 %v12266_v10, %s5816_s21  ;;  %v12274_v51 = vld [vmem:[#allocation26_spill] sm:$0xff]  ;;  %v12275_v10 = vld [vmem:[#allocation25_spill] sm:$0xff] }
 0x1a6   : > { %1191 = vrot.lane.b32.xlu1 %v12267_v27, %s5816_s21 }
 0x1a7   : > { %v7316_v18 = vpop.permute.xlu0 %1026 }
 0x1a8   : > { %12268 = vst [vmem:[#allocation184_spill] sm:$0xff] %v7316_v18  ;;  %v7318_v32 = vpop.permute.xlu1 %1028 }
 0x1a9   : > { %12269 = vst [vmem:[#allocation185_spill] sm:$0xff] %v7318_v32  ;;  %1193 = vrot.lane.b32.xlu0 %v12270_v61, %s5816_s21  ;;  %v12278_v32 = vld [vmem:[#allocation27_spill] sm:$0xff]  ;;  %v7339_v61 = vrot.slane %v7156_v45, 1 }
 0x1aa   : > { %1195 = vrot.lane.b32.xlu1 %v12271_v43, %s5816_s21 }
 0x1ab   : > { %v7324_v13 = vpop.permute.xlu0 %1030  ;;  %12279 = vst [vmem:[#allocation190_spill] sm:$0xff] %v7339_v61 }
 0x1ac   : > { %12272 = vst [vmem:[#allocation186_spill] sm:$0xff] %v7324_v13  ;;  %v7326_v8 = vpop.permute.xlu1 %1032  ;;  %v7342_v13 = vrot.slane %v7150_v23, 1 }
 0x1ad   : > { %12273 = vst [vmem:[#allocation187_spill] sm:$0xff] %v7326_v8  ;;  %1197 = vrot.lane.b32.xlu0 %v12274_v51, %s5816_s21  ;;  %v12281_v8 = vld [vmem:[#allocation29_spill] sm:$0xff] }
 0x1ae   : > { %1199 = vrot.lane.b32.xlu1 %v12275_v10, %s5816_s21  ;;  %12280 = vst [vmem:[#allocation191_spill] sm:$0xff] %v7342_v13 }
 0x1af   : > { %v7332_v27 = vpop.permute.xlu0 %1034 }
 0x1b0   : > { %12276 = vst [vmem:[#allocation188_spill] sm:$0xff] %v7332_v27  ;;  %v7334_v18 = vpop.permute.xlu1 %1036  ;;  %v12284_v27 = vld [vmem:[#allocation28_spill] sm:$0xff] }
 0x1b1   : > { %12277 = vst [vmem:[#allocation189_spill] sm:$0xff] %v7334_v18  ;;  %1201 = vrot.lane.b32.xlu0 %v12278_v32, %s5816_s21  ;;  %v7355_v18 = vsel %vm518_vm1, %v7342_v13, %v7339_v61 }
 0x1b2   : > { %1203 = vrot.lane.b32.xlu1 %v12281_v8, %s5816_s21  ;;  %12285 = vst [vmem:[#allocation194_spill] sm:$0xff] %v7355_v18  ;;  %v12298_v8 = vld [vmem:[#allocation34_spill] sm:$0xff] }
 0x1b3   : > { %v7346_v51 = vpop.permute.xlu0 %1038 }
 0x1b4   : > { %12282 = vst [vmem:[#allocation192_spill] sm:$0xff] %v7346_v51  ;;  %v7348_v43 = vpop.permute.xlu1 %1040 }
 0x1b5   : > { %12283 = vst [vmem:[#allocation193_spill] sm:$0xff] %v7348_v43  ;;  %1205 = vrot.lane.b32.xlu0 %v12284_v27, %s5816_s21  ;;  %v12290_v27 = vld [vmem:[#allocation30_spill] sm:$0xff] }
 0x1b6   : > { %1207 = vrot.lane.b32.xlu1 %v7342_v13, %s5816_s21  ;;  %v12291_v13 = vld [vmem:[#allocation31_spill] sm:$0xff] }
 0x1b7   : > { %v7359_v32 = vpop.permute.xlu0 %1042 }
 0x1b8   : > { %12286 = vst [vmem:[#allocation195_spill] sm:$0xff] %v7359_v32  ;;  %v7361_v10 = vpop.permute.xlu1 %1044 }
 0x1b9   : > { %12287 = vst [vmem:[#allocation196_spill] sm:$0xff] %v7361_v10  ;;  %1209 = vrot.lane.b32.xlu0 %v7355_v18, %s5816_s21  ;;  %v12294_v18 = vld [vmem:[#allocation32_spill] sm:$0xff] }
 0x1ba   : > { %1211 = vrot.lane.b32.xlu1 %v7339_v61, %s5816_s21  ;;  %v12295_v61 = vld [vmem:[#allocation33_spill] sm:$0xff] }
 0x1bb   : > { %v7367_v43 = vpop.permute.xlu0 %1046 }
 0x1bc   : > { %12288 = vst [vmem:[#allocation197_spill] sm:$0xff] %v7367_v43  ;;  %v7369_v51 = vpop.permute.xlu1 %1048 }
 0x1bd   : > { %12289 = vst [vmem:[#allocation198_spill] sm:$0xff] %v7369_v51  ;;  %1267 = vrot.lane.b32.xlu0 %v12290_v27, %s5817_s22  ;;  %v12299_v27 = vld [vmem:[#allocation35_spill] sm:$0xff] }
 0x1be   : > { %1269 = vrot.lane.b32.xlu1 %v12291_v13, %s5817_s22 }
 0x1bf   : > { %v7375_v32 = vpop.permute.xlu0 %1050 }
 0x1c0   : > { %12292 = vst [vmem:[#allocation30_spill] sm:$0xff] %v7375_v32  ;;  %v7377_v10 = vpop.permute.xlu1 %1052 }
 0x1c1   : > { %12293 = vst [vmem:[#allocation31_spill] sm:$0xff] %v7377_v10  ;;  %1271 = vrot.lane.b32.xlu0 %v12294_v18, %s5817_s22  ;;  %v12302_v10 = vld [vmem:[#allocation36_spill] sm:$0xff]  ;;  %v12303_v18 = vld [vmem:[#allocation37_spill] sm:$0xff] }
 0x1c2   : > { %1273 = vrot.lane.b32.xlu1 %v12295_v61, %s5817_s22 }
 0x1c3   : > { %v7383_v43 = vpop.permute.xlu0 %1054 }
 0x1c4   : > { %12296 = vst [vmem:[#allocation32_spill] sm:$0xff] %v7383_v43  ;;  %v7385_v51 = vpop.permute.xlu1 %1056 }
 0x1c5   : > { %12297 = vst [vmem:[#allocation199_spill] sm:$0xff] %v7385_v51  ;;  %1275 = vrot.lane.b32.xlu0 %v12298_v8, %s5817_s22  ;;  %v12306_v51 = vld [vmem:[#allocation40_spill] sm:$0xff]  ;;  %v12307_v8 = vld [vmem:[#allocation41_spill] sm:$0xff] }
 0x1c6   : > { %1277 = vrot.lane.b32.xlu1 %v12299_v27, %s5817_s22 }
 0x1c7   : > { %v7391_v13 = vpop.permute.xlu0 %1058 }
 0x1c8   : > { %12300 = vst [vmem:[#allocation200_spill] sm:$0xff] %v7391_v13  ;;  %v7393_v32 = vpop.permute.xlu1 %1060 }
 0x1c9   : > { %12301 = vst [vmem:[#allocation201_spill] sm:$0xff] %v7393_v32  ;;  %1279 = vrot.lane.b32.xlu0 %v12302_v10, %s5817_s22  ;;  %v12310_v32 = vld [vmem:[#allocation43_spill] sm:$0xff]  ;;  %v12311_v10 = vld [vmem:[#allocation45_spill] sm:$0xff] }
 0x1ca   : > { %1281 = vrot.lane.b32.xlu1 %v12303_v18, %s5817_s22 }
 0x1cb   : > { %v7399_v61 = vpop.permute.xlu0 %1062 }
 0x1cc   : > { %12304 = vst [vmem:[#allocation202_spill] sm:$0xff] %v7399_v61  ;;  %v7401_v43 = vpop.permute.xlu1 %1064 }
 0x1cd   : > { %12305 = vst [vmem:[#allocation203_spill] sm:$0xff] %v7401_v43  ;;  %1283 = vrot.lane.b32.xlu0 %v12306_v51, %s5817_s22  ;;  %v12314_v43 = vld [vmem:[#allocation46_spill] sm:$0xff]  ;;  %v12315_v51 = vld [vmem:[#allocation49_spill] sm:$0xff] }
 0x1ce   : > { %1285 = vrot.lane.b32.xlu1 %v12307_v8, %s5817_s22 }
 0x1cf   : > { %v7407_v27 = vpop.permute.xlu0 %1117 }
 0x1d0   : > { %12308 = vst [vmem:[#allocation204_spill] sm:$0xff] %v7407_v27  ;;  %v7409_v13 = vpop.permute.xlu1 %1119 }
 0x1d1   : > { %12309 = vst [vmem:[#allocation205_spill] sm:$0xff] %v7409_v13  ;;  %1287 = vrot.lane.b32.xlu0 %v12310_v32, %s5817_s22  ;;  %v12318_v13 = vld [vmem:[#allocation51_spill] sm:$0xff]  ;;  %v12319_v32 = vld [vmem:[#allocation52_spill] sm:$0xff] }
 0x1d2   : > { %1289 = vrot.lane.b32.xlu1 %v12311_v10, %s5817_s22 }
 0x1d3   : > { %v7415_v18 = vpop.permute.xlu0 %1121 }
 0x1d4   : > { %12312 = vst [vmem:[#allocation206_spill] sm:$0xff] %v7415_v18  ;;  %v7417_v61 = vpop.permute.xlu1 %1123 }
 0x1d5   : > { %12313 = vst [vmem:[#allocation207_spill] sm:$0xff] %v7417_v61  ;;  %1291 = vrot.lane.b32.xlu0 %v12314_v43, %s5817_s22  ;;  %v12322_v61 = vld [vmem:[#allocation55_spill] sm:$0xff]  ;;  %v12323_v43 = vld [vmem:[#allocation57_spill] sm:$0xff] }
 0x1d6   : > { %1293 = vrot.lane.b32.xlu1 %v12315_v51, %s5817_s22 }
 0x1d7   : > { %v7423_v8 = vpop.permute.xlu0 %1125 }
 0x1d8   : > { %12316 = vst [vmem:[#allocation208_spill] sm:$0xff] %v7423_v8  ;;  %v7425_v27 = vpop.permute.xlu1 %1127 }
 0x1d9   : > { %12317 = vst [vmem:[#allocation209_spill] sm:$0xff] %v7425_v27  ;;  %1295 = vrot.lane.b32.xlu0 %v12318_v13, %s5817_s22  ;;  %v12326_v27 = vld [vmem:[#allocation58_spill] sm:$0xff]  ;;  %v12327_v13 = vld [vmem:[#allocation61_spill] sm:$0xff] }
 0x1da   : > { %1297 = vrot.lane.b32.xlu1 %v12319_v32, %s5817_s22 }
 0x1db   : > { %v7431_v10 = vpop.permute.xlu0 %1129 }
 0x1dc   : > { %12320 = vst [vmem:[#allocation210_spill] sm:$0xff] %v7431_v10  ;;  %v7433_v18 = vpop.permute.xlu1 %1131 }
 0x1dd   : > { %12321 = vst [vmem:[#allocation211_spill] sm:$0xff] %v7433_v18  ;;  %1299 = vrot.lane.b32.xlu0 %v12322_v61, %s5817_s22  ;;  %v12330_v18 = vld [vmem:[#allocation63_spill] sm:$0xff]  ;;  %v12331_v61 = vld [vmem:[#allocation64_spill] sm:$0xff] }
 0x1de   : > { %1301 = vrot.lane.b32.xlu1 %v12323_v43, %s5817_s22 }
 0x1df   : > { %v7439_v51 = vpop.permute.xlu0 %1133 }
 0x1e0   : > { %12324 = vst [vmem:[#allocation212_spill] sm:$0xff] %v7439_v51  ;;  %v7441_v8 = vpop.permute.xlu1 %1135 }
 0x1e1   : > { %12325 = vst [vmem:[#allocation213_spill] sm:$0xff] %v7441_v8  ;;  %1303 = vrot.lane.b32.xlu0 %v12326_v27, %s5817_s22  ;;  %v12334_v8 = vld [vmem:[#allocation67_spill] sm:$0xff]  ;;  %v12335_v27 = vld [vmem:[#allocation69_spill] sm:$0xff] }
 0x1e2   : > { %1305 = vrot.lane.b32.xlu1 %v12327_v13, %s5817_s22 }
 0x1e3   : > { %v7447_v32 = vpop.permute.xlu0 %1137 }
 0x1e4   : > { %12328 = vst [vmem:[#allocation214_spill] sm:$0xff] %v7447_v32  ;;  %v7449_v10 = vpop.permute.xlu1 %1139 }
 0x1e5   : > { %12329 = vst [vmem:[#allocation215_spill] sm:$0xff] %v7449_v10  ;;  %1307 = vrot.lane.b32.xlu0 %v12330_v18, %s5817_s22  ;;  %v12338_v10 = vld [vmem:[#allocation70_spill] sm:$0xff]  ;;  %v12339_v18 = vld [vmem:[#allocation73_spill] sm:$0xff] }
 0x1e6   : > { %1309 = vrot.lane.b32.xlu1 %v12331_v61, %s5817_s22 }
 0x1e7   : > { %v7455_v43 = vpop.permute.xlu0 %1141 }
 0x1e8   : > { %12332 = vst [vmem:[#allocation216_spill] sm:$0xff] %v7455_v43  ;;  %v7457_v51 = vpop.permute.xlu1 %1143 }
 0x1e9   : > { %12333 = vst [vmem:[#allocation217_spill] sm:$0xff] %v7457_v51  ;;  %1311 = vrot.lane.b32.xlu0 %v12334_v8, %s5817_s22  ;;  %v12342_v51 = vld [vmem:[#allocation75_spill] sm:$0xff]  ;;  %v12343_v8 = vld [vmem:[#allocation76_spill] sm:$0xff] }
 0x1ea   : > { %1313 = vrot.lane.b32.xlu1 %v12335_v27, %s5817_s22 }
 0x1eb   : > { %v7463_v13 = vpop.permute.xlu0 %1145 }
 0x1ec   : > { %12336 = vst [vmem:[#allocation218_spill] sm:$0xff] %v7463_v13  ;;  %v7465_v32 = vpop.permute.xlu1 %1147 }
 0x1ed   : > { %12337 = vst [vmem:[#allocation219_spill] sm:$0xff] %v7465_v32  ;;  %1315 = vrot.lane.b32.xlu0 %v12338_v10, %s5817_s22  ;;  %v12346_v32 = vld [vmem:[#allocation79_spill] sm:$0xff]  ;;  %v12347_v10 = vld [vmem:[#allocation81_spill] sm:$0xff] }
 0x1ee   : > { %1317 = vrot.lane.b32.xlu1 %v12339_v18, %s5817_s22 }
 0x1ef   : > { %v7471_v61 = vpop.permute.xlu0 %1149 }
 0x1f0   : > { %12340 = vst [vmem:[#allocation220_spill] sm:$0xff] %v7471_v61  ;;  %v7473_v43 = vpop.permute.xlu1 %1151 }
 0x1f1   : > { %12341 = vst [vmem:[#allocation221_spill] sm:$0xff] %v7473_v43  ;;  %1319 = vrot.lane.b32.xlu0 %v12342_v51, %s5817_s22  ;;  %v12350_v43 = vld [vmem:[#allocation82_spill] sm:$0xff]  ;;  %v12351_v51 = vld [vmem:[#allocation85_spill] sm:$0xff] }
 0x1f2   : > { %1321 = vrot.lane.b32.xlu1 %v12343_v8, %s5817_s22 }
 0x1f3   : > { %v7479_v27 = vpop.permute.xlu0 %1153 }
 0x1f4   : > { %12344 = vst [vmem:[#allocation222_spill] sm:$0xff] %v7479_v27  ;;  %v7481_v13 = vpop.permute.xlu1 %1155 }
 0x1f5   : > { %12345 = vst [vmem:[#allocation223_spill] sm:$0xff] %v7481_v13  ;;  %1323 = vrot.lane.b32.xlu0 %v12346_v32, %s5817_s22  ;;  %v12354_v13 = vld [vmem:[#allocation87_spill] sm:$0xff]  ;;  %v12355_v32 = vld [vmem:[#allocation88_spill] sm:$0xff] }
 0x1f6   : > { %1325 = vrot.lane.b32.xlu1 %v12347_v10, %s5817_s22 }
 0x1f7   : > { %v7487_v18 = vpop.permute.xlu0 %1157 }
 0x1f8   : > { %12348 = vst [vmem:[#allocation224_spill] sm:$0xff] %v7487_v18  ;;  %v7489_v61 = vpop.permute.xlu1 %1159 }
 0x1f9   : > { %12349 = vst [vmem:[#allocation225_spill] sm:$0xff] %v7489_v61  ;;  %1327 = vrot.lane.b32.xlu0 %v12350_v43, %s5817_s22  ;;  %v12358_v61 = vld [vmem:[#allocation91_spill] sm:$0xff]  ;;  %v12359_v43 = vld [vmem:[#allocation93_spill] sm:$0xff] }
 0x1fa   : > { %1329 = vrot.lane.b32.xlu1 %v12351_v51, %s5817_s22 }
 0x1fb   : > { %v7495_v8 = vpop.permute.xlu0 %1161 }
 0x1fc   : > { %12352 = vst [vmem:[#allocation226_spill] sm:$0xff] %v7495_v8  ;;  %v7497_v27 = vpop.permute.xlu1 %1163 }
 0x1fd   : > { %12353 = vst [vmem:[#allocation227_spill] sm:$0xff] %v7497_v27  ;;  %1331 = vrot.lane.b32.xlu0 %v12354_v13, %s5817_s22  ;;  %v12362_v27 = vld [vmem:[#allocation94_spill] sm:$0xff]  ;;  %v12363_v13 = vld [vmem:[#allocation97_spill] sm:$0xff] }
 0x1fe   : > { %1333 = vrot.lane.b32.xlu1 %v12355_v32, %s5817_s22 }
 0x1ff   : > { %v7503_v10 = vpop.permute.xlu0 %1165 }
 0x200   : > { %12356 = vst [vmem:[#allocation228_spill] sm:$0xff] %v7503_v10  ;;  %v7505_v18 = vpop.permute.xlu1 %1167 }
 0x201   : > { %12357 = vst [vmem:[#allocation229_spill] sm:$0xff] %v7505_v18  ;;  %1335 = vrot.lane.b32.xlu0 %v12358_v61, %s5817_s22  ;;  %v12366_v18 = vld [vmem:[#allocation99_spill] sm:$0xff] }
 0x202   : > { %1337 = vrot.lane.b32.xlu1 %v12359_v43, %s5817_s22 }
 0x203   : > { %v7511_v51 = vpop.permute.xlu0 %1169 }
 0x204   : > { %12360 = vst [vmem:[#allocation91_spill] sm:$0xff] %v7511_v51  ;;  %v7513_v8 = vpop.permute.xlu1 %1171 }
 0x205   : > { %12361 = vst [vmem:[#allocation230_spill] sm:$0xff] %v7513_v8  ;;  %1339 = vrot.lane.b32.xlu0 %v12362_v27, %s5817_s22  ;;  %v12369_v8 = vld [vmem:[#allocation103_spill] sm:$0xff] }
 0x206   : > { %1341 = vrot.lane.b32.xlu1 %v12363_v13, %s5817_s22 }
 0x207   : > { %v7519_v32 = vpop.permute.xlu0 %1173 }
 0x208   : > { %12364 = vst [vmem:[#allocation94_spill] sm:$0xff] %v7519_v32  ;;  %v7521_v10 = vpop.permute.xlu1 %1175 }
 0x209   : > { %12365 = vst [vmem:[#allocation231_spill] sm:$0xff] %v7521_v10  ;;  %1343 = vrot.lane.b32.xlu0 %v12366_v18, %s5817_s22  ;;  %v481_v10 = vld [vmem:[#allocation2 + $0x218] sm:$0xff] }
 0x20a   : > { %1345 = vrot.lane.b32.xlu1 %v6888_v17, %s5817_s22  ;;  %v1263_v17 = vrot.slane %v7156_v45, 2 }
 0x20b   : > { %v7527_v43 = vpop.permute.xlu0 %1177 }
 0x20c   : > { %12367 = vst [vmem:[#allocation99_spill] sm:$0xff] %v7527_v43  ;;  %v7529_v51 = vpop.permute.xlu1 %1179  ;;  %v7543_v43 = vrot.slane %v7150_v23, 2 }
 0x20d   : > { %12368 = vst [vmem:[#allocation232_spill] sm:$0xff] %v7529_v51  ;;  %1347 = vrot.lane.b32.xlu0 %v12369_v8, %s5817_s22  ;;  %v1265_v8 = vrot.slane %v481_v10, 2 }
 0x20e   : > { %1349 = vrot.lane.b32.xlu1 %v6908_v7, %s5817_s22 }
 0x20f   : > { %v7535_v13 = vpop.permute.xlu0 %1181 }
 0x210   : > { %12370 = vst [vmem:[#allocation233_spill] sm:$0xff] %v7535_v13  ;;  %v7537_v32 = vpop.permute.xlu1 %1183 }
 0x211   : > { %12371 = vst [vmem:[#allocation234_spill] sm:$0xff] %v7537_v32  ;;  %1351 = vrot.lane.b32.xlu0 %v6911_v42, %s5817_s22  ;;  %v7555_v32 = vsel %vm727_vm3, %v7543_v43, %v1263_v17  ;;  %v7562_v42 = vsel %vm727_vm3, %v1263_v17, %v1265_v8 }
 0x212   : > { %1353 = vrot.lane.b32.xlu1 %v6924_v26, %s5817_s22 }
 0x213   : > { %v7547_v51 = vpop.permute.xlu0 %1185 }
 0x214   : > { %12372 = vst [vmem:[#allocation235_spill] sm:$0xff] %v7547_v51  ;;  %v7549_v7 = vpop.permute.xlu1 %1187 }
 0x215   : > { %12373 = vst [vmem:[#allocation236_spill] sm:$0xff] %v7549_v7  ;;  %1355 = vrot.lane.b32.xlu0 %v6931_v0, %s5817_s22 }
 0x216   : > { %1357 = vrot.lane.b32.xlu1 %v7543_v43, %s5817_s22 }
 0x217   : > { %v7559_v13 = vpop.permute.xlu0 %1189 }
 0x218   : > { %12374 = vst [vmem:[#allocation237_spill] sm:$0xff] %v7559_v13  ;;  %v7564_v26 = vpop.permute.xlu1 %1191  ;;  %v7576_v13 = vld [vmem:[#allocation2 + $0x48] sm:$0xff] }
 0x219   : > { %12375 = vst [vmem:[#allocation238_spill] sm:$0xff] %v7564_v26  ;;  %1359 = vrot.lane.b32.xlu0 %v7555_v32, %s5817_s22  ;;  %v7584_v26 = vld [vmem:[#allocation2 + $0x50] sm:$0xff] }
 0x21a   : > { %1361 = vrot.lane.b32.xlu1 %v7562_v42, %s5817_s22  ;;  %s5272_s22 = sshll.u32 %s270_s20, 4  ;;  %s5273_s22 = int_to_ptr.vmem [resolvable:$true] %s5272_s22 }
 0x21b   : > { %v7570_v10 = vpop.permute.xlu0 %1193 }
 0x21c   : > { %12376 = vst [vmem:[#allocation239_spill] sm:$0xff] %v7570_v10  ;;  %v7572_v7 = vpop.permute.xlu1 %1195  ;;  %v7594_v10 = vld [vmem:[#allocation2 + $0x68] sm:$0xff] }
 0x21d   : > { %12377 = vst [vmem:[#allocation240_spill] sm:$0xff] %v7572_v7  ;;  %1414 = vrot.lane.b32.xlu0 %v6952_v16, %s5818_s23  ;;  %12382 = vst [vmem:[#allocation245_spill] sm:$0xff] %v7594_v10 }
 0x21e   : > { %1416 = vrot.lane.b32.xlu1 %v7576_v13, %s5818_s23 }
 0x21f   : > { %v7580_v17 = vpop.permute.xlu0 %1197 }
 0x220   : > { %12378 = vst [vmem:[#allocation241_spill] sm:$0xff] %v7580_v17  ;;  %v7582_v8 = vpop.permute.xlu1 %1199  ;;  %v7598_v17 = vld [vmem:[#allocation2 + $0x70] sm:$0xff] }
 0x221   : > { %12379 = vst [vmem:[#allocation242_spill] sm:$0xff] %v7582_v8  ;;  %1418 = vrot.lane.b32.xlu0 %v7584_v26, %s5818_s23 }
 0x222   : > { %1420 = vrot.lane.b32.xlu1 %v6966_v21, %s5818_s23  ;;  %v7608_v21 = vld [vmem:[#allocation2 + $0x88] sm:$0xff] }
 0x223   : > { %v7590_v7 = vpop.permute.xlu0 %1201 }
 0x224   : > { %12380 = vst [vmem:[#allocation243_spill] sm:$0xff] %v7590_v7  ;;  %v7592_v16 = vpop.permute.xlu1 %1203 }
 0x225   : > { %12381 = vst [vmem:[#allocation244_spill] sm:$0xff] %v7592_v16  ;;  %1422 = vrot.lane.b32.xlu0 %v7594_v10, %s5818_s23  ;;  %v7616_v10 = vld [vmem:[#allocation2 + $0x90] sm:$0xff] }
 0x226   : > { %1424 = vrot.lane.b32.xlu1 %v7598_v17, %s5818_s23  ;;  %12387 = vst [vmem:[#allocation250_spill] sm:$0xff] %v7616_v10 }
 0x227   : > { %v7602_v8 = vpop.permute.xlu0 %1205 }
 0x228   : > { %12383 = vst [vmem:[#allocation246_spill] sm:$0xff] %v7602_v8  ;;  %v7604_v51 = vpop.permute.xlu1 %1207  ;;  %v7626_v8 = vld [vmem:[#allocation2 + $0xa8] sm:$0xff] }
 0x229   : > { %12384 = vst [vmem:[#allocation247_spill] sm:$0xff] %v7604_v51  ;;  %1426 = vrot.lane.b32.xlu0 %v6980_v28, %s5818_s23  ;;  %12390 = vst [vmem:[#allocation253_spill] sm:$0xff] %v7626_v8 }
 0x22a   : > { %1428 = vrot.lane.b32.xlu1 %v7608_v21, %s5818_s23 }
 0x22b   : > { %v7612_v16 = vpop.permute.xlu0 %1209 }
 0x22c   : > { %12385 = vst [vmem:[#allocation248_spill] sm:$0xff] %v7612_v16  ;;  %v7614_v7 = vpop.permute.xlu1 %1211  ;;  %v7630_v16 = vld [vmem:[#allocation2 + $0xb0] sm:$0xff] }
 0x22d   : > { %12386 = vst [vmem:[#allocation249_spill] sm:$0xff] %v7614_v7  ;;  %1430 = vrot.lane.b32.xlu0 %v7616_v10, %s5818_s23 }
 0x22e   : > { %1432 = vrot.lane.b32.xlu1 %v6994_v33, %s5818_s23  ;;  %v7640_v33 = vld [vmem:[#allocation2 + $0xc8] sm:$0xff] }
 0x22f   : > { %v7622_v51 = vpop.permute.xlu0 %1267 }
 0x230   : > { %12388 = vst [vmem:[#allocation251_spill] sm:$0xff] %v7622_v51  ;;  %v7624_v28 = vpop.permute.xlu1 %1269 }
 0x231   : > { %12389 = vst [vmem:[#allocation252_spill] sm:$0xff] %v7624_v28  ;;  %1434 = vrot.lane.b32.xlu0 %v7626_v8, %s5818_s23  ;;  %v7648_v8 = vld [vmem:[#allocation2 + $0xd0] sm:$0xff] }
 0x232   : > { %1436 = vrot.lane.b32.xlu1 %v7630_v16, %s5818_s23  ;;  %12395 = vst [vmem:[#allocation258_spill] sm:$0xff] %v7648_v8 }
 0x233   : > { %v7634_v7 = vpop.permute.xlu0 %1271 }
 0x234   : > { %12391 = vst [vmem:[#allocation254_spill] sm:$0xff] %v7634_v7  ;;  %v7636_v10 = vpop.permute.xlu1 %1273  ;;  %v7658_v7 = vld [vmem:[#allocation2 + $0xe8] sm:$0xff] }
 0x235   : > { %12392 = vst [vmem:[#allocation255_spill] sm:$0xff] %v7636_v10  ;;  %1438 = vrot.lane.b32.xlu0 %v7008_v50, %s5818_s23  ;;  %12398 = vst [vmem:[#allocation261_spill] sm:$0xff] %v7658_v7 }
 0x236   : > { %1440 = vrot.lane.b32.xlu1 %v7640_v33, %s5818_s23 }
 0x237   : > { %v7644_v28 = vpop.permute.xlu0 %1275 }
 0x238   : > { %12393 = vst [vmem:[#allocation256_spill] sm:$0xff] %v7644_v28  ;;  %v7646_v51 = vpop.permute.xlu1 %1277  ;;  %v7662_v28 = vld [vmem:[#allocation2 + $0xf0] sm:$0xff] }
 0x239   : > { %12394 = vst [vmem:[#allocation257_spill] sm:$0xff] %v7646_v51  ;;  %1442 = vrot.lane.b32.xlu0 %v7648_v8, %s5818_s23 }
 0x23a   : > { %1444 = vrot.lane.b32.xlu1 %v7022_v29, %s5818_s23  ;;  %v7672_v29 = vld [vmem:[#allocation2 + $0x108] sm:$0xff] }
 0x23b   : > { %v7654_v10 = vpop.permute.xlu0 %1279 }
 0x23c   : > { %12396 = vst [vmem:[#allocation259_spill] sm:$0xff] %v7654_v10  ;;  %v7656_v50 = vpop.permute.xlu1 %1281 }
 0x23d   : > { %12397 = vst [vmem:[#allocation260_spill] sm:$0xff] %v7656_v50  ;;  %1446 = vrot.lane.b32.xlu0 %v7658_v7, %s5818_s23  ;;  %v7680_v7 = vld [vmem:[#allocation2 + $0x110] sm:$0xff] }
 0x23e   : > { %1448 = vrot.lane.b32.xlu1 %v7662_v28, %s5818_s23  ;;  %12403 = vst [vmem:[#allocation266_spill] sm:$0xff] %v7680_v7 }
 0x23f   : > { %v7666_v51 = vpop.permute.xlu0 %1283 }
 0x240   : > { %12399 = vst [vmem:[#allocation262_spill] sm:$0xff] %v7666_v51  ;;  %v7668_v8 = vpop.permute.xlu1 %1285  ;;  %v7690_v51 = vld [vmem:[#allocation2 + $0x128] sm:$0xff] }
 0x241   : > { %12400 = vst [vmem:[#allocation263_spill] sm:$0xff] %v7668_v8  ;;  %1450 = vrot.lane.b32.xlu0 %v7036_v60, %s5818_s23  ;;  %12406 = vst [vmem:[#allocation269_spill] sm:$0xff] %v7690_v51 }
 0x242   : > { %1452 = vrot.lane.b32.xlu1 %v7672_v29, %s5818_s23 }
 0x243   : > { %v7676_v50 = vpop.permute.xlu0 %1287 }
 0x244   : > { %12401 = vst [vmem:[#allocation264_spill] sm:$0xff] %v7676_v50  ;;  %v7678_v10 = vpop.permute.xlu1 %1289  ;;  %v7694_v50 = vld [vmem:[#allocation2 + $0x130] sm:$0xff] }
 0x245   : > { %12402 = vst [vmem:[#allocation265_spill] sm:$0xff] %v7678_v10  ;;  %1454 = vrot.lane.b32.xlu0 %v7680_v7, %s5818_s23 }
 0x246   : > { %1456 = vrot.lane.b32.xlu1 %v7050_v39, %s5818_s23  ;;  %v7704_v39 = vld [vmem:[#allocation2 + $0x148] sm:$0xff] }
 0x247   : > { %v7686_v8 = vpop.permute.xlu0 %1291 }
 0x248   : > { %12404 = vst [vmem:[#allocation267_spill] sm:$0xff] %v7686_v8  ;;  %v7688_v60 = vpop.permute.xlu1 %1293 }
 0x249   : > { %12405 = vst [vmem:[#allocation268_spill] sm:$0xff] %v7688_v60  ;;  %1458 = vrot.lane.b32.xlu0 %v7690_v51, %s5818_s23  ;;  %v7712_v51 = vld [vmem:[#allocation2 + $0x150] sm:$0xff] }
 0x24a   : > { %1460 = vrot.lane.b32.xlu1 %v7694_v50, %s5818_s23  ;;  %12411 = vst [vmem:[#allocation274_spill] sm:$0xff] %v7712_v51 }
 0x24b   : > { %v7698_v10 = vpop.permute.xlu0 %1295 }
 0x24c   : > { %12407 = vst [vmem:[#allocation270_spill] sm:$0xff] %v7698_v10  ;;  %v7700_v7 = vpop.permute.xlu1 %1297  ;;  %v7722_v10 = vld [vmem:[#allocation2 + $0x168] sm:$0xff] }
 0x24d   : > { %12408 = vst [vmem:[#allocation271_spill] sm:$0xff] %v7700_v7  ;;  %1462 = vrot.lane.b32.xlu0 %v7064_v9, %s5818_s23  ;;  %12414 = vst [vmem:[#allocation277_spill] sm:$0xff] %v7722_v10 }
 0x24e   : > { %1464 = vrot.lane.b32.xlu1 %v7704_v39, %s5818_s23 }
 0x24f   : > { %v7708_v60 = vpop.permute.xlu0 %1299 }
 0x250   : > { %12409 = vst [vmem:[#allocation272_spill] sm:$0xff] %v7708_v60  ;;  %v7710_v8 = vpop.permute.xlu1 %1301  ;;  %v7726_v60 = vld [vmem:[#allocation2 + $0x170] sm:$0xff] }
 0x251   : > { %12410 = vst [vmem:[#allocation273_spill] sm:$0xff] %v7710_v8  ;;  %1466 = vrot.lane.b32.xlu0 %v7712_v51, %s5818_s23 }
 0x252   : > { %1468 = vrot.lane.b32.xlu1 %v7078_v56, %s5818_s23  ;;  %v7736_v56 = vld [vmem:[#allocation2 + $0x188] sm:$0xff] }
 0x253   : > { %v7718_v7 = vpop.permute.xlu0 %1303 }
 0x254   : > { %12412 = vst [vmem:[#allocation275_spill] sm:$0xff] %v7718_v7  ;;  %v7720_v9 = vpop.permute.xlu1 %1305 }
 0x255   : > { %12413 = vst [vmem:[#allocation276_spill] sm:$0xff] %v7720_v9  ;;  %1470 = vrot.lane.b32.xlu0 %v7722_v10, %s5818_s23  ;;  %v7744_v10 = vld [vmem:[#allocation2 + $0x190] sm:$0xff] }
 0x256   : > { %1472 = vrot.lane.b32.xlu1 %v7726_v60, %s5818_s23  ;;  %12419 = vst [vmem:[#allocation282_spill] sm:$0xff] %v7744_v10 }
 0x257   : > { %v7730_v8 = vpop.permute.xlu0 %1307 }
 0x258   : > { %12415 = vst [vmem:[#allocation278_spill] sm:$0xff] %v7730_v8  ;;  %v7732_v51 = vpop.permute.xlu1 %1309  ;;  %v7754_v8 = vld [vmem:[#allocation2 + $0x1a8] sm:$0xff] }
 0x259   : > { %12416 = vst [vmem:[#allocation279_spill] sm:$0xff] %v7732_v51  ;;  %1474 = vrot.lane.b32.xlu0 %v7092_v19, %s5818_s23  ;;  %12422 = vst [vmem:[#allocation285_spill] sm:$0xff] %v7754_v8 }
 0x25a   : > { %1476 = vrot.lane.b32.xlu1 %v7736_v56, %s5818_s23 }
 0x25b   : > { %v7740_v9 = vpop.permute.xlu0 %1311 }
 0x25c   : > { %12417 = vst [vmem:[#allocation280_spill] sm:$0xff] %v7740_v9  ;;  %v7742_v7 = vpop.permute.xlu1 %1313  ;;  %v7758_v9 = vld [vmem:[#allocation2 + $0x1b0] sm:$0xff] }
 0x25d   : > { %12418 = vst [vmem:[#allocation281_spill] sm:$0xff] %v7742_v7  ;;  %1478 = vrot.lane.b32.xlu0 %v7744_v10, %s5818_s23 }
 0x25e   : > { %1480 = vrot.lane.b32.xlu1 %v7106_v3, %s5818_s23  ;;  %v7768_v3 = vld [vmem:[#allocation2 + $0x1c8] sm:$0xff] }
 0x25f   : > { %v7750_v51 = vpop.permute.xlu0 %1315 }
 0x260   : > { %12420 = vst [vmem:[#allocation283_spill] sm:$0xff] %v7750_v51  ;;  %v7752_v19 = vpop.permute.xlu1 %1317 }
 0x261   : > { %12421 = vst [vmem:[#allocation284_spill] sm:$0xff] %v7752_v19  ;;  %1482 = vrot.lane.b32.xlu0 %v7754_v8, %s5818_s23  ;;  %v7776_v8 = vld [vmem:[#allocation2 + $0x1d0] sm:$0xff] }
 0x262   : > { %1484 = vrot.lane.b32.xlu1 %v7758_v9, %s5818_s23  ;;  %12427 = vst [vmem:[#allocation290_spill] sm:$0xff] %v7776_v8 }
 0x263   : > { %v7762_v7 = vpop.permute.xlu0 %1319 }
 0x264   : > { %12423 = vst [vmem:[#allocation286_spill] sm:$0xff] %v7762_v7  ;;  %v7764_v10 = vpop.permute.xlu1 %1321  ;;  %v7786_v7 = vld [vmem:[#allocation2 + $0x1e8] sm:$0xff] }
 0x265   : > { %12424 = vst [vmem:[#allocation287_spill] sm:$0xff] %v7764_v10  ;;  %1486 = vrot.lane.b32.xlu0 %v7120_v40, %s5818_s23  ;;  %12430 = vst [vmem:[#allocation293_spill] sm:$0xff] %v7786_v7 }
 0x266   : > { %1488 = vrot.lane.b32.xlu1 %v7768_v3, %s5818_s23 }
 0x267   : > { %v7772_v19 = vpop.permute.xlu0 %1323 }
 0x268   : > { %12425 = vst [vmem:[#allocation288_spill] sm:$0xff] %v7772_v19  ;;  %v7774_v51 = vpop.permute.xlu1 %1325  ;;  %v7790_v19 = vld [vmem:[#allocation2 + $0x1f0] sm:$0xff] }
 0x269   : > { %12426 = vst [vmem:[#allocation289_spill] sm:$0xff] %v7774_v51  ;;  %1490 = vrot.lane.b32.xlu0 %v7776_v8, %s5818_s23 }
 0x26a   : > { %1492 = vrot.lane.b32.xlu1 %v7134_v15, %s5818_s23 }
 0x26b   : > { %v7782_v10 = vpop.permute.xlu0 %1327 }
 0x26c   : > { %12428 = vst [vmem:[#allocation291_spill] sm:$0xff] %v7782_v10  ;;  %v7784_v40 = vpop.permute.xlu1 %1329 }
 0x26d   : > { %12429 = vst [vmem:[#allocation292_spill] sm:$0xff] %v7784_v40  ;;  %1494 = vrot.lane.b32.xlu0 %v7786_v7, %s5818_s23  ;;  %v482_v40 = vld [vmem:[#allocation2 + $0x220] sm:$0xff]  ;;  %v7808_v7 = vld [vmem:[#allocation2 + $0x228] sm:$0xff] }
 0x26e   : > { %1496 = vrot.lane.b32.xlu1 %v7790_v19, %s5818_s23 }
 0x26f   : > { %v7794_v51 = vpop.permute.xlu0 %1331 }
 0x270   : > { %12431 = vst [vmem:[#allocation294_spill] sm:$0xff] %v7794_v51  ;;  %v7796_v8 = vpop.permute.xlu1 %1333 }
 0x271   : > { %12432 = vst [vmem:[#allocation295_spill] sm:$0xff] %v7796_v8  ;;  %1498 = vrot.lane.b32.xlu0 %v7144_v25, %s5818_s23  ;;  %v7813_v8 = vld [vmem:[#allocation2 + $0x230] sm:$0xff] }
 0x272   : > { %1500 = vrot.lane.b32.xlu1 %v7150_v23, %s5818_s23 }
 0x273   : > { %v7802_v15 = vpop.permute.xlu0 %1335 }
 0x274   : > { %12433 = vst [vmem:[#allocation296_spill] sm:$0xff] %v7802_v15  ;;  %v7804_v10 = vpop.permute.xlu1 %1337  ;;  %v1559_v15 = vrot.slane %v7813_v8, 1 }
 0x275   : > { %12434 = vst [vmem:[#allocation297_spill] sm:$0xff] %v7804_v10  ;;  %1502 = vrot.lane.b32.xlu0 %v7156_v45, %s5818_s23 }
 0x276   : > { %1504 = vrot.lane.b32.xlu1 %v482_v40, %s5818_s23 }
 0x277   : > { %v7811_v51 = vpop.permute.xlu0 %1339 }
 0x278   : > { %12435 = vst [vmem:[#allocation298_spill] sm:$0xff] %v7811_v51  ;;  %v7815_v25 = vpop.permute.xlu1 %1341  ;;  %v2377_v51 = vld [vmem:[%s11782_s1 + $0x10] sm:$0xff] }
 0x279   : > { %12436 = vst [vmem:[#allocation299_spill] sm:$0xff] %v7815_v25  ;;  %1506 = vrot.lane.b32.xlu0 %v7808_v7, %s5818_s23 }
 0x27a   : > { %1508 = vrot.lane.b32.xlu1 %v7813_v8, %s5818_s23 }
 0x27b   : > { %v7821_v23 = vpop.permute.xlu0 %1343 }
 0x27c   : > { %12437 = vst [vmem:[#allocation300_spill] sm:$0xff] %v7821_v23  ;;  %v7823_v10 = vpop.permute.xlu1 %1345 }
 0x27d   : > { %12438 = vst [vmem:[#allocation301_spill] sm:$0xff] %v7823_v10  ;;  %1561 = vrot.lane.b32.xlu0 %v6130_v31, %s5819_s29 }
 0x27e   : > { %1563 = vrot.lane.b32.xlu1 %v6186_v49, %s5819_s29 }
 0x27f   : > { %v7829_v45 = vpop.permute.xlu0 %1347 }
 0x280   : > { %12439 = vst [vmem:[#allocation302_spill] sm:$0xff] %v7829_v45  ;;  %v7831_v40 = vpop.permute.xlu1 %1349  ;;  %v12481_v45 = vld [vmem:[#allocation29_spill] sm:$0xff] }
 0x281   : > { %12440 = vst [vmem:[#allocation303_spill] sm:$0xff] %v7831_v40  ;;  %1565 = vrot.lane.b32.xlu0 %v6148_v37, %s5819_s29 }
 0x282   : > { %1567 = vrot.lane.b32.xlu1 %v6153_v38, %s5819_s29 }
 0x283   : > { %v7837_v23 = vpop.permute.xlu0 %1351 }
 0x284   : > { %12441 = vst [vmem:[#allocation304_spill] sm:$0xff] %v7837_v23  ;;  %v7839_v10 = vpop.permute.xlu1 %1353  ;;  %v12477_v23 = vld [vmem:[#allocation25_spill] sm:$0xff] }
 0x285   : > { %12442 = vst [vmem:[#allocation305_spill] sm:$0xff] %v7839_v10  ;;  %1569 = vrot.lane.b32.xlu0 %v6197_v52, %s5819_s29 }
 0x286   : > { %1571 = vrot.lane.b32.xlu1 %v6174_v47, %s5819_s29 }
 0x287   : > { %v7845_v31 = vpop.permute.xlu0 %1355 }
 0x288   : > { %12443 = vst [vmem:[#allocation306_spill] sm:$0xff] %v7845_v31  ;;  %v7847_v49 = vpop.permute.xlu1 %1357  ;;  %v12473_v31 = vld [vmem:[#allocation24_spill] sm:$0xff] }
 0x289   : > { %12444 = vst [vmem:[#allocation307_spill] sm:$0xff] %v7847_v49  ;;  %1573 = vrot.lane.b32.xlu0 %v6202_v53, %s5819_s29 }
 0x28a   : > { %1575 = vrot.lane.b32.xlu1 %v6218_v57, %s5819_s29 }
 0x28b   : > { %v7853_v37 = vpop.permute.xlu0 %1359 }
 0x28c   : > { %12445 = vst [vmem:[#allocation308_spill] sm:$0xff] %v7853_v37  ;;  %v7855_v38 = vpop.permute.xlu1 %1361  ;;  %v12469_v37 = vld [vmem:[#allocation23_spill] sm:$0xff] }
 0x28d   : > { %12446 = vst [vmem:[#allocation309_spill] sm:$0xff] %v7855_v38  ;;  %1577 = vrot.lane.b32.xlu0 %v6205_v54, %s5819_s29 }
 0x28e   : > { %1579 = vrot.lane.b32.xlu1 %v6223_v58, %s5819_s29 }
 0x28f   : > { %v7861_v47 = vpop.permute.xlu0 %1414 }
 0x290   : > { %v7863_v52 = vpop.permute.xlu1 %1416 }
 0x291   : > { %1581 = vrot.lane.b32.xlu0 %v6239_v62, %s5819_s29 }
 0x292   : > { %1583 = vrot.lane.b32.xlu1 %v6226_v59, %s5819_s29 }
 0x293   : > { %v7869_v53 = vpop.permute.xlu0 %1418 }
 0x294   : > { %v7871_v57 = vpop.permute.xlu1 %1420 }
 0x295   : > { %1585 = vrot.lane.b32.xlu0 %v6244_v63, %s5819_s29 }
 0x296   : > { %1587 = vrot.lane.b32.xlu1 %v6260_v4, %s5819_s29 }
 0x297   : > { %v7877_v54 = vpop.permute.xlu0 %1422 }
 0x298   : > { %v7879_v58 = vpop.permute.xlu1 %1424 }
 0x299   : > { %12447 = vst [vmem:[#allocation310_spill] sm:$0xff] %v7879_v58  ;;  %1589 = vrot.lane.b32.xlu0 %v6247_v1, %s5819_s29  ;;  %v12633_v58 = vld [vmem:[#allocation116_spill] sm:$0xff] }
 0x29a   : > { %1591 = vrot.lane.b32.xlu1 %v6265_v5, %s5819_s29 }
 0x29b   : > { %v7885_v59 = vpop.permute.xlu0 %1426 }
 0x29c   : > { %12448 = vst [vmem:[#allocation311_spill] sm:$0xff] %v7885_v59  ;;  %v7887_v62 = vpop.permute.xlu1 %1428  ;;  %v5714_v59 = vld [vmem:[#allocation2 + $0x1a0] sm:$0xff] }
 0x29d   : > { %12449 = vst [vmem:[#allocation312_spill] sm:$0xff] %v7887_v62  ;;  %1593 = vrot.lane.b32.xlu0 %v6281_v11, %s5819_s29  ;;  %v5713_v62 = vld [vmem:[#allocation2 + $0x180] sm:$0xff] }
 0x29e   : > { %1595 = vrot.lane.b32.xlu1 %v6268_v6, %s5819_s29 }
 0x29f   : > { %v7893_v63 = vpop.permute.xlu0 %1430 }
 0x2a0   : > { %12450 = vst [vmem:[#allocation313_spill] sm:$0xff] %v7893_v63  ;;  %v7895_v4 = vpop.permute.xlu1 %1432  ;;  %v12617_v63 = vld [vmem:[#allocation104_spill] sm:$0xff] }
 0x2a1   : > { %12451 = vst [vmem:[#allocation314_spill] sm:$0xff] %v7895_v4  ;;  %1597 = vrot.lane.b32.xlu0 %v6286_v12, %s5819_s29  ;;  %v12612_v4 = vld [vmem:[#allocation96_spill] sm:$0xff] }
 0x2a2   : > { %1599 = vrot.lane.b32.xlu1 %v12238_v44, %s5819_s29 }
 0x2a3   : > { %v7901_v1 = vpop.permute.xlu0 %1434 }
 0x2a4   : > { %12452 = vst [vmem:[#allocation315_spill] sm:$0xff] %v7901_v1  ;;  %v7903_v5 = vpop.permute.xlu1 %1436  ;;  %v12608_v1 = vld [vmem:[#allocation92_spill] sm:$0xff] }
 0x2a5   : > { %12453 = vst [vmem:[#allocation316_spill] sm:$0xff] %v7903_v5  ;;  %1601 = vrot.lane.b32.xlu0 %v12239_v34, %s5819_s29 }
 0x2a6   : > { %1603 = vrot.lane.b32.xlu1 %v12242_v48, %s5819_s29 }
 0x2a7   : > { %v7909_v6 = vpop.permute.xlu0 %1438 }
 0x2a8   : > { %12454 = vst [vmem:[#allocation317_spill] sm:$0xff] %v7909_v6  ;;  %v7911_v11 = vpop.permute.xlu1 %1440 }
 0x2a9   : > { %12455 = vst [vmem:[#allocation318_spill] sm:$0xff] %v7911_v11  ;;  %1605 = vrot.lane.b32.xlu0 %v12243_v41, %s5819_s29  ;;  %v12593_v11 = vld [vmem:[#allocation253_spill] sm:$0xff] }
 0x2aa   : > { %1607 = vrot.lane.b32.xlu1 %v12246_v35, %s5819_s29 }
 0x2ab   : > { %v7917_v12 = vpop.permute.xlu0 %1442 }
 0x2ac   : > { %12456 = vst [vmem:[#allocation319_spill] sm:$0xff] %v7917_v12  ;;  %v7919_v44 = vpop.permute.xlu1 %1444  ;;  %v12582_v12 = vld [vmem:[#allocation56_spill] sm:$0xff] }
 0x2ad   : > { %12457 = vst [vmem:[#allocation320_spill] sm:$0xff] %v7919_v44  ;;  %1609 = vrot.lane.b32.xlu0 %v12247_v24, %s5819_s29 }
 0x2ae   : > { %1611 = vrot.lane.b32.xlu1 %v12250_v20, %s5819_s29 }
 0x2af   : > { %v7925_v48 = vpop.permute.xlu0 %1446 }
 0x2b0   : > { %12458 = vst [vmem:[#allocation321_spill] sm:$0xff] %v7925_v48  ;;  %v7927_v34 = vpop.permute.xlu1 %1448 }
 0x2b1   : > { %12459 = vst [vmem:[#allocation322_spill] sm:$0xff] %v7927_v34  ;;  %1613 = vrot.lane.b32.xlu0 %v12251_v14, %s5819_s29  ;;  %v12542_v34 = vld [vmem:[#allocation81_spill] sm:$0xff] }
 0x2b2   : > { %1615 = vrot.lane.b32.xlu1 %v12254_v46, %s5819_s29 }
 0x2b3   : > { %v7933_v41 = vpop.permute.xlu0 %1450 }
 0x2b4   : > { %12460 = vst [vmem:[#allocation323_spill] sm:$0xff] %v7933_v41  ;;  %v7935_v35 = vpop.permute.xlu1 %1452 }
 0x2b5   : > { %12461 = vst [vmem:[#allocation324_spill] sm:$0xff] %v7935_v35  ;;  %1617 = vrot.lane.b32.xlu0 %v12255_v2, %s5819_s29  ;;  %v12466_v2 = vld [vmem:[#allocation21_spill] sm:$0xff]  ;;  %v12538_v35 = vld [vmem:[#allocation76_spill] sm:$0xff] }
 0x2b6   : > { %1619 = vrot.lane.b32.xlu1 %v12258_v30, %s5819_s29 }
 0x2b7   : > { %v7941_v20 = vpop.permute.xlu0 %1454 }
 0x2b8   : > { %12462 = vst [vmem:[#allocation325_spill] sm:$0xff] %v7941_v20  ;;  %v7943_v24 = vpop.permute.xlu1 %1456 }
 0x2b9   : > { %12463 = vst [vmem:[#allocation326_spill] sm:$0xff] %v7943_v24  ;;  %1621 = vrot.lane.b32.xlu0 %v12259_v55, %s5819_s29  ;;  %v12470_v55 = vld [vmem:[#allocation22_spill] sm:$0xff]  ;;  %v12534_v24 = vld [vmem:[#allocation73_spill] sm:$0xff] }
 0x2ba   : > { %1623 = vrot.lane.b32.xlu1 %v12262_v22, %s5819_s29 }
 0x2bb   : > { %v7949_v14 = vpop.permute.xlu0 %1458 }
 0x2bc   : > { %12464 = vst [vmem:[#allocation327_spill] sm:$0xff] %v7949_v14  ;;  %v7951_v46 = vpop.permute.xlu1 %1460 }
 0x2bd   : > { %12465 = vst [vmem:[#allocation328_spill] sm:$0xff] %v7951_v46  ;;  %1625 = vrot.lane.b32.xlu0 %v12263_v36, %s5819_s29  ;;  %v12474_v36 = vld [vmem:[#allocation26_spill] sm:$0xff]  ;;  %v12530_v46 = vld [vmem:[#allocation69_spill] sm:$0xff] }
 0x2be   : > { %1627 = vrot.lane.b32.xlu1 %v12466_v2, %s5819_s29 }
 0x2bf   : > { %v7957_v30 = vpop.permute.xlu0 %1462 }
 0x2c0   : > { %12467 = vst [vmem:[#allocation21_spill] sm:$0xff] %v7957_v30  ;;  %v7959_v38 = vpop.permute.xlu1 %1464 }
 0x2c1   : > { %12468 = vst [vmem:[#allocation329_spill] sm:$0xff] %v7959_v38  ;;  %1629 = vrot.lane.b32.xlu0 %v12469_v37, %s5819_s29  ;;  %v12478_v37 = vld [vmem:[#allocation27_spill] sm:$0xff]  ;;  %v12526_v38 = vld [vmem:[#allocation64_spill] sm:$0xff] }
 0x2c2   : > { %1631 = vrot.lane.b32.xlu1 %v12470_v55, %s5819_s29 }
 0x2c3   : > { %v7965_v22 = vpop.permute.xlu0 %1466 }
 0x2c4   : > { %12471 = vst [vmem:[#allocation23_spill] sm:$0xff] %v7965_v22  ;;  %v7967_v49 = vpop.permute.xlu1 %1468 }
 0x2c5   : > { %12472 = vst [vmem:[#allocation22_spill] sm:$0xff] %v7967_v49  ;;  %1633 = vrot.lane.b32.xlu0 %v12473_v31, %s5819_s29  ;;  %v2379_v31 = vld [vmem:[%s11782_s1 + $0x20] sm:$0xf]  ;;  %v12522_v49 = vld [vmem:[#allocation61_spill] sm:$0xff] }
 0x2c6   : > { %1635 = vrot.lane.b32.xlu1 %v12474_v36, %s5819_s29  ;;  %5486 = vmatprep.subr.msk.mxu0 %vm2452_vm4, %v2379_v31  ;;  %v12482_v36 = vld [vmem:[#allocation28_spill] sm:$0xff] }
 0x2c7   : > { %v7973_v2 = vpop.permute.xlu0 %1470  ;;  %5487 = vmatpush3.msk.msra.mxu0 %vm2452_vm4, %v2379_v31  ;;  %v12486_v31 = vld [vmem:[#allocation194_spill] sm:$0xff]  ;;  %vm4789_vm4 = vcmask 588800  }
 0x2c8   : > { %12475 = vst [vmem:[#allocation24_spill] sm:$0xff] %v7973_v2  ;;  %v7975_v10 = vpop.permute.xlu1 %1472 }
 0x2c9   : > { %12476 = vst [vmem:[#allocation26_spill] sm:$0xff] %v7975_v10  ;;  %1637 = vrot.lane.b32.xlu0 %v12477_v23, %s5819_s29  ;;  %v12518_v10 = vld [vmem:[#allocation57_spill] sm:$0xff] }
 0x2ca   : > { %1639 = vrot.lane.b32.xlu1 %v12478_v37, %s5819_s29  ;;  %v2378_v37 = vld [vmem:[%s11782_s1 + $0x18] sm:$0xff] }
 0x2cb   : > { %v7981_v55 = vpop.permute.xlu0 %1474  ;;  %5488 = vmatprep.subr.mxu0 %v2378_v37 }
 0x2cc   : > { %12479 = vst [vmem:[#allocation25_spill] sm:$0xff] %v7981_v55  ;;  %v7983_v40 = vpop.permute.xlu1 %1476  ;;  %5489 = vmatpush3.msra.mxu0 %v2378_v37 }
 0x2cd   : > { %12480 = vst [vmem:[#allocation27_spill] sm:$0xff] %v7983_v40  ;;  %1641 = vrot.lane.b32.xlu0 %v12481_v45, %s5819_s29  ;;  %v12485_v45 = vld [vmem:[#allocation191_spill] sm:$0xff]  ;;  %5490 = vmatprep.subr.mxu0 %v2377_v51 }
 0x2ce   : > { %1643 = vrot.lane.b32.xlu1 %v12482_v36, %s5819_s29  ;;  %v1558_v36 = vrot.slane %v7808_v7, 1  ;;  %5491 = vmatpush3.msra.mxu0 %v2377_v51  ;;  %v2375_v40 = vld [vmem:[%s11782_s1] sm:$0xff] }
 0x2cf   : > { %v7992_v23 = vpop.permute.xlu0 %1478 }
 0x2d0   : > { %12483 = vst [vmem:[#allocation29_spill] sm:$0xff] %v7992_v23  ;;  %v7997_v25 = vpop.permute.xlu1 %1480 }
 0x2d1   : > { %12484 = vst [vmem:[#allocation28_spill] sm:$0xff] %v7997_v25  ;;  %1645 = vrot.lane.b32.xlu0 %v12485_v45, %s5819_s29  ;;  %v2376_v45 = vld [vmem:[%s11782_s1 + $0x8] sm:$0xff]  ;;  %v12489_v25 = vld [vmem:[#allocation190_spill] sm:$0xff] }
 0x2d2   : > { %1647 = vrot.lane.b32.xlu1 %v12486_v31, %s5819_s29  ;;  %5492 = vmatprep.subr.mxu0 %v2376_v45  ;;  %v1560_v31 = vsel %vm518_vm1, %v1558_v36, %v1559_v15 }
 0x2d3   : > { %v8008_v23 = vpop.permute.xlu0 %1482  ;;  %5493 = vmatpush3.msra.mxu0 %v2376_v45 }
 0x2d4   : > { %12487 = vst [vmem:[#allocation191_spill] sm:$0xff] %v8008_v23  ;;  %v8013_v37 = vpop.permute.xlu1 %1484  ;;  %5494 = vmatprep.subr.mxu0 %v2375_v40  ;;  %v12491_v23 = vmov 0.0  }
 0x2d5   : > { %12488 = vst [vmem:[#allocation194_spill] sm:$0xff] %v8013_v37  ;;  %1649 = vrot.lane.b32.xlu0 %v12489_v25, %s5819_s29  ;;  %5495 = vmatpush3.msra.mxu0 %v2375_v40  ;;  %v12495_v37 = vld [vmem:[#allocation33_spill] sm:$0xff] }
 0x2d6   : > { %1651 = vrot.lane.b32.xlu1 %v1558_v36, %s5819_s29  ;;  %5610 = vmatprep.subr.mxu0 %v12491_v23  ;;  %v12496_v36 = vld [vmem:[#allocation34_spill] sm:$0xff] }
 0x2d7   : > { %v8022_v51 = vpop.permute.xlu0 %1486 }
 0x2d8   : > { %12490 = vst [vmem:[#allocation190_spill] sm:$0xff] %v8022_v51  ;;  %v8025_v55 = vpop.permute.xlu1 %1488 }
 0x2d9   : > { %12492 = vst [vmem:[#allocation330_spill] sm:$0xff] %v8025_v55  ;;  %1653 = vrot.lane.b32.xlu0 %v1560_v31, %s5819_s29  ;;  %v12499_v55 = vld [vmem:[#allocation35_spill] sm:$0xff] }
 0x2da   : > { %1655 = vrot.lane.b32.xlu1 %v1559_v15, %s5819_s29  ;;  %v12500_v15 = vld [vmem:[#allocation36_spill] sm:$0xff]  ;;  %s5823_s29 = smov 56  }
 0x2db   : > { %v8029_v25 = vpop.permute.xlu0 %1490 }
 0x2dc   : > { %12493 = vst [vmem:[#allocation331_spill] sm:$0xff] %v8029_v25  ;;  %v8031_v45 = vpop.permute.xlu1 %1492  ;;  %v12503_v25 = vld [vmem:[#allocation37_spill] sm:$0xff] }
 0x2dd   : > { %12494 = vst [vmem:[#allocation332_spill] sm:$0xff] %v8031_v45  ;;  %1711 = vrot.lane.b32.xlu0 %v12495_v37, %s5820_s8  ;;  %v12504_v37 = vld [vmem:[#allocation40_spill] sm:$0xff] }
 0x2de   : > { %1713 = vrot.lane.b32.xlu1 %v12496_v36, %s5820_s8 }
 0x2df   : > { %v8037_v40 = vpop.permute.xlu0 %1494 }
 0x2e0   : > { %12497 = vst [vmem:[#allocation33_spill] sm:$0xff] %v8037_v40  ;;  %v8039_v23 = vpop.permute.xlu1 %1496 }
 0x2e1   : > { %12498 = vst [vmem:[#allocation34_spill] sm:$0xff] %v8039_v23  ;;  %1715 = vrot.lane.b32.xlu0 %v12499_v55, %s5820_s8  ;;  %v12507_v23 = vld [vmem:[#allocation41_spill] sm:$0xff]  ;;  %v12508_v55 = vld [vmem:[#allocation43_spill] sm:$0xff] }
 0x2e2   : > { %1717 = vrot.lane.b32.xlu1 %v12500_v15, %s5820_s8 }
 0x2e3   : > { %v8045_v31 = vpop.permute.xlu0 %1498 }
 0x2e4   : > { %12501 = vst [vmem:[#allocation35_spill] sm:$0xff] %v8045_v31  ;;  %v8047_v45 = vpop.permute.xlu1 %1500 }
 0x2e5   : > { %12502 = vst [vmem:[#allocation36_spill] sm:$0xff] %v8047_v45  ;;  %1719 = vrot.lane.b32.xlu0 %v12503_v25, %s5820_s8  ;;  %v12511_v45 = vld [vmem:[#allocation45_spill] sm:$0xff]  ;;  %v12512_v25 = vld [vmem:[#allocation46_spill] sm:$0xff] }
 0x2e6   : > { %1721 = vrot.lane.b32.xlu1 %v12504_v37, %s5820_s8 }
 0x2e7   : > { %v8053_v36 = vpop.permute.xlu0 %1502 }
 0x2e8   : > { %12505 = vst [vmem:[#allocation37_spill] sm:$0xff] %v8053_v36  ;;  %v8055_v40 = vpop.permute.xlu1 %1504 }
 0x2e9   : > { %12506 = vst [vmem:[#allocation40_spill] sm:$0xff] %v8055_v40  ;;  %1723 = vrot.lane.b32.xlu0 %v12507_v23, %s5820_s8  ;;  %v12513_v40 = vld [vmem:[#allocation49_spill] sm:$0xff]  ;;  %v12514_v23 = vld [vmem:[#allocation51_spill] sm:$0xff] }
 0x2ea   : > { %1725 = vrot.lane.b32.xlu1 %v12508_v55, %s5820_s8 }
 0x2eb   : > { %v8061_v15 = vpop.permute.xlu0 %1506 }
 0x2ec   : > { %12509 = vst [vmem:[#allocation41_spill] sm:$0xff] %v8061_v15  ;;  %v8063_v31 = vpop.permute.xlu1 %1508 }
 0x2ed   : > { %12510 = vst [vmem:[#allocation43_spill] sm:$0xff] %v8063_v31  ;;  %1727 = vrot.lane.b32.xlu0 %v12511_v45, %s5820_s8  ;;  %v12515_v31 = vld [vmem:[#allocation52_spill] sm:$0xff]  ;;  %v12516_v45 = vld [vmem:[#allocation55_spill] sm:$0xff] }
 0x2ee   : > { %1729 = vrot.lane.b32.xlu1 %v12512_v25, %s5820_s8 }
 0x2ef   : > { %v8069_v37 = vpop.permute.xlu0 %1561 }
 0x2f0   : > { %v8071_v36 = vpop.permute.xlu1 %1563 }
 0x2f1   : > { %1731 = vrot.lane.b32.xlu0 %v12513_v40, %s5820_s8  ;;  %v12519_v40 = vld [vmem:[#allocation58_spill] sm:$0xff] }
 0x2f2   : > { %1733 = vrot.lane.b32.xlu1 %v12514_v23, %s5820_s8 }
 0x2f3   : > { %v8077_v55 = vpop.permute.xlu0 %1565 }
 0x2f4   : > { %v8079_v15 = vpop.permute.xlu1 %1567 }
 0x2f5   : > { %1735 = vrot.lane.b32.xlu0 %v12515_v31, %s5820_s8  ;;  %v12523_v31 = vld [vmem:[#allocation63_spill] sm:$0xff] }
 0x2f6   : > { %1737 = vrot.lane.b32.xlu1 %v12516_v45, %s5820_s8 }
 0x2f7   : > { %v8085_v25 = vpop.permute.xlu0 %1569 }
 0x2f8   : > { %v8087_v51 = vpop.permute.xlu1 %1571 }
 0x2f9   : > { %12517 = vst [vmem:[#allocation45_spill] sm:$0xff] %v8087_v51  ;;  %1739 = vrot.lane.b32.xlu0 %v12518_v10, %s5820_s8  ;;  %v12527_v10 = vld [vmem:[#allocation67_spill] sm:$0xff]  ;;  %v12629_v51 = vld [vmem:[#allocation285_spill] sm:$0xff] }
 0x2fa   : > { %1741 = vrot.lane.b32.xlu1 %v12519_v40, %s5820_s8 }
 0x2fb   : > { %v8093_v23 = vpop.permute.xlu0 %1573 }
 0x2fc   : > { %12520 = vst [vmem:[#allocation46_spill] sm:$0xff] %v8093_v23  ;;  %v8095_v2 = vpop.permute.xlu1 %1575  ;;  %v12623_v23 = vld [vmem:[#allocation111_spill] sm:$0xff] }
 0x2fd   : > { %12521 = vst [vmem:[#allocation49_spill] sm:$0xff] %v8095_v2  ;;  %1743 = vrot.lane.b32.xlu0 %v12522_v49, %s5820_s8  ;;  %v12531_v49 = vld [vmem:[#allocation70_spill] sm:$0xff]  ;;  %v12619_v2 = vld [vmem:[#allocation277_spill] sm:$0xff] }
 0x2fe   : > { %1745 = vrot.lane.b32.xlu1 %v12523_v31, %s5820_s8 }
 0x2ff   : > { %v8101_v45 = vpop.permute.xlu0 %1577 }
 0x300   : > { %12524 = vst [vmem:[#allocation51_spill] sm:$0xff] %v8101_v45  ;;  %v8103_v22 = vpop.permute.xlu1 %1579  ;;  %v12614_v45 = vld [vmem:[#allocation101_spill] sm:$0xff] }
 0x301   : > { %12525 = vst [vmem:[#allocation52_spill] sm:$0xff] %v8103_v22  ;;  %1747 = vrot.lane.b32.xlu0 %v12526_v38, %s5820_s8  ;;  %v12535_v38 = vld [vmem:[#allocation75_spill] sm:$0xff] }
 0x302   : > { %1749 = vrot.lane.b32.xlu1 %v12527_v10, %s5820_s8  ;;  %v12610_v22 = vld [vmem:[#allocation95_spill] sm:$0xff] }
 0x303   : > { %v8109_v40 = vpop.permute.xlu0 %1581 }
 0x304   : > { %12528 = vst [vmem:[#allocation55_spill] sm:$0xff] %v8109_v40  ;;  %v8111_v30 = vpop.permute.xlu1 %1583  ;;  %v12607_v40 = vld [vmem:[#allocation266_spill] sm:$0xff] }
 0x305   : > { %12529 = vst [vmem:[#allocation57_spill] sm:$0xff] %v8111_v30  ;;  %1751 = vrot.lane.b32.xlu0 %v12530_v46, %s5820_s8  ;;  %v12539_v46 = vld [vmem:[#allocation79_spill] sm:$0xff] }
 0x306   : > { %1753 = vrot.lane.b32.xlu1 %v12531_v49, %s5820_s8 }
 0x307   : > { %v8117_v31 = vpop.permute.xlu0 %1585 }
 0x308   : > { %12532 = vst [vmem:[#allocation58_spill] sm:$0xff] %v8117_v31  ;;  %v8119_v14 = vpop.permute.xlu1 %1587  ;;  %v12595_v31 = vld [vmem:[#allocation74_spill] sm:$0xff] }
 0x309   : > { %12533 = vst [vmem:[#allocation61_spill] sm:$0xff] %v8119_v14  ;;  %1755 = vrot.lane.b32.xlu0 %v12534_v24, %s5820_s8  ;;  %v12543_v24 = vld [vmem:[#allocation82_spill] sm:$0xff]  ;;  %v12585_v14 = vld [vmem:[#allocation60_spill] sm:$0xff] }
 0x30a   : > { %1757 = vrot.lane.b32.xlu1 %v12535_v38, %s5820_s8 }
 0x30b   : > { %v8125_v10 = vpop.permute.xlu0 %1589 }
 0x30c   : > { %12536 = vst [vmem:[#allocation63_spill] sm:$0xff] %v8125_v10  ;;  %v8127_v20 = vpop.permute.xlu1 %1591 }
 0x30d   : > { %12537 = vst [vmem:[#allocation64_spill] sm:$0xff] %v8127_v20  ;;  %1759 = vrot.lane.b32.xlu0 %v12538_v35, %s5820_s8  ;;  %v12546_v20 = vld [vmem:[#allocation85_spill] sm:$0xff]  ;;  %v12547_v35 = vld [vmem:[#allocation87_spill] sm:$0xff] }
 0x30e   : > { %1761 = vrot.lane.b32.xlu1 %v12539_v46, %s5820_s8 }
 0x30f   : > { %v8133_v49 = vpop.permute.xlu0 %1593 }
 0x310   : > { %12540 = vst [vmem:[#allocation67_spill] sm:$0xff] %v8133_v49  ;;  %v8135_v41 = vpop.permute.xlu1 %1595 }
 0x311   : > { %12541 = vst [vmem:[#allocation69_spill] sm:$0xff] %v8135_v41  ;;  %1763 = vrot.lane.b32.xlu0 %v12542_v34, %s5820_s8  ;;  %v12550_v41 = vld [vmem:[#allocation88_spill] sm:$0xff] }
 0x312   : > { %1765 = vrot.lane.b32.xlu1 %v12543_v24, %s5820_s8 }
 0x313   : > { %v8141_v38 = vpop.permute.xlu0 %1597 }
 0x314   : > { %12544 = vst [vmem:[#allocation70_spill] sm:$0xff] %v8141_v38  ;;  %v8143_v48 = vpop.permute.xlu1 %1599 }
 0x315   : > { %12545 = vst [vmem:[#allocation73_spill] sm:$0xff] %v8143_v48  ;;  %1767 = vrot.lane.b32.xlu0 %v12546_v20, %s5820_s8  ;;  %v12553_v48 = vld [vmem:[#allocation93_spill] sm:$0xff] }
 0x316   : > { %1769 = vrot.lane.b32.xlu1 %v12547_v35, %s5820_s8 }
 0x317   : > { %v8149_v46 = vpop.permute.xlu0 %1601 }
 0x318   : > { %12548 = vst [vmem:[#allocation75_spill] sm:$0xff] %v8149_v46  ;;  %v8151_v49 = vpop.permute.xlu1 %1603  ;;  %v5701_v46 = vld [vmem:[#allocation2 + $0x40] sm:$0xff] }
 0x319   : > { %12549 = vst [vmem:[#allocation76_spill] sm:$0xff] %v8151_v49  ;;  %1771 = vrot.lane.b32.xlu0 %v12550_v41, %s5820_s8  ;;  %v12556_v49 = vld [vmem:[#allocation97_spill] sm:$0xff] }
 0x31a   : > { %1773 = vrot.lane.b32.xlu1 %v12358_v61, %s5820_s8 }
 0x31b   : > { %v8157_v34 = vpop.permute.xlu0 %1605 }
 0x31c   : > { %12551 = vst [vmem:[#allocation79_spill] sm:$0xff] %v8157_v34  ;;  %v8159_v24 = vpop.permute.xlu1 %1607  ;;  %v12574_v34 = vld [vmem:[#allocation42_spill] sm:$0xff] }
 0x31d   : > { %12552 = vst [vmem:[#allocation81_spill] sm:$0xff] %v8159_v24  ;;  %1775 = vrot.lane.b32.xlu0 %v12553_v48, %s5820_s8  ;;  %v12559_v24 = vld [vmem:[#allocation100_spill] sm:$0xff]  ;;  %v12560_v48 = vld [vmem:[#allocation103_spill] sm:$0xff] }
 0x31e   : > { %1777 = vrot.lane.b32.xlu1 %v12362_v27, %s5820_s8 }
 0x31f   : > { %v8165_v20 = vpop.permute.xlu0 %1609 }
 0x320   : > { %12554 = vst [vmem:[#allocation82_spill] sm:$0xff] %v8165_v20  ;;  %v8167_v35 = vpop.permute.xlu1 %1611 }
 0x321   : > { %12555 = vst [vmem:[#allocation85_spill] sm:$0xff] %v8167_v35  ;;  %1779 = vrot.lane.b32.xlu0 %v12556_v49, %s5820_s8  ;;  %v12563_v35 = vld [vmem:[#allocation105_spill] sm:$0xff]  ;;  %v12564_v49 = vld [vmem:[#allocation106_spill] sm:$0xff] }
 0x322   : > { %1781 = vrot.lane.b32.xlu1 %v12366_v18, %s5820_s8 }
 0x323   : > { %v8173_v61 = vpop.permute.xlu0 %1613 }
 0x324   : > { %12557 = vst [vmem:[#allocation87_spill] sm:$0xff] %v8173_v61  ;;  %v8175_v41 = vpop.permute.xlu1 %1615 }
 0x325   : > { %12558 = vst [vmem:[#allocation88_spill] sm:$0xff] %v8175_v41  ;;  %1783 = vrot.lane.b32.xlu0 %v12559_v24, %s5820_s8  ;;  %v12567_v41 = vld [vmem:[#allocation109_spill] sm:$0xff] }
 0x326   : > { %1785 = vrot.lane.b32.xlu1 %v12560_v48, %s5820_s8 }
 0x327   : > { %v8181_v27 = vpop.permute.xlu0 %1617 }
 0x328   : > { %12561 = vst [vmem:[#allocation93_spill] sm:$0xff] %v8181_v27  ;;  %v8183_v20 = vpop.permute.xlu1 %1619 }
 0x329   : > { %12562 = vst [vmem:[#allocation97_spill] sm:$0xff] %v8183_v20  ;;  %1787 = vrot.lane.b32.xlu0 %v12563_v35, %s5820_s8  ;;  %v485_v35 = vld [vmem:[#allocation2 + $0x238] sm:$0xff]  ;;  %v414_v20 = vld [vmem:[#allocation2] sm:$0xff] }
 0x32a   : > { %1789 = vrot.lane.b32.xlu1 %v12564_v49, %s5820_s8  ;;  %v1706_v49 = vrot.slane %v7808_v7, 2 }
 0x32b   : > { %v8189_v18 = vpop.permute.xlu0 %1621 }
 0x32c   : > { %12565 = vst [vmem:[#allocation100_spill] sm:$0xff] %v8189_v18  ;;  %v8191_v61 = vpop.permute.xlu1 %1623  ;;  %v1707_v18 = vrot.slane %v7813_v8, 2  ;;  %v12573_v8 = vld [vmem:[#allocation39_spill] sm:$0xff] }
 0x32d   : > { %12566 = vst [vmem:[#allocation103_spill] sm:$0xff] %v8191_v61  ;;  %1791 = vrot.lane.b32.xlu0 %v12567_v41, %s5820_s8  ;;  %v1709_v61 = vrot.slane %v485_v35, 2 }
 0x32e   : > { %1793 = vrot.lane.b32.xlu1 %v6931_v0, %s5820_s8  ;;  %v1708_v7 = vsel %vm727_vm3, %v1706_v49, %v1707_v18 }
 0x32f   : > { %v8197_v24 = vpop.permute.xlu0 %1625 }
 0x330   : > { %12568 = vst [vmem:[#allocation105_spill] sm:$0xff] %v8197_v24  ;;  %v8199_v48 = vpop.permute.xlu1 %1627  ;;  %v5698_v24 = vld [vmem:[#allocation2 + $0x10] sm:$0xff] }
 0x331   : > { %12569 = vst [vmem:[#allocation106_spill] sm:$0xff] %v8199_v48  ;;  %1795 = vrot.lane.b32.xlu0 %v7543_v43, %s5820_s8  ;;  %v12572_v48 = vld [vmem:[#allocation38_spill] sm:$0xff]  ;;  %v8220_v27 = vsel %vm276_vm0, %v5698_v24, %v12573_v8  ;;  %v5702_v24 = vld [vmem:[#allocation2 + $0x30] sm:$0xff] }
 0x332   : > { %1797 = vrot.lane.b32.xlu1 %v7555_v32, %s5820_s8  ;;  %v8215_v43 = vsel %vm276_vm0, %v414_v20, %v12572_v48  ;;  %v5699_v32 = vld [vmem:[#allocation2 + $0x8] sm:$0xff] }
 0x333   : > { %v8207_v41 = vpop.permute.xlu0 %1629  ;;  %v8224_v35 = vsel %vm276_vm0, %v5699_v32, %v12574_v34  ;;  %v12576_v20 = vld [vmem:[#allocation47_spill] sm:$0xff]  ;;  %v12578_v8 = vld [vmem:[#allocation48_spill] sm:$0xff]  ;;  %v12579_v34 = vld [vmem:[#allocation50_spill] sm:$0xff] }
 0x334   : > { %12570 = vst [vmem:[#allocation109_spill] sm:$0xff] %v8207_v41  ;;  %v8209_v0 = vpop.permute.xlu1 %1631  ;;  %v12575_v41 = vld [vmem:[#allocation44_spill] sm:$0xff]  ;;  %v8232_v48 = vsel %vm276_vm0, %v5701_v46, %v12576_v20  ;;  %v8239_v44 = vsel %vm276_vm0, %v5702_v24, %v12578_v8  ;;  %v8244_v32 = vsel %vm276_vm0, %v7584_v26, %v12579_v34  ;;  %v1710_v46 = vsel %vm727_vm3, %v1707_v18, %v1709_v61  ;;  %v12581_v20 = vld [vmem:[#allocation54_spill] sm:$0xff]  ;;  %v12583_v8 = vld [vmem:[#allocation59_spill] sm:$0xff] }
 0x335   : > { %12571 = vst [vmem:[#allocation333_spill] sm:$0xff] %v8209_v0  ;;  %1799 = vrot.lane.b32.xlu0 %v7562_v42, %s5820_s8  ;;  %v5700_v0 = vld [vmem:[#allocation2 + $0x20] sm:$0xff]  ;;  %v8258_v24 = vsel %vm276_vm0, %v7576_v13, %v12582_v12  ;;  %v12584_v26 = vld [vmem:[#allocation245_spill] sm:$0xff] }
 0x336   : > { %v8228_v42 = vsel %vm276_vm0, %v5700_v0, %v12575_v41  ;;  %1801 = vrot.lane.b32.xlu1 %v1706_v49, %s5820_s8  ;;  %v5703_v41 = vld [vmem:[#allocation2 + $0x60] sm:$0xff]  ;;  %v12580_v0 = vld [vmem:[#allocation53_spill] sm:$0xff]  ;;  %v5704_v49 = vld [vmem:[#allocation2 + $0x28] sm:$0xff]  ;;  %v8263_v34 = vsel %vm276_vm0, %v12584_v26, %v12583_v8 }
 0x337   : > { %v8235_v38 = vpop.permute.xlu0 %1633  ;;  %v8248_v10 = vsel %vm276_vm0, %v5703_v41, %v12580_v0  ;;  %v8268_v41 = vsel %vm276_vm0, %v7598_v17, %v12585_v14  ;;  %v5705_v18 = vld [vmem:[#allocation2 + $0x80] sm:$0xff]  ;;  %v12588_v13 = vld [vmem:[#allocation65_spill] sm:$0xff]  ;;  %v12591_v14 = vld [vmem:[#allocation68_spill] sm:$0xff] }
 0x338   : > { %12577 = vst [vmem:[#allocation38_spill] sm:$0xff] %v8235_v38  ;;  %v8253_v38 = vsel %vm276_vm0, %v5704_v49, %v12581_v20  ;;  %v8270_v61 = vpop.permute.xlu1 %1635  ;;  %v12587_v0 = vld [vmem:[#allocation62_spill] sm:$0xff]  ;;  %v8280_v12 = vsel %vm276_vm0, %v7608_v21, %v12588_v13 }
 0x339   : > { %12586 = vst [vmem:[#allocation39_spill] sm:$0xff] %v8270_v61  ;;  %1803 = vrot.lane.b32.xlu0 %v1708_v7, %s5820_s8  ;;  %v8275_v49 = vsel %vm276_vm0, %v5705_v18, %v12587_v0  ;;  %v12589_v20 = vld [vmem:[#allocation66_spill] sm:$0xff]  ;;  %v12592_v7 = vld [vmem:[#allocation71_spill] sm:$0xff]  ;;  %v12594_v0 = vld [vmem:[#allocation72_spill] sm:$0xff] }
 0x33a   : > { %v12590_v8 = vld [vmem:[#allocation250_spill] sm:$0xff]  ;;  %v8294_v18 = vsel %vm276_vm0, %v12593_v11, %v12592_v7  ;;  %v8299_v21 = vsel %vm276_vm0, %v7630_v16, %v12594_v0  ;;  %1805 = vrot.lane.b32.xlu1 %v1710_v46, %s5820_s8  ;;  %v12600_v0 = vld [vmem:[#allocation80_spill] sm:$0xff] }
 0x33b   : > { %v8285_v26 = vsel %vm276_vm0, %v12590_v8, %v12589_v20  ;;  %v5706_v17 = vld [vmem:[#allocation2 + $0xa0] sm:$0xff]  ;;  %v12596_v8 = vld [vmem:[#allocation77_spill] sm:$0xff] }
 0x33c   : > { %v8289_v61 = vsel %vm276_vm0, %v5706_v17, %v12591_v14  ;;  %v5707_v13 = vld [vmem:[#allocation2 + $0xc0] sm:$0xff]  ;;  %v8308_v17 = vsel %vm276_vm0, %v7640_v33, %v12596_v8  ;;  %v8311_v14 = vpop.permute.xlu0 %1637  ;;  %v12603_v33 = vld [vmem:[#allocation84_spill] sm:$0xff] }
 0x33d   : > { %v8303_v20 = vsel %vm276_vm0, %v5707_v13, %v12595_v31  ;;  %12597 = vst [vmem:[#allocation42_spill] sm:$0xff] %v8311_v14  ;;  %v12598_v11 = vld [vmem:[#allocation78_spill] sm:$0xff]  ;;  %v12601_v31 = vld [vmem:[#allocation83_spill] sm:$0xff]  ;;  %v12602_v13 = vld [vmem:[#allocation261_spill] sm:$0xff]  ;;  %v8330_v46 = vsel %vm276_vm0, %v7662_v28, %v12603_v33  ;;  %v8350_v33 = vpop.permute.xlu1 %1639 }
 0x33e   : > { %v12599_v7 = vld [vmem:[#allocation258_spill] sm:$0xff]  ;;  %v8325_v5 = vsel %vm276_vm0, %v12602_v13, %v12601_v31  ;;  %12609 = vst [vmem:[#allocation44_spill] sm:$0xff] %v8350_v33 }
 0x33f   : > { %v8316_v6 = vsel %vm276_vm0, %v12599_v7, %v12598_v11  ;;  %v5708_v16 = vld [vmem:[#allocation2 + $0xe0] sm:$0xff]  ;;  %v12605_v7 = vld [vmem:[#allocation89_spill] sm:$0xff] }
 0x340   : > { %v8320_v30 = vsel %vm276_vm0, %v5708_v16, %v12600_v0  ;;  %v5709_v8 = vld [vmem:[#allocation2 + $0x100] sm:$0xff]  ;;  %v8339_v16 = vsel %vm276_vm0, %v7672_v29, %v12605_v7  ;;  %v8360_v29 = vsel %vm276_vm0, %v7694_v50, %v12612_v4 }
 0x341   : > { %v12604_v14 = vld [vmem:[#allocation86_spill] sm:$0xff]  ;;  %v12618_v4 = vld [vmem:[#allocation107_spill] sm:$0xff] }
 0x342   : > { %v8334_v11 = vsel %vm276_vm0, %v5709_v8, %v12604_v14  ;;  %v12606_v0 = vld [vmem:[#allocation90_spill] sm:$0xff]  ;;  %v12611_v14 = vld [vmem:[#allocation269_spill] sm:$0xff] }
 0x343   : > { %v8344_v31 = vsel %vm276_vm0, %v12607_v40, %v12606_v0  ;;  %v5710_v13 = vld [vmem:[#allocation2 + $0x120] sm:$0xff]  ;;  %v8355_v8 = vsel %vm276_vm0, %v12611_v14, %v12610_v22 }
 0x344   : > { %v8348_v28 = vsel %vm276_vm0, %v5710_v13, %v12608_v1  ;;  %v5711_v7 = vld [vmem:[#allocation2 + $0x140] sm:$0xff]  ;;  %v8369_v1 = vsel %vm276_vm0, %v7704_v39, %v12614_v45  ;;  %v8390_v45 = vpop.permute.xlu0 %1641 }
 0x345   : > { %v12613_v40 = vld [vmem:[#allocation98_spill] sm:$0xff]  ;;  %12621 = vst [vmem:[#allocation47_spill] sm:$0xff] %v8390_v45 }
 0x346   : > { %v8364_v0 = vsel %vm276_vm0, %v5711_v7, %v12613_v40  ;;  %v12615_v13 = vld [vmem:[#allocation102_spill] sm:$0xff]  ;;  %v8383_v7 = vsel %vm276_vm0, %v12619_v2, %v12618_v4  ;;  %v12620_v40 = vld [vmem:[#allocation108_spill] sm:$0xff] }
 0x347   : > { %v12616_v33 = vld [vmem:[#allocation274_spill] sm:$0xff]  ;;  %v8388_v39 = vsel %vm276_vm0, %v7726_v60, %v12620_v40  ;;  %v12626_v60 = vld [vmem:[#allocation113_spill] sm:$0xff] }
 0x348   : > { %v8374_v22 = vsel %vm276_vm0, %v12616_v33, %v12615_v13  ;;  %v5712_v14 = vld [vmem:[#allocation2 + $0x160] sm:$0xff]  ;;  %v8408_v40 = vsel %vm276_vm0, %v5714_v59, %v12626_v60  ;;  %v8429_v60 = vpop.permute.xlu1 %1643 }
 0x349   : > { %v8378_v50 = vsel %vm276_vm0, %v5712_v14, %v12617_v63  ;;  %v12622_v33 = vld [vmem:[#allocation110_spill] sm:$0xff]  ;;  %v8399_v63 = vsel %vm276_vm0, %v7736_v56, %v12623_v23  ;;  %v12624_v14 = vld [vmem:[#allocation112_spill] sm:$0xff]  ;;  %12627 = vst [vmem:[#allocation48_spill] sm:$0xff] %v8408_v40  ;;  %12636 = vst [vmem:[#allocation56_spill] sm:$0xff] %v8429_v60 }
 0x34a   : > { %v8394_v13 = vsel %vm276_vm0, %v5713_v62, %v12622_v33  ;;  %v12625_v2 = vld [vmem:[#allocation282_spill] sm:$0xff]  ;;  %v12631_v33 = vld [vmem:[#allocation115_spill] sm:$0xff] }
 0x34b   : > { %v8404_v4 = vsel %vm276_vm0, %v12625_v2, %v12624_v14  ;;  %v12628_v45 = vld [vmem:[#allocation114_spill] sm:$0xff]  ;;  %v8418_v56 = vsel %vm276_vm0, %v7758_v9, %v12631_v33  ;;  %v12635_v2 = vld [vmem:[#allocation117_spill] sm:$0xff]  ;;  %v12639_v9 = vld [vmem:[#allocation119_spill] sm:$0xff] }
 0x34c   : > { %v8413_v62 = vsel %vm276_vm0, %v12629_v51, %v12628_v45  ;;  %12632 = vst [vmem:[#allocation53_spill] sm:$0xff] %v8418_v56  ;;  %v5715_v23 = vld [vmem:[#allocation2 + $0x1c0] sm:$0xff]  ;;  %v8427_v59 = vsel %vm276_vm0, %v7768_v3, %v12635_v2  ;;  %v12641_v56 = vld [vmem:[#allocation120_spill] sm:$0xff] }
 0x34d   : > { %12630 = vst [vmem:[#allocation50_spill] sm:$0xff] %v8413_v62  ;;  %v8422_v14 = vsel %vm276_vm0, %v5715_v23, %v12633_v58  ;;  %v12637_v40 = vld [vmem:[#allocation118_spill] sm:$0xff]  ;;  %v12642_v58 = vld [vmem:[#allocation293_spill] sm:$0xff] }
 0x34e   : > { %12634 = vst [vmem:[#allocation54_spill] sm:$0xff] %v8422_v14  ;;  %v12638_v51 = vld [vmem:[#allocation290_spill] sm:$0xff]  ;;  %v8443_v23 = vsel %vm276_vm0, %v12642_v58, %v12641_v56  ;;  %v12643_v14 = vld [vmem:[#allocation121_spill] sm:$0xff]  ;;  %v8462_v58 = vpop.permute.xlu0 %1645 }
 0x34f   : > { %v8434_v45 = vsel %vm276_vm0, %v12638_v51, %v12637_v40  ;;  %v5716_v62 = vld [vmem:[#allocation2 + $0x1e0] sm:$0xff]  ;;  %v8448_v3 = vsel %vm276_vm0, %v7790_v19, %v12643_v14  ;;  %12649 = vst [vmem:[#allocation60_spill] sm:$0xff] %v8462_v58  ;;  %v12696_v58 = vld [vmem:[#allocation173_spill] sm:$0xff] }
 0x350   : > { %v8438_v33 = vsel %vm276_vm0, %v5716_v62, %v12639_v9  ;;  %12644 = vst [vmem:[#allocation245_spill] sm:$0xff] %v8448_v3  ;;  %v12645_v2 = vld [vmem:[#allocation122_spill] sm:$0xff]  ;;  %v12646_v51 = vld [vmem:[#allocation123_spill] sm:$0xff]  ;;  %v12647_v62 = vld [vmem:[#allocation124_spill] sm:$0xff]  ;;  %vm4596_vm0 = vcmask 523264  }
 0x351   : > { %12640 = vst [vmem:[#allocation59_spill] sm:$0xff] %v8438_v33  ;;  %v1904_v40 = vsel %vm1903_vm2, %v8215_v43, %v12645_v2  ;;  %v1905_v60 = vsel %vm1903_vm2, %v8224_v35, %v12646_v51  ;;  %v1906_v9 = vsel %vm1903_vm2, %v8220_v27, %v12647_v62  ;;  %v12648_v33 = vld [vmem:[#allocation125_spill] sm:$0xff]  ;;  %v12650_v19 = vld [vmem:[#allocation126_spill] sm:$0xff]  ;;  %v12651_v3 = vld [vmem:[#allocation127_spill] sm:$0xff] }
 0x352   : > { %v1907_v56 = vsel %vm1903_vm2, %v8228_v42, %v12648_v33  ;;  %v1908_v14 = vsel %vm1903_vm2, %v8253_v38, %v12650_v19  ;;  %v8470_v43 = vsel %vm1903_vm2, %v8239_v44, %v12651_v3  ;;  %v12652_v35 = vld [vmem:[#allocation128_spill] sm:$0xff]  ;;  %v12653_v27 = vld [vmem:[#allocation129_spill] sm:$0xff]  ;;  %v12654_v33 = vld [vmem:[#allocation130_spill] sm:$0xff]  ;;  %v8502_v19 = vpop.permute.xlu1 %1647 }
 0x353   : > { %v8475_v2 = vsel %vm1903_vm2, %v8232_v48, %v12652_v35  ;;  %v8480_v42 = vsel %vm1903_vm2, %v8258_v24, %v12653_v27  ;;  %v8485_v51 = vsel %vm1903_vm2, %v8244_v32, %v12654_v33  ;;  %v12655_v38 = vld [vmem:[#allocation131_spill] sm:$0xff]  ;;  %v12656_v3 = vld [vmem:[#allocation132_spill] sm:$0xff]  ;;  %v12657_v62 = vld [vmem:[#allocation133_spill] sm:$0xff]  ;;  %12658 = vst [vmem:[#allocation62_spill] sm:$0xff] %v8502_v19 }
 0x354   : > { %v8490_v44 = vsel %vm1903_vm2, %v8248_v10, %v12655_v38  ;;  %v8495_v48 = vsel %vm1903_vm2, %v8263_v34, %v12656_v3  ;;  %v8500_v24 = vsel %vm1903_vm2, %v8268_v41, %v12657_v62  ;;  %v12659_v35 = vld [vmem:[#allocation134_spill] sm:$0xff]  ;;  %v12660_v27 = vld [vmem:[#allocation135_spill] sm:$0xff]  ;;  %v12661_v33 = vld [vmem:[#allocation136_spill] sm:$0xff] }
 0x355   : > { %v8507_v32 = vsel %vm1903_vm2, %v8275_v49, %v12659_v35  ;;  %v8512_v10 = vsel %vm1903_vm2, %v8280_v12, %v12660_v27  ;;  %v8517_v34 = vsel %vm1903_vm2, %v8285_v26, %v12661_v33  ;;  %v12662_v38 = vld [vmem:[#allocation137_spill] sm:$0xff]  ;;  %v12663_v3 = vld [vmem:[#allocation138_spill] sm:$0xff]  ;;  %v12664_v62 = vld [vmem:[#allocation139_spill] sm:$0xff]  ;;  %v8544_v33 = vpop.permute.xlu0 %1649 }
 0x356   : > { %v8522_v41 = vsel %vm1903_vm2, %v8289_v61, %v12662_v38  ;;  %v8527_v49 = vsel %vm1903_vm2, %v8294_v18, %v12663_v3  ;;  %v8532_v12 = vsel %vm1903_vm2, %v8299_v21, %v12664_v62  ;;  %v12665_v35 = vld [vmem:[#allocation140_spill] sm:$0xff]  ;;  %v12666_v27 = vld [vmem:[#allocation141_spill] sm:$0xff]  ;;  %12667 = vst [vmem:[#allocation65_spill] sm:$0xff] %v8544_v33  ;;  %v12668_v38 = vld [vmem:[#allocation142_spill] sm:$0xff] }
 0x357   : > { %v8537_v26 = vsel %vm1903_vm2, %v8303_v20, %v12665_v35  ;;  %v8542_v61 = vsel %vm1903_vm2, %v8308_v17, %v12666_v27  ;;  %v8549_v18 = vsel %vm1903_vm2, %v8316_v6, %v12668_v38  ;;  %v12669_v3 = vld [vmem:[#allocation143_spill] sm:$0xff]  ;;  %v12670_v62 = vld [vmem:[#allocation144_spill] sm:$0xff]  ;;  %v12671_v35 = vld [vmem:[#allocation145_spill] sm:$0xff] }
 0x358   : > { %v8554_v21 = vsel %vm1903_vm2, %v8320_v30, %v12669_v3  ;;  %v8559_v20 = vsel %vm1903_vm2, %v8325_v5, %v12670_v62  ;;  %v8564_v17 = vsel %vm1903_vm2, %v8330_v46, %v12671_v35  ;;  %v12672_v27 = vld [vmem:[#allocation146_spill] sm:$0xff]  ;;  %v12673_v38 = vld [vmem:[#allocation147_spill] sm:$0xff]  ;;  %v12674_v3 = vld [vmem:[#allocation148_spill] sm:$0xff]  ;;  %v8581_v62 = vpop.permute.xlu1 %1651 }
 0x359   : > { %v8569_v6 = vsel %vm1903_vm2, %v8334_v11, %v12672_v27  ;;  %v8574_v30 = vsel %vm1903_vm2, %v8339_v16, %v12673_v38  ;;  %v8579_v5 = vsel %vm1903_vm2, %v8344_v31, %v12674_v3  ;;  %12675 = vst [vmem:[#allocation66_spill] sm:$0xff] %v8581_v62  ;;  %v12676_v46 = vld [vmem:[#allocation149_spill] sm:$0xff]  ;;  %v12677_v11 = vld [vmem:[#allocation150_spill] sm:$0xff]  ;;  %v12678_v16 = vld [vmem:[#allocation151_spill] sm:$0xff] }
 0x35a   : > { %v8586_v35 = vsel %vm1903_vm2, %v8348_v28, %v12676_v46  ;;  %v8591_v27 = vsel %vm1903_vm2, %v8355_v8, %v12677_v11  ;;  %v8596_v38 = vsel %vm1903_vm2, %v8360_v29, %v12678_v16  ;;  %v12679_v31 = vld [vmem:[#allocation152_spill] sm:$0xff]  ;;  %v12680_v62 = vld [vmem:[#allocation153_spill] sm:$0xff]  ;;  %v12681_v46 = vld [vmem:[#allocation170_spill] sm:$0xff]  ;;  %v8610_v11 = vpop.permute.xlu0 %1653 }
 0x35b   : > { %v8601_v3 = vsel %vm1903_vm2, %v8364_v0, %v12679_v31  ;;  %v8606_v28 = vsel %vm1903_vm2, %v8369_v1, %v12680_v62  ;;  %v1953_v8 = vsel %vm1952_vm5, %v1904_v40, %v12681_v46  ;;  %12682 = vst [vmem:[#allocation250_spill] sm:$0xff] %v8610_v11  ;;  %v12683_v33 = vld [vmem:[#allocation154_spill] sm:$0xff]  ;;  %v12684_v16 = vld [vmem:[#allocation155_spill] sm:$0xff]  ;;  %v12685_v31 = vld [vmem:[#allocation204_spill] sm:$0xff] }
 0x35c   : > { %v8615_v29 = vsel %vm1903_vm2, %v8374_v22, %v12683_v33  ;;  %v8620_v0 = vsel %vm1903_vm2, %v8378_v50, %v12684_v16  ;;  %v2002_v1 = vsel %vm2001_vm6, %v1953_v8, %v12685_v31  ;;  %v12686_v62 = vld [vmem:[#allocation156_spill] sm:$0xff]  ;;  %v12687_v46 = vld [vmem:[#allocation171_spill] sm:$0xff]  ;;  %v8633_v33 = vpop.permute.xlu1 %1655  ;;  %v12690_v50 = vld [vmem:[#allocation157_spill] sm:$0xff] }
 0x35d   : > { %v8627_v40 = vsel %vm1903_vm2, %v8383_v7, %v12686_v62  ;;  %v1954_v11 = vsel %vm1952_vm5, %v1905_v60, %v12687_v46  ;;  %v12688_v19 = vld [vmem:[#allocation251_spill] sm:$0xff]  ;;  %12689 = vst [vmem:[#allocation68_spill] sm:$0xff] %v8633_v33  ;;  %v8638_v16 = vsel %vm1903_vm2, %v8388_v39, %v12690_v50  ;;  %v12691_v8 = vld [vmem:[#allocation158_spill] sm:$0xff]  ;;  %v12692_v7 = vld [vmem:[#allocation205_spill] sm:$0xff] }
 0x35e   : > { %v2051_v22 = vsel %vm2050_vm7, %v2002_v1, %v12688_v19  ;;  %v8643_v31 = vsel %vm1903_vm2, %v8394_v13, %v12691_v8  ;;  %v2003_v62 = vsel %vm2001_vm6, %v1954_v11, %v12692_v7  ;;  %v12693_v19 = vld [vmem:[#allocation159_spill] sm:$0xff]  ;;  %v12694_v46 = vld [vmem:[#allocation172_spill] sm:$0xff]  ;;  %v1712_v8 = vpop.permute.xlu0 %1711  ;;  %v1956_v11 = vsel %vm1952_vm5, %v1907_v56, %v12696_v58  ;;  %v12697_v7 = vld [vmem:[#allocation206_spill] sm:$0xff] }
 0x35f   : > { %v2100_v60 = vsel %vm2099_vm8, %v2051_v22, %v7861_v47  ;;  %v8652_v1 = vsel %vm1903_vm2, %v8399_v63, %v12693_v19  ;;  %v1955_v39 = vsel %vm1952_vm5, %v1906_v9, %v12694_v46  ;;  %v12695_v50 = vld [vmem:[#allocation252_spill] sm:$0xff]  ;;  %v12698_v19 = vld [vmem:[#allocation174_spill] sm:$0xff]  ;;  %v12699_v46 = vld [vmem:[#allocation207_spill] sm:$0xff] }
 0x360   : > { %v2052_v33 = vsel %vm2050_vm7, %v2003_v62, %v12695_v50  ;;  %v2149_v13 = vsel %vm2148_vm9, %v2100_v60, %v8069_v37  ;;  %v2004_v47 = vsel %vm2001_vm6, %v1955_v39, %v12697_v7  ;;  %v1957_v9 = vsel %vm1952_vm5, %v1908_v14, %v12698_v19  ;;  %v12700_v50 = vld [vmem:[#allocation254_spill] sm:$0xff]  ;;  %v1714_v58 = vpop.permute.xlu1 %1713  ;;  %v12701_v60 = vld [vmem:[#allocation255_spill] sm:$0xff] }
 0x361   : > { %v2101_v63 = vsel %vm2099_vm8, %v2052_v33, %v7863_v52  ;;  %v2198_v22 = vsel %vm2197_vm10, %v2149_v13, %v1712_v8  ;;  %v2005_v62 = vsel %vm2001_vm6, %v1956_v11, %v12699_v46  ;;  %v2053_v37 = vsel %vm2050_vm7, %v2004_v47, %v12700_v50  ;;  %v12702_v7 = vld [vmem:[#allocation175_spill] sm:$0xff]  ;;  %v12703_v47 = vld [vmem:[#allocation208_spill] sm:$0xff] }
 0x362   : > { %v2150_v56 = vsel %vm2148_vm9, %v2101_v63, %v8071_v36  ;;  %v2054_v39 = vsel %vm2050_vm7, %v2005_v62, %v12701_v60  ;;  %v2102_v52 = vsel %vm2099_vm8, %v2053_v37, %v7869_v53  ;;  %v2295_v13 = vrot.slane %v2198_v22, 7  ;;  %v1716_v11 = vpop.permute.xlu0 %1715  ;;  %v12704_v46 = vld [vmem:[#allocation256_spill] sm:$0xff] }
 0x363   : > { %v2199_v33 = vsel %vm2197_vm10, %v2150_v56, %v1714_v58  ;;  %v2151_v14 = vsel %vm2148_vm9, %v2102_v52, %v8077_v55  ;;  %v1958_v36 = vsel %vm1952_vm5, %v8470_v43, %v12702_v7  ;;  %v2006_v63 = vsel %vm2001_vm6, %v1957_v9, %v12703_v47  ;;  %v12705_v56 = vld [vmem:[#allocation160_spill] sm:$0xff]  ;;  %v12706_v9 = vld [vmem:[#allocation209_spill] sm:$0xff]  ;;  %v12710_v7 = vld [vmem:[#allocation210_spill] sm:$0xff] }
 0x364   : > { %v2296_v8 = vrot.slane %v2199_v33, 7  ;;  %v2103_v53 = vsel %vm2099_vm8, %v2054_v39, %v7871_v57  ;;  %v2200_v19 = vsel %vm2197_vm10, %v2151_v14, %v1716_v11  ;;  %v2055_v62 = vsel %vm2050_vm7, %v2006_v63, %v12704_v46  ;;  %v1718_v50 = vpop.permute.xlu1 %1717  ;;  %v12708_v52 = vld [vmem:[#allocation257_spill] sm:$0xff]  ;;  %v12711_v47 = vld [vmem:[#allocation310_spill] sm:$0xff] }
 0x365   : > { %v2152_v55 = vsel %vm2148_vm9, %v2103_v53, %v8079_v15  ;;  %v2298_v22 = vrot.slane %v2200_v19, 7  ;;  %v8698_v43 = vsel %vm1903_vm2, %v8404_v4, %v12705_v56  ;;  %v2007_v57 = vsel %vm2001_vm6, %v1958_v36, %v12706_v9  ;;  %v12707_v15 = vld [vmem:[#allocation176_spill] sm:$0xff]  ;;  %v12709_v11 = vld [vmem:[#allocation177_spill] sm:$0xff]  ;;  %v12712_v53 = vld [vmem:[#allocation259_spill] sm:$0xff] }
 0x366   : > { %v2297_v37 = vsel %vm2294_vm11, %v2295_v13, %v2296_v8  ;;  %v2104_v58 = vsel %vm2099_vm8, %v2055_v62, %v7877_v54  ;;  %v2201_v60 = vsel %vm2197_vm10, %v2152_v55, %v1718_v50  ;;  %v1959_v39 = vsel %vm1952_vm5, %v8475_v2, %v12707_v15  ;;  %v1720_v14 = vpop.permute.xlu0 %1719  ;;  %v12713_v19 = vld [vmem:[#allocation45_spill] sm:$0xff]  ;;  %v12715_v50 = vld [vmem:[#allocation211_spill] sm:$0xff] }
 0x367   : > { %5496 = vmatprep.mubr.msk.f32.mxu0 %vm2387_vm12, %v2297_v37  ;;  %v2056_v33 = vsel %vm2050_vm7, %v2007_v57, %v12708_v52  ;;  %v2153_v4 = vsel %vm2148_vm9, %v2104_v58, %v8085_v25  ;;  %v2299_v13 = vsel %vm2294_vm11, %v2296_v8, %v2298_v22  ;;  %v1960_v54 = vsel %vm1952_vm5, %v8480_v42, %v12709_v11  ;;  %v12714_v42 = vld [vmem:[#allocation178_spill] sm:$0xff]  ;;  %v12716_v56 = vld [vmem:[#allocation311_spill] sm:$0xff]  ;;  %v12717_v58 = vld [vmem:[#allocation260_spill] sm:$0xff] }
 0x368   : > { %v2008_v36 = vsel %vm2001_vm6, %v1959_v39, %v12710_v7  ;;  %v2105_v63 = vsel %vm2099_vm8, %v2056_v33, %v12711_v47  ;;  %v2202_v2 = vsel %vm2197_vm10, %v2153_v4, %v1720_v14  ;;  %5497 = vmatmul.mubr.msk.f32.vlgmr.msra.gmra.mxu0 %vm2387_vm12, %v2299_v13  ;;  %v2300_v46 = vrot.slane %v2201_v60, 7  ;;  %v1722_v55 = vpop.permute.xlu1 %1721  ;;  %v12718_v39 = vld [vmem:[#allocation46_spill] sm:$0xff]  ;;  %v12719_v14 = vld [vmem:[#allocation161_spill] sm:$0xff]  ;;  %v12721_v11 = vld [vmem:[#allocation212_spill] sm:$0xff] }
 0x369   : > { %v2057_v25 = vsel %vm2050_vm7, %v2008_v36, %v12712_v53  ;;  %v2154_v8 = vsel %vm2148_vm9, %v2105_v63, %v12713_v19  ;;  %v2301_v62 = vrot.slane %v2202_v2, 7  ;;  %v1961_v22 = vsel %vm1952_vm5, %v8485_v51, %v12714_v42  ;;  %v12720_v51 = vld [vmem:[#allocation48_spill] sm:$0xff]  ;;  %v12723_v63 = vld [vmem:[#allocation179_spill] sm:$0xff]  ;;  %v12724_v53 = vld [vmem:[#allocation262_spill] sm:$0xff] }
 0x36a   : > { %v2009_v37 = vsel %vm2001_vm6, %v1960_v54, %v12715_v50  ;;  %v2106_v9 = vsel %vm2099_vm8, %v2057_v25, %v12716_v56  ;;  %v2203_v57 = vsel %vm2197_vm10, %v2154_v8, %v1722_v55  ;;  %v1724_v33 = vpop.permute.xlu0 %1723  ;;  %v8743_v13 = vsel %vm1903_vm2, %v12720_v51, %v12719_v14  ;;  %v12722_v7 = vld [vmem:[#allocation312_spill] sm:$0xff]  ;;  %v12725_v19 = vld [vmem:[#allocation49_spill] sm:$0xff]  ;;  %v12733_v51 = vld [vmem:[#allocation314_spill] sm:$0xff] }
 0x36b   : > { %v2058_v15 = vsel %vm2050_vm7, %v2009_v37, %v12717_v58  ;;  %v2155_v60 = vsel %vm2148_vm9, %v2106_v9, %v12718_v39  ;;  %v2303_v52 = vrot.slane %v2203_v57, 7  ;;  %v2302_v4 = vsel %vm2294_vm11, %v2300_v46, %v2301_v62  ;;  %v12726_v42 = vld [vmem:[#allocation180_spill] sm:$0xff]  ;;  %v12727_v50 = vld [vmem:[#allocation213_spill] sm:$0xff]  ;;  %v12729_v57 = vld [vmem:[#allocation263_spill] sm:$0xff] }
 0x36c   : > { %v2010_v54 = vsel %vm2001_vm6, %v1961_v22, %v12721_v11  ;;  %v2107_v36 = vsel %vm2099_vm8, %v2058_v15, %v12722_v7  ;;  %v2204_v47 = vsel %vm2197_vm10, %v2155_v60, %v1724_v33  ;;  %5499 = vmatprep.mubr.msk.f32.mxu0 %vm2387_vm12, %v2302_v4  ;;  %v1962_v2 = vsel %vm1952_vm5, %v8490_v44, %v12723_v63  ;;  %v1726_v46 = vpop.permute.xlu1 %1725  ;;  %v12728_v56 = vld [vmem:[#allocation313_spill] sm:$0xff]  ;;  %v12730_v15 = vld [vmem:[#allocation51_spill] sm:$0xff]  ;;  %v12732_v4 = vld [vmem:[#allocation214_spill] sm:$0xff] }
 0x36d   : > { %v2059_v25 = vsel %vm2050_vm7, %v2010_v54, %v12724_v53  ;;  %v2156_v8 = vsel %vm2148_vm9, %v2107_v36, %v12725_v19  ;;  %v2304_v55 = vsel %vm2294_vm11, %v2301_v62, %v2303_v52  ;;  %v1963_v22 = vsel %vm1952_vm5, %v8495_v48, %v12726_v42  ;;  %v12731_v48 = vld [vmem:[#allocation181_spill] sm:$0xff]  ;;  %v12734_v7 = vld [vmem:[#allocation264_spill] sm:$0xff]  ;;  %v12736_v19 = vld [vmem:[#allocation162_spill] sm:$0xff] }
 0x36e   : > { %v2011_v37 = vsel %vm2001_vm6, %v1962_v2, %v12727_v50  ;;  %v2108_v9 = vsel %vm2099_vm8, %v2059_v25, %v12728_v56  ;;  %v2205_v44 = vsel %vm2197_vm10, %v2156_v8, %v1726_v46  ;;  %5500 = vmatmul.mubr.msk.f32.gmra.mxu0 %vm2387_vm12, %v2304_v55  ;;  %v2305_v39 = vrot.slane %v2204_v47, 7  ;;  %v1728_v52 = vpop.permute.xlu0 %1727  ;;  %v12735_v63 = vld [vmem:[#allocation52_spill] sm:$0xff]  ;;  %v12738_v46 = vld [vmem:[#allocation215_spill] sm:$0xff] }
 0x36f   : > { %v2060_v58 = vsel %vm2050_vm7, %v2011_v37, %v12729_v57  ;;  %v2157_v62 = vsel %vm2148_vm9, %v2108_v9, %v12730_v15  ;;  %v2306_v60 = vrot.slane %v2205_v44, 7  ;;  %v1964_v33 = vsel %vm1952_vm5, %v8500_v24, %v12731_v48  ;;  %v12737_v24 = vld [vmem:[#allocation50_spill] sm:$0xff]  ;;  %v12739_v42 = vld [vmem:[#allocation315_spill] sm:$0xff]  ;;  %v12741_v9 = vld [vmem:[#allocation265_spill] sm:$0xff] }
 0x370   : > { %v2012_v14 = vsel %vm2001_vm6, %v1963_v22, %v12732_v4  ;;  %v2109_v11 = vsel %vm2099_vm8, %v2060_v58, %v12733_v51  ;;  %v2206_v54 = vsel %vm2197_vm10, %v2157_v62, %v1728_v52  ;;  %v1730_v53 = vpop.permute.xlu1 %1729  ;;  %v8788_v8 = vsel %vm1903_vm2, %v12737_v24, %v12736_v19  ;;  %v12740_v37 = vld [vmem:[#allocation182_spill] sm:$0xff]  ;;  %v12742_v57 = vld [vmem:[#allocation55_spill] sm:$0xff]  ;;  %v12744_v48 = vld [vmem:[#allocation216_spill] sm:$0xff] }
 0x371   : > { %v2061_v36 = vsel %vm2050_vm7, %v2012_v14, %v12734_v7  ;;  %v2158_v47 = vsel %vm2148_vm9, %v2109_v11, %v12735_v63  ;;  %v2308_v2 = vrot.slane %v2206_v54, 7  ;;  %v2307_v25 = vsel %vm2294_vm11, %v2305_v39, %v2306_v60  ;;  %v12743_v39 = vld [vmem:[#allocation183_spill] sm:$0xff]  ;;  %v12745_v4 = vld [vmem:[#allocation316_spill] sm:$0xff]  ;;  %v12747_v54 = vld [vmem:[#allocation57_spill] sm:$0xff] }
 0x372   : > { %v2013_v55 = vsel %vm2001_vm6, %v1964_v33, %v12738_v46  ;;  %v2110_v22 = vsel %vm2099_vm8, %v2061_v36, %v12739_v42  ;;  %v2207_v50 = vsel %vm2197_vm10, %v2158_v47, %v1730_v53  ;;  %5502 = vmatprep.mubr.msk.f32.mxu0 %vm2387_vm12, %v2307_v25  ;;  %v1965_v56 = vsel %vm1952_vm5, %v8507_v32, %v12740_v37  ;;  %v1732_v15 = vpop.permute.xlu0 %1731  ;;  %v12746_v51 = vld [vmem:[#allocation267_spill] sm:$0xff]  ;;  %v12750_v25 = vld [vmem:[#allocation317_spill] sm:$0xff]  ;;  %v12751_v46 = vld [vmem:[#allocation268_spill] sm:$0xff] }
 0x373   : > { %v2062_v44 = vsel %vm2050_vm7, %v2013_v55, %v12741_v9  ;;  %v2159_v58 = vsel %vm2148_vm9, %v2110_v22, %v12742_v57  ;;  %v2309_v62 = vsel %vm2294_vm11, %v2306_v60, %v2308_v2  ;;  %v1966_v52 = vsel %vm1952_vm5, %v8512_v10, %v12743_v39  ;;  %v12748_v10 = vld [vmem:[#allocation8_spill] sm:$0xff]  ;;  %v12749_v2 = vld [vmem:[#allocation217_spill] sm:$0xff]  ;;  %v12752_v42 = vld [vmem:[#allocation58_spill] sm:$0xff] }
 0x374   : > { %v2014_v33 = vsel %vm2001_vm6, %v1965_v56, %v12744_v48  ;;  %v2111_v14 = vsel %vm2099_vm8, %v2062_v44, %v12745_v4  ;;  %v2208_v32 = vsel %vm2197_vm10, %v2159_v58, %v1732_v15  ;;  %5503 = vmatmul.mubr.msk.f32.gmra.mxu0 %vm2387_vm12, %v2309_v62  ;;  %v2310_v7 = vrot.slane %v2207_v50, 7  ;;  %v1734_v63 = vpop.permute.xlu1 %1733  ;;  %v12753_v9 = vld [vmem:[#allocation163_spill] sm:$0xff]  ;;  %v12755_v57 = vld [vmem:[#allocation218_spill] sm:$0xff] }
 0x375   : > { %v2063_v11 = vsel %vm2050_vm7, %v2014_v33, %v12746_v51  ;;  %v2160_v60 = vsel %vm2148_vm9, %v2111_v14, %v12747_v54  ;;  %v2311_v36 = vrot.slane %v2208_v32, 7  ;;  %v1967_v47 = vsel %vm1952_vm5, %v8517_v34, %v12748_v10  ;;  %v12754_v34 = vld [vmem:[#allocation53_spill] sm:$0xff]  ;;  %v12756_v15 = vld [vmem:[#allocation318_spill] sm:$0xff]  ;;  %v12762_v10 = vld [vmem:[#allocation319_spill] sm:$0xff] }
 0x376   : > { %v2015_v53 = vsel %vm2001_vm6, %v1966_v52, %v12749_v2  ;;  %v2112_v19 = vsel %vm2099_vm8, %v2063_v11, %v12750_v25  ;;  %v2209_v24 = vsel %vm2197_vm10, %v2160_v60, %v1734_v63  ;;  %v1736_v37 = vpop.permute.xlu0 %1735  ;;  %v8833_v44 = vsel %vm1903_vm2, %v12754_v34, %v12753_v9  ;;  %v12757_v52 = vld [vmem:[#allocation7_spill] sm:$0xff]  ;;  %v12758_v33 = vld [vmem:[#allocation270_spill] sm:$0xff]  ;;  %v12759_v14 = vld [vmem:[#allocation61_spill] sm:$0xff] }
 0x377   : > { %v2064_v55 = vsel %vm2050_vm7, %v2015_v53, %v12751_v46  ;;  %v2161_v22 = vsel %vm2148_vm9, %v2112_v19, %v12752_v42  ;;  %v2313_v50 = vrot.slane %v2209_v24, 7  ;;  %v2312_v56 = vsel %vm2294_vm11, %v2310_v7, %v2311_v36  ;;  %v12760_v54 = vld [vmem:[#allocation9_spill] sm:$0xff]  ;;  %v12761_v7 = vld [vmem:[#allocation219_spill] sm:$0xff]  ;;  %v12766_v42 = vld [vmem:[#allocation220_spill] sm:$0xff] }
 0x378   : > { %v2016_v58 = vsel %vm2001_vm6, %v1967_v47, %v12755_v57  ;;  %v2113_v62 = vsel %vm2099_vm8, %v2064_v55, %v12756_v15  ;;  %v2210_v39 = vsel %vm2197_vm10, %v2161_v22, %v1736_v37  ;;  %5505 = vmatprep.mubr.msk.f32.mxu0 %vm2387_vm12, %v2312_v56  ;;  %v1968_v48 = vsel %vm1952_vm5, %v8522_v41, %v12757_v52  ;;  %v1738_v51 = vpop.permute.xlu1 %1737  ;;  %v12763_v2 = vld [vmem:[#allocation271_spill] sm:$0xff]  ;;  %v12768_v9 = vld [vmem:[#allocation272_spill] sm:$0xff] }
 0x379   : > { %v2065_v4 = vsel %vm2050_vm7, %v2016_v58, %v12758_v33  ;;  %v2162_v32 = vsel %vm2148_vm9, %v2113_v62, %v12759_v14  ;;  %v2314_v11 = vsel %vm2294_vm11, %v2311_v36, %v2313_v50  ;;  %v1969_v60 = vsel %vm1952_vm5, %v8527_v49, %v12760_v54  ;;  %v12764_v25 = vld [vmem:[#allocation63_spill] sm:$0xff]  ;;  %v12767_v50 = vld [vmem:[#allocation320_spill] sm:$0xff]  ;;  %v12772_v33 = vld [vmem:[#allocation221_spill] sm:$0xff] }
 0x37a   : > { %v2017_v63 = vsel %vm2001_vm6, %v1968_v48, %v12761_v7  ;;  %v2114_v47 = vsel %vm2099_vm8, %v2065_v4, %v12762_v10  ;;  %v2211_v41 = vsel %vm2197_vm10, %v2162_v32, %v1738_v51  ;;  %5506 = vmatmul.mubr.msk.f32.gmra.mxu0 %vm2387_vm12, %v2314_v11  ;;  %v2315_v19 = vrot.slane %v2210_v39, 7  ;;  %v1740_v46 = vpop.permute.xlu0 %1739  ;;  %v12765_v49 = vld [vmem:[#allocation11_spill] sm:$0xff]  ;;  %v12769_v57 = vld [vmem:[#allocation64_spill] sm:$0xff]  ;;  %v12773_v14 = vld [vmem:[#allocation321_spill] sm:$0xff] }
 0x37b   : > { %v2066_v53 = vsel %vm2050_vm7, %v2017_v63, %v12763_v2  ;;  %v2163_v36 = vsel %vm2148_vm9, %v2114_v47, %v12764_v25  ;;  %v2316_v24 = vrot.slane %v2211_v41, 7  ;;  %v1970_v55 = vsel %vm1952_vm5, %v8532_v12, %v12765_v49  ;;  %v12770_v52 = vld [vmem:[#allocation164_spill] sm:$0xff]  ;;  %v12771_v12 = vld [vmem:[#allocation54_spill] sm:$0xff]  ;;  %v12776_v63 = vld [vmem:[#allocation67_spill] sm:$0xff] }
 0x37c   : > { %v2018_v22 = vsel %vm2001_vm6, %v1969_v60, %v12766_v42  ;;  %v2115_v37 = vsel %vm2099_vm8, %v2066_v53, %v12767_v50  ;;  %v2212_v56 = vsel %vm2197_vm10, %v2163_v36, %v1740_v46  ;;  %v1742_v62 = vpop.permute.xlu1 %1741  ;;  %v8878_v48 = vsel %vm1903_vm2, %v12771_v12, %v12770_v52  ;;  %v12774_v11 = vld [vmem:[#allocation10_spill] sm:$0xff]  ;;  %v12775_v60 = vld [vmem:[#allocation273_spill] sm:$0xff]  ;;  %v12777_v2 = vld [vmem:[#allocation12_spill] sm:$0xff] }
 0x37d   : > { %v2067_v34 = vsel %vm2050_vm7, %v2018_v22, %v12768_v9  ;;  %v2164_v58 = vsel %vm2148_vm9, %v2115_v37, %v12769_v57  ;;  %v2318_v15 = vrot.slane %v2212_v56, 7  ;;  %v2317_v39 = vsel %vm2294_vm11, %v2315_v19, %v2316_v24  ;;  %v12778_v25 = vld [vmem:[#allocation222_spill] sm:$0xff]  ;;  %v12780_v49 = vld [vmem:[#allocation275_spill] sm:$0xff]  ;;  %v12781_v42 = vld [vmem:[#allocation69_spill] sm:$0xff] }
 0x37e   : > { %v2019_v4 = vsel %vm2001_vm6, %v1970_v55, %v12772_v33  ;;  %v2116_v32 = vsel %vm2099_vm8, %v2067_v34, %v12773_v14  ;;  %v2213_v51 = vsel %vm2197_vm10, %v2164_v58, %v1742_v62  ;;  %5508 = vmatprep.mubr.msk.f32.mxu0 %vm2387_vm12, %v2317_v39  ;;  %v1971_v54 = vsel %vm1952_vm5, %v8537_v26, %v12774_v11  ;;  %v1744_v47 = vpop.permute.xlu0 %1743  ;;  %v12779_v19 = vld [vmem:[#allocation322_spill] sm:$0xff]  ;;  %v12783_v9 = vld [vmem:[#allocation223_spill] sm:$0xff]  ;;  %v12785_v62 = vld [vmem:[#allocation276_spill] sm:$0xff] }
 0x37f   : > { %v2068_v7 = vsel %vm2050_vm7, %v2019_v4, %v12775_v60  ;;  %v2165_v10 = vsel %vm2148_vm9, %v2116_v32, %v12776_v63  ;;  %v2319_v41 = vsel %vm2294_vm11, %v2316_v24, %v2318_v15  ;;  %v1972_v53 = vsel %vm1952_vm5, %v8542_v61, %v12777_v2  ;;  %v12782_v61 = vld [vmem:[#allocation14_spill] sm:$0xff]  ;;  %v12784_v57 = vld [vmem:[#allocation323_spill] sm:$0xff]  ;;  %v12787_v32 = vld [vmem:[#allocation165_spill] sm:$0xff] }
 0x380   : > { %v2020_v36 = vsel %vm2001_vm6, %v1971_v54, %v12778_v25  ;;  %v2117_v46 = vsel %vm2099_vm8, %v2068_v7, %v12779_v19  ;;  %v2214_v26 = vsel %vm2197_vm10, %v2165_v10, %v1744_v47  ;;  %5509 = vmatmul.mubr.msk.f32.gmra.mxu0 %vm2387_vm12, %v2319_v41  ;;  %v2320_v22 = vrot.slane %v2213_v51, 7  ;;  %v1746_v37 = vpop.permute.xlu1 %1745  ;;  %v12786_v52 = vld [vmem:[#allocation70_spill] sm:$0xff]  ;;  %v12788_v51 = vld [vmem:[#allocation224_spill] sm:$0xff]  ;;  %v12790_v63 = vld [vmem:[#allocation13_spill] sm:$0xff] }
 0x381   : > { %v2069_v55 = vsel %vm2050_vm7, %v2020_v36, %v12780_v49  ;;  %v2166_v24 = vsel %vm2148_vm9, %v2117_v46, %v12781_v42  ;;  %v2321_v50 = vrot.slane %v2214_v26, 7  ;;  %v1973_v56 = vsel %vm1952_vm5, %v8549_v18, %v12782_v61  ;;  %v12789_v54 = vld [vmem:[#allocation324_spill] sm:$0xff]  ;;  %v12791_v47 = vld [vmem:[#allocation278_spill] sm:$0xff]  ;;  %v12792_v2 = vld [vmem:[#allocation73_spill] sm:$0xff] }
 0x382   : > { %v2021_v34 = vsel %vm2001_vm6, %v1972_v53, %v12783_v9  ;;  %v2118_v58 = vsel %vm2099_vm8, %v2069_v55, %v12784_v57  ;;  %v2215_v15 = vsel %vm2197_vm10, %v2166_v24, %v1746_v37  ;;  %v1748_v4 = vpop.permute.xlu0 %1747  ;;  %v8923_v18 = vsel %vm1903_vm2, %v8427_v59, %v12787_v32  ;;  %v12793_v36 = vld [vmem:[#allocation15_spill] sm:$0xff]  ;;  %v12794_v46 = vld [vmem:[#allocation225_spill] sm:$0xff] }
 0x383   : > { %v2070_v39 = vsel %vm2050_vm7, %v2021_v34, %v12785_v62  ;;  %v2167_v12 = vsel %vm2148_vm9, %v2118_v58, %v12786_v52  ;;  %v2323_v33 = vrot.slane %v2215_v15, 7  ;;  %v2322_v14 = vsel %vm2294_vm11, %v2320_v22, %v2321_v50  ;;  %v12795_v49 = vld [vmem:[#allocation325_spill] sm:$0xff]  ;;  %v12796_v42 = vld [vmem:[#allocation279_spill] sm:$0xff]  ;;  %v12799_v34 = vld [vmem:[#allocation226_spill] sm:$0xff] }
 0x384   : > { %v2022_v11 = vsel %vm2001_vm6, %v1973_v56, %v12788_v51  ;;  %v2119_v60 = vsel %vm2099_vm8, %v2070_v39, %v12789_v54  ;;  %v2216_v7 = vsel %vm2197_vm10, %v2167_v12, %v1748_v4  ;;  %5511 = vmatprep.mubr.msk.f32.mxu0 %vm2387_vm12, %v2322_v14  ;;  %v1974_v10 = vsel %vm1952_vm5, %v8554_v21, %v12790_v63  ;;  %v1750_v53 = vpop.permute.xlu1 %1749  ;;  %v12797_v22 = vld [vmem:[#allocation75_spill] sm:$0xff]  ;;  %v12800_v58 = vld [vmem:[#allocation326_spill] sm:$0xff]  ;;  %v12801_v39 = vld [vmem:[#allocation280_spill] sm:$0xff] }
 0x385   : > { %v2071_v41 = vsel %vm2050_vm7, %v2022_v11, %v12791_v47  ;;  %v2168_v59 = vsel %vm2148_vm9, %v2119_v60, %v12792_v2  ;;  %v2324_v25 = vsel %vm2294_vm11, %v2321_v50, %v2323_v33  ;;  %v1975_v19 = vsel %vm1952_vm5, %v8559_v20, %v12793_v36  ;;  %v12798_v20 = vld [vmem:[#allocation17_spill] sm:$0xff]  ;;  %v12802_v12 = vld [vmem:[#allocation76_spill] sm:$0xff]  ;;  %v12803_v51 = vld [vmem:[#allocation166_spill] sm:$0xff] }
 0x386   : > { %v2023_v26 = vsel %vm2001_vm6, %v1974_v10, %v12794_v46  ;;  %v2120_v55 = vsel %vm2099_vm8, %v2071_v41, %v12795_v49  ;;  %v2217_v21 = vsel %vm2197_vm10, %v2168_v59, %v1750_v53  ;;  %5512 = vmatmul.mubr.msk.f32.gmra.mxu0 %vm2387_vm12, %v2324_v25  ;;  %v2325_v37 = vrot.slane %v2216_v7, 7  ;;  %v1752_v56 = vpop.permute.xlu0 %1751  ;;  %v12804_v11 = vld [vmem:[#allocation227_spill] sm:$0xff]  ;;  %v12806_v10 = vld [vmem:[#allocation16_spill] sm:$0xff]  ;;  %v12807_v41 = vld [vmem:[#allocation281_spill] sm:$0xff] }
 0x387   : > { %v2072_v24 = vsel %vm2050_vm7, %v2023_v26, %v12796_v42  ;;  %v2169_v50 = vsel %vm2148_vm9, %v2120_v55, %v12797_v22  ;;  %v2326_v61 = vrot.slane %v2217_v21, 7  ;;  %v1976_v9 = vsel %vm1952_vm5, %v8564_v17, %v12798_v20  ;;  %v12805_v60 = vld [vmem:[#allocation327_spill] sm:$0xff]  ;;  %v12809_v36 = vld [vmem:[#allocation18_spill] sm:$0xff]  ;;  %v12810_v46 = vld [vmem:[#allocation228_spill] sm:$0xff] }
 0x388   : > { %v2024_v57 = vsel %vm2001_vm6, %v1975_v19, %v12799_v34  ;;  %v2121_v15 = vsel %vm2099_vm8, %v2072_v24, %v12800_v58  ;;  %v2218_v62 = vsel %vm2197_vm10, %v2169_v50, %v1752_v56  ;;  %v1754_v14 = vpop.permute.xlu1 %1753  ;;  %v8968_v17 = vsel %vm1903_vm2, %v8434_v45, %v12803_v51  ;;  %v12808_v59 = vld [vmem:[#allocation79_spill] sm:$0xff]  ;;  %v12811_v49 = vld [vmem:[#allocation328_spill] sm:$0xff]  ;;  %v12813_v24 = vld [vmem:[#allocation81_spill] sm:$0xff] }
 0x389   : > { %v2073_v52 = vsel %vm2050_vm7, %v2024_v57, %v12801_v39  ;;  %v2170_v33 = vsel %vm2148_vm9, %v2121_v15, %v12802_v12  ;;  %v2328_v4 = vrot.slane %v2218_v62, 7  ;;  %v2327_v32 = vsel %vm2294_vm11, %v2325_v37, %v2326_v61  ;;  %v12812_v21 = vld [vmem:[#allocation283_spill] sm:$0xff]  ;;  %v12815_v20 = vld [vmem:[#allocation229_spill] sm:$0xff]  ;;  %v12817_v15 = vld [vmem:[#allocation284_spill] sm:$0xff] }
 0x38a   : > { %v2025_v54 = vsel %vm2001_vm6, %v1976_v9, %v12804_v11  ;;  %v2122_v7 = vsel %vm2099_vm8, %v2073_v52, %v12805_v60  ;;  %v2219_v63 = vsel %vm2197_vm10, %v2170_v33, %v1754_v14  ;;  %5514 = vmatprep.mubr.msk.f32.mxu0 %vm2387_vm12, %v2327_v32  ;;  %v1977_v47 = vsel %vm1952_vm5, %v8569_v6, %v12806_v10  ;;  %v1756_v53 = vpop.permute.xlu0 %1755  ;;  %v12816_v34 = vld [vmem:[#allocation21_spill] sm:$0xff]  ;;  %v12818_v39 = vld [vmem:[#allocation82_spill] sm:$0xff]  ;;  %v12819_v14 = vld [vmem:[#allocation167_spill] sm:$0xff] }
 0x38b   : > { %v2074_v2 = vsel %vm2050_vm7, %v2025_v54, %v12807_v41  ;;  %v2171_v45 = vsel %vm2148_vm9, %v2122_v7, %v12808_v59  ;;  %v2329_v25 = vsel %vm2294_vm11, %v2326_v61, %v2328_v4  ;;  %v1978_v19 = vsel %vm1952_vm5, %v8574_v30, %v12809_v36  ;;  %v12814_v30 = vld [vmem:[#allocation20_spill] sm:$0xff]  ;;  %v12821_v51 = vld [vmem:[#allocation91_spill] sm:$0xff]  ;;  %v12822_v54 = vld [vmem:[#allocation329_spill] sm:$0xff] }
 0x38c   : > { %v2026_v26 = vsel %vm2001_vm6, %v1977_v47, %v12810_v46  ;;  %v2123_v55 = vsel %vm2099_vm8, %v2074_v2, %v12811_v49  ;;  %v2220_v6 = vsel %vm2197_vm10, %v2171_v45, %v1756_v53  ;;  %5515 = vmatmul.mubr.msk.f32.gmra.mxu0 %vm2387_vm12, %v2329_v25  ;;  %v2330_v50 = vrot.slane %v2219_v63, 7  ;;  %v1758_v61 = vpop.permute.xlu1 %1757  ;;  %v12823_v63 = vld [vmem:[#allocation19_spill] sm:$0xff]  ;;  %v12824_v47 = vld [vmem:[#allocation286_spill] sm:$0xff]  ;;  %v12825_v2 = vld [vmem:[#allocation85_spill] sm:$0xff] }
 0x38d   : > { %v2075_v42 = vsel %vm2050_vm7, %v2026_v26, %v12812_v21  ;;  %v2172_v22 = vsel %vm2148_vm9, %v2123_v55, %v12813_v24  ;;  %v2331_v37 = vrot.slane %v2220_v6, 7  ;;  %v1979_v56 = vsel %vm1952_vm5, %v8579_v5, %v12814_v30  ;;  %v12820_v5 = vld [vmem:[#allocation59_spill] sm:$0xff]  ;;  %v12826_v25 = vld [vmem:[#allocation184_spill] sm:$0xff] }
 0x38e   : > { %v2027_v9 = vsel %vm2001_vm6, %v1978_v19, %v12815_v20  ;;  %v2124_v57 = vsel %vm2099_vm8, %v2075_v42, %v12816_v34  ;;  %v2221_v58 = vsel %vm2197_vm10, %v2172_v22, %v1758_v61  ;;  %v1760_v33 = vpop.permute.xlu0 %1759  ;;  %v9013_v32 = vsel %vm1903_vm2, %v12820_v5, %v12819_v14  ;;  %v12827_v19 = vld [vmem:[#allocation230_spill] sm:$0xff]  ;;  %v12828_v26 = vld [vmem:[#allocation23_spill] sm:$0xff]  ;;  %v12834_v34 = vld [vmem:[#allocation288_spill] sm:$0xff] }
 0x38f   : > { %v2076_v62 = vsel %vm2050_vm7, %v2027_v9, %v12817_v15  ;;  %v2173_v52 = vsel %vm2148_vm9, %v2124_v57, %v12818_v39  ;;  %v2333_v12 = vrot.slane %v2221_v58, 7  ;;  %v2332_v4 = vsel %vm2294_vm11, %v2330_v50, %v2331_v37  ;;  %v12829_v55 = vld [vmem:[#allocation287_spill] sm:$0xff]  ;;  %v12832_v61 = vld [vmem:[#allocation94_spill] sm:$0xff]  ;;  %v12835_v58 = vld [vmem:[#allocation88_spill] sm:$0xff] }
 0x390   : > { %v2028_v11 = vsel %vm2001_vm6, %v1979_v56, %v12821_v51  ;;  %v2125_v60 = vsel %vm2099_vm8, %v2076_v62, %v12822_v54  ;;  %v2222_v7 = vsel %vm2197_vm10, %v2173_v52, %v1760_v33  ;;  %5517 = vmatprep.mubr.msk.f32.mxu0 %vm2387_vm12, %v2332_v4  ;;  %v1980_v10 = vsel %vm1952_vm5, %v8586_v35, %v12823_v63  ;;  %v1762_v45 = vpop.permute.xlu1 %1761  ;;  %v12830_v21 = vld [vmem:[#allocation87_spill] sm:$0xff]  ;;  %v12833_v56 = vld [vmem:[#allocation22_spill] sm:$0xff]  ;;  %v12838_v14 = vld [vmem:[#allocation24_spill] sm:$0xff] }
 0x391   : > { %v2077_v41 = vsel %vm2050_vm7, %v2028_v11, %v12824_v47  ;;  %v2174_v59 = vsel %vm2148_vm9, %v2125_v60, %v12825_v2  ;;  %v2334_v53 = vsel %vm2294_vm11, %v2331_v37, %v2333_v12  ;;  %v1981_v36 = vsel %vm1952_vm5, %v8591_v27, %v12826_v25  ;;  %v12831_v27 = vld [vmem:[#allocation185_spill] sm:$0xff]  ;;  %v12836_v12 = vld [vmem:[#allocation168_spill] sm:$0xff]  ;;  %v12837_v33 = vld [vmem:[#allocation231_spill] sm:$0xff] }
 0x392   : > { %v2029_v46 = vsel %vm2001_vm6, %v1980_v10, %v12827_v19  ;;  %v2126_v49 = vsel %vm2099_vm8, %v2077_v41, %v12828_v26  ;;  %v2223_v35 = vsel %vm2197_vm10, %v2174_v59, %v1762_v45  ;;  %5518 = vmatmul.mubr.msk.f32.gmra.mxu0 %vm2387_vm12, %v2334_v53  ;;  %v2335_v24 = vrot.slane %v2222_v7, 7  ;;  %v1764_v50 = vpop.permute.xlu0 %1763  ;;  %v12839_v11 = vld [vmem:[#allocation186_spill] sm:$0xff]  ;;  %v12840_v60 = vld [vmem:[#allocation289_spill] sm:$0xff]  ;;  %v12842_v41 = vld [vmem:[#allocation187_spill] sm:$0xff] }
 0x393   : > { %v2078_v6 = vsel %vm2050_vm7, %v2029_v46, %v12829_v55  ;;  %v2175_v42 = vsel %vm2148_vm9, %v2126_v49, %v12830_v21  ;;  %v2336_v22 = vrot.slane %v2223_v35, 7  ;;  %v1982_v37 = vsel %vm1952_vm5, %v8596_v38, %v12831_v27  ;;  %v12841_v63 = vld [vmem:[#allocation93_spill] sm:$0xff]  ;;  %v12843_v59 = vld [vmem:[#allocation99_spill] sm:$0xff]  ;;  %v12844_v53 = vld [vmem:[#allocation26_spill] sm:$0xff] }
 0x394   : > { %v2030_v30 = vsel %vm2001_vm6, %v1981_v36, %v12832_v61  ;;  %v2127_v20 = vsel %vm2099_vm8, %v2078_v6, %v12833_v56  ;;  %v2224_v9 = vsel %vm2197_vm10, %v2175_v42, %v1764_v50  ;;  %v1766_v39 = vpop.permute.xlu1 %1765  ;;  %v9058_v38 = vsel %vm1903_vm2, %v8443_v23, %v12836_v12  ;;  %v12845_v36 = vld [vmem:[#allocation291_spill] sm:$0xff]  ;;  %v12846_v46 = vld [vmem:[#allocation97_spill] sm:$0xff]  ;;  %v12848_v21 = vld [vmem:[#allocation232_spill] sm:$0xff] }
 0x395   : > { %v2079_v57 = vsel %vm2050_vm7, %v2030_v30, %v12834_v34  ;;  %v2176_v15 = vsel %vm2148_vm9, %v2127_v20, %v12835_v58  ;;  %v2338_v62 = vrot.slane %v2224_v9, 7  ;;  %v2337_v52 = vsel %vm2294_vm11, %v2335_v24, %v2336_v22  ;;  %v12849_v24 = vld [vmem:[#allocation25_spill] sm:$0xff]  ;;  %v12850_v27 = vld [vmem:[#allocation292_spill] sm:$0xff] }
 0x396   : > { %v2031_v4 = vsel %vm2001_vm6, %v1982_v37, %v12837_v33  ;;  %v2128_v5 = vsel %vm2099_vm8, %v2079_v57, %v12838_v14  ;;  %v2225_v51 = vsel %vm2197_vm10, %v2176_v15, %v1766_v39  ;;  %5520 = vmatprep.mubr.msk.f32.mxu0 %vm2387_vm12, %v2337_v52  ;;  %v1983_v54 = vsel %vm1952_vm5, %v8601_v3, %v12839_v11  ;;  %v1768_v10 = vpop.permute.xlu0 %1767  ;;  %v12851_v61 = vld [vmem:[#allocation100_spill] sm:$0xff]  ;;  %v12852_v34 = vld [vmem:[#allocation169_spill] sm:$0xff] }
 0x397   : > { %v2080_v7 = vsel %vm2050_vm7, %v2031_v4, %v12840_v60  ;;  %v2177_v23 = vsel %vm2148_vm9, %v2128_v5, %v12841_v63  ;;  %v2339_v47 = vsel %vm2294_vm11, %v2336_v22, %v2338_v62  ;;  %v1984_v2 = vsel %vm1952_vm5, %v8606_v28, %v12842_v41  ;;  %v12847_v28 = vld [vmem:[#allocation188_spill] sm:$0xff]  ;;  %v12854_v58 = vld [vmem:[#allocation233_spill] sm:$0xff]  ;;  %v12855_v62 = vld [vmem:[#allocation27_spill] sm:$0xff] }
 0x398   : > { %v2032_v45 = vsel %vm2001_vm6, %v1983_v54, %v12843_v59  ;;  %v2129_v25 = vsel %vm2099_vm8, %v2080_v7, %v12844_v53  ;;  %v2226_v3 = vsel %vm2197_vm10, %v2177_v23, %v1768_v10  ;;  %5521 = vmatmul.mubr.msk.f32.gmra.mxu0 %vm2387_vm12, %v2339_v47  ;;  %v2340_v49 = vrot.slane %v2225_v51, 7  ;;  %v1770_v55 = vpop.permute.xlu1 %1769  ;;  %v12856_v12 = vld [vmem:[#allocation189_spill] sm:$0xff]  ;;  %v12857_v4 = vld [vmem:[#allocation294_spill] sm:$0xff]  ;;  %v12858_v5 = vld [vmem:[#allocation103_spill] sm:$0xff] }
 0x399   : > { %v2081_v19 = vsel %vm2050_vm7, %v2032_v45, %v12845_v36  ;;  %v2178_v26 = vsel %vm2148_vm9, %v2129_v25, %v12846_v46  ;;  %v2341_v35 = vrot.slane %v2226_v3, 7  ;;  %v1985_v6 = vsel %vm1952_vm5, %v8615_v29, %v12847_v28  ;;  %v12853_v29 = vld [vmem:[#allocation245_spill] sm:$0xff]  ;;  %v12859_v60 = vld [vmem:[#allocation192_spill] sm:$0xff]  ;;  %v12860_v63 = vld [vmem:[#allocation234_spill] sm:$0xff] }
 0x39a   : > { %v2033_v42 = vsel %vm2001_vm6, %v1984_v2, %v12848_v21  ;;  %v2130_v22 = vsel %vm2099_vm8, %v2081_v19, %v12849_v24  ;;  %v2227_v50 = vsel %vm2197_vm10, %v2178_v26, %v1770_v55  ;;  %v1772_v20 = vpop.permute.xlu0 %1771  ;;  %v9103_v57 = vsel %vm1903_vm2, %v12853_v29, %v12852_v34  ;;  %v12861_v10 = vld [vmem:[#allocation29_spill] sm:$0xff]  ;;  %v12862_v41 = vld [vmem:[#allocation295_spill] sm:$0xff]  ;;  %v12866_v26 = vld [vmem:[#allocation28_spill] sm:$0xff] }
 0x39b   : > { %v2082_v37 = vsel %vm2050_vm7, %v2033_v42, %v12850_v27  ;;  %v2179_v30 = vsel %vm2148_vm9, %v2130_v22, %v12851_v61  ;;  %v2343_v56 = vrot.slane %v2227_v50, 7  ;;  %v2342_v9 = vsel %vm2294_vm11, %v2340_v49, %v2341_v35  ;;  %v12863_v59 = vld [vmem:[#allocation105_spill] sm:$0xff]  ;;  %v12865_v19 = vld [vmem:[#allocation235_spill] sm:$0xff]  ;;  %v12867_v55 = vld [vmem:[#allocation296_spill] sm:$0xff] }
 0x39c   : > { %v2034_v15 = vsel %vm2001_vm6, %v1985_v6, %v12854_v58  ;;  %v2131_v39 = vsel %vm2099_vm8, %v2082_v37, %v12855_v62  ;;  %v2228_v52 = vsel %vm2197_vm10, %v2179_v30, %v1772_v20  ;;  %5523 = vmatprep.mubr.msk.f32.mxu0 %vm2387_vm12, %v2342_v9  ;;  %v1986_v33 = vsel %vm1952_vm5, %v8620_v0, %v12856_v12  ;;  %v1774_v11 = vpop.permute.xlu1 %1773  ;;  %v12868_v6 = vld [vmem:[#allocation106_spill] sm:$0xff]  ;;  %v12869_v50 = vld [vmem:[#allocation195_spill] sm:$0xff]  ;;  %v12870_v27 = vld [vmem:[#allocation236_spill] sm:$0xff] }
 0x39d   : > { %v2083_v14 = vsel %vm2050_vm7, %v2034_v15, %v12857_v4  ;;  %v2180_v51 = vsel %vm2148_vm9, %v2131_v39, %v12858_v5  ;;  %v2344_v54 = vsel %vm2294_vm11, %v2341_v35, %v2343_v56  ;;  %v1987_v7 = vsel %vm1952_vm5, %v8627_v40, %v12859_v60  ;;  %v12864_v40 = vld [vmem:[#allocation193_spill] sm:$0xff]  ;;  %v12871_v61 = vld [vmem:[#allocation191_spill] sm:$0xff]  ;;  %v12872_v20 = vld [vmem:[#allocation196_spill] sm:$0xff] }
 0x39e   : > { %v2035_v23 = vsel %vm2001_vm6, %v1986_v33, %v12860_v63  ;;  %v2132_v47 = vsel %vm2099_vm8, %v2083_v14, %v12861_v10  ;;  %v2229_v0 = vsel %vm2197_vm10, %v2180_v51, %v1774_v11  ;;  %5524 = vmatmul.mubr.msk.f32.gmra.mxu0 %vm2387_vm12, %v2344_v54  ;;  %v2345_v53 = vrot.slane %v2228_v52, 7  ;;  %v1776_v3 = vpop.permute.xlu0 %1775  ;;  %v12873_v34 = vld [vmem:[#allocation297_spill] sm:$0xff]  ;;  %v12877_v4 = vld [vmem:[#allocation194_spill] sm:$0xff] }
 0x39f   : > { %v2084_v2 = vsel %vm2050_vm7, %v2035_v23, %v12862_v41  ;;  %v2181_v45 = vsel %vm2148_vm9, %v2132_v47, %v12863_v59  ;;  %v2346_v25 = vrot.slane %v2229_v0, 7  ;;  %v1988_v36 = vsel %vm1952_vm5, %v8638_v16, %v12864_v40  ;;  %v12874_v58 = vld [vmem:[#allocation109_spill] sm:$0xff]  ;;  %v12878_v5 = vld [vmem:[#allocation298_spill] sm:$0xff]  ;;  %v12883_v59 = vld [vmem:[#allocation299_spill] sm:$0xff] }
 0x3a0   : > { %v2036_v46 = vsel %vm2001_vm6, %v1987_v7, %v12865_v19  ;;  %v2133_v49 = vsel %vm2099_vm8, %v2084_v2, %v12866_v26  ;;  %v2230_v35 = vsel %vm2197_vm10, %v2181_v45, %v1776_v3  ;;  %v1778_v24 = vpop.permute.xlu1 %1777  ;;  %v1989_v16 = vsel %vm1952_vm5, %v8643_v31, %v12869_v50  ;;  %v12875_v39 = vld [vmem:[#allocation197_spill] sm:$0xff]  ;;  %v12881_v10 = vld [vmem:[#allocation238_spill] sm:$0xff] }
 0x3a1   : > { %v2085_v28 = vsel %vm2050_vm7, %v2036_v46, %v12867_v55  ;;  %v2182_v21 = vsel %vm2148_vm9, %v2133_v49, %v12868_v6  ;;  %v2348_v42 = vrot.slane %v2230_v35, 7  ;;  %v2347_v22 = vsel %vm2294_vm11, %v2345_v53, %v2346_v25  ;;  %v12876_v12 = vld [vmem:[#allocation237_spill] sm:$0xff]  ;;  %v12882_v0 = vld [vmem:[#allocation190_spill] sm:$0xff]  ;;  %v12886_v46 = vld [vmem:[#allocation239_spill] sm:$0xff] }
 0x3a2   : > { %v2037_v37 = vsel %vm2001_vm6, %v1988_v36, %v12870_v27  ;;  %v2134_v30 = vsel %vm2099_vm8, %v2085_v28, %v12871_v61  ;;  %v2231_v56 = vsel %vm2197_vm10, %v2182_v21, %v1778_v24  ;;  %5526 = vmatprep.mubr.msk.f32.mxu0 %vm2387_vm12, %v2347_v22  ;;  %v1990_v9 = vsel %vm1952_vm5, %v8652_v1, %v12872_v20  ;;  %v1780_v15 = vpop.permute.xlu0 %1779  ;;  %v12879_v11 = vld [vmem:[#allocation333_spill] sm:$0xff]  ;;  %v12884_v53 = vld [vmem:[#allocation38_spill] sm:$0xff]  ;;  %v12888_v28 = vld [vmem:[#allocation31_spill] sm:$0xff] }
 0x3a3   : > { %v2086_v29 = vsel %vm2050_vm7, %v2037_v37, %v12873_v34  ;;  %v2183_v31 = vsel %vm2148_vm9, %v2134_v30, %v12874_v58  ;;  %v2349_v62 = vsel %vm2294_vm11, %v2346_v25, %v2348_v42  ;;  %v1991_v52 = vsel %vm1952_vm5, %v8698_v43, %v12875_v39  ;;  %v12880_v43 = vld [vmem:[#allocation198_spill] sm:$0xff]  ;;  %v12889_v21 = vld [vmem:[#allocation300_spill] sm:$0xff]  ;;  %v12890_v24 = vld [vmem:[#allocation39_spill] sm:$0xff] }
 0x3a4   : > { %v2038_v33 = vsel %vm2001_vm6, %v1989_v16, %v12876_v12  ;;  %v2135_v14 = vsel %vm2099_vm8, %v2086_v29, %v12877_v4  ;;  %v2232_v1 = vsel %vm2197_vm10, %v2183_v31, %v1780_v15  ;;  %5527 = vmatmul.mubr.msk.f32.gmra.mxu0 %vm2387_vm12, %v2349_v62  ;;  %v2350_v60 = vrot.slane %v2231_v56, 7  ;;  %v1782_v63 = vpop.permute.xlu1 %1781  ;;  %v12885_v19 = vld [vmem:[#allocation30_spill] sm:$0xff]  ;;  %v12891_v16 = vld [vmem:[#allocation32_spill] sm:$0xff]  ;;  %v12893_v30 = vld [vmem:[#allocation331_spill] sm:$0xff] }
 0x3a5   : > { %v2087_v51 = vsel %vm2050_vm7, %v2038_v33, %v12878_v5  ;;  %v2184_v54 = vsel %vm2148_vm9, %v2135_v14, %v12879_v11  ;;  %v2351_v7 = vrot.slane %v2232_v1, 7  ;;  %v1992_v23 = vsel %vm1952_vm5, %v8743_v13, %v12880_v43  ;;  %v12887_v49 = vld [vmem:[#allocation330_spill] sm:$0xff]  ;;  %v12892_v37 = vld [vmem:[#allocation240_spill] sm:$0xff]  ;;  %v12894_v20 = vld [vmem:[#allocation301_spill] sm:$0xff] }
 0x3a6   : > { %v2039_v47 = vsel %vm2001_vm6, %v1990_v9, %v12881_v10  ;;  %v2136_v41 = vsel %vm2099_vm8, %v2087_v51, %v12882_v0  ;;  %v2233_v2 = vsel %vm2197_vm10, %v2184_v54, %v1782_v63  ;;  %v1784_v40 = vpop.permute.xlu0 %1783  ;;  %v1993_v13 = vsel %vm1952_vm5, %v8788_v8, %v12885_v19  ;;  %v12895_v34 = vld [vmem:[#allocation42_spill] sm:$0xff]  ;;  %v12897_v39 = vld [vmem:[#allocation241_spill] sm:$0xff]  ;;  %v12898_v12 = vld [vmem:[#allocation332_spill] sm:$0xff] }
 0x3a7   : > { %v2088_v45 = vsel %vm2050_vm7, %v2039_v47, %v12883_v59  ;;  %v2185_v25 = vsel %vm2148_vm9, %v2136_v41, %v12884_v53  ;;  %v2353_v3 = vrot.slane %v2233_v2, 7  ;;  %v2352_v36 = vsel %vm2294_vm11, %v2350_v60, %v2351_v7  ;;  %v12899_v14 = vld [vmem:[#allocation302_spill] sm:$0xff]  ;;  %v12900_v5 = vld [vmem:[#allocation44_spill] sm:$0xff]  ;;  %v12904_v0 = vld [vmem:[#allocation201_spill] sm:$0xff] }
 0x3a8   : > { %v2040_v26 = vsel %vm2001_vm6, %v1991_v52, %v12886_v46  ;;  %v2137_v35 = vsel %vm2099_vm8, %v2088_v45, %v12887_v49  ;;  %v2234_v55 = vsel %vm2197_vm10, %v2185_v25, %v1784_v40  ;;  %5529 = vmatprep.mubr.msk.f32.mxu0 %vm2387_vm12, %v2352_v36  ;;  %v1994_v6 = vsel %vm1952_vm5, %v8833_v44, %v12888_v28  ;;  %v1786_v22 = vpop.permute.xlu1 %1785  ;;  %v12902_v63 = vld [vmem:[#allocation242_spill] sm:$0xff]  ;;  %v12905_v2 = vld [vmem:[#allocation303_spill] sm:$0xff] }
 0x3a9   : > { %v2089_v42 = vsel %vm2050_vm7, %v2040_v26, %v12889_v21  ;;  %v2186_v8 = vsel %vm2148_vm9, %v2137_v35, %v12890_v24  ;;  %v2354_v50 = vsel %vm2294_vm11, %v2351_v7, %v2353_v3  ;;  %v1995_v27 = vsel %vm1952_vm5, %v8878_v48, %v12891_v16  ;;  %v12896_v48 = vld [vmem:[#allocation199_spill] sm:$0xff]  ;;  %v12901_v7 = vld [vmem:[#allocation200_spill] sm:$0xff]  ;;  %v12908_v19 = vld [vmem:[#allocation34_spill] sm:$0xff] }
 0x3aa   : > { %v2041_v61 = vsel %vm2001_vm6, %v1992_v23, %v12892_v37  ;;  %v2138_v56 = vsel %vm2099_vm8, %v2089_v42, %v12893_v30  ;;  %v2235_v44 = vsel %vm2197_vm10, %v2186_v8, %v1786_v22  ;;  %5530 = vmatmul.mubr.msk.f32.gmra.mxu0 %vm2387_vm12, %v2354_v50  ;;  %v2355_v58 = vrot.slane %v2234_v55, 7  ;;  %v1788_v15 = vpop.permute.xlu0 %1787  ;;  %v12903_v23 = vld [vmem:[#allocation33_spill] sm:$0xff]  ;;  %v12906_v45 = vld [vmem:[#allocation47_spill] sm:$0xff]  ;;  %v12909_v26 = vld [vmem:[#allocation304_spill] sm:$0xff] }
 0x3ab   : > { %v2090_v9 = vsel %vm2050_vm7, %v2041_v61, %v12894_v20  ;;  %v2187_v29 = vsel %vm2148_vm9, %v2138_v56, %v12895_v34  ;;  %v2356_v31 = vrot.slane %v2235_v44, 7  ;;  %v1996_v62 = vsel %vm1952_vm5, %v8923_v18, %v12896_v48  ;;  %v9248_v3 = vld [vmem:[#allocation3 + $0x8] sm:$0xff]  ;;  %v9261_v42 = vld [vmem:[#allocation3 + $0x10] sm:$0xff]  ;;  %v12915_v34 = vld [vmem:[#allocation246_spill] sm:$0xff] }
 0x3ac   : > { %v2042_v52 = vsel %vm2001_vm6, %v1993_v13, %v12897_v39  ;;  %v2139_v33 = vsel %vm2099_vm8, %v2090_v9, %v12898_v12  ;;  %v2236_v4 = vsel %vm2197_vm10, %v2187_v29, %v1788_v15  ;;  %v1790_v54 = vpop.permute.xlu1 %1789  ;;  %v1997_v18 = vsel %vm1952_vm5, %v8968_v17, %v12901_v7  ;;  %v12907_v40 = vld [vmem:[#allocation243_spill] sm:$0xff]  ;;  %v12910_v35 = vld [vmem:[#allocation56_spill] sm:$0xff]  ;;  %v12913_v37 = vld [vmem:[#allocation305_spill] sm:$0xff] }
 0x3ad   : > { %v2091_v1 = vsel %vm2050_vm7, %v2042_v52, %v12899_v14  ;;  %v2188_v51 = vsel %vm2148_vm9, %v2139_v33, %v12900_v5  ;;  %v2358_v11 = vrot.slane %v2236_v4, 7  ;;  %v2357_v60 = vsel %vm2294_vm11, %v2355_v58, %v2356_v31  ;;  %v12911_v24 = vld [vmem:[#allocation244_spill] sm:$0xff]  ;;  %v12912_v22 = vld [vmem:[#allocation35_spill] sm:$0xff]  ;;  %v12918_v52 = vld [vmem:[#allocation306_spill] sm:$0xff] }
 0x3ae   : > { %v2043_v43 = vsel %vm2001_vm6, %v1994_v6, %v12902_v63  ;;  %v2140_v10 = vsel %vm2099_vm8, %v2091_v1, %v12903_v23  ;;  %v2237_v47 = vsel %vm2197_vm10, %v2188_v51, %v1790_v54  ;;  %5532 = vmatprep.mubr.msk.f32.mxu0 %vm2387_vm12, %v2357_v60  ;;  %v1998_v41 = vsel %vm1952_vm5, %v9013_v32, %v12904_v0  ;;  %v1792_v53 = vpop.permute.xlu0 %1791  ;;  %v12914_v30 = vld [vmem:[#allocation60_spill] sm:$0xff]  ;;  %v12919_v33 = vld [vmem:[#allocation62_spill] sm:$0xff]  ;;  %v12920_v5 = vld [vmem:[#allocation247_spill] sm:$0xff] }
 0x3af   : > { %v2092_v59 = vsel %vm2050_vm7, %v2043_v43, %v12905_v2  ;;  %v2189_v17 = vsel %vm2148_vm9, %v2140_v10, %v12906_v45  ;;  %v2359_v25 = vsel %vm2294_vm11, %v2356_v31, %v2358_v11  ;;  %v2044_v36 = vsel %vm2001_vm6, %v1995_v27, %v12907_v40  ;;  %v12916_v58 = vld [vmem:[#allocation36_spill] sm:$0xff]  ;;  %v12921_v11 = vld [vmem:[#allocation37_spill] sm:$0xff]  ;;  %v12928_v40 = vld [vmem:[#allocation66_spill] sm:$0xff] }
 0x3b0   : > { %v2141_v13 = vsel %vm2099_vm8, %v2092_v59, %v12908_v19  ;;  %v2238_v46 = vsel %vm2197_vm10, %v2189_v17, %v1792_v53  ;;  %5533 = vmatmul.mubr.msk.f32.gmra.mxu0 %vm2387_vm12, %v2359_v25  ;;  %v2922_v32 = vrot.slane %v9248_v3, 1  ;;  %v2093_v49 = vsel %vm2050_vm7, %v2044_v36, %v12909_v26  ;;  %v1794_v21 = vpop.permute.xlu1 %1793  ;;  %v12926_v59 = vld [vmem:[#allocation40_spill] sm:$0xff]  ;;  %v12930_v26 = vld [vmem:[#allocation41_spill] sm:$0xff] }
 0x3b1   : > { %v2190_v55 = vsel %vm2148_vm9, %v2141_v13, %v12910_v35  ;;  %v2360_v28 = vrot.slane %v2237_v47, 7  ;;  %v2361_v6 = vrot.slane %v2238_v46, 7  ;;  %v2045_v8 = vsel %vm2001_vm6, %v1996_v62, %v12911_v24  ;;  %v12917_v62 = vld [vmem:[#allocation202_spill] sm:$0xff]  ;;  %v12924_v47 = vld [vmem:[#allocation203_spill] sm:$0xff]  ;;  %v12927_v53 = vld [vmem:[#allocation308_spill] sm:$0xff] }
 0x3b2   : > { %v2142_v50 = vsel %vm2099_vm8, %v2093_v49, %v12912_v22  ;;  %v2239_v16 = vsel %vm2197_vm10, %v2190_v55, %v1794_v21  ;;  %2970 = vrot.lane.b32.xlu0 %v2922_v32, %s5814_s19  ;;  %v2923_v27 = vrot.slane %v9261_v42, 1  ;;  %v2094_v61 = vsel %vm2050_vm7, %v2045_v8, %v12913_v37  ;;  %v1796_v20 = vpop.permute.xlu0 %1795  ;;  %v12931_v55 = vld [vmem:[#allocation309_spill] sm:$0xff]  ;;  %v12933_v22 = vld [vmem:[#allocation43_spill] sm:$0xff] }
 0x3b3   : > { %v2191_v56 = vsel %vm2148_vm9, %v2142_v50, %v12914_v30  ;;  %v2363_v44 = vrot.slane %v2239_v16, 7  ;;  %v2362_v9 = vsel %vm2294_vm11, %v2360_v28, %v2361_v6  ;;  %v2046_v29 = vsel %vm2001_vm6, %v1997_v18, %v12915_v34  ;;  %v12923_v18 = vld [vmem:[#allocation65_spill] sm:$0xff] }
 0x3b4   : > { %v2143_v31 = vsel %vm2099_vm8, %v2094_v61, %v12916_v58  ;;  %v2240_v15 = vsel %vm2197_vm10, %v2191_v56, %v1796_v20  ;;  %5535 = vmatprep.mubr.msk.f32.mxu0 %vm2387_vm12, %v2362_v9  ;;  %v2924_v48 = vsel %vm518_vm1, %v2922_v32, %v2923_v27  ;;  %v1999_v39 = vsel %vm1952_vm5, %v9058_v38, %v12917_v62  ;;  %v1798_v14 = vpop.permute.xlu1 %1797  ;;  %v12922_v38 = vld [vmem:[#allocation307_spill] sm:$0xff]  ;;  %v12929_v32 = vld [vmem:[#allocation249_spill] sm:$0xff] }
 0x3b5   : > { %v2095_v12 = vsel %vm2050_vm7, %v2046_v29, %v12918_v52  ;;  %v2192_v4 = vsel %vm2148_vm9, %v2143_v31, %v12919_v33  ;;  %v2364_v1 = vsel %vm2294_vm11, %v2361_v6, %v2363_v44  ;;  %2972 = vrot.lane.b32.xlu1 %v2924_v48, %s5814_s19  ;;  %v2047_v51 = vsel %vm2001_vm6, %v1998_v41, %v12920_v5  ;;  %v12925_v41 = vld [vmem:[#allocation248_spill] sm:$0xff]  ;;  %v12932_v6 = vld [vmem:[#allocation250_spill] sm:$0xff] }
 0x3b6   : > { %v2144_v54 = vsel %vm2099_vm8, %v2095_v12, %v12921_v11  ;;  %v2241_v60 = vsel %vm2197_vm10, %v2192_v4, %v1798_v14  ;;  %5536 = vmatmul.mubr.msk.f32.gmra.mxu0 %vm2387_vm12, %v2364_v1  ;;  %2974 = vrot.lane.b32.xlu0 %v2923_v27, %s5814_s19  ;;  %v2096_v7 = vsel %vm2050_vm7, %v2047_v51, %v12922_v38  ;;  %v2365_v43 = vrot.slane %v2240_v15, 7  ;;  %v1800_v10 = vpop.permute.xlu0 %1799  ;;  %v12934_v27 = vld [vmem:[#allocation68_spill] sm:$0xff]  ;;  %v9340_v29 = vld [vmem:[%s11783_s2] ss:$0 sm:$0xff] }
 0x3b7   : > { %v2193_v63 = vsel %vm2148_vm9, %v2144_v54, %v12923_v18  ;;  %v2366_v23 = vrot.slane %v2241_v60, 7  ;;  %v2000_v0 = vsel %vm1952_vm5, %v9103_v57, %v12924_v47  ;;  %v2048_v2 = vsel %vm2001_vm6, %v1999_v39, %v12925_v41 }
 0x3b8   : > { %v2145_v45 = vsel %vm2099_vm8, %v2096_v7, %v12926_v59  ;;  %v2242_v17 = vsel %vm2197_vm10, %v2193_v63, %v1800_v10  ;;  %v2097_v25 = vsel %vm2050_vm7, %v2048_v2, %v12927_v53  ;;  %v1802_v13 = vpop.permute.xlu1 %1801  ;;  %v2049_v57 = vsel %vm2001_vm6, %v2000_v0, %v12929_v32 }
 0x3b9   : > { %v2194_v36 = vsel %vm2148_vm9, %v2145_v45, %v12928_v40  ;;  %v2368_v19 = vrot.slane %v2242_v17, 7  ;;  %v2367_v46 = vsel %vm2294_vm11, %v2365_v43, %v2366_v23  ;;  %v2146_v49 = vsel %vm2099_vm8, %v2097_v25, %v12930_v26 }
 0x3ba   : > { %v2243_v35 = vsel %vm2197_vm10, %v2194_v36, %v1802_v13  ;;  %5538 = vmatprep.mubr.msk.f32.mxu0 %vm2387_vm12, %v2367_v46  ;;  %v2098_v28 = vsel %vm2050_vm7, %v2049_v57, %v12931_v55  ;;  %v2195_v21 = vsel %vm2148_vm9, %v2146_v49, %v12932_v6  ;;  %v1804_v24 = vpop.permute.xlu0 %1803 }
 0x3bb   : > { %v2369_v8 = vsel %vm2294_vm11, %v2366_v23, %v2368_v19  ;;  %v2147_v50 = vsel %vm2099_vm8, %v2098_v28, %v12933_v22  ;;  %v2244_v16 = vsel %vm2197_vm10, %v2195_v21, %v1804_v24  ;;  %v2370_v61 = vrot.slane %v2243_v35, 7 }
 0x3bc   : > { %5539 = vmatmul.mubr.msk.f32.gmra.mxu0 %vm2387_vm12, %v2369_v8  ;;  %v2196_v37 = vsel %vm2148_vm9, %v2147_v50, %v12934_v27  ;;  %v2371_v30 = vrot.slane %v2244_v16, 7  ;;  %v1806_v56 = vpop.permute.xlu1 %1805 }
 0x3bd   : > { %v2245_v44 = vsel %vm2197_vm10, %v2196_v37, %v1806_v56 }
 0x3be   : > { %v2373_v20 = vrot.slane %v2245_v44, 7  ;;  %v2372_v9 = vsel %vm2294_vm11, %v2370_v61, %v2371_v30 }
 0x3bf   : > { %5541 = vmatprep.mubr.msk.f32.mxu0 %vm2387_vm12, %v2372_v9 }
 0x3c0   : > { %v2374_v34 = vsel %vm2294_vm11, %v2371_v30, %v2373_v20 }
 0x3c1   : > { %5542 = vmatmul.mubr.msk.f32.gmra.mxu0 %vm2387_vm12, %v2374_v34 }
 0x428   : > { %v5498_v58 = vpop.f32.mrf.mxu0 }
 0x429   : > { %v2528_v31 = vadd.f32 %v5498_v58, %v9340_v29 }
 0x42a   : > { %v2522_v15 = vpop.f32.mrf.mxu0 }
 0x42b   : > { %v2682_v48 = vmax.f32 %v2528_v31, 0.0  ;;  %v2523_v62 = vadd.f32 %v9340_v29, %v2522_v15 }
 0x42d   : > { %2787 = vst.msk [vmem:[#allocation3 + $0x30] sm:$0xff] %vm1903_vm2, %v2682_v48  ;;  %v2681_v39 = vmax.f32 %v2523_v62, 0.0 }
 0x42e   : > { %v5501_v52 = vpop.f32.mrf.mxu0 }
 0x42f   : > { %2786 = vst.msk [vmem:[#allocation3 + $0x28] sm:$0xff] %vm1903_vm2, %v2681_v39  ;;  %v2538_v12 = vadd.f32 %v5501_v52, %v9340_v29 }
 0x430   : > { %v2532_v33 = vpop.f32.mrf.mxu0 }
 0x431   : > { %v2684_v4 = vmax.f32 %v2538_v12, 0.0  ;;  %v2533_v14 = vadd.f32 %v9340_v29, %v2532_v33 }
 0x433   : > { %2789 = vst.msk [vmem:[#allocation3 + $0x50] sm:$0xff] %vm1903_vm2, %v2684_v4  ;;  %v2683_v1 = vmax.f32 %v2533_v14, 0.0 }
 0x434   : > { %v5504_v5 = vpop.f32.mrf.mxu0  ;;  %v9349_v51 = vld [vmem:[#allocation3 + $0x30] sm:$0xff] }
 0x435   : > { %2788 = vst.msk [vmem:[#allocation3 + $0x48] sm:$0xff] %vm1903_vm2, %v2683_v1  ;;  %v2548_v11 = vadd.f32 %v5504_v5, %v9340_v29  ;;  %v9360_v63 = vrot.slane %v9349_v51, 1 }
 0x436   : > { %v2542_v54 = vpop.f32.mrf.mxu0  ;;  %v9353_v60 = vld [vmem:[#allocation3 + $0x28] sm:$0xff] }
 0x437   : > { %v2686_v38 = vmax.f32 %v2548_v11, 0.0  ;;  %v2543_v7 = vadd.f32 %v9340_v29, %v2542_v54  ;;  %v9357_v18 = vrot.slane %v9353_v60, 1 }
 0x439   : > { %2791 = vst.msk [vmem:[#allocation3 + $0x70] sm:$0xff] %vm1903_vm2, %v2686_v38  ;;  %v2685_v43 = vmax.f32 %v2543_v7, 0.0  ;;  %2976 = vrot.lane.b32.xlu1 %v9357_v18, %s5814_s19  ;;  %v9368_v23 = vsel %vm518_vm1, %v9357_v18, %v9360_v63 }
 0x43a   : > { %2978 = vrot.lane.b32.xlu0 %v9368_v23, %s5814_s19  ;;  %v5507_v10 = vpop.f32.mrf.mxu0  ;;  %v9372_v47 = vld [vmem:[#allocation3 + $0x50] sm:$0xff] }
 0x43b   : > { %2790 = vst.msk [vmem:[#allocation3 + $0x68] sm:$0xff] %vm1903_vm2, %v2685_v43  ;;  %v2558_v0 = vadd.f32 %v5507_v10, %v9340_v29  ;;  %v9385_v53 = vrot.slane %v9372_v47, 1 }
 0x43c   : > { %v2552_v41 = vpop.f32.mrf.mxu0  ;;  %v9376_v2 = vld [vmem:[#allocation3 + $0x48] sm:$0xff] }
 0x43d   : > { %v2688_v59 = vmax.f32 %v2558_v0, 0.0  ;;  %v2553_v45 = vadd.f32 %v9340_v29, %v2552_v41  ;;  %2980 = vrot.lane.b32.xlu1 %v9360_v63, %s5814_s19  ;;  %v9382_v17 = vrot.slane %v9376_v2, 1 }
 0x43f   : > { %2793 = vst.msk [vmem:[#allocation3 + $0x90] sm:$0xff] %vm1903_vm2, %v2688_v59  ;;  %v2687_v25 = vmax.f32 %v2553_v45, 0.0  ;;  %2982 = vrot.lane.b32.xlu0 %v9382_v17, %s5814_s19  ;;  %v9393_v40 = vsel %vm518_vm1, %v9382_v17, %v9385_v53 }
 0x440   : > { %v5510_v36 = vpop.f32.mrf.mxu0  ;;  %v9395_v19 = vld [vmem:[#allocation3 + $0x70] sm:$0xff] }
 0x441   : > { %2792 = vst.msk [vmem:[#allocation3 + $0x88] sm:$0xff] %vm1903_vm2, %v2687_v25  ;;  %v2568_v13 = vadd.f32 %v5510_v36, %v9340_v29  ;;  %2984 = vrot.lane.b32.xlu1 %v9393_v40, %s5814_s19  ;;  %v9410_v35 = vrot.slane %v9395_v19, 1 }
 0x442   : > { %v2562_v46 = vpop.f32.mrf.mxu0  ;;  %v9401_v32 = vld [vmem:[#allocation3 + $0x68] sm:$0xff] }
 0x443   : > { %v2690_v57 = vmax.f32 %v2568_v13, 0.0  ;;  %v2563_v26 = vadd.f32 %v9340_v29, %v2562_v46  ;;  %2986 = vrot.lane.b32.xlu0 %v9385_v53, %s5814_s19  ;;  %v9407_v49 = vrot.slane %v9401_v32, 1 }
 0x445   : > { %2795 = vst.msk [vmem:[#allocation3 + $0xb0] sm:$0xff] %vm1903_vm2, %v2690_v57  ;;  %v2689_v55 = vmax.f32 %v2563_v26, 0.0  ;;  %2988 = vrot.lane.b32.xlu1 %v9407_v49, %s5814_s19  ;;  %v9418_v28 = vsel %vm518_vm1, %v9407_v49, %v9410_v35 }
 0x446   : > { %v5513_v6 = vpop.f32.mrf.mxu0  ;;  %v9420_v21 = vld [vmem:[#allocation3 + $0x90] sm:$0xff] }
 0x447   : > { %2794 = vst.msk [vmem:[#allocation3 + $0xa8] sm:$0xff] %vm1903_vm2, %v2689_v55  ;;  %v2578_v24 = vadd.f32 %v5513_v6, %v9340_v29  ;;  %2990 = vrot.lane.b32.xlu0 %v9418_v28, %s5814_s19  ;;  %v9435_v37 = vrot.slane %v9420_v21, 1 }
 0x448   : > { %v2572_v8 = vpop.f32.mrf.mxu0  ;;  %v9426_v22 = vld [vmem:[#allocation3 + $0x88] sm:$0xff] }
 0x449   : > { %v2692_v50 = vmax.f32 %v2578_v24, 0.0  ;;  %v2573_v16 = vadd.f32 %v9340_v29, %v2572_v8  ;;  %2992 = vrot.lane.b32.xlu1 %v9410_v35, %s5814_s19  ;;  %v9432_v27 = vrot.slane %v9426_v22, 1 }
 0x44b   : > { %2797 = vst.msk [vmem:[#allocation3 + $0xd0] sm:$0xff] %vm1903_vm2, %v2692_v50  ;;  %v2691_v61 = vmax.f32 %v2573_v16, 0.0  ;;  %2994 = vrot.lane.b32.xlu0 %v9432_v27, %s5814_s19  ;;  %v9443_v30 = vsel %vm518_vm1, %v9432_v27, %v9435_v37 }
 0x44c   : > { %v5516_v56 = vpop.f32.mrf.mxu0  ;;  %v9445_v44 = vld [vmem:[#allocation3 + $0xb0] sm:$0xff] }
 0x44d   : > { %2796 = vst.msk [vmem:[#allocation3 + $0xc8] sm:$0xff] %vm1903_vm2, %v2691_v61  ;;  %v2588_v20 = vadd.f32 %v5516_v56, %v9340_v29  ;;  %2996 = vrot.lane.b32.xlu1 %v9443_v30, %s5814_s19  ;;  %v9460_v48 = vrot.slane %v9445_v44, 1 }
 0x44e   : > { %v2582_v9 = vpop.f32.mrf.mxu0  ;;  %v9451_v34 = vld [vmem:[#allocation3 + $0xa8] sm:$0xff] }
 0x44f   : > { %v2694_v58 = vmax.f32 %v2588_v20, 0.0  ;;  %v2583_v31 = vadd.f32 %v9340_v29, %v2582_v9  ;;  %2998 = vrot.lane.b32.xlu0 %v9435_v37, %s5814_s19  ;;  %v9457_v15 = vrot.slane %v9451_v34, 1  ;;  %12936 = vst [vmem:[#allocation253_spill] sm:$0xff] %v9460_v48 }
 0x451   : > { %12935 = vst [vmem:[#allocation71_spill] sm:$0xff] %v9457_v15  ;;  %2799 = vst.msk [vmem:[#allocation3 + $0xf0] sm:$0xff] %vm1903_vm2, %v2694_v58  ;;  %v2693_v62 = vmax.f32 %v2583_v31, 0.0  ;;  %3000 = vrot.lane.b32.xlu1 %v9457_v15, %s5814_s19  ;;  %v9468_v39 = vsel %vm518_vm1, %v9457_v15, %v9460_v48 }
 0x452   : > { %12937 = vst [vmem:[#allocation72_spill] sm:$0xff] %v9468_v39  ;;  %v5519_v52 = vpop.f32.mrf.mxu0  ;;  %v9470_v12 = vld [vmem:[#allocation3 + $0xd0] sm:$0xff] }
 0x453   : > { %2798 = vst.msk [vmem:[#allocation3 + $0xe8] sm:$0xff] %vm1903_vm2, %v2693_v62  ;;  %v2598_v33 = vadd.f32 %v5519_v52, %v9340_v29  ;;  %3002 = vrot.lane.b32.xlu0 %v9468_v39, %s5814_s19  ;;  %v9485_v54 = vrot.slane %v9470_v12, 1 }
 0x454   : > { %v2592_v4 = vpop.f32.mrf.mxu0  ;;  %v9476_v14 = vld [vmem:[#allocation3 + $0xc8] sm:$0xff] }
 0x455   : > { %v2696_v1 = vmax.f32 %v2598_v33, 0.0  ;;  %v2593_v5 = vadd.f32 %v9340_v29, %v2592_v4  ;;  %3004 = vrot.lane.b32.xlu1 %v9460_v48, %s5814_s19  ;;  %v9482_v11 = vrot.slane %v9476_v14, 1  ;;  %12939 = vst [vmem:[#allocation77_spill] sm:$0xff] %v9485_v54 }
 0x457   : > { %12938 = vst [vmem:[#allocation74_spill] sm:$0xff] %v9482_v11  ;;  %2801 = vst.msk [vmem:[#allocation3 + $0x110] sm:$0xff] %vm1903_vm2, %v2696_v1  ;;  %v2695_v38 = vmax.f32 %v2593_v5, 0.0  ;;  %3006 = vrot.lane.b32.xlu0 %v9482_v11, %s5814_s19  ;;  %v9493_v7 = vsel %vm518_vm1, %v9482_v11, %v9485_v54 }
 0x458   : > { %12940 = vst [vmem:[#allocation78_spill] sm:$0xff] %v9493_v7  ;;  %v5522_v43 = vpop.f32.mrf.mxu0  ;;  %v9495_v10 = vld [vmem:[#allocation3 + $0xf0] sm:$0xff] }
 0x459   : > { %2800 = vst.msk [vmem:[#allocation3 + $0x108] sm:$0xff] %vm1903_vm2, %v2695_v38  ;;  %v2608_v0 = vadd.f32 %v5522_v43, %v9340_v29  ;;  %3008 = vrot.lane.b32.xlu1 %v9493_v7, %s5814_s19  ;;  %v9510_v13 = vrot.slane %v9495_v10, 1 }
 0x45a   : > { %v2602_v41 = vpop.f32.mrf.mxu0  ;;  %v9501_v59 = vld [vmem:[#allocation3 + $0xe8] sm:$0xff] }
 0x45b   : > { %v2698_v45 = vmax.f32 %v2608_v0, 0.0  ;;  %v2603_v25 = vadd.f32 %v9340_v29, %v2602_v41  ;;  %3010 = vrot.lane.b32.xlu0 %v9485_v54, %s5814_s19  ;;  %v9507_v36 = vrot.slane %v9501_v59, 1  ;;  %12942 = vst [vmem:[#allocation80_spill] sm:$0xff] %v9510_v13  ;;  %v3151_v54 = vrot.slane %v9420_v21, 2 }
 0x45d   : > { %12941 = vst [vmem:[#allocation258_spill] sm:$0xff] %v9507_v36  ;;  %2803 = vst.msk [vmem:[#allocation3 + $0x130] sm:$0xff] %vm1903_vm2, %v2698_v45  ;;  %v2697_v46 = vmax.f32 %v2603_v25, 0.0  ;;  %3012 = vrot.lane.b32.xlu1 %v9507_v36, %s5814_s19  ;;  %v9518_v57 = vsel %vm518_vm1, %v9507_v36, %v9510_v13 }
 0x45e   : > { %12943 = vst [vmem:[#allocation83_spill] sm:$0xff] %v9518_v57  ;;  %v5525_v26 = vpop.f32.mrf.mxu0  ;;  %v9520_v55 = vld [vmem:[#allocation3 + $0x110] sm:$0xff] }
 0x45f   : > { %2802 = vst.msk [vmem:[#allocation3 + $0x128] sm:$0xff] %vm1903_vm2, %v2697_v46  ;;  %v2618_v6 = vadd.f32 %v5525_v26, %v9340_v29  ;;  %3014 = vrot.lane.b32.xlu0 %v9518_v57, %s5814_s19  ;;  %v9535_v56 = vrot.slane %v9520_v55, 1 }
 0x460   : > { %v2612_v24 = vpop.f32.mrf.mxu0  ;;  %v9526_v8 = vld [vmem:[#allocation3 + $0x108] sm:$0xff] }
 0x461   : > { %v2700_v50 = vmax.f32 %v2618_v6, 0.0  ;;  %v2613_v16 = vadd.f32 %v9340_v29, %v2612_v24  ;;  %3016 = vrot.lane.b32.xlu1 %v9510_v13, %s5814_s19  ;;  %v9532_v61 = vrot.slane %v9526_v8, 1  ;;  %12945 = vst [vmem:[#allocation84_spill] sm:$0xff] %v9535_v56  ;;  %v9770_v13 = vpop.permute.xlu1 %2972 }
 0x462   : > { %12969 = vst [vmem:[#allocation115_spill] sm:$0xff] %v9770_v13 }
 0x463   : > { %12944 = vst [vmem:[#allocation261_spill] sm:$0xff] %v9532_v61  ;;  %2805 = vst.msk [vmem:[#allocation3 + $0x150] sm:$0xff] %vm1903_vm2, %v2700_v50  ;;  %v2699_v20 = vmax.f32 %v2613_v16, 0.0  ;;  %3018 = vrot.lane.b32.xlu0 %v9532_v61, %s5814_s19  ;;  %v9543_v9 = vsel %vm518_vm1, %v9532_v61, %v9535_v56 }
 0x464   : > { %12946 = vst [vmem:[#allocation86_spill] sm:$0xff] %v9543_v9  ;;  %v5528_v58 = vpop.f32.mrf.mxu0  ;;  %v9545_v31 = vld [vmem:[#allocation3 + $0x130] sm:$0xff] }
 0x465   : > { %2804 = vst.msk [vmem:[#allocation3 + $0x148] sm:$0xff] %vm1903_vm2, %v2699_v20  ;;  %v2628_v62 = vadd.f32 %v5528_v58, %v9340_v29  ;;  %3020 = vrot.lane.b32.xlu1 %v9543_v9, %s5814_s19  ;;  %v9560_v38 = vrot.slane %v9545_v31, 1  ;;  %v9763_v9 = vrot.slane %v9401_v32, 2 }
 0x466   : > { %v2622_v52 = vpop.f32.mrf.mxu0  ;;  %v9551_v33 = vld [vmem:[#allocation3 + $0x128] sm:$0xff] }
 0x467   : > { %v2702_v4 = vmax.f32 %v2628_v62, 0.0  ;;  %v2623_v1 = vadd.f32 %v9340_v29, %v2622_v52  ;;  %3022 = vrot.lane.b32.xlu0 %v9535_v56, %s5814_s19  ;;  %v9557_v5 = vrot.slane %v9551_v33, 1  ;;  %12948 = vst [vmem:[#allocation90_spill] sm:$0xff] %v9560_v38 }
 0x469   : > { %12947 = vst [vmem:[#allocation89_spill] sm:$0xff] %v9557_v5  ;;  %2807 = vst.msk [vmem:[#allocation3 + $0x170] sm:$0xff] %vm1903_vm2, %v2702_v4  ;;  %v2701_v43 = vmax.f32 %v2623_v1, 0.0  ;;  %3024 = vrot.lane.b32.xlu1 %v9557_v5, %s5814_s19  ;;  %v9568_v0 = vsel %vm518_vm1, %v9557_v5, %v9560_v38 }
 0x46a   : > { %12949 = vst [vmem:[#allocation266_spill] sm:$0xff] %v9568_v0  ;;  %v5531_v41 = vpop.f32.mrf.mxu0  ;;  %v9570_v45 = vld [vmem:[#allocation3 + $0x150] sm:$0xff] }
 0x46b   : > { %2806 = vst.msk [vmem:[#allocation3 + $0x168] sm:$0xff] %vm1903_vm2, %v2701_v43  ;;  %v2638_v25 = vadd.f32 %v5531_v41, %v9340_v29  ;;  %3026 = vrot.lane.b32.xlu0 %v9568_v0, %s5814_s19  ;;  %v9585_v16 = vrot.slane %v9570_v45, 1 }
 0x46c   : > { %v2632_v46 = vpop.f32.mrf.mxu0  ;;  %v9576_v26 = vld [vmem:[#allocation3 + $0x148] sm:$0xff] }
 0x46d   : > { %v2704_v6 = vmax.f32 %v2638_v25, 0.0  ;;  %v2633_v24 = vadd.f32 %v9340_v29, %v2632_v46  ;;  %3028 = vrot.lane.b32.xlu1 %v9560_v38, %s5814_s19  ;;  %v9582_v50 = vrot.slane %v9576_v26, 1  ;;  %12951 = vst [vmem:[#allocation95_spill] sm:$0xff] %v9585_v16 }
 0x46f   : > { %12950 = vst [vmem:[#allocation92_spill] sm:$0xff] %v9582_v50  ;;  %2809 = vst.msk [vmem:[#allocation3 + $0x190] sm:$0xff] %vm1903_vm2, %v2704_v6  ;;  %v2703_v20 = vmax.f32 %v2633_v24, 0.0  ;;  %3030 = vrot.lane.b32.xlu0 %v9582_v50, %s5814_s19  ;;  %v9593_v58 = vsel %vm518_vm1, %v9582_v50, %v9585_v16 }
 0x470   : > { %12952 = vst [vmem:[#allocation269_spill] sm:$0xff] %v9593_v58  ;;  %v5534_v62 = vpop.f32.mrf.mxu0  ;;  %v9595_v52 = vld [vmem:[#allocation3 + $0x170] sm:$0xff] }
 0x471   : > { %2808 = vst.msk [vmem:[#allocation3 + $0x188] sm:$0xff] %vm1903_vm2, %v2703_v20  ;;  %v2648_v4 = vadd.f32 %v5534_v62, %v9340_v29  ;;  %3032 = vrot.lane.b32.xlu1 %v9593_v58, %s5814_s19  ;;  %v9610_v6 = vrot.slane %v9595_v52, 1 }
 0x472   : > { %v2642_v1 = vpop.f32.mrf.mxu0  ;;  %v9601_v43 = vld [vmem:[#allocation3 + $0x168] sm:$0xff] }
 0x473   : > { %v2706_v41 = vmax.f32 %v2648_v4, 0.0  ;;  %v2643_v25 = vadd.f32 %v9340_v29, %v2642_v1  ;;  %3034 = vrot.lane.b32.xlu0 %v9585_v16, %s5814_s19  ;;  %v9607_v46 = vrot.slane %v9601_v43, 1  ;;  %12954 = vst [vmem:[#allocation98_spill] sm:$0xff] %v9610_v6 }
 0x475   : > { %12953 = vst [vmem:[#allocation96_spill] sm:$0xff] %v9607_v46  ;;  %2811 = vst.msk [vmem:[#allocation3 + $0x1b0] sm:$0xff] %vm1903_vm2, %v2706_v41  ;;  %v2705_v24 = vmax.f32 %v2643_v25, 0.0  ;;  %3036 = vrot.lane.b32.xlu1 %v9607_v46, %s5814_s19  ;;  %v9618_v20 = vsel %vm518_vm1, %v9607_v46, %v9610_v6 }
 0x476   : > { %12955 = vst [vmem:[#allocation101_spill] sm:$0xff] %v9618_v20  ;;  %v5537_v62 = vpop.f32.mrf.mxu0  ;;  %v9620_v4 = vld [vmem:[#allocation3 + $0x190] sm:$0xff] }
 0x477   : > { %2810 = vst.msk [vmem:[#allocation3 + $0x1a8] sm:$0xff] %vm1903_vm2, %v2705_v24  ;;  %v2658_v1 = vadd.f32 %v5537_v62, %v9340_v29  ;;  %3038 = vrot.lane.b32.xlu0 %v9618_v20, %s5814_s19  ;;  %v9635_v50 = vrot.slane %v9620_v4, 1 }
 0x478   : > { %v2652_v41 = vpop.f32.mrf.mxu0  ;;  %v9626_v25 = vld [vmem:[#allocation3 + $0x188] sm:$0xff] }
 0x479   : > { %v2708_v16 = vmax.f32 %v2658_v1, 0.0  ;;  %v2653_v58 = vadd.f32 %v9340_v29, %v2652_v41  ;;  %3040 = vrot.lane.b32.xlu1 %v9610_v6, %s5814_s19  ;;  %v9632_v46 = vrot.slane %v9626_v25, 1  ;;  %12957 = vst [vmem:[#allocation274_spill] sm:$0xff] %v9635_v50 }
 0x47b   : > { %12956 = vst [vmem:[#allocation102_spill] sm:$0xff] %v9632_v46  ;;  %2813 = vst.msk [vmem:[#allocation3 + $0x1d0] sm:$0xff] %vm1903_vm2, %v2708_v16  ;;  %v2707_v24 = vmax.f32 %v2653_v58, 0.0  ;;  %3042 = vrot.lane.b32.xlu0 %v9632_v46, %s5814_s19  ;;  %v9643_v62 = vsel %vm518_vm1, %v9632_v46, %v9635_v50 }
 0x47c   : > { %12958 = vst [vmem:[#allocation104_spill] sm:$0xff] %v9643_v62  ;;  %v5540_v1 = vpop.f32.mrf.mxu0  ;;  %v9645_v41 = vld [vmem:[#allocation3 + $0x1b0] sm:$0xff] }
 0x47d   : > { %2812 = vst.msk [vmem:[#allocation3 + $0x1c8] sm:$0xff] %vm1903_vm2, %v2707_v24  ;;  %v2668_v6 = vadd.f32 %v5540_v1, %v9340_v29  ;;  %3044 = vrot.lane.b32.xlu1 %v9643_v62, %s5814_s19  ;;  %v9660_v0 = vrot.slane %v9645_v41, 1 }
 0x47e   : > { %v2662_v16 = vpop.f32.mrf.mxu0  ;;  %v9651_v58 = vld [vmem:[#allocation3 + $0x1a8] sm:$0xff] }
 0x47f   : > { %v2710_v20 = vmax.f32 %v2668_v6, 0.0  ;;  %v2663_v38 = vadd.f32 %v9340_v29, %v2662_v16  ;;  %3046 = vrot.lane.b32.xlu0 %v9635_v50, %s5814_s19  ;;  %v9657_v46 = vrot.slane %v9651_v58, 1  ;;  %12960 = vst [vmem:[#allocation277_spill] sm:$0xff] %v9660_v0 }
 0x481   : > { %12959 = vst [vmem:[#allocation107_spill] sm:$0xff] %v9657_v46  ;;  %2815 = vst.msk [vmem:[#allocation3 + $0x1f0] sm:$0xff] %vm1903_vm2, %v2710_v20  ;;  %v2709_v24 = vmax.f32 %v2663_v38, 0.0  ;;  %3048 = vrot.lane.b32.xlu1 %v9657_v46, %s5814_s19  ;;  %v9668_v6 = vsel %vm518_vm1, %v9657_v46, %v9660_v0  ;;  %v5543_v1 = vpop.f32.mrf.mxu0 }
 0x482   : > { %12961 = vst [vmem:[#allocation108_spill] sm:$0xff] %v9668_v6  ;;  %v9670_v16 = vld [vmem:[#allocation3 + $0x1d0] sm:$0xff]  ;;  %v2678_v50 = vadd.f32 %v5543_v1, %v9340_v29 }
 0x483   : > { %2814 = vst.msk [vmem:[#allocation3 + $0x1e8] sm:$0xff] %vm1903_vm2, %v2709_v24  ;;  %3050 = vrot.lane.b32.xlu0 %v9668_v6, %s5814_s19  ;;  %v2672_v20 = vpop.f32.mrf.mxu0  ;;  %v9685_v56 = vrot.slane %v9670_v16, 1 }
 0x484   : > { %v9676_v38 = vld [vmem:[#allocation3 + $0x1c8] sm:$0xff]  ;;  %v2712_v62 = vmax.f32 %v2678_v50, 0.0  ;;  %v2673_v5 = vadd.f32 %v9340_v29, %v2672_v20 }
 0x485   : > { %3052 = vrot.lane.b32.xlu1 %v9660_v0, %s5814_s19  ;;  %v9682_v46 = vrot.slane %v9676_v38, 1  ;;  %12963 = vst [vmem:[#allocation111_spill] sm:$0xff] %v9685_v56 }
 0x486   : > { %2817 = vst.msk [vmem:[#allocation3 + $0x210] sm:$0xff] %vm1903_vm2, %v2712_v62  ;;  %v2711_v24 = vmax.f32 %v2673_v5, 0.0 }
 0x487   : > { %12962 = vst [vmem:[#allocation110_spill] sm:$0xff] %v9682_v46  ;;  %3054 = vrot.lane.b32.xlu0 %v9682_v46, %s5814_s19  ;;  %v9693_v50 = vsel %vm518_vm1, %v9682_v46, %v9685_v56  ;;  %v3131_v46 = vrot.slane %v9261_v42, 2  ;;  %v3136_v42 = vrot.slane %v9349_v51, 2 }
 0x488   : > { %12964 = vst [vmem:[#allocation112_spill] sm:$0xff] %v9693_v50  ;;  %v9695_v29 = vld [vmem:[#allocation3 + $0x1f0] sm:$0xff]  ;;  %2816 = vst.msk [vmem:[#allocation3 + $0x208] sm:$0xff] %vm1903_vm2, %v2711_v24  ;;  %v2821_v24 = vld [vmem:[#allocation3 + $0x18] sm:$0xff] }
 0x489   : > { %3056 = vrot.lane.b32.xlu1 %v9693_v50, %s5814_s19  ;;  %v9708_v62 = vrot.slane %v9695_v29, 1  ;;  %v3130_v50 = vrot.slane %v9248_v3, 2  ;;  %v9728_v3 = vrot.slane %v9353_v60, 2 }
 0x48a   : > { %v9700_v1 = vld [vmem:[#allocation3 + $0x1e8] sm:$0xff] }
 0x48b   : > { %3058 = vrot.lane.b32.xlu0 %v9685_v56, %s5814_s19  ;;  %v9705_v5 = vrot.slane %v9700_v1, 1  ;;  %12966 = vst [vmem:[#allocation113_spill] sm:$0xff] %v9708_v62  ;;  %v3133_v56 = vrot.slane %v2821_v24, 2  ;;  %v3132_v0 = vsel %vm727_vm3, %v3130_v50, %v3131_v46 }
 0x48d   : > { %12965 = vst [vmem:[#allocation282_spill] sm:$0xff] %v9705_v5  ;;  %3060 = vrot.lane.b32.xlu1 %v9705_v5, %s5814_s19  ;;  %v9715_v20 = vsel %vm518_vm1, %v9705_v5, %v9708_v62  ;;  %v3134_v6 = vsel %vm727_vm3, %v3131_v46, %v3133_v56  ;;  %v2825_v5 = vld [vmem:[#allocation3 + $0x38] sm:$0xff]  ;;  %v9744_v46 = vrot.slane %v9376_v2, 2 }
 0x48e   : > { %12967 = vst [vmem:[#allocation114_spill] sm:$0xff] %v9715_v20  ;;  %v3138_v24 = vrot.slane %v2825_v5, 2  ;;  %v2829_v56 = vld [vmem:[#allocation3 + $0x58] sm:$0xff] }
 0x48f   : > { %3062 = vrot.lane.b32.xlu0 %v9715_v20, %s5814_s19  ;;  %v9755_v20 = vpop.permute.xlu0 %2970 }
 0x490   : > { %12968 = vst [vmem:[#allocation285_spill] sm:$0xff] %v9755_v20 }
 0x491   : > { %3064 = vrot.lane.b32.xlu1 %v9708_v62, %s5814_s19  ;;  %v9736_v62 = vsel %vm727_vm3, %v9728_v3, %v3136_v42  ;;  %s5821_s19 = smov 40  }
 0x493   : > { %3210 = vrot.lane.b32.xlu0 %v3130_v50, %s5816_s21  ;;  %v3143_v50 = vrot.slane %v2829_v56, 2  ;;  %v3146_v56 = vrot.slane %v9395_v19, 2 }
 0x495   : > { %3212 = vrot.lane.b32.xlu1 %v3132_v0, %s5816_s21  ;;  %v9741_v0 = vsel %vm727_vm3, %v3136_v42, %v3138_v24  ;;  %v2833_v42 = vld [vmem:[#allocation3 + $0x78] sm:$0xff]  ;;  %v9774_v57 = vsel %vm727_vm3, %v9763_v9, %v3146_v56 }
 0x496   : > { %v3148_v61 = vrot.slane %v2833_v42, 2  ;;  %v9784_v42 = vrot.slane %v9426_v22, 2 }
 0x497   : > { %3214 = vrot.lane.b32.xlu0 %v3134_v6, %s5816_s21  ;;  %v3141_v6 = vrot.slane %v9372_v47, 2 }
 0x498   : > { %v9781_v36 = vsel %vm727_vm3, %v3146_v56, %v3148_v61  ;;  %v9797_v61 = vsel %vm727_vm3, %v9784_v42, %v3151_v54  ;;  %v2841_v56 = vld [vmem:[#allocation3 + $0xb8] sm:$0xff] }
 0x499   : > { %3216 = vrot.lane.b32.xlu1 %v9728_v3, %s5816_s21  ;;  %v9753_v5 = vsel %vm727_vm3, %v9744_v46, %v3141_v6  ;;  %v9760_v24 = vsel %vm727_vm3, %v3141_v6, %v3143_v50  ;;  %v9776_v6 = vpop.permute.xlu0 %2974  ;;  %v2837_v50 = vld [vmem:[#allocation3 + $0x98] sm:$0xff]  ;;  %v3158_v20 = vrot.slane %v2841_v56, 2  ;;  %v9828_v56 = vrot.slane %v9476_v14, 2 }
 0x49a   : > { %12970 = vst [vmem:[#allocation116_spill] sm:$0xff] %v9776_v6  ;;  %v3153_v7 = vrot.slane %v2837_v50, 2  ;;  %v9805_v50 = vrot.slane %v9451_v34, 2 }
 0x49b   : > { %3218 = vrot.lane.b32.xlu0 %v9736_v62, %s5816_s21  ;;  %12979 = vst [vmem:[#allocation123_spill] sm:$0xff] %v9828_v56 }
 0x49c   : > { %v9802_v13 = vsel %vm727_vm3, %v3151_v54, %v3153_v7  ;;  %12974 = vst [vmem:[#allocation119_spill] sm:$0xff] %v9805_v50 }
 0x49d   : > { %3220 = vrot.lane.b32.xlu1 %v9741_v0, %s5816_s21  ;;  %12973 = vst [vmem:[#allocation290_spill] sm:$0xff] %v9802_v13 }
 0x49f   : > { %3222 = vrot.lane.b32.xlu0 %v9744_v46, %s5816_s21 }
 0x4a1   : > { %3224 = vrot.lane.b32.xlu1 %v9753_v5, %s5816_s21 }
 0x4a3   : > { %3226 = vrot.lane.b32.xlu0 %v9760_v24, %s5816_s21 }
 0x4a5   : > { %3228 = vrot.lane.b32.xlu1 %v9763_v9, %s5816_s21 }
 0x4a7   : > { %3230 = vrot.lane.b32.xlu0 %v9774_v57, %s5816_s21 }
 0x4a9   : > { %3232 = vrot.lane.b32.xlu1 %v9781_v36, %s5816_s21 }
 0x4ab   : > { %v9789_v11 = vpop.permute.xlu1 %2976  ;;  %3234 = vrot.lane.b32.xlu0 %v9784_v42, %s5816_s21 }
 0x4ac   : > { %12971 = vst [vmem:[#allocation117_spill] sm:$0xff] %v9789_v11  ;;  %v9793_v6 = vpop.permute.xlu0 %2978 }
 0x4ad   : > { %12972 = vst [vmem:[#allocation118_spill] sm:$0xff] %v9793_v6  ;;  %3236 = vrot.lane.b32.xlu1 %v9797_v61, %s5816_s21  ;;  %v3156_v6 = vrot.slane %v9445_v44, 2 }
 0x4af   : > { %v9807_v11 = vpop.permute.xlu1 %2980  ;;  %3238 = vrot.lane.b32.xlu0 %v9802_v13, %s5816_s21  ;;  %v9818_v54 = vsel %vm727_vm3, %v9805_v50, %v3156_v6  ;;  %v9825_v39 = vsel %vm727_vm3, %v3156_v6, %v3158_v20 }
 0x4b0   : > { %12975 = vst [vmem:[#allocation120_spill] sm:$0xff] %v9807_v11  ;;  %v2845_v11 = vld [vmem:[#allocation3 + $0xd8] sm:$0xff]  ;;  %12978 = vst [vmem:[#allocation122_spill] sm:$0xff] %v9825_v39 }
 0x4b1   : > { %3240 = vrot.lane.b32.xlu1 %v9805_v50, %s5816_s21  ;;  %v9814_v48 = vpop.permute.xlu0 %2982  ;;  %v3161_v50 = vrot.slane %v9470_v12, 2  ;;  %v3163_v15 = vrot.slane %v2845_v11, 2  ;;  %v9851_v11 = vrot.slane %v9501_v59, 2  ;;  %v2853_v59 = vld [vmem:[#allocation3 + $0x118] sm:$0xff] }
 0x4b2   : > { %12976 = vst [vmem:[#allocation293_spill] sm:$0xff] %v9814_v48 }
 0x4b3   : > { %v9820_v7 = vpop.permute.xlu1 %2984  ;;  %3242 = vrot.lane.b32.xlu0 %v9818_v54, %s5816_s21  ;;  %v9841_v20 = vsel %vm727_vm3, %v9828_v56, %v3161_v50  ;;  %12984 = vst [vmem:[#allocation128_spill] sm:$0xff] %v9851_v11 }
 0x4b4   : > { %12977 = vst [vmem:[#allocation121_spill] sm:$0xff] %v9820_v7  ;;  %12982 = vst [vmem:[#allocation126_spill] sm:$0xff] %v9841_v20  ;;  %v2849_v7 = vld [vmem:[#allocation3 + $0xf8] sm:$0xff] }
 0x4b5   : > { %3244 = vrot.lane.b32.xlu1 %v9825_v39, %s5816_s21  ;;  %v9832_v48 = vpop.permute.xlu0 %2986  ;;  %v3168_v39 = vrot.slane %v2849_v7, 2 }
 0x4b6   : > { %12980 = vst [vmem:[#allocation124_spill] sm:$0xff] %v9832_v48  ;;  %v9848_v48 = vsel %vm727_vm3, %v3161_v50, %v3163_v15 }
 0x4b7   : > { %v9835_v13 = vpop.permute.xlu1 %2988  ;;  %3246 = vrot.lane.b32.xlu0 %v9828_v56, %s5816_s21  ;;  %v3166_v56 = vrot.slane %v9495_v10, 2  ;;  %v9874_v10 = vrot.slane %v9526_v8, 2 }
 0x4b8   : > { %12981 = vst [vmem:[#allocation125_spill] sm:$0xff] %v9835_v13 }
 0x4b9   : > { %3248 = vrot.lane.b32.xlu1 %v9841_v20, %s5816_s21  ;;  %v9845_v6 = vpop.permute.xlu0 %2990  ;;  %v9864_v15 = vsel %vm727_vm3, %v9851_v11, %v3166_v56 }
 0x4ba   : > { %12983 = vst [vmem:[#allocation127_spill] sm:$0xff] %v9845_v6  ;;  %v3173_v6 = vrot.slane %v2853_v59, 2 }
 0x4bb   : > { %v9853_v13 = vpop.permute.xlu1 %2992  ;;  %3250 = vrot.lane.b32.xlu0 %v9848_v48, %s5816_s21 }
 0x4bc   : > { %12985 = vst [vmem:[#allocation129_spill] sm:$0xff] %v9853_v13  ;;  %v9871_v13 = vsel %vm727_vm3, %v3166_v56, %v3168_v39  ;;  %v2857_v56 = vld [vmem:[#allocation3 + $0x138] sm:$0xff] }
 0x4bd   : > { %3252 = vrot.lane.b32.xlu1 %v9851_v11, %s5816_s21  ;;  %v9860_v20 = vpop.permute.xlu0 %2994 }
 0x4be   : > { %12986 = vst [vmem:[#allocation130_spill] sm:$0xff] %v9860_v20  ;;  %v3171_v20 = vrot.slane %v9520_v55, 2  ;;  %v9897_v55 = vrot.slane %v9551_v33, 2  ;;  %v2861_v33 = vld [vmem:[#allocation3 + $0x158] sm:$0xff] }
 0x4bf   : > { %v9866_v50 = vpop.permute.xlu1 %2996  ;;  %3254 = vrot.lane.b32.xlu0 %v9864_v15, %s5816_s21 }
 0x4c0   : > { %12987 = vst [vmem:[#allocation131_spill] sm:$0xff] %v9866_v50  ;;  %v9887_v39 = vsel %vm727_vm3, %v9874_v10, %v3171_v20  ;;  %12992 = vst [vmem:[#allocation136_spill] sm:$0xff] %v9897_v55  ;;  %v3178_v50 = vrot.slane %v2857_v56, 2 }
 0x4c1   : > { %3256 = vrot.lane.b32.xlu1 %v9871_v13, %s5816_s21  ;;  %v9878_v7 = vpop.permute.xlu0 %2998  ;;  %12990 = vst [vmem:[#allocation134_spill] sm:$0xff] %v9887_v39 }
 0x4c2   : > { %12988 = vst [vmem:[#allocation132_spill] sm:$0xff] %v9878_v7  ;;  %v9894_v7 = vsel %vm727_vm3, %v3171_v20, %v3173_v6 }
 0x4c3   : > { %v9881_v11 = vpop.permute.xlu1 %3000  ;;  %3258 = vrot.lane.b32.xlu0 %v9874_v10, %s5816_s21 }
 0x4c4   : > { %12989 = vst [vmem:[#allocation133_spill] sm:$0xff] %v9881_v11  ;;  %v3176_v11 = vrot.slane %v9545_v31, 2  ;;  %v9920_v31 = vrot.slane %v9576_v26, 2 }
 0x4c5   : > { %3260 = vrot.lane.b32.xlu1 %v9887_v39, %s5816_s21  ;;  %v9891_v8 = vpop.permute.xlu0 %3002 }
 0x4c6   : > { %12991 = vst [vmem:[#allocation135_spill] sm:$0xff] %v9891_v8  ;;  %v9910_v20 = vsel %vm727_vm3, %v9897_v55, %v3176_v11  ;;  %12996 = vst [vmem:[#allocation140_spill] sm:$0xff] %v9920_v31  ;;  %v3183_v8 = vrot.slane %v2861_v33, 2 }
 0x4c7   : > { %v9899_v59 = vpop.permute.xlu1 %3004  ;;  %3262 = vrot.lane.b32.xlu0 %v9894_v7, %s5816_s21 }
 0x4c8   : > { %12993 = vst [vmem:[#allocation137_spill] sm:$0xff] %v9899_v59  ;;  %v9917_v59 = vsel %vm727_vm3, %v3176_v11, %v3178_v50  ;;  %v2865_v50 = vld [vmem:[#allocation3 + $0x178] sm:$0xff] }
 0x4c9   : > { %3264 = vrot.lane.b32.xlu1 %v9897_v55, %s5816_s21  ;;  %v9906_v39 = vpop.permute.xlu0 %3006 }
 0x4ca   : > { %12994 = vst [vmem:[#allocation138_spill] sm:$0xff] %v9906_v39  ;;  %v3181_v39 = vrot.slane %v9570_v45, 2  ;;  %v9943_v45 = vrot.slane %v9601_v43, 2  ;;  %v2869_v43 = vld [vmem:[#allocation3 + $0x198] sm:$0xff] }
 0x4cb   : > { %v9912_v6 = vpop.permute.xlu1 %3008  ;;  %3266 = vrot.lane.b32.xlu0 %v9910_v20, %s5816_s21 }
 0x4cc   : > { %12995 = vst [vmem:[#allocation139_spill] sm:$0xff] %v9912_v6  ;;  %v9933_v11 = vsel %vm727_vm3, %v9920_v31, %v3181_v39  ;;  %13002 = vst [vmem:[#allocation146_spill] sm:$0xff] %v9943_v45  ;;  %v3188_v6 = vrot.slane %v2865_v50, 2 }
 0x4cd   : > { %3268 = vrot.lane.b32.xlu1 %v9917_v59, %s5816_s21  ;;  %v9924_v56 = vpop.permute.xlu0 %3010  ;;  %12999 = vst [vmem:[#allocation143_spill] sm:$0xff] %v9933_v11 }
 0x4ce   : > { %12997 = vst [vmem:[#allocation141_spill] sm:$0xff] %v9924_v56  ;;  %v9940_v56 = vsel %vm727_vm3, %v3181_v39, %v3183_v8 }
 0x4cf   : > { %v9927_v55 = vpop.permute.xlu1 %3012  ;;  %3270 = vrot.lane.b32.xlu0 %v9920_v31, %s5816_s21  ;;  %13001 = vst [vmem:[#allocation145_spill] sm:$0xff] %v9940_v56 }
 0x4d0   : > { %12998 = vst [vmem:[#allocation142_spill] sm:$0xff] %v9927_v55  ;;  %v3186_v55 = vrot.slane %v9595_v52, 2  ;;  %v9966_v52 = vrot.slane %v9626_v25, 2 }
 0x4d1   : > { %3272 = vrot.lane.b32.xlu1 %v9933_v11, %s5816_s21  ;;  %v9937_v26 = vpop.permute.xlu0 %3014 }
 0x4d2   : > { %13000 = vst [vmem:[#allocation144_spill] sm:$0xff] %v9937_v26  ;;  %v9956_v39 = vsel %vm727_vm3, %v9943_v45, %v3186_v55  ;;  %13008 = vst [vmem:[#allocation152_spill] sm:$0xff] %v9966_v52  ;;  %v3193_v26 = vrot.slane %v2869_v43, 2 }
 0x4d3   : > { %v9945_v33 = vpop.permute.xlu1 %3016  ;;  %3274 = vrot.lane.b32.xlu0 %v9940_v56, %s5816_s21  ;;  %13005 = vst [vmem:[#allocation149_spill] sm:$0xff] %v9956_v39 }
 0x4d4   : > { %13003 = vst [vmem:[#allocation147_spill] sm:$0xff] %v9945_v33  ;;  %v9963_v33 = vsel %vm727_vm3, %v3186_v55, %v3188_v6  ;;  %v2873_v6 = vld [vmem:[#allocation3 + $0x1b8] sm:$0xff] }
 0x4d5   : > { %3276 = vrot.lane.b32.xlu1 %v9943_v45, %s5816_s21  ;;  %v9952_v11 = vpop.permute.xlu0 %3018  ;;  %13007 = vst [vmem:[#allocation151_spill] sm:$0xff] %v9963_v33 }
 0x4d6   : > { %13004 = vst [vmem:[#allocation148_spill] sm:$0xff] %v9952_v11  ;;  %v3191_v11 = vrot.slane %v9620_v4, 2  ;;  %v9989_v4 = vrot.slane %v9651_v58, 2  ;;  %v2877_v58 = vld [vmem:[#allocation3 + $0x1d8] sm:$0xff] }
 0x4d7   : > { %v9958_v8 = vpop.permute.xlu1 %3020  ;;  %3278 = vrot.lane.b32.xlu0 %v9956_v39, %s5816_s21 }
 0x4d8   : > { %13006 = vst [vmem:[#allocation150_spill] sm:$0xff] %v9958_v8  ;;  %v9979_v55 = vsel %vm727_vm3, %v9966_v52, %v3191_v11  ;;  %13014 = vst [vmem:[#allocation156_spill] sm:$0xff] %v9989_v4  ;;  %v3198_v8 = vrot.slane %v2873_v6, 2 }
 0x4d9   : > { %3280 = vrot.lane.b32.xlu1 %v9963_v33, %s5816_s21  ;;  %v9970_v50 = vpop.permute.xlu0 %3022  ;;  %13011 = vst [vmem:[#allocation154_spill] sm:$0xff] %v9979_v55  ;;  %v13086_v33 = vld [vmem:[#allocation119_spill] sm:$0xff] }
 0x4da   : > { %13009 = vst [vmem:[#allocation153_spill] sm:$0xff] %v9970_v50  ;;  %v9986_v50 = vsel %vm727_vm3, %v3191_v11, %v3193_v26 }
 0x4db   : > { %v9973_v45 = vpop.permute.xlu1 %3024  ;;  %3282 = vrot.lane.b32.xlu0 %v9966_v52, %s5816_s21  ;;  %13013 = vst [vmem:[#allocation204_spill] sm:$0xff] %v9986_v50 }
 0x4dc   : > { %13010 = vst [vmem:[#allocation170_spill] sm:$0xff] %v9973_v45  ;;  %v3196_v45 = vrot.slane %v9645_v41, 2  ;;  %v10012_v41 = vrot.slane %v9676_v38, 2 }
 0x4dd   : > { %3284 = vrot.lane.b32.xlu1 %v9979_v55, %s5816_s21  ;;  %v9983_v25 = vpop.permute.xlu0 %3026 }
 0x4de   : > { %13012 = vst [vmem:[#allocation155_spill] sm:$0xff] %v9983_v25  ;;  %v10002_v11 = vsel %vm727_vm3, %v9989_v4, %v3196_v45  ;;  %13020 = vst [vmem:[#allocation159_spill] sm:$0xff] %v10012_v41  ;;  %v3203_v25 = vrot.slane %v2877_v58, 2 }
 0x4df   : > { %v9991_v43 = vpop.permute.xlu1 %3028  ;;  %3286 = vrot.lane.b32.xlu0 %v9986_v50, %s5816_s21  ;;  %13017 = vst [vmem:[#allocation157_spill] sm:$0xff] %v10002_v11 }
 0x4e0   : > { %13015 = vst [vmem:[#allocation171_spill] sm:$0xff] %v9991_v43  ;;  %v10009_v43 = vsel %vm727_vm3, %v3196_v45, %v3198_v8  ;;  %v2881_v8 = vld [vmem:[#allocation3 + $0x1f8] sm:$0xff] }
 0x4e1   : > { %3288 = vrot.lane.b32.xlu1 %v9989_v4, %s5816_s21  ;;  %v9998_v55 = vpop.permute.xlu0 %3030  ;;  %13019 = vst [vmem:[#allocation205_spill] sm:$0xff] %v10009_v43 }
 0x4e2   : > { %13016 = vst [vmem:[#allocation251_spill] sm:$0xff] %v9998_v55  ;;  %v3201_v55 = vrot.slane %v9670_v16, 2  ;;  %v10035_v16 = vrot.slane %v9700_v1, 2 }
 0x4e3   : > { %v10004_v26 = vpop.permute.xlu1 %3032  ;;  %3290 = vrot.lane.b32.xlu0 %v10002_v11, %s5816_s21 }
 0x4e4   : > { %13018 = vst [vmem:[#allocation158_spill] sm:$0xff] %v10004_v26  ;;  %v10025_v45 = vsel %vm727_vm3, %v10012_v41, %v3201_v55  ;;  %13026 = vst [vmem:[#allocation207_spill] sm:$0xff] %v10035_v16  ;;  %v3208_v26 = vrot.slane %v2881_v8, 2  ;;  %v10061_v8 = vld [vmem:[#allocation3 + $0x20] sm:$0xff] }
 0x4e5   : > { %3292 = vrot.lane.b32.xlu1 %v10009_v43, %s5816_s21  ;;  %v10016_v6 = vpop.permute.xlu0 %3034  ;;  %13023 = vst [vmem:[#allocation173_spill] sm:$0xff] %v10025_v45 }
 0x4e6   : > { %13021 = vst [vmem:[#allocation172_spill] sm:$0xff] %v10016_v6  ;;  %v10032_v6 = vsel %vm727_vm3, %v3201_v55, %v3203_v25 }
 0x4e7   : > { %v10019_v4 = vpop.permute.xlu1 %3036  ;;  %3294 = vrot.lane.b32.xlu0 %v10012_v41, %s5816_s21  ;;  %13025 = vst [vmem:[#allocation174_spill] sm:$0xff] %v10032_v6 }
 0x4e8   : > { %13022 = vst [vmem:[#allocation252_spill] sm:$0xff] %v10019_v4  ;;  %v3206_v4 = vrot.slane %v9695_v29, 2 }
 0x4e9   : > { %3296 = vrot.lane.b32.xlu1 %v10025_v45, %s5816_s21  ;;  %v10029_v38 = vpop.permute.xlu0 %3038 }
 0x4ea   : > { %13024 = vst [vmem:[#allocation206_spill] sm:$0xff] %v10029_v38  ;;  %v10048_v55 = vsel %vm727_vm3, %v10035_v16, %v3206_v4  ;;  %v10055_v1 = vsel %vm727_vm3, %v3206_v4, %v3208_v26  ;;  %v10075_v4 = vld [vmem:[#allocation3 + $0x40] sm:$0xff] }
 0x4eb   : > { %v10037_v58 = vpop.permute.xlu1 %3040  ;;  %3298 = vrot.lane.b32.xlu0 %v10032_v6, %s5816_s21  ;;  %13029 = vst [vmem:[#allocation175_spill] sm:$0xff] %v10048_v55  ;;  %13031 = vst [vmem:[#allocation256_spill] sm:$0xff] %v10055_v1 }
 0x4ec   : > { %13027 = vst [vmem:[#allocation254_spill] sm:$0xff] %v10037_v58 }
 0x4ed   : > { %3300 = vrot.lane.b32.xlu1 %v10035_v16, %s5816_s21  ;;  %v10044_v45 = vpop.permute.xlu0 %3042 }
 0x4ee   : > { %13028 = vst [vmem:[#allocation255_spill] sm:$0xff] %v10044_v45 }
 0x4ef   : > { %v10050_v25 = vpop.permute.xlu1 %3044  ;;  %3302 = vrot.lane.b32.xlu0 %v10048_v55, %s5816_s21 }
 0x4f0   : > { %13030 = vst [vmem:[#allocation208_spill] sm:$0xff] %v10050_v25 }
 0x4f1   : > { %3304 = vrot.lane.b32.xlu1 %v10055_v1, %s5816_s21  ;;  %v10059_v29 = vpop.permute.xlu0 %3046  ;;  %s5824_s21 = smov 64  }
 0x4f2   : > { %13032 = vst [vmem:[#allocation160_spill] sm:$0xff] %v10059_v29 }
 0x4f3   : > { %v10063_v45 = vpop.permute.xlu1 %3048  ;;  %3372 = vrot.lane.b32.xlu0 %v10061_v8, %s5818_s23 }
 0x4f4   : > { %13033 = vst [vmem:[#allocation209_spill] sm:$0xff] %v10063_v45 }
 0x4f5   : > { %3374 = vrot.lane.b32.xlu1 %v9353_v60, %s5818_s23  ;;  %v10069_v25 = vpop.permute.xlu0 %3050 }
 0x4f6   : > { %13034 = vst [vmem:[#allocation176_spill] sm:$0xff] %v10069_v25  ;;  %v10103_v25 = vld [vmem:[#allocation3 + $0x80] sm:$0xff] }
 0x4f7   : > { %v10071_v58 = vpop.permute.xlu1 %3052  ;;  %3376 = vrot.lane.b32.xlu0 %v9349_v51, %s5818_s23 }
 0x4f8   : > { %13035 = vst [vmem:[#allocation257_spill] sm:$0xff] %v10071_v58  ;;  %v10089_v58 = vld [vmem:[#allocation3 + $0x60] sm:$0xff] }
 0x4f9   : > { %3378 = vrot.lane.b32.xlu1 %v10075_v4, %s5818_s23  ;;  %v10079_v26 = vpop.permute.xlu0 %3054 }
 0x4fa   : > { %13036 = vst [vmem:[#allocation177_spill] sm:$0xff] %v10079_v26 }
 0x4fb   : > { %v10081_v45 = vpop.permute.xlu1 %3056  ;;  %3380 = vrot.lane.b32.xlu0 %v9376_v2, %s5818_s23 }
 0x4fc   : > { %13037 = vst [vmem:[#allocation210_spill] sm:$0xff] %v10081_v45 }
 0x4fd   : > { %3382 = vrot.lane.b32.xlu1 %v9372_v47, %s5818_s23  ;;  %v10087_v60 = vpop.permute.xlu0 %3058 }
 0x4fe   : > { %13038 = vst [vmem:[#allocation310_spill] sm:$0xff] %v10087_v60 }
 0x4ff   : > { %v10091_v51 = vpop.permute.xlu1 %3060  ;;  %3384 = vrot.lane.b32.xlu0 %v10089_v58, %s5818_s23 }
 0x500   : > { %13039 = vst [vmem:[#allocation259_spill] sm:$0xff] %v10091_v51 }
 0x501   : > { %3386 = vrot.lane.b32.xlu1 %v9401_v32, %s5818_s23  ;;  %v10097_v26 = vpop.permute.xlu0 %3062 }
 0x502   : > { %13040 = vst [vmem:[#allocation45_spill] sm:$0xff] %v10097_v26 }
 0x503   : > { %v10099_v45 = vpop.permute.xlu1 %3064  ;;  %3388 = vrot.lane.b32.xlu0 %v9395_v19, %s5818_s23 }
 0x504   : > { %13041 = vst [vmem:[#allocation178_spill] sm:$0xff] %v10099_v45  ;;  %v10117_v45 = vld [vmem:[#allocation3 + $0xa0] sm:$0xff] }
 0x505   : > { %3390 = vrot.lane.b32.xlu1 %v10103_v25, %s5818_s23  ;;  %v10107_v60 = vpop.permute.xlu0 %3210  ;;  %13042 = vst [vmem:[#allocation211_spill] sm:$0xff] %v10117_v45 }
 0x507   : > { %v10109_v51 = vpop.permute.xlu1 %3212  ;;  %3392 = vrot.lane.b32.xlu0 %v9426_v22, %s5818_s23 }
 0x509   : > { %3394 = vrot.lane.b32.xlu1 %v9420_v21, %s5818_s23  ;;  %v10115_v26 = vpop.permute.xlu0 %3214  ;;  %v10131_v21 = vld [vmem:[#allocation3 + $0xc0] sm:$0xff] }
 0x50b   : > { %v10119_v29 = vpop.permute.xlu1 %3216  ;;  %3396 = vrot.lane.b32.xlu0 %v10117_v45, %s5818_s23 }
 0x50d   : > { %3398 = vrot.lane.b32.xlu1 %v9451_v34, %s5818_s23  ;;  %v10125_v38 = vpop.permute.xlu0 %3218 }
 0x50f   : > { %v10127_v1 = vpop.permute.xlu1 %3220  ;;  %3400 = vrot.lane.b32.xlu0 %v9445_v44, %s5818_s23 }
 0x511   : > { %3402 = vrot.lane.b32.xlu1 %v10131_v21, %s5818_s23  ;;  %v10135_v55 = vpop.permute.xlu0 %3222 }
 0x513   : > { %v10137_v16 = vpop.permute.xlu1 %3224  ;;  %3404 = vrot.lane.b32.xlu0 %v9476_v14, %s5818_s23 }
 0x515   : > { %3406 = vrot.lane.b32.xlu1 %v9470_v12, %s5818_s23  ;;  %v10143_v34 = vpop.permute.xlu0 %3226 }
 0x517   : > { %v10145_v6 = vpop.permute.xlu1 %3228  ;;  %3519 = vrot.lane.b32.xlu0 %v9357_v18, %s5820_s8 }
 0x519   : > { %3521 = vrot.lane.b32.xlu1 %v9368_v23, %s5820_s8  ;;  %v10151_v44 = vpop.permute.xlu0 %3230 }
 0x51b   : > { %v10153_v41 = vpop.permute.xlu1 %3232  ;;  %3523 = vrot.lane.b32.xlu0 %v9360_v63, %s5820_s8  ;;  %v4781_v63 = vld [vmem:[%s11784_s3 + $0x40] sm:$0xff] }
 0x51c   : > { %5544 = vmatprep.subr.mxu1 %v4781_v63 }
 0x51d   : > { %3669 = vrot.lane.b32.xlu1 %v9728_v3, %s5821_s19  ;;  %v10159_v12 = vpop.permute.xlu0 %3234  ;;  %5545 = vmatpush3.msra.mxu1 %v4781_v63  ;;  %v4778_v63 = vld [vmem:[%s11784_s3 + $0x28] sm:$0xff] }
 0x51f   : > { %v10161_v14 = vpop.permute.xlu1 %3236  ;;  %3671 = vrot.lane.b32.xlu0 %v9736_v62, %s5821_s19  ;;  %v4780_v62 = vld [vmem:[%s11784_s3 + $0x38] sm:$0xff] }
 0x520   : > { %5546 = vmatprep.subr.mxu1 %v4780_v62 }
 0x521   : > { %3673 = vrot.lane.b32.xlu1 %v9741_v0, %s5821_s19  ;;  %v10167_v18 = vpop.permute.xlu0 %3238  ;;  %5547 = vmatpush3.msra.mxu1 %v4780_v62  ;;  %v4779_v0 = vld [vmem:[%s11784_s3 + $0x30] sm:$0xff]  ;;  %v4777_v62 = vld [vmem:[%s11784_s3 + $0x20] sm:$0xff] }
 0x522   : > { %5548 = vmatprep.subr.mxu1 %v4779_v0 }
 0x523   : > { %v10172_v23 = vpop.permute.xlu1 %3240  ;;  %3816 = vrot.lane.b32.xlu0 %v10075_v4, %s5822_s14  ;;  %5549 = vmatpush3.msra.mxu1 %v4779_v0 }
 0x524   : > { %13043 = vst [vmem:[#allocation311_spill] sm:$0xff] %v10172_v23  ;;  %5550 = vmatprep.subr.mxu1 %v4778_v63  ;;  %v13091_v23 = vld [vmem:[#allocation115_spill] sm:$0xff] }
 0x525   : > { %3818 = vrot.lane.b32.xlu1 %v9376_v2, %s5822_s14  ;;  %v10181_v3 = vpop.permute.xlu0 %3242  ;;  %5551 = vmatpush3.msra.mxu1 %v4778_v63  ;;  %v4775_v63 = vld [vmem:[%s11784_s3 + $0x10] sm:$0xff] }
 0x526   : > { %13044 = vst [vmem:[#allocation260_spill] sm:$0xff] %v10181_v3  ;;  %5552 = vmatprep.subr.mxu1 %v4777_v62 }
 0x527   : > { %v10186_v43 = vpop.permute.xlu1 %3244  ;;  %3820 = vrot.lane.b32.xlu0 %v9372_v47, %s5822_s14  ;;  %5553 = vmatpush3.msra.mxu1 %v4777_v62  ;;  %v4776_v47 = vld [vmem:[%s11784_s3 + $0x18] sm:$0xff]  ;;  %v4774_v62 = vld [vmem:[%s11784_s3 + $0x8] sm:$0xff] }
 0x528   : > { %13045 = vst [vmem:[#allocation46_spill] sm:$0xff] %v10186_v43  ;;  %5554 = vmatprep.subr.mxu1 %v4776_v47  ;;  %v13087_v43 = vld [vmem:[#allocation122_spill] sm:$0xff] }
 0x529   : > { %3963 = vrot.lane.b32.xlu1 %v9382_v17, %s5823_s29  ;;  %v10195_v2 = vpop.permute.xlu0 %3246  ;;  %5555 = vmatpush3.msra.mxu1 %v4776_v47  ;;  %v4773_v47 = vld [vmem:[%s11784_s3] sm:$0xff] }
 0x52a   : > { %13046 = vst [vmem:[#allocation161_spill] sm:$0xff] %v10195_v2  ;;  %5556 = vmatprep.subr.mxu1 %v4775_v63 }
 0x52b   : > { %v10200_v11 = vpop.permute.xlu1 %3248  ;;  %3965 = vrot.lane.b32.xlu0 %v9393_v40, %s5823_s29  ;;  %5557 = vmatpush3.msra.mxu1 %v4775_v63 }
 0x52c   : > { %13047 = vst [vmem:[#allocation48_spill] sm:$0xff] %v10200_v11  ;;  %5558 = vmatprep.subr.mxu1 %v4774_v62 }
 0x52d   : > { %3525 = vrot.lane.b32.xlu1 %v9382_v17, %s5820_s8  ;;  %v10209_v0 = vpop.permute.xlu0 %3250  ;;  %5559 = vmatpush3.msra.mxu1 %v4774_v62 }
 0x52e   : > { %13048 = vst [vmem:[#allocation212_spill] sm:$0xff] %v10209_v0  ;;  %5560 = vmatprep.subr.mxu1 %v4773_v47  ;;  %v13085_v0 = vld [vmem:[#allocation253_spill] sm:$0xff] }
 0x52f   : > { %v10214_v50 = vpop.permute.xlu1 %3252  ;;  %3527 = vrot.lane.b32.xlu0 %v9393_v40, %s5820_s8  ;;  %5561 = vmatpush3.msra.mxu1 %v4773_v47 }
 0x530   : > { %13049 = vst [vmem:[#allocation312_spill] sm:$0xff] %v10214_v50 }
 0x531   : > { %3967 = vrot.lane.b32.xlu1 %v9385_v53, %s5823_s29  ;;  %v10223_v17 = vpop.permute.xlu0 %3254 }
 0x532   : > { %13050 = vst [vmem:[#allocation179_spill] sm:$0xff] %v10223_v17 }
 0x533   : > { %v10228_v50 = vpop.permute.xlu1 %3256  ;;  %4113 = vrot.lane.b32.xlu0 %v9744_v46, %s5824_s21 }
 0x534   : > { %13051 = vst [vmem:[#allocation262_spill] sm:$0xff] %v10228_v50 }
 0x535   : > { %4115 = vrot.lane.b32.xlu1 %v9753_v5, %s5824_s21  ;;  %v10234_v40 = vpop.permute.xlu0 %3258 }
 0x536   : > { %13052 = vst [vmem:[#allocation49_spill] sm:$0xff] %v10234_v40 }
 0x537   : > { %v10236_v63 = vpop.permute.xlu1 %3260  ;;  %3529 = vrot.lane.b32.xlu0 %v9385_v53, %s5820_s8 }
 0x538   : > { %13053 = vst [vmem:[#allocation180_spill] sm:$0xff] %v10236_v63 }
 0x539   : > { %3675 = vrot.lane.b32.xlu1 %v9744_v46, %s5821_s19  ;;  %v10242_v62 = vpop.permute.xlu0 %3262 }
 0x53a   : > { %13054 = vst [vmem:[#allocation213_spill] sm:$0xff] %v10242_v62 }
 0x53b   : > { %v10244_v50 = vpop.permute.xlu1 %3264  ;;  %3677 = vrot.lane.b32.xlu0 %v9753_v5, %s5821_s19 }
 0x53c   : > { %13055 = vst [vmem:[#allocation313_spill] sm:$0xff] %v10244_v50  ;;  %v13082_v50 = vld [vmem:[#allocation72_spill] sm:$0xff] }
 0x53d   : > { %4117 = vrot.lane.b32.xlu1 %v9760_v24, %s5824_s21  ;;  %v10250_v47 = vpop.permute.xlu0 %3266 }
 0x53e   : > { %13056 = vst [vmem:[#allocation263_spill] sm:$0xff] %v10250_v47 }
 0x53f   : > { %v10252_v40 = vpop.permute.xlu1 %3268  ;;  %3679 = vrot.lane.b32.xlu0 %v9760_v24, %s5821_s19 }
 0x540   : > { %13057 = vst [vmem:[#allocation51_spill] sm:$0xff] %v10252_v40  ;;  %v13081_v40 = vld [vmem:[#allocation71_spill] sm:$0xff] }
 0x541   : > { %3822 = vrot.lane.b32.xlu1 %v10089_v58, %s5822_s14  ;;  %v10258_v53 = vpop.permute.xlu0 %3270 }
 0x542   : > { %13058 = vst [vmem:[#allocation181_spill] sm:$0xff] %v10258_v53 }
 0x543   : > { %v10260_v46 = vpop.permute.xlu1 %3272  ;;  %3824 = vrot.lane.b32.xlu0 %v9401_v32, %s5822_s14 }
 0x544   : > { %13059 = vst [vmem:[#allocation214_spill] sm:$0xff] %v10260_v46 }
 0x545   : > { %3826 = vrot.lane.b32.xlu1 %v9395_v19, %s5822_s14  ;;  %v10266_v5 = vpop.permute.xlu0 %3274 }
 0x546   : > { %13060 = vst [vmem:[#allocation314_spill] sm:$0xff] %v10266_v5  ;;  %v10384_v5 = vld [vmem:[#allocation3 + $0xa8] sm:$0xff] }
 0x547   : > { %v10268_v47 = vpop.permute.xlu1 %3276  ;;  %3969 = vrot.lane.b32.xlu0 %v9407_v49, %s5823_s29  ;;  %13077 = vst [vmem:[#allocation217_spill] sm:$0xff] %v10384_v5 }
 0x548   : > { %13061 = vst [vmem:[#allocation264_spill] sm:$0xff] %v10268_v47 }
 0x549   : > { %3971 = vrot.lane.b32.xlu1 %v9418_v28, %s5823_s29  ;;  %v10274_v24 = vpop.permute.xlu0 %3278 }
 0x54a   : > { %13062 = vst [vmem:[#allocation52_spill] sm:$0xff] %v10274_v24 }
 0x54b   : > { %v10276_v53 = vpop.permute.xlu1 %3280  ;;  %3531 = vrot.lane.b32.xlu0 %v9407_v49, %s5820_s8 }
 0x54c   : > { %13063 = vst [vmem:[#allocation162_spill] sm:$0xff] %v10276_v53 }
 0x54d   : > { %3533 = vrot.lane.b32.xlu1 %v9418_v28, %s5820_s8  ;;  %v10282_v19 = vpop.permute.xlu0 %3282 }
 0x54e   : > { %13064 = vst [vmem:[#allocation50_spill] sm:$0xff] %v10282_v19 }
 0x54f   : > { %v10284_v32 = vpop.permute.xlu1 %3284  ;;  %3973 = vrot.lane.b32.xlu0 %v9410_v35, %s5823_s29 }
 0x550   : > { %13065 = vst [vmem:[#allocation215_spill] sm:$0xff] %v10284_v32 }
 0x551   : > { %4119 = vrot.lane.b32.xlu1 %v9763_v9, %s5824_s21  ;;  %v10290_v47 = vpop.permute.xlu0 %3286 }
 0x552   : > { %13066 = vst [vmem:[#allocation315_spill] sm:$0xff] %v10290_v47 }
 0x553   : > { %v10292_v24 = vpop.permute.xlu1 %3288  ;;  %4121 = vrot.lane.b32.xlu0 %v9774_v57, %s5824_s21 }
 0x554   : > { %13067 = vst [vmem:[#allocation182_spill] sm:$0xff] %v10292_v24  ;;  %v13076_v24 = vld [vmem:[#allocation290_spill] sm:$0xff] }
 0x555   : > { %3535 = vrot.lane.b32.xlu1 %v9410_v35, %s5820_s8  ;;  %v10298_v49 = vpop.permute.xlu0 %3290 }
 0x556   : > { %13068 = vst [vmem:[#allocation265_spill] sm:$0xff] %v10298_v49 }
 0x557   : > { %v10300_v28 = vpop.permute.xlu1 %3292  ;;  %3681 = vrot.lane.b32.xlu0 %v9763_v9, %s5821_s19 }
 0x558   : > { %13069 = vst [vmem:[#allocation55_spill] sm:$0xff] %v10300_v28 }
 0x559   : > { %3683 = vrot.lane.b32.xlu1 %v9774_v57, %s5821_s19  ;;  %v10306_v32 = vpop.permute.xlu0 %3294 }
 0x55a   : > { %13070 = vst [vmem:[#allocation183_spill] sm:$0xff] %v10306_v32 }
 0x55b   : > { %v10308_v47 = vpop.permute.xlu1 %3296  ;;  %4123 = vrot.lane.b32.xlu0 %v9781_v36, %s5824_s21 }
 0x55c   : > { %13071 = vst [vmem:[#allocation216_spill] sm:$0xff] %v10308_v47  ;;  %v10326_v47 = vld [vmem:[#allocation3 + $0x90] sm:$0xff] }
 0x55d   : > { %3685 = vrot.lane.b32.xlu1 %v9781_v36, %s5821_s19  ;;  %v10314_v35 = vpop.permute.xlu0 %3298 }
 0x55e   : > { %13072 = vst [vmem:[#allocation316_spill] sm:$0xff] %v10314_v35 }
 0x55f   : > { %v10316_v49 = vpop.permute.xlu1 %3300  ;;  %3828 = vrot.lane.b32.xlu0 %v10103_v25, %s5822_s14 }
 0x560   : > { %13073 = vst [vmem:[#allocation267_spill] sm:$0xff] %v10316_v49 }
 0x561   : > { %3830 = vrot.lane.b32.xlu1 %v9426_v22, %s5822_s14  ;;  %v10322_v57 = vpop.permute.xlu0 %3302 }
 0x562   : > { %13074 = vst [vmem:[#allocation57_spill] sm:$0xff] %v10322_v57 }
 0x563   : > { %v10324_v9 = vpop.permute.xlu1 %3304  ;;  %3832 = vrot.lane.b32.xlu0 %v10326_v47, %s5822_s14 }
 0x564   : > { %13075 = vst [vmem:[#allocation8_spill] sm:$0xff] %v10324_v9 }
 0x565   : > { %3975 = vrot.lane.b32.xlu1 %v9432_v27, %s5823_s29  ;;  %v10332_v36 = vpop.permute.xlu0 %3372 }
 0x567   : > { %v10334_v49 = vpop.permute.xlu1 %3374  ;;  %3977 = vrot.lane.b32.xlu0 %v9443_v30, %s5823_s29 }
 0x569   : > { %3537 = vrot.lane.b32.xlu1 %v9432_v27, %s5820_s8  ;;  %v10340_v22 = vpop.permute.xlu0 %3376 }
 0x56b   : > { %v10342_v9 = vpop.permute.xlu1 %3378  ;;  %3539 = vrot.lane.b32.xlu0 %v9443_v30, %s5820_s8 }
 0x56d   : > { %3979 = vrot.lane.b32.xlu1 %v9435_v37, %s5823_s29  ;;  %v10348_v57 = vpop.permute.xlu0 %3380 }
 0x56f   : > { %v10350_v35 = vpop.permute.xlu1 %3382  ;;  %4125 = vrot.lane.b32.xlu0 %v9784_v42, %s5824_s21 }
 0x571   : > { %4127 = vrot.lane.b32.xlu1 %v9797_v61, %s5824_s21  ;;  %v10356_v27 = vpop.permute.xlu0 %3384 }
 0x573   : > { %v10358_v32 = vpop.permute.xlu1 %3386  ;;  %3541 = vrot.lane.b32.xlu0 %v9435_v37, %s5820_s8 }
 0x575   : > { %3687 = vrot.lane.b32.xlu1 %v9784_v42, %s5821_s19  ;;  %v10364_v30 = vpop.permute.xlu0 %3388 }
 0x577   : > { %v10366_v28 = vpop.permute.xlu1 %3390  ;;  %3689 = vrot.lane.b32.xlu0 %v9797_v61, %s5821_s19  ;;  %v10388_v61 = vld [vmem:[#allocation3 + $0xb0] sm:$0xff] }
 0x578   : > { %13078 = vst [vmem:[#allocation317_spill] sm:$0xff] %v10388_v61 }
 0x579   : > { %4129 = vrot.lane.b32.xlu1 %v13076_v24, %s5824_s21  ;;  %v10372_v19 = vpop.permute.xlu0 %3392 }
 0x57b   : > { %v10374_v53 = vpop.permute.xlu1 %3394  ;;  %3691 = vrot.lane.b32.xlu0 %v13076_v24, %s5821_s19 }
 0x57d   : > { %3834 = vrot.lane.b32.xlu1 %v10117_v45, %s5822_s14  ;;  %v10380_v37 = vpop.permute.xlu0 %3396 }
 0x57f   : > { %v10382_v42 = vpop.permute.xlu1 %3398  ;;  %3836 = vrot.lane.b32.xlu0 %v10384_v5, %s5822_s14  ;;  %v10436_v5 = vld [vmem:[#allocation3 + $0xd0] sm:$0xff] }
 0x580   : > { %13090 = vst [vmem:[#allocation318_spill] sm:$0xff] %v10436_v5 }
 0x581   : > { %3838 = vrot.lane.b32.xlu1 %v10388_v61, %s5822_s14  ;;  %v10392_v46 = vpop.permute.xlu0 %3400 }
 0x582   : > { %13079 = vst [vmem:[#allocation268_spill] sm:$0xff] %v10392_v46 }
 0x583   : > { %v10394_v24 = vpop.permute.xlu1 %3402  ;;  %3981 = vrot.lane.b32.xlu0 %v13081_v40, %s5823_s29 }
 0x584   : > { %13080 = vst [vmem:[#allocation58_spill] sm:$0xff] %v10394_v24 }
 0x585   : > { %3983 = vrot.lane.b32.xlu1 %v13082_v50, %s5823_s29  ;;  %v10400_v62 = vpop.permute.xlu0 %3404 }
 0x586   : > { %13083 = vst [vmem:[#allocation163_spill] sm:$0xff] %v10400_v62  ;;  %v10428_v62 = vld [vmem:[#allocation3 + $0xc8] sm:$0xff] }
 0x587   : > { %v10402_v63 = vpop.permute.xlu1 %3406  ;;  %3543 = vrot.lane.b32.xlu0 %v13081_v40, %s5820_s8  ;;  %13088 = vst [vmem:[#allocation218_spill] sm:$0xff] %v10428_v62 }
 0x588   : > { %13084 = vst [vmem:[#allocation53_spill] sm:$0xff] %v10402_v63 }
 0x589   : > { %3545 = vrot.lane.b32.xlu1 %v13082_v50, %s5820_s8  ;;  %v3520_v17 = vpop.permute.xlu0 %3519 }
 0x58b   : > { %v3522_v52 = vpop.permute.xlu1 %3521  ;;  %3985 = vrot.lane.b32.xlu0 %v13085_v0, %s5823_s29 }
 0x58d   : > { %4131 = vrot.lane.b32.xlu1 %v13086_v33, %s5824_s21  ;;  %v10412_v11 = vpop.permute.xlu0 %3523 }
 0x58f   : > { %v3670_v39 = vpop.permute.xlu1 %3669  ;;  %4133 = vrot.lane.b32.xlu0 %v9818_v54, %s5824_s21 }
 0x591   : > { %3547 = vrot.lane.b32.xlu1 %v13085_v0, %s5820_s8  ;;  %v3672_v40 = vpop.permute.xlu0 %3671  ;;  %v2818_v0 = vld [vmem:[#allocation3] sm:$0xff] }
 0x593   : > { %v3674_v2 = vpop.permute.xlu1 %3673  ;;  %3693 = vrot.lane.b32.xlu0 %v13086_v33, %s5821_s19  ;;  %v13089_v33 = vld [vmem:[#allocation285_spill] sm:$0xff] }
 0x594   : > { %v4257_v3 = vsel %vm1903_vm2, %v2818_v0, %v13089_v33  ;;  %v13092_v0 = vld [vmem:[#allocation74_spill] sm:$0xff] }
 0x595   : > { %3695 = vrot.lane.b32.xlu1 %v9818_v54, %s5821_s19  ;;  %v3817_v50 = vpop.permute.xlu0 %3816 }
 0x597   : > { %v3819_v63 = vpop.permute.xlu1 %3818  ;;  %4135 = vrot.lane.b32.xlu0 %v13087_v43, %s5824_s21 }
 0x599   : > { %3697 = vrot.lane.b32.xlu1 %v13087_v43, %s5821_s19  ;;  %v3821_v56 = vpop.permute.xlu0 %3820  ;;  %v4305_v43 = vsel %vm2001_vm6, %v4257_v3, %v10107_v60 }
 0x59b   : > { %v3964_v61 = vpop.permute.xlu1 %3963  ;;  %3840 = vrot.lane.b32.xlu0 %v10131_v21, %s5822_s14  ;;  %v5722_v21 = vld [vmem:[#allocation3 + $0x8] sm:$0xff] }
 0x59c   : > { %v4258_v31 = vsel %vm1903_vm2, %v5722_v21, %v13091_v23 }
 0x59d   : > { %3842 = vrot.lane.b32.xlu1 %v10428_v62, %s5822_s14  ;;  %v3966_v54 = vpop.permute.xlu0 %3965  ;;  %v4353_v62 = vsel %vm2099_vm8, %v4305_v43, %v10332_v36  ;;  %v13093_v36 = vld [vmem:[#allocation78_spill] sm:$0xff] }
 0x59e   : > { %v4401_v45 = vsel %vm2197_vm10, %v4353_v62, %v3520_v17 }
 0x59f   : > { %v10434_v24 = vpop.permute.xlu1 %3525  ;;  %3844 = vrot.lane.b32.xlu0 %v10436_v5, %s5822_s14  ;;  %v4306_v5 = vsel %vm2001_vm6, %v4258_v31, %v10109_v51  ;;  %v4450_v23 = vsel %vm4449_vm13, %v4401_v45, %v3670_v39 }
 0x5a0   : > { %v4354_v60 = vsel %vm2099_vm8, %v4306_v5, %v10334_v49  ;;  %v4499_v21 = vsel %vm4498_vm14, %v4450_v23, %v3817_v50  ;;  %v5723_v5 = vld [vmem:[#allocation3 + $0x10] sm:$0xff]  ;;  %v13096_v23 = vld [vmem:[#allocation123_spill] sm:$0xff] }
 0x5a1   : > { %3987 = vrot.lane.b32.xlu1 %v13092_v0, %s5823_s29  ;;  %v10448_v33 = vpop.permute.xlu0 %3527  ;;  %v4402_v43 = vsel %vm2197_vm10, %v4354_v60, %v3522_v52  ;;  %v4548_v31 = vsel %vm4547_vm15, %v4499_v21, %v3964_v61  ;;  %v13094_v49 = vld [vmem:[#allocation116_spill] sm:$0xff] }
 0x5a2   : > { %v4451_v46 = vsel %vm4449_vm13, %v4402_v43, %v3672_v40  ;;  %v4259_v61 = vsel %vm1903_vm2, %v5723_v5, %v13094_v49 }
 0x5a3   : > { %v3968_v3 = vpop.permute.xlu1 %3967  ;;  %3989 = vrot.lane.b32.xlu0 %v13093_v36, %s5823_s29  ;;  %v4500_v17 = vsel %vm4498_vm14, %v4451_v46, %v3819_v63  ;;  %v4307_v46 = vsel %vm2001_vm6, %v4259_v61, %v10115_v26  ;;  %v10508_v61 = vld [vmem:[#allocation3 + $0xe8] sm:$0xff] }
 0x5a4   : > { %v4549_v45 = vsel %vm4547_vm15, %v4500_v17, %v3966_v54  ;;  %v4355_v54 = vsel %vm2099_vm8, %v4307_v46, %v10340_v22  ;;  %v5725_v46 = vld [vmem:[#allocation3 + $0x28] sm:$0xff] }
 0x5a5   : > { %3549 = vrot.lane.b32.xlu1 %v13092_v0, %s5820_s8  ;;  %v4114_v51 = vpop.permute.xlu0 %4113  ;;  %v13095_v0 = vld [vmem:[#allocation77_spill] sm:$0xff]  ;;  %v4403_v43 = vsel %vm2197_vm10, %v4355_v54, %v10412_v11  ;;  %v13099_v54 = vld [vmem:[#allocation118_spill] sm:$0xff] }
 0x5a6   : > { %v4597_v39 = vsel %vm4596_vm0, %v4548_v31, %v4114_v51  ;;  %v4452_v21 = vsel %vm4449_vm13, %v4403_v43, %v3674_v2  ;;  %v13097_v31 = vld [vmem:[#allocation126_spill] sm:$0xff] }
 0x5a7   : > { %v4116_v62 = vpop.permute.xlu1 %4115  ;;  %3551 = vrot.lane.b32.xlu0 %v13093_v36, %s5820_s8  ;;  %v4693_v40 = vrot.slane %v4597_v39, 7  ;;  %v4501_v51 = vsel %vm4498_vm14, %v4452_v21, %v3821_v56 }
 0x5a8   : > { %v4598_v52 = vsel %vm4596_vm0, %v4549_v45, %v4116_v62  ;;  %v4550_v22 = vsel %vm4547_vm15, %v4501_v51, %v3968_v3  ;;  %v10536_v51 = vld [vmem:[#allocation3 + $0xf0] sm:$0xff] }
 0x5a9   : > { %v4694_v50 = vrot.slane %v4598_v52, 7  ;;  %3991 = vrot.lane.b32.xlu1 %v13095_v0, %s5823_s29  ;;  %v10474_v63 = vpop.permute.xlu0 %3529  ;;  %v10504_v52 = vld [vmem:[#allocation3 + $0xe0] sm:$0xff] }
 0x5ab   : > { %v3676_v60 = vpop.permute.xlu1 %3675  ;;  %4137 = vrot.lane.b32.xlu0 %v13096_v23, %s5824_s21  ;;  %v4695_v36 = vsel %vm2294_vm11, %v4693_v40, %v4694_v50  ;;  %v13098_v40 = vld [vmem:[#allocation117_spill] sm:$0xff] }
 0x5ac   : > { %5562 = vmatprep.mubr.msk.f32.mxu1 %vm4789_vm4, %v4695_v36 }
 0x5ad   : > { %4139 = vrot.lane.b32.xlu1 %v13097_v31, %s5824_s21  ;;  %v3678_v26 = vpop.permute.xlu0 %3677 }
 0x5af   : > { %v4118_v17 = vpop.permute.xlu1 %4117  ;;  %3553 = vrot.lane.b32.xlu0 %v13095_v0, %s5820_s8 }
 0x5b0   : > { %v4599_v39 = vsel %vm4596_vm0, %v4550_v22, %v4118_v17 }
 0x5b1   : > { %v4696_v45 = vrot.slane %v4599_v39, 7  ;;  %3699 = vrot.lane.b32.xlu1 %v13096_v23, %s5821_s19  ;;  %v3680_v11 = vpop.permute.xlu0 %3679  ;;  %v4261_v23 = vsel %vm1903_vm2, %v5725_v46, %v13099_v54 }
 0x5b3   : > { %v3823_v2 = vpop.permute.xlu1 %3822  ;;  %3701 = vrot.lane.b32.xlu0 %v13097_v31, %s5821_s19  ;;  %v4697_v62 = vsel %vm2294_vm11, %v4694_v50, %v4696_v45  ;;  %v4260_v50 = vsel %vm1903_vm2, %v10061_v8, %v13098_v40  ;;  %v4309_v8 = vsel %vm2001_vm6, %v4261_v23, %v10125_v38  ;;  %v13101_v40 = vld [vmem:[#allocation83_spill] sm:$0xff] }
 0x5b4   : > { %5563 = vmatmul.mubr.msk.f32.vlgmr.msra.gmra.mxu1 %vm4789_vm4, %v4697_v62  ;;  %v4308_v0 = vsel %vm2001_vm6, %v4260_v50, %v10119_v29  ;;  %v4357_v29 = vsel %vm2099_vm8, %v4309_v8, %v10348_v57  ;;  %v13100_v57 = vld [vmem:[#allocation258_spill] sm:$0xff]  ;;  %v5727_v50 = vld [vmem:[#allocation3 + $0x30] sm:$0xff] }
 0x5b5   : > { %4141 = vrot.lane.b32.xlu1 %v9848_v48, %s5824_s21  ;;  %v3825_v56 = vpop.permute.xlu0 %3824  ;;  %v4356_v36 = vsel %vm2099_vm8, %v4308_v0, %v10342_v9  ;;  %v4405_v22 = vsel %vm2197_vm10, %v4357_v29, %v10448_v33 }
 0x5b6   : > { %v4404_v21 = vsel %vm2197_vm10, %v4356_v36, %v10434_v24  ;;  %v4454_v38 = vsel %vm4449_vm13, %v4405_v22, %v3678_v26  ;;  %v13102_v26 = vld [vmem:[#allocation120_spill] sm:$0xff] }
 0x5b7   : > { %v3827_v3 = vpop.permute.xlu1 %3826  ;;  %3703 = vrot.lane.b32.xlu0 %v9848_v48, %s5821_s19  ;;  %v4453_v31 = vsel %vm4449_vm13, %v4404_v21, %v3676_v60  ;;  %v4503_v60 = vsel %vm4498_vm14, %v4454_v38, %v3825_v56 }
 0x5b8   : > { %v4502_v17 = vsel %vm4498_vm14, %v4453_v31, %v3823_v2  ;;  %v13103_v31 = vld [vmem:[#allocation80_spill] sm:$0xff] }
 0x5b9   : > { %3846 = vrot.lane.b32.xlu1 %v10504_v52, %s5822_s14  ;;  %v3970_v5 = vpop.permute.xlu0 %3969 }
 0x5ba   : > { %v4551_v24 = vsel %vm4547_vm15, %v4502_v17, %v3970_v5  ;;  %v4262_v5 = vsel %vm1903_vm2, %v5727_v50, %v13102_v26  ;;  %v5728_v50 = vld [vmem:[#allocation3 + $0x48] sm:$0xff] }
 0x5bb   : > { %v3972_v49 = vpop.permute.xlu1 %3971  ;;  %3848 = vrot.lane.b32.xlu0 %v10508_v61, %s5822_s14  ;;  %v4310_v56 = vsel %vm2001_vm6, %v4262_v5, %v10127_v1 }
 0x5bc   : > { %v4552_v62 = vsel %vm4547_vm15, %v4503_v60, %v3972_v49  ;;  %v4358_v49 = vsel %vm2099_vm8, %v4310_v56, %v10350_v35 }
 0x5bd   : > { %3408 = vrot.lane.b32.xlu1 %v10504_v52, %s5818_s23  ;;  %v10517_v48 = vpop.permute.xlu0 %3531  ;;  %v4406_v8 = vsel %vm2197_vm10, %v4358_v49, %v10474_v63  ;;  %v10617_v49 = vld [vmem:[#allocation3 + $0x108] sm:$0xff] }
 0x5be   : > { %v4455_v21 = vsel %vm4449_vm13, %v4406_v8, %v3680_v11 }
 0x5bf   : > { %v10525_v43 = vpop.permute.xlu1 %3533  ;;  %3410 = vrot.lane.b32.xlu0 %v10508_v61, %s5818_s23  ;;  %v4504_v1 = vsel %vm4498_vm14, %v4455_v21, %v3827_v3 }
 0x5c1   : > { %3850 = vrot.lane.b32.xlu1 %v10536_v51, %s5822_s14  ;;  %v3974_v9 = vpop.permute.xlu0 %3973 }
 0x5c2   : > { %v4553_v35 = vsel %vm4547_vm15, %v4504_v1, %v3974_v9 }
 0x5c3   : > { %v4120_v39 = vpop.permute.xlu1 %4119  ;;  %3993 = vrot.lane.b32.xlu0 %v13100_v57, %s5823_s29 }
 0x5c4   : > { %v4600_v45 = vsel %vm4596_vm0, %v4551_v24, %v4120_v39  ;;  %v13104_v24 = vld [vmem:[#allocation128_spill] sm:$0xff] }
 0x5c5   : > { %3995 = vrot.lane.b32.xlu1 %v13101_v40, %s5823_s29  ;;  %v4122_v33 = vpop.permute.xlu0 %4121  ;;  %v4698_v0 = vrot.slane %v4600_v45, 7  ;;  %v13105_v45 = vld [vmem:[#allocation293_spill] sm:$0xff] }
 0x5c6   : > { %v4601_v2 = vsel %vm4596_vm0, %v4552_v62, %v4122_v33  ;;  %v4263_v62 = vsel %vm1903_vm2, %v10075_v4, %v13105_v45  ;;  %v10598_v33 = vld [vmem:[#allocation3 + $0x100] sm:$0xff] }
 0x5c7   : > { %v4699_v46 = vrot.slane %v4601_v2, 7  ;;  %v10555_v54 = vpop.permute.xlu1 %3535  ;;  %3412 = vrot.lane.b32.xlu0 %v10536_v51, %s5818_s23  ;;  %v4311_v2 = vsel %vm2001_vm6, %v4263_v62, %v10135_v55 }
 0x5c8   : > { %v4359_v5 = vsel %vm2099_vm8, %v4311_v2, %v10356_v27  ;;  %v13109_v2 = vld [vmem:[#allocation86_spill] sm:$0xff] }
 0x5c9   : > { %3555 = vrot.lane.b32.xlu1 %v13100_v57, %s5820_s8  ;;  %v3682_v23 = vpop.permute.xlu0 %3681  ;;  %v4700_v36 = vsel %vm2294_vm11, %v4698_v0, %v4699_v46  ;;  %v4407_v0 = vsel %vm2197_vm10, %v4359_v5, %v10517_v48 }
 0x5ca   : > { %5565 = vmatprep.mubr.msk.f32.mxu1 %vm4789_vm4, %v4700_v36 }
 0x5cb   : > { %v3684_v29 = vpop.permute.xlu1 %3683  ;;  %3557 = vrot.lane.b32.xlu0 %v13101_v40, %s5820_s8 }
 0x5cd   : > { %3997 = vrot.lane.b32.xlu1 %v13103_v31, %s5823_s29  ;;  %v4124_v22 = vpop.permute.xlu0 %4123 }
 0x5ce   : > { %v4602_v17 = vsel %vm4596_vm0, %v4553_v35, %v4124_v22  ;;  %v5730_v35 = vld [vmem:[#allocation3 + $0x50] sm:$0xff] }
 0x5cf   : > { %v4701_v38 = vrot.slane %v4602_v17, 7  ;;  %v3686_v63 = vpop.permute.xlu1 %3685  ;;  %4143 = vrot.lane.b32.xlu0 %v13104_v24, %s5824_s21 }
 0x5d1   : > { %4145 = vrot.lane.b32.xlu1 %v9864_v15, %s5824_s21  ;;  %v3829_v11 = vpop.permute.xlu0 %3828  ;;  %v4702_v39 = vsel %vm2294_vm11, %v4699_v46, %v4701_v38  ;;  %v4456_v46 = vsel %vm4449_vm13, %v4407_v0, %v3682_v23  ;;  %v10636_v38 = vld [vmem:[#allocation3 + $0x110] sm:$0xff] }
 0x5d2   : > { %5566 = vmatmul.mubr.msk.f32.gmra.mxu1 %vm4789_vm4, %v4702_v39  ;;  %v4505_v36 = vsel %vm4498_vm14, %v4456_v46, %v3829_v11  ;;  %v13111_v46 = vld [vmem:[#allocation134_spill] sm:$0xff] }
 0x5d3   : > { %v3831_v3 = vpop.permute.xlu1 %3830  ;;  %3559 = vrot.lane.b32.xlu0 %v13103_v31, %s5820_s8 }
 0x5d5   : > { %3705 = vrot.lane.b32.xlu1 %v13104_v24, %s5821_s19  ;;  %v3833_v9 = vpop.permute.xlu0 %3832 }
 0x5d7   : > { %v3976_v57 = vpop.permute.xlu1 %3975  ;;  %3707 = vrot.lane.b32.xlu0 %v9864_v15, %s5821_s19  ;;  %v13106_v15 = vld [vmem:[#allocation121_spill] sm:$0xff] }
 0x5d8   : > { %v4264_v26 = vsel %vm1903_vm2, %v5728_v50, %v13106_v15  ;;  %v4554_v48 = vsel %vm4547_vm15, %v4505_v36, %v3976_v57  ;;  %v13108_v57 = vld [vmem:[#allocation261_spill] sm:$0xff] }
 0x5d9   : > { %4147 = vrot.lane.b32.xlu1 %v9871_v13, %s5824_s21  ;;  %v3978_v60 = vpop.permute.xlu0 %3977  ;;  %v13112_v36 = vld [vmem:[#allocation125_spill] sm:$0xff] }
 0x5db   : > { %v10594_v40 = vpop.permute.xlu1 %3537  ;;  %3709 = vrot.lane.b32.xlu0 %v9871_v13, %s5821_s19  ;;  %v4312_v13 = vsel %vm2001_vm6, %v4264_v26, %v10137_v16 }
 0x5dc   : > { %v4360_v55 = vsel %vm2099_vm8, %v4312_v13, %v10358_v32 }
 0x5dd   : > { %3852 = vrot.lane.b32.xlu1 %v10598_v33, %s5822_s14  ;;  %v10608_v4 = vpop.permute.xlu0 %3539  ;;  %v4408_v27 = vsel %vm2197_vm10, %v4360_v55, %v10525_v43 }
 0x5de   : > { %v4457_v16 = vsel %vm4449_vm13, %v4408_v27, %v3684_v29  ;;  %v13107_v29 = vld [vmem:[#allocation124_spill] sm:$0xff] }
 0x5df   : > { %v3980_v56 = vpop.permute.xlu1 %3979  ;;  %3854 = vrot.lane.b32.xlu0 %v10617_v49, %s5822_s14  ;;  %v4506_v23 = vsel %vm4498_vm14, %v4457_v16, %v3831_v3  ;;  %v4265_v31 = vsel %vm1903_vm2, %v5730_v35, %v13107_v29  ;;  %v4266_v16 = vsel %vm1903_vm2, %v10089_v58, %v13112_v36 }
 0x5e0   : > { %v4555_v21 = vsel %vm4547_vm15, %v4506_v23, %v3978_v60  ;;  %v4313_v11 = vsel %vm2001_vm6, %v4265_v31, %v10143_v34  ;;  %v5732_v23 = vld [vmem:[#allocation3 + $0x68] sm:$0xff] }
 0x5e1   : > { %3414 = vrot.lane.b32.xlu1 %v10598_v33, %s5818_s23  ;;  %v4126_v32 = vpop.permute.xlu0 %4125  ;;  %v4361_v39 = vsel %vm2099_vm8, %v4313_v11, %v10364_v30 }
 0x5e2   : > { %v4603_v8 = vsel %vm4596_vm0, %v4554_v48, %v4126_v32  ;;  %v4409_v45 = vsel %vm2197_vm10, %v4361_v39, %v10555_v54  ;;  %v4314_v32 = vsel %vm2001_vm6, %v4266_v16, %v10145_v6 }
 0x5e3   : > { %v4128_v1 = vpop.permute.xlu1 %4127  ;;  %3416 = vrot.lane.b32.xlu0 %v10617_v49, %s5818_s23  ;;  %v4703_v22 = vrot.slane %v4603_v8, 7  ;;  %v4458_v62 = vsel %vm4449_vm13, %v4409_v45, %v3686_v63  ;;  %v13113_v8 = vld [vmem:[#allocation127_spill] sm:$0xff] }
 0x5e4   : > { %v4604_v43 = vsel %vm4596_vm0, %v4555_v21, %v4128_v1  ;;  %v4507_v50 = vsel %vm4498_vm14, %v4458_v62, %v3833_v9  ;;  %v13110_v9 = vld [vmem:[#allocation84_spill] sm:$0xff]  ;;  %v4267_v21 = vsel %vm1903_vm2, %v5732_v23, %v13113_v8  ;;  %v4362_v1 = vsel %vm2099_vm8, %v4314_v32, %v10366_v28  ;;  %v13117_v8 = vld [vmem:[#allocation90_spill] sm:$0xff] }
 0x5e5   : > { %v4704_v17 = vrot.slane %v4604_v43, 7  ;;  %3856 = vrot.lane.b32.xlu1 %v10636_v38, %s5822_s14  ;;  %v10640_v24 = vpop.permute.xlu0 %3541  ;;  %v4556_v30 = vsel %vm4547_vm15, %v4507_v50, %v3980_v56  ;;  %v4410_v58 = vsel %vm2197_vm10, %v4362_v1, %v10594_v40  ;;  %v13118_v1 = vld [vmem:[#allocation130_spill] sm:$0xff] }
 0x5e7   : > { %v3688_v3 = vpop.permute.xlu1 %3687  ;;  %3999 = vrot.lane.b32.xlu0 %v13108_v57, %s5823_s29  ;;  %v4705_v60 = vsel %vm2294_vm11, %v4703_v22, %v4704_v17 }
 0x5e8   : > { %5568 = vmatprep.mubr.msk.f32.mxu1 %vm4789_vm4, %v4705_v60  ;;  %v4459_v35 = vsel %vm4449_vm13, %v4410_v58, %v3688_v3  ;;  %v13114_v60 = vld [vmem:[#allocation129_spill] sm:$0xff] }
 0x5e9   : > { %4001 = vrot.lane.b32.xlu1 %v13109_v2, %s5823_s29  ;;  %v3690_v34 = vpop.permute.xlu0 %3689 }
 0x5eb   : > { %v4130_v15 = vpop.permute.xlu1 %4129  ;;  %3418 = vrot.lane.b32.xlu0 %v10636_v38, %s5818_s23 }
 0x5ec   : > { %v4605_v26 = vsel %vm4596_vm0, %v4556_v30, %v4130_v15 }
 0x5ed   : > { %v4706_v5 = vrot.slane %v4605_v26, 7  ;;  %3561 = vrot.lane.b32.xlu1 %v13108_v57, %s5820_s8  ;;  %v3692_v54 = vpop.permute.xlu0 %3691  ;;  %v5733_v57 = vld [vmem:[#allocation3 + $0x70] sm:$0xff] }
 0x5ee   : > { %v4268_v45 = vsel %vm1903_vm2, %v5733_v57, %v13114_v60 }
 0x5ef   : > { %v3835_v63 = vpop.permute.xlu1 %3834  ;;  %3563 = vrot.lane.b32.xlu0 %v13109_v2, %s5820_s8  ;;  %v4707_v13 = vsel %vm2294_vm11, %v4704_v17, %v4706_v5  ;;  %v4316_v50 = vsel %vm2001_vm6, %v4268_v45, %v10153_v41  ;;  %v13121_v45 = vld [vmem:[#allocation132_spill] sm:$0xff] }
 0x5f0   : > { %5569 = vmatmul.mubr.msk.f32.gmra.mxu1 %vm4789_vm4, %v4707_v13  ;;  %v4508_v31 = vsel %vm4498_vm14, %v4459_v35, %v3835_v63  ;;  %v4364_v30 = vsel %vm2099_vm8, %v4316_v50, %v10374_v53 }
 0x5f1   : > { %4003 = vrot.lane.b32.xlu1 %v13110_v9, %s5823_s29  ;;  %v3837_v0 = vpop.permute.xlu0 %3836  ;;  %v4412_v5 = vsel %vm2197_vm10, %v4364_v30, %v10640_v24 }
 0x5f2   : > { %v4461_v63 = vsel %vm4449_vm13, %v4412_v5, %v3692_v54  ;;  %v13115_v54 = vld [vmem:[#allocation89_spill] sm:$0xff] }
 0x5f3   : > { %v3839_v55 = vpop.permute.xlu1 %3838  ;;  %4149 = vrot.lane.b32.xlu0 %v9874_v10, %s5824_s21 }
 0x5f4   : > { %v4510_v41 = vsel %vm4498_vm14, %v4461_v63, %v3839_v55 }
 0x5f5   : > { %4151 = vrot.lane.b32.xlu1 %v13111_v46, %s5824_s21  ;;  %v3982_v56 = vpop.permute.xlu0 %3981 }
 0x5f7   : > { %v3984_v27 = vpop.permute.xlu1 %3983  ;;  %3565 = vrot.lane.b32.xlu0 %v13110_v9, %s5820_s8  ;;  %v10738_v9 = vld [vmem:[#allocation3 + $0x130] sm:$0xff] }
 0x5f9   : > { %3711 = vrot.lane.b32.xlu1 %v9874_v10, %s5821_s19  ;;  %v10679_v48 = vpop.permute.xlu0 %3543  ;;  %v4315_v10 = vsel %vm2001_vm6, %v4267_v21, %v10151_v44  ;;  %v4557_v44 = vsel %vm4547_vm15, %v4508_v31, %v3982_v56 }
 0x5fa   : > { %v4363_v6 = vsel %vm2099_vm8, %v4315_v10, %v10372_v19  ;;  %v10707_v19 = vld [vmem:[#allocation3 + $0x120] sm:$0xff]  ;;  %v4269_v10 = vsel %vm1903_vm2, %v10103_v25, %v13118_v1 }
 0x5fb   : > { %v10687_v43 = vpop.permute.xlu1 %3545  ;;  %3713 = vrot.lane.b32.xlu0 %v13111_v46, %s5821_s19  ;;  %v4411_v29 = vsel %vm2197_vm10, %v4363_v6, %v10608_v4  ;;  %v13119_v6 = vld [vmem:[#allocation136_spill] sm:$0xff]  ;;  %v4317_v35 = vsel %vm2001_vm6, %v4269_v10, %v10159_v12 }
 0x5fc   : > { %v4460_v22 = vsel %vm4449_vm13, %v4411_v29, %v3690_v34  ;;  %v10719_v34 = vld [vmem:[#allocation3 + $0x128] sm:$0xff] }
 0x5fd   : > { %4153 = vrot.lane.b32.xlu1 %v9894_v7, %s5824_s21  ;;  %v3986_v28 = vpop.permute.xlu0 %3985  ;;  %v4509_v40 = vsel %vm4498_vm14, %v4460_v22, %v3837_v0  ;;  %v13120_v29 = vld [vmem:[#allocation131_spill] sm:$0xff]  ;;  %v4365_v22 = vsel %vm2099_vm8, %v4317_v35, %v10380_v37 }
 0x5fe   : > { %v4558_v39 = vsel %vm4547_vm15, %v4509_v40, %v3984_v27  ;;  %v4559_v53 = vsel %vm4547_vm15, %v4510_v41, %v3986_v28  ;;  %v13116_v27 = vld [vmem:[#allocation266_spill] sm:$0xff]  ;;  %v5736_v28 = vld [vmem:[#allocation3 + $0x88] sm:$0xff] }
 0x5ff   : > { %v4132_v17 = vpop.permute.xlu1 %4131  ;;  %3715 = vrot.lane.b32.xlu0 %v9894_v7, %s5821_s19  ;;  %v4270_v31 = vsel %vm1903_vm2, %v5736_v28, %v13120_v29  ;;  %v13126_v28 = vld [vmem:[#allocation133_spill] sm:$0xff]  ;;  %v13127_v29 = vld [vmem:[#allocation211_spill] sm:$0xff] }
 0x600   : > { %v4606_v11 = vsel %vm4596_vm0, %v4557_v44, %v4132_v17  ;;  %v4318_v25 = vsel %vm2001_vm6, %v4270_v31, %v10161_v14  ;;  %v4413_v17 = vsel %vm2197_vm10, %v4365_v22, %v10679_v48  ;;  %v4272_v31 = vsel %vm1903_vm2, %v13127_v29, %v13126_v28 }
 0x601   : > { %3858 = vrot.lane.b32.xlu1 %v10707_v19, %s5822_s14  ;;  %v4134_v4 = vpop.permute.xlu0 %4133  ;;  %v4708_v62 = vrot.slane %v4606_v11, 7  ;;  %v4366_v12 = vsel %vm2099_vm8, %v4318_v25, %v10382_v42  ;;  %v13128_v25 = vld [vmem:[#allocation140_spill] sm:$0xff] }
 0x602   : > { %v4607_v3 = vsel %vm4596_vm0, %v4558_v39, %v4134_v4  ;;  %v4414_v37 = vsel %vm2197_vm10, %v4366_v12, %v10687_v43 }
 0x603   : > { %v4709_v7 = vrot.slane %v4607_v3, 7  ;;  %v10717_v2 = vpop.permute.xlu1 %3547  ;;  %3860 = vrot.lane.b32.xlu0 %v10719_v34, %s5822_s14 }
 0x605   : > { %3420 = vrot.lane.b32.xlu1 %v10707_v19, %s5818_s23  ;;  %v3694_v15 = vpop.permute.xlu0 %3693  ;;  %v4710_v26 = vsel %vm2294_vm11, %v4708_v62, %v4709_v7  ;;  %v4271_v62 = vsel %vm1903_vm2, %v10326_v47, %v13121_v45  ;;  %v10810_v47 = vld [vmem:[#allocation3 + $0x140] sm:$0xff] }
 0x606   : > { %5571 = vmatprep.mubr.msk.f32.mxu1 %vm4789_vm4, %v4710_v26  ;;  %v4462_v40 = vsel %vm4449_vm13, %v4413_v17, %v3694_v15  ;;  %v4319_v15 = vsel %vm2001_vm6, %v4271_v62, %v10167_v18  ;;  %v13122_v26 = vld [vmem:[#allocation268_spill] sm:$0xff]  ;;  %v13129_v17 = vld [vmem:[#allocation311_spill] sm:$0xff] }
 0x607   : > { %v3696_v13 = vpop.permute.xlu1 %3695  ;;  %3422 = vrot.lane.b32.xlu0 %v10719_v34, %s5818_s23  ;;  %v4367_v5 = vsel %vm2099_vm8, %v4319_v15, %v13122_v26  ;;  %v4320_v12 = vsel %vm2001_vm6, %v4272_v31, %v13129_v17 }
 0x608   : > { %v4463_v4 = vsel %vm4449_vm13, %v4414_v37, %v3696_v13  ;;  %v4415_v13 = vsel %vm2197_vm10, %v4367_v5, %v10717_v2 }
 0x609   : > { %3862 = vrot.lane.b32.xlu1 %v10738_v9, %s5822_s14  ;;  %v4136_v0 = vpop.permute.xlu0 %4135 }
 0x60a   : > { %v4608_v24 = vsel %vm4596_vm0, %v4559_v53, %v4136_v0 }
 0x60b   : > { %v4711_v46 = vrot.slane %v4608_v24, 7  ;;  %v3698_v56 = vpop.permute.xlu1 %3697  ;;  %4005 = vrot.lane.b32.xlu0 %v13115_v54, %s5823_s29  ;;  %v10820_v24 = vld [vmem:[#allocation3 + $0x148] sm:$0xff] }
 0x60c   : > { %v4464_v41 = vsel %vm4449_vm13, %v4415_v13, %v3698_v56 }
 0x60d   : > { %4007 = vrot.lane.b32.xlu1 %v13116_v27, %s5823_s29  ;;  %v3841_v36 = vpop.permute.xlu0 %3840  ;;  %v4712_v55 = vsel %vm2294_vm11, %v4709_v7, %v4711_v46 }
 0x60e   : > { %5572 = vmatmul.mubr.msk.f32.gmra.mxu1 %vm4789_vm4, %v4712_v55  ;;  %v4511_v39 = vsel %vm4498_vm14, %v4462_v40, %v3841_v36  ;;  %v10831_v36 = vld [vmem:[#allocation3 + $0x150] sm:$0xff]  ;;  %v13130_v40 = vld [vmem:[#allocation135_spill] sm:$0xff] }
 0x60f   : > { %v3843_v16 = vpop.permute.xlu1 %3842  ;;  %3424 = vrot.lane.b32.xlu0 %v10738_v9, %s5818_s23 }
 0x610   : > { %v4512_v42 = vsel %vm4498_vm14, %v4463_v4, %v3843_v16 }
 0x611   : > { %3567 = vrot.lane.b32.xlu1 %v13115_v54, %s5820_s8  ;;  %v3845_v32 = vpop.permute.xlu0 %3844 }
 0x612   : > { %v4513_v53 = vsel %vm4498_vm14, %v4464_v41, %v3845_v32  ;;  %v13123_v32 = vld [vmem:[#allocation92_spill] sm:$0xff]  ;;  %v13136_v41 = vld [vmem:[#allocation137_spill] sm:$0xff] }
 0x613   : > { %v3988_v23 = vpop.permute.xlu1 %3987  ;;  %3569 = vrot.lane.b32.xlu0 %v13116_v27, %s5820_s8 }
 0x614   : > { %v4560_v14 = vsel %vm4547_vm15, %v4511_v39, %v3988_v23  ;;  %v13124_v23 = vld [vmem:[#allocation269_spill] sm:$0xff]  ;;  %v13132_v39 = vld [vmem:[#allocation58_spill] sm:$0xff] }
 0x615   : > { %4009 = vrot.lane.b32.xlu1 %v13117_v8, %s5823_s29  ;;  %v3990_v21 = vpop.permute.xlu0 %3989  ;;  %v4368_v4 = vsel %vm2099_vm8, %v4320_v12, %v13132_v39  ;;  %v10917_v12 = vld [vmem:[#allocation3 + $0x168] sm:$0xff] }
 0x616   : > { %v4561_v57 = vsel %vm4547_vm15, %v4512_v42, %v3990_v21  ;;  %v13134_v42 = vld [vmem:[#allocation260_spill] sm:$0xff] }
 0x617   : > { %v10760_v58 = vpop.permute.xlu1 %3549  ;;  %4155 = vrot.lane.b32.xlu0 %v13119_v6, %s5824_s21 }
 0x619   : > { %4157 = vrot.lane.b32.xlu1 %v9910_v20, %s5824_s21  ;;  %v10772_v44 = vpop.permute.xlu0 %3551 }
 0x61b   : > { %v3992_v11 = vpop.permute.xlu1 %3991  ;;  %3571 = vrot.lane.b32.xlu0 %v13117_v8, %s5820_s8 }
 0x61c   : > { %v4562_v0 = vsel %vm4547_vm15, %v4513_v53, %v3992_v11  ;;  %v13131_v11 = vld [vmem:[#allocation217_spill] sm:$0xff] }
 0x61d   : > { %3717 = vrot.lane.b32.xlu1 %v13119_v6, %s5821_s19  ;;  %v4138_v48 = vpop.permute.xlu0 %4137  ;;  %v13125_v6 = vld [vmem:[#allocation95_spill] sm:$0xff]  ;;  %v4273_v37 = vsel %vm1903_vm2, %v13131_v11, %v13130_v40 }
 0x61e   : > { %v4609_v3 = vsel %vm4596_vm0, %v4560_v14, %v4138_v48  ;;  %v13133_v14 = vld [vmem:[#allocation143_spill] sm:$0xff] }
 0x61f   : > { %v4140_v60 = vpop.permute.xlu1 %4139  ;;  %3719 = vrot.lane.b32.xlu0 %v9910_v20, %s5821_s19  ;;  %v4713_v7 = vrot.slane %v4609_v3, 7  ;;  %v4321_v3 = vsel %vm2001_vm6, %v4273_v37, %v13134_v42  ;;  %v10928_v37 = vld [vmem:[#allocation3 + $0x170] sm:$0xff] }
 0x620   : > { %v4610_v43 = vsel %vm4596_vm0, %v4561_v57, %v4140_v60  ;;  %v4416_v57 = vsel %vm2197_vm10, %v4368_v4, %v10760_v58  ;;  %v13135_v60 = vld [vmem:[#allocation163_spill] sm:$0xff]  ;;  %v13142_v42 = vld [vmem:[#allocation101_spill] sm:$0xff] }
 0x621   : > { %v4714_v50 = vrot.slane %v4610_v43, 7  ;;  %4159 = vrot.lane.b32.xlu1 %v9917_v59, %s5824_s21  ;;  %v10801_v30 = vpop.permute.xlu0 %3553  ;;  %v4369_v43 = vsel %vm2099_vm8, %v4321_v3, %v13135_v60 }
 0x623   : > { %v3700_v20 = vpop.permute.xlu1 %3699  ;;  %3721 = vrot.lane.b32.xlu0 %v9917_v59, %s5821_s19  ;;  %v4715_v63 = vsel %vm2294_vm11, %v4713_v7, %v4714_v50  ;;  %v4417_v7 = vsel %vm2197_vm10, %v4369_v43, %v10772_v44 }
 0x624   : > { %5574 = vmatprep.mubr.msk.f32.mxu1 %vm4789_vm4, %v4715_v63  ;;  %v4465_v45 = vsel %vm4449_vm13, %v4416_v57, %v3700_v20 }
 0x625   : > { %3864 = vrot.lane.b32.xlu1 %v10810_v47, %s5822_s14  ;;  %v3702_v18 = vpop.permute.xlu0 %3701 }
 0x626   : > { %v4466_v15 = vsel %vm4449_vm13, %v4417_v7, %v3702_v18  ;;  %v13137_v18 = vld [vmem:[#allocation317_spill] sm:$0xff]  ;;  %v5741_v7 = vld [vmem:[#allocation3 + $0xc0] sm:$0xff] }
 0x627   : > { %v4142_v59 = vpop.permute.xlu1 %4141  ;;  %3866 = vrot.lane.b32.xlu0 %v10820_v24, %s5822_s14  ;;  %v4274_v53 = vsel %vm1903_vm2, %v13137_v18, %v13136_v41  ;;  %v13149_v18 = vld [vmem:[#allocation149_spill] sm:$0xff] }
 0x628   : > { %v4611_v2 = vsel %vm4596_vm0, %v4562_v0, %v4142_v59 }
 0x629   : > { %v4716_v46 = vrot.slane %v4611_v2, 7  ;;  %3426 = vrot.lane.b32.xlu1 %v10810_v47, %s5818_s23  ;;  %v3704_v56 = vpop.permute.xlu0 %3703  ;;  %v13138_v2 = vld [vmem:[#allocation145_spill] sm:$0xff] }
 0x62b   : > { %v3847_v54 = vpop.permute.xlu1 %3846  ;;  %3428 = vrot.lane.b32.xlu0 %v10820_v24, %s5818_s23  ;;  %v4717_v27 = vsel %vm2294_vm11, %v4714_v50, %v4716_v46 }
 0x62c   : > { %5575 = vmatmul.mubr.msk.f32.gmra.mxu1 %vm4789_vm4, %v4717_v27  ;;  %v4514_v50 = vsel %vm4498_vm14, %v4465_v45, %v3847_v54  ;;  %v13139_v54 = vld [vmem:[#allocation46_spill] sm:$0xff] }
 0x62d   : > { %3868 = vrot.lane.b32.xlu1 %v10831_v36, %s5822_s14  ;;  %v3849_v55 = vpop.permute.xlu0 %3848  ;;  %v4322_v27 = vsel %vm2001_vm6, %v4274_v53, %v13139_v54  ;;  %v13143_v45 = vld [vmem:[#allocation98_spill] sm:$0xff] }
 0x62e   : > { %v4515_v5 = vsel %vm4498_vm14, %v4466_v15, %v3849_v55  ;;  %v13140_v55 = vld [vmem:[#allocation53_spill] sm:$0xff] }
 0x62f   : > { %v10835_v16 = vpop.permute.xlu1 %3408  ;;  %4011 = vrot.lane.b32.xlu0 %v13123_v32, %s5823_s29 }
 0x631   : > { %4013 = vrot.lane.b32.xlu1 %v13124_v23, %s5823_s29  ;;  %v10841_v8 = vpop.permute.xlu0 %3410 }
 0x633   : > { %v3851_v21 = vpop.permute.xlu1 %3850  ;;  %3430 = vrot.lane.b32.xlu0 %v10831_v36, %s5818_s23 }
 0x635   : > { %3573 = vrot.lane.b32.xlu1 %v13123_v32, %s5820_s8  ;;  %v3994_v1 = vpop.permute.xlu0 %3993  ;;  %v4370_v32 = vsel %vm2099_vm8, %v4322_v27, %v13140_v55 }
 0x636   : > { %v4563_v26 = vsel %vm4547_vm15, %v4514_v50, %v3994_v1  ;;  %v13144_v50 = vld [vmem:[#allocation138_spill] sm:$0xff] }
 0x637   : > { %v3996_v10 = vpop.permute.xlu1 %3995  ;;  %3575 = vrot.lane.b32.xlu0 %v13124_v23, %s5820_s8  ;;  %v4275_v15 = vsel %vm1903_vm2, %v5741_v7, %v13144_v50 }
 0x638   : > { %v4564_v63 = vsel %vm4547_vm15, %v4515_v5, %v3996_v10  ;;  %v10907_v10 = vld [vmem:[#allocation3 + $0x160] sm:$0xff]  ;;  %v13146_v5 = vld [vmem:[#allocation161_spill] sm:$0xff] }
 0x639   : > { %4015 = vrot.lane.b32.xlu1 %v13125_v6, %s5823_s29  ;;  %v10851_v35 = vpop.permute.xlu0 %3412 }
 0x63b   : > { %v10856_v22 = vpop.permute.xlu1 %3555  ;;  %4161 = vrot.lane.b32.xlu0 %v13128_v25, %s5824_s21 }
 0x63d   : > { %4163 = vrot.lane.b32.xlu1 %v13133_v14, %s5824_s21  ;;  %v10869_v48 = vpop.permute.xlu0 %3557 }
 0x63f   : > { %v3998_v62 = vpop.permute.xlu1 %3997  ;;  %3577 = vrot.lane.b32.xlu0 %v13125_v6, %s5820_s8  ;;  %v4418_v6 = vsel %vm2197_vm10, %v4370_v32, %v10801_v30 }
 0x640   : > { %v4467_v28 = vsel %vm4449_vm13, %v4418_v6, %v3704_v56 }
 0x641   : > { %3723 = vrot.lane.b32.xlu1 %v13128_v25, %s5821_s19  ;;  %v4144_v58 = vpop.permute.xlu0 %4143  ;;  %v4516_v31 = vsel %vm4498_vm14, %v4467_v28, %v3851_v21 }
 0x642   : > { %v4612_v20 = vsel %vm4596_vm0, %v4563_v26, %v4144_v58  ;;  %v4565_v25 = vsel %vm4547_vm15, %v4516_v31, %v3998_v62  ;;  %v13145_v58 = vld [vmem:[#allocation146_spill] sm:$0xff] }
 0x643   : > { %v4146_v13 = vpop.permute.xlu1 %4145  ;;  %3725 = vrot.lane.b32.xlu0 %v13133_v14, %s5821_s19  ;;  %v4718_v0 = vrot.slane %v4612_v20, 7  ;;  %v13141_v14 = vld [vmem:[#allocation96_spill] sm:$0xff]  ;;  %v4323_v20 = vsel %vm2001_vm6, %v4275_v15, %v13146_v5 }
 0x644   : > { %v4613_v44 = vsel %vm4596_vm0, %v4564_v63, %v4146_v13  ;;  %v13147_v63 = vld [vmem:[#allocation139_spill] sm:$0xff]  ;;  %v13148_v13 = vld [vmem:[#allocation218_spill] sm:$0xff]  ;;  %v4371_v41 = vsel %vm2099_vm8, %v4323_v20, %v10835_v16 }
 0x645   : > { %v4719_v59 = vrot.slane %v4613_v44, 7  ;;  %4165 = vrot.lane.b32.xlu1 %v13138_v2, %s5824_s21  ;;  %v10898_v46 = vpop.permute.xlu0 %3559  ;;  %v4276_v44 = vsel %vm1903_vm2, %v13148_v13, %v13147_v63  ;;  %v11013_v20 = vld [vmem:[#allocation3 + $0x188] sm:$0xff] }
 0x647   : > { %v3706_v23 = vpop.permute.xlu1 %3705  ;;  %3727 = vrot.lane.b32.xlu0 %v13138_v2, %s5821_s19  ;;  %v4720_v1 = vsel %vm2294_vm11, %v4718_v0, %v4719_v59  ;;  %v13150_v0 = vld [vmem:[#allocation48_spill] sm:$0xff]  ;;  %v4419_v2 = vsel %vm2197_vm10, %v4371_v41, %v10856_v22 }
 0x648   : > { %5577 = vmatprep.mubr.msk.f32.mxu1 %vm4789_vm4, %v4720_v1  ;;  %v4468_v27 = vsel %vm4449_vm13, %v4419_v2, %v3706_v23 }
 0x649   : > { %3870 = vrot.lane.b32.xlu1 %v10907_v10, %s5822_s14  ;;  %v3708_v29 = vpop.permute.xlu0 %3707 }
 0x64b   : > { %v4148_v17 = vpop.permute.xlu1 %4147  ;;  %3872 = vrot.lane.b32.xlu0 %v10917_v12, %s5822_s14 }
 0x64c   : > { %v4614_v30 = vsel %vm4596_vm0, %v4565_v25, %v4148_v17  ;;  %v13151_v25 = vld [vmem:[#allocation141_spill] sm:$0xff] }
 0x64d   : > { %v4721_v40 = vrot.slane %v4614_v30, 7  ;;  %3432 = vrot.lane.b32.xlu1 %v10907_v10, %s5818_s23  ;;  %v3710_v56 = vpop.permute.xlu0 %3709 }
 0x64f   : > { %v3853_v11 = vpop.permute.xlu1 %3852  ;;  %3434 = vrot.lane.b32.xlu0 %v10917_v12, %s5818_s23  ;;  %v4722_v21 = vsel %vm2294_vm11, %v4719_v59, %v4721_v40  ;;  %v4324_v59 = vsel %vm2001_vm6, %v4276_v44, %v13150_v0  ;;  %v11024_v44 = vld [vmem:[#allocation3 + $0x190] sm:$0xff]  ;;  %v13155_v0 = vld [vmem:[#allocation102_spill] sm:$0xff] }
 0x650   : > { %5578 = vmatmul.mubr.msk.f32.gmra.mxu1 %vm4789_vm4, %v4722_v21  ;;  %v4372_v54 = vsel %vm2099_vm8, %v4324_v59, %v10841_v8  ;;  %v4517_v32 = vsel %vm4498_vm14, %v4468_v27, %v3853_v11  ;;  %v13153_v11 = vld [vmem:[#allocation151_spill] sm:$0xff]  ;;  %v13156_v59 = vld [vmem:[#allocation104_spill] sm:$0xff] }
 0x651   : > { %3874 = vrot.lane.b32.xlu1 %v10928_v37, %s5822_s14  ;;  %v3855_v39 = vpop.permute.xlu0 %3854  ;;  %v4420_v16 = vsel %vm2197_vm10, %v4372_v54, %v10869_v48 }
 0x652   : > { %v4469_v1 = vsel %vm4449_vm13, %v4420_v16, %v3708_v29  ;;  %v13152_v29 = vld [vmem:[#allocation318_spill] sm:$0xff] }
 0x653   : > { %v10932_v4 = vpop.permute.xlu1 %3414  ;;  %4017 = vrot.lane.b32.xlu0 %v13141_v14, %s5823_s29  ;;  %v4518_v8 = vsel %vm4498_vm14, %v4469_v1, %v3855_v39  ;;  %v4277_v17 = vsel %vm1903_vm2, %v13152_v29, %v13151_v25  ;;  %v13154_v39 = vld [vmem:[#allocation212_spill] sm:$0xff]  ;;  %v13157_v16 = vld [vmem:[#allocation274_spill] sm:$0xff] }
 0x654   : > { %v13158_v1 = vld [vmem:[#allocation142_spill] sm:$0xff] }
 0x655   : > { %4019 = vrot.lane.b32.xlu1 %v13142_v42, %s5823_s29  ;;  %v10938_v3 = vpop.permute.xlu0 %3416  ;;  %v13162_v29 = vld [vmem:[#allocation154_spill] sm:$0xff] }
 0x657   : > { %v3857_v57 = vpop.permute.xlu1 %3856  ;;  %3436 = vrot.lane.b32.xlu0 %v10928_v37, %s5818_s23 }
 0x659   : > { %3579 = vrot.lane.b32.xlu1 %v13141_v14, %s5820_s8  ;;  %v4000_v60 = vpop.permute.xlu0 %3999  ;;  %v4325_v14 = vsel %vm2001_vm6, %v4277_v17, %v13154_v39 }
 0x65a   : > { %v4566_v6 = vsel %vm4547_vm15, %v4517_v32, %v4000_v60 }
 0x65b   : > { %v4002_v43 = vpop.permute.xlu1 %4001  ;;  %3581 = vrot.lane.b32.xlu0 %v13142_v42, %s5820_s8  ;;  %v4373_v42 = vsel %vm2099_vm8, %v4325_v14, %v10851_v35 }
 0x65c   : > { %v4567_v28 = vsel %vm4547_vm15, %v4518_v8, %v4002_v43  ;;  %v4421_v7 = vsel %vm2197_vm10, %v4373_v42, %v10898_v46  ;;  %v13159_v8 = vld [vmem:[#allocation152_spill] sm:$0xff] }
 0x65d   : > { %4021 = vrot.lane.b32.xlu1 %v13143_v45, %s5823_s29  ;;  %v10948_v62 = vpop.permute.xlu0 %3418  ;;  %v4470_v50 = vsel %vm4449_vm13, %v4421_v7, %v3710_v56 }
 0x65e   : > { %v4519_v35 = vsel %vm4498_vm14, %v4470_v50, %v3857_v57 }
 0x65f   : > { %v10952_v26 = vpop.permute.xlu1 %3561  ;;  %4167 = vrot.lane.b32.xlu0 %v13145_v58, %s5824_s21 }
 0x661   : > { %4169 = vrot.lane.b32.xlu1 %v13149_v18, %s5824_s21  ;;  %v10965_v53 = vpop.permute.xlu0 %3563 }
 0x663   : > { %v4004_v55 = vpop.permute.xlu1 %4003  ;;  %3583 = vrot.lane.b32.xlu0 %v13143_v45, %s5820_s8  ;;  %v11003_v45 = vld [vmem:[#allocation3 + $0x180] sm:$0xff] }
 0x665   : > { %3729 = vrot.lane.b32.xlu1 %v13145_v58, %s5821_s19  ;;  %v4150_v22 = vpop.permute.xlu0 %4149  ;;  %v4568_v58 = vsel %vm4547_vm15, %v4519_v35, %v4004_v55  ;;  %v13164_v35 = vld [vmem:[#allocation147_spill] sm:$0xff] }
 0x666   : > { %v4615_v23 = vsel %vm4596_vm0, %v4566_v6, %v4150_v22  ;;  %v4278_v6 = vsel %vm1903_vm2, %v10504_v52, %v13158_v1  ;;  %v13163_v52 = vld [vmem:[#allocation179_spill] sm:$0xff] }
 0x667   : > { %v4152_v31 = vpop.permute.xlu1 %4151  ;;  %3731 = vrot.lane.b32.xlu0 %v13149_v18, %s5821_s19  ;;  %v4723_v30 = vrot.slane %v4615_v23, 7  ;;  %v13160_v23 = vld [vmem:[#allocation312_spill] sm:$0xff] }
 0x668   : > { %v4616_v48 = vsel %vm4596_vm0, %v4567_v28, %v4152_v31  ;;  %v4326_v28 = vsel %vm2001_vm6, %v4278_v6, %v13160_v23  ;;  %v13161_v31 = vld [vmem:[#allocation144_spill] sm:$0xff] }
 0x669   : > { %v4724_v40 = vrot.slane %v4616_v48, 7  ;;  %4171 = vrot.lane.b32.xlu1 %v13153_v11, %s5824_s21  ;;  %v10994_v21 = vpop.permute.xlu0 %3565  ;;  %v4279_v48 = vsel %vm1903_vm2, %v10508_v61, %v13161_v31  ;;  %v4374_v25 = vsel %vm2099_vm8, %v4326_v28, %v10932_v4  ;;  %v11121_v31 = vld [vmem:[#allocation3 + $0x1b0] sm:$0xff] }
 0x66b   : > { %v3712_v60 = vpop.permute.xlu1 %3711  ;;  %3733 = vrot.lane.b32.xlu0 %v13153_v11, %s5821_s19  ;;  %v4725_v43 = vsel %vm2294_vm11, %v4723_v30, %v4724_v40  ;;  %v4327_v30 = vsel %vm2001_vm6, %v4279_v48, %v13163_v52  ;;  %v13168_v52 = vld [vmem:[#allocation108_spill] sm:$0xff] }
 0x66c   : > { %5580 = vmatprep.mubr.msk.f32.mxu1 %vm4789_vm4, %v4725_v43  ;;  %v4375_v11 = vsel %vm2099_vm8, %v4327_v30, %v10938_v3 }
 0x66d   : > { %3876 = vrot.lane.b32.xlu1 %v11003_v45, %s5822_s14  ;;  %v3714_v15 = vpop.permute.xlu0 %3713  ;;  %v4423_v4 = vsel %vm2197_vm10, %v4375_v11, %v10965_v53 }
 0x66e   : > { %v4472_v42 = vsel %vm4449_vm13, %v4423_v4, %v3714_v15  ;;  %v4280_v15 = vsel %vm1903_vm2, %v10536_v51, %v13164_v35  ;;  %v11100_v51 = vld [vmem:[#allocation3 + $0x1a0] sm:$0xff]  ;;  %v13174_v35 = vld [vmem:[#allocation157_spill] sm:$0xff] }
 0x66f   : > { %v4154_v5 = vpop.permute.xlu1 %4153  ;;  %3878 = vrot.lane.b32.xlu0 %v11013_v20, %s5822_s14 }
 0x670   : > { %v4617_v46 = vsel %vm4596_vm0, %v4568_v58, %v4154_v5 }
 0x671   : > { %v4726_v63 = vrot.slane %v4617_v46, 7  ;;  %3438 = vrot.lane.b32.xlu1 %v11003_v45, %s5818_s23  ;;  %v3716_v56 = vpop.permute.xlu0 %3715  ;;  %v13165_v46 = vld [vmem:[#allocation204_spill] sm:$0xff] }
 0x673   : > { %v3859_v13 = vpop.permute.xlu1 %3858  ;;  %3440 = vrot.lane.b32.xlu0 %v11013_v20, %s5818_s23  ;;  %v4727_v57 = vsel %vm2294_vm11, %v4724_v40, %v4726_v63  ;;  %v4422_v40 = vsel %vm2197_vm10, %v4374_v25, %v10952_v26 }
 0x674   : > { %5581 = vmatmul.mubr.msk.f32.gmra.mxu1 %vm4789_vm4, %v4727_v57  ;;  %v4471_v39 = vsel %vm4449_vm13, %v4422_v40, %v3712_v60 }
 0x675   : > { %3880 = vrot.lane.b32.xlu1 %v11024_v44, %s5822_s14  ;;  %v3861_v41 = vpop.permute.xlu0 %3860  ;;  %v4520_v14 = vsel %vm4498_vm14, %v4471_v39, %v3859_v13  ;;  %v13166_v13 = vld [vmem:[#allocation262_spill] sm:$0xff] }
 0x676   : > { %v4521_v3 = vsel %vm4498_vm14, %v4472_v42, %v3861_v41  ;;  %v4328_v57 = vsel %vm2001_vm6, %v4280_v15, %v13166_v13 }
 0x677   : > { %v11028_v18 = vpop.permute.xlu1 %3420  ;;  %4023 = vrot.lane.b32.xlu0 %v13155_v0, %s5823_s29  ;;  %v4376_v41 = vsel %vm2099_vm8, %v4328_v57, %v10948_v62 }
 0x679   : > { %4025 = vrot.lane.b32.xlu1 %v13156_v59, %s5823_s29  ;;  %v11034_v2 = vpop.permute.xlu0 %3422 }
 0x67b   : > { %v3863_v54 = vpop.permute.xlu1 %3862  ;;  %3442 = vrot.lane.b32.xlu0 %v11024_v44, %s5818_s23 }
 0x67d   : > { %3585 = vrot.lane.b32.xlu1 %v13155_v0, %s5820_s8  ;;  %v4006_v27 = vpop.permute.xlu0 %4005 }
 0x67e   : > { %v4569_v43 = vsel %vm4547_vm15, %v4520_v14, %v4006_v27  ;;  %v4424_v27 = vsel %vm2197_vm10, %v4376_v41, %v10994_v21  ;;  %v13170_v14 = vld [vmem:[#allocation148_spill] sm:$0xff] }
 0x67f   : > { %v4008_v55 = vpop.permute.xlu1 %4007  ;;  %3587 = vrot.lane.b32.xlu0 %v13156_v59, %s5820_s8  ;;  %v4281_v42 = vsel %vm1903_vm2, %v10598_v33, %v13170_v14  ;;  %v13175_v33 = vld [vmem:[#allocation180_spill] sm:$0xff] }
 0x680   : > { %v4570_v7 = vsel %vm4547_vm15, %v4521_v3, %v4008_v55  ;;  %v4473_v55 = vsel %vm4449_vm13, %v4424_v27, %v3716_v56  ;;  %v13172_v3 = vld [vmem:[#allocation49_spill] sm:$0xff] }
 0x681   : > { %4027 = vrot.lane.b32.xlu1 %v13157_v16, %s5823_s29  ;;  %v11044_v32 = vpop.permute.xlu0 %3424  ;;  %v4522_v62 = vsel %vm4498_vm14, %v4473_v55, %v3863_v54 }
 0x683   : > { %v11049_v22 = vpop.permute.xlu1 %3567  ;;  %4173 = vrot.lane.b32.xlu0 %v13159_v8, %s5824_s21 }
 0x685   : > { %4175 = vrot.lane.b32.xlu1 %v13162_v29, %s5824_s21  ;;  %v11062_v17 = vpop.permute.xlu0 %3569 }
 0x687   : > { %v4010_v61 = vpop.permute.xlu1 %4009  ;;  %3589 = vrot.lane.b32.xlu0 %v13157_v16, %s5820_s8 }
 0x688   : > { %v4571_v1 = vsel %vm4547_vm15, %v4522_v62, %v4010_v61  ;;  %v13169_v61 = vld [vmem:[#allocation277_spill] sm:$0xff] }
 0x689   : > { %3735 = vrot.lane.b32.xlu1 %v13159_v8, %s5821_s19  ;;  %v4156_v26 = vpop.permute.xlu0 %4155  ;;  %v11110_v8 = vld [vmem:[#allocation3 + $0x1a8] sm:$0xff]  ;;  %v13176_v62 = vld [vmem:[#allocation153_spill] sm:$0xff] }
 0x68a   : > { %v4618_v60 = vsel %vm4596_vm0, %v4569_v43, %v4156_v26  ;;  %v13171_v26 = vld [vmem:[#allocation156_spill] sm:$0xff] }
 0x68b   : > { %v4158_v50 = vpop.permute.xlu1 %4157  ;;  %3737 = vrot.lane.b32.xlu0 %v13162_v29, %s5821_s19  ;;  %v4728_v58 = vrot.slane %v4618_v60, 7  ;;  %v13167_v29 = vld [vmem:[#allocation107_spill] sm:$0xff]  ;;  %v4329_v60 = vsel %vm2001_vm6, %v4281_v42, %v13172_v3 }
 0x68c   : > { %v4619_v53 = vsel %vm4596_vm0, %v4570_v7, %v4158_v50  ;;  %v13173_v7 = vld [vmem:[#allocation150_spill] sm:$0xff] }
 0x68d   : > { %v4729_v5 = vrot.slane %v4619_v53, 7  ;;  %4177 = vrot.lane.b32.xlu1 %v13165_v46, %s5824_s21  ;;  %v11091_v63 = vpop.permute.xlu0 %3571  ;;  %v4282_v50 = vsel %vm1903_vm2, %v10617_v49, %v13173_v7  ;;  %v4377_v53 = vsel %vm2099_vm8, %v4329_v60, %v11028_v18  ;;  %v11218_v7 = vld [vmem:[#allocation3 + $0x1d0] sm:$0xff] }
 0x68f   : > { %v3718_v0 = vpop.permute.xlu1 %3717  ;;  %3739 = vrot.lane.b32.xlu0 %v13165_v46, %s5821_s19  ;;  %v4730_v59 = vsel %vm2294_vm11, %v4728_v58, %v4729_v5  ;;  %v4330_v58 = vsel %vm2001_vm6, %v4282_v50, %v13175_v33  ;;  %v13180_v33 = vld [vmem:[#allocation112_spill] sm:$0xff] }
 0x690   : > { %5583 = vmatprep.mubr.msk.f32.mxu1 %vm4789_vm4, %v4730_v59  ;;  %v4378_v46 = vsel %vm2099_vm8, %v4330_v58, %v11034_v2 }
 0x691   : > { %3882 = vrot.lane.b32.xlu1 %v11100_v51, %s5822_s14  ;;  %v3720_v16 = vpop.permute.xlu0 %3719  ;;  %v4426_v18 = vsel %vm2197_vm10, %v4378_v46, %v11062_v17 }
 0x692   : > { %v4475_v41 = vsel %vm4449_vm13, %v4426_v18, %v3720_v16  ;;  %v4283_v16 = vsel %vm1903_vm2, %v10636_v38, %v13176_v62  ;;  %v11197_v38 = vld [vmem:[#allocation3 + $0x1c0] sm:$0xff]  ;;  %v13186_v62 = vld [vmem:[#allocation173_spill] sm:$0xff] }
 0x693   : > { %v4160_v6 = vpop.permute.xlu1 %4159  ;;  %3884 = vrot.lane.b32.xlu0 %v11110_v8, %s5822_s14 }
 0x694   : > { %v4620_v21 = vsel %vm4596_vm0, %v4571_v1, %v4160_v6 }
 0x695   : > { %v4731_v23 = vrot.slane %v4620_v21, 7  ;;  %3444 = vrot.lane.b32.xlu1 %v11100_v51, %s5818_s23  ;;  %v3722_v56 = vpop.permute.xlu0 %3721  ;;  %v13177_v21 = vld [vmem:[#allocation205_spill] sm:$0xff] }
 0x697   : > { %v3865_v28 = vpop.permute.xlu1 %3864  ;;  %3446 = vrot.lane.b32.xlu0 %v11110_v8, %s5818_s23  ;;  %v4732_v54 = vsel %vm2294_vm11, %v4729_v5, %v4731_v23  ;;  %v4425_v5 = vsel %vm2197_vm10, %v4377_v53, %v11049_v22 }
 0x698   : > { %5584 = vmatmul.mubr.msk.f32.gmra.mxu1 %vm4789_vm4, %v4732_v54  ;;  %v4474_v13 = vsel %vm4449_vm13, %v4425_v5, %v3718_v0 }
 0x699   : > { %3886 = vrot.lane.b32.xlu1 %v11121_v31, %s5822_s14  ;;  %v3867_v48 = vpop.permute.xlu0 %3866  ;;  %v4523_v57 = vsel %vm4498_vm14, %v4474_v13, %v3865_v28  ;;  %v13178_v28 = vld [vmem:[#allocation213_spill] sm:$0xff] }
 0x69a   : > { %v4524_v2 = vsel %vm4498_vm14, %v4475_v41, %v3867_v48  ;;  %v4331_v54 = vsel %vm2001_vm6, %v4283_v16, %v13178_v28 }
 0x69b   : > { %v11125_v25 = vpop.permute.xlu1 %3426  ;;  %4029 = vrot.lane.b32.xlu0 %v13167_v29, %s5823_s29  ;;  %v4379_v48 = vsel %vm2099_vm8, %v4331_v54, %v11044_v32 }
 0x69d   : > { %4031 = vrot.lane.b32.xlu1 %v13168_v52, %s5823_s29  ;;  %v11131_v30 = vpop.permute.xlu0 %3428 }
 0x69f   : > { %v3869_v40 = vpop.permute.xlu1 %3868  ;;  %3448 = vrot.lane.b32.xlu0 %v11121_v31, %s5818_s23 }
 0x6a1   : > { %3591 = vrot.lane.b32.xlu1 %v13167_v29, %s5820_s8  ;;  %v4012_v11 = vpop.permute.xlu0 %4011 }
 0x6a2   : > { %v4572_v59 = vsel %vm4547_vm15, %v4523_v57, %v4012_v11  ;;  %v4427_v11 = vsel %vm2197_vm10, %v4379_v48, %v11091_v63  ;;  %v13182_v57 = vld [vmem:[#allocation170_spill] sm:$0xff] }
 0x6a3   : > { %v4014_v39 = vpop.permute.xlu1 %4013  ;;  %3593 = vrot.lane.b32.xlu0 %v13168_v52, %s5820_s8  ;;  %v4284_v41 = vsel %vm1903_vm2, %v10707_v19, %v13182_v57  ;;  %v13187_v19 = vld [vmem:[#allocation263_spill] sm:$0xff] }
 0x6a4   : > { %v4573_v27 = vsel %vm4547_vm15, %v4524_v2, %v4014_v39  ;;  %v4476_v39 = vsel %vm4449_vm13, %v4427_v11, %v3722_v56  ;;  %v13184_v2 = vld [vmem:[#allocation313_spill] sm:$0xff] }
 0x6a5   : > { %4033 = vrot.lane.b32.xlu1 %v13169_v61, %s5823_s29  ;;  %v11141_v4 = vpop.permute.xlu0 %3430  ;;  %v4525_v32 = vsel %vm4498_vm14, %v4476_v39, %v3869_v40 }
 0x6a7   : > { %v11146_v43 = vpop.permute.xlu1 %3573  ;;  %4179 = vrot.lane.b32.xlu0 %v13171_v26, %s5824_s21 }
 0x6a9   : > { %4181 = vrot.lane.b32.xlu1 %v13174_v35, %s5824_s21  ;;  %v11159_v15 = vpop.permute.xlu0 %3575 }
 0x6ab   : > { %v4016_v49 = vpop.permute.xlu1 %4015  ;;  %3595 = vrot.lane.b32.xlu0 %v13169_v61, %s5820_s8 }
 0x6ac   : > { %v4574_v14 = vsel %vm4547_vm15, %v4525_v32, %v4016_v49  ;;  %v13181_v49 = vld [vmem:[#allocation111_spill] sm:$0xff] }
 0x6ad   : > { %3741 = vrot.lane.b32.xlu1 %v13171_v26, %s5821_s19  ;;  %v4162_v22 = vpop.permute.xlu0 %4161  ;;  %v11207_v26 = vld [vmem:[#allocation3 + $0x1c8] sm:$0xff] }
 0x6ae   : > { %v4621_v0 = vsel %vm4596_vm0, %v4572_v59, %v4162_v22  ;;  %v13183_v22 = vld [vmem:[#allocation159_spill] sm:$0xff] }
 0x6af   : > { %v4164_v55 = vpop.permute.xlu1 %4163  ;;  %3743 = vrot.lane.b32.xlu0 %v13174_v35, %s5821_s19  ;;  %v4733_v1 = vrot.slane %v4621_v0, 7  ;;  %v13179_v35 = vld [vmem:[#allocation110_spill] sm:$0xff]  ;;  %v4332_v0 = vsel %vm2001_vm6, %v4284_v41, %v13184_v2  ;;  %v13188_v32 = vld [vmem:[#allocation171_spill] sm:$0xff] }
 0x6b0   : > { %v4622_v17 = vsel %vm4596_vm0, %v4573_v27, %v4164_v55  ;;  %v13185_v27 = vld [vmem:[#allocation155_spill] sm:$0xff] }
 0x6b1   : > { %v4734_v6 = vrot.slane %v4622_v17, 7  ;;  %4183 = vrot.lane.b32.xlu1 %v13177_v21, %s5824_s21  ;;  %v11188_v23 = vpop.permute.xlu0 %3577  ;;  %v4285_v55 = vsel %vm1903_vm2, %v10719_v34, %v13185_v27  ;;  %v4380_v17 = vsel %vm2099_vm8, %v4332_v0, %v11125_v25  ;;  %v11315_v27 = vld [vmem:[#allocation3 + $0x1f0] sm:$0xff] }
 0x6b3   : > { %v3724_v29 = vpop.permute.xlu1 %3723  ;;  %3745 = vrot.lane.b32.xlu0 %v13177_v21, %s5821_s19  ;;  %v4735_v52 = vsel %vm2294_vm11, %v4733_v1, %v4734_v6  ;;  %v4333_v1 = vsel %vm2001_vm6, %v4285_v55, %v13187_v19  ;;  %v13192_v19 = vld [vmem:[#allocation114_spill] sm:$0xff] }
 0x6b4   : > { %5586 = vmatprep.mubr.msk.f32.mxu1 %vm4789_vm4, %v4735_v52  ;;  %v4381_v21 = vsel %vm2099_vm8, %v4333_v1, %v11131_v30 }
 0x6b5   : > { %3888 = vrot.lane.b32.xlu1 %v11197_v38, %s5822_s14  ;;  %v3726_v61 = vpop.permute.xlu0 %3725  ;;  %v4429_v25 = vsel %vm2197_vm10, %v4381_v21, %v11159_v15 }
 0x6b6   : > { %v4478_v48 = vsel %vm4449_vm13, %v4429_v25, %v3726_v61  ;;  %v4286_v61 = vsel %vm1903_vm2, %v10738_v9, %v13188_v32  ;;  %v11294_v9 = vld [vmem:[#allocation3 + $0x1e0] sm:$0xff] }
 0x6b7   : > { %v4166_v42 = vpop.permute.xlu1 %4165  ;;  %3890 = vrot.lane.b32.xlu0 %v11207_v26, %s5822_s14  ;;  %v13198_v32 = vld [vmem:[#allocation175_spill] sm:$0xff] }
 0x6b8   : > { %v4623_v63 = vsel %vm4596_vm0, %v4574_v14, %v4166_v42 }
 0x6b9   : > { %v4736_v3 = vrot.slane %v4623_v63, 7  ;;  %3450 = vrot.lane.b32.xlu1 %v11197_v38, %s5818_s23  ;;  %v3728_v56 = vpop.permute.xlu0 %3727  ;;  %v13189_v63 = vld [vmem:[#allocation174_spill] sm:$0xff] }
 0x6bb   : > { %v3871_v60 = vpop.permute.xlu1 %3870  ;;  %3452 = vrot.lane.b32.xlu0 %v11207_v26, %s5818_s23  ;;  %v4737_v40 = vsel %vm2294_vm11, %v4734_v6, %v4736_v3  ;;  %v4428_v6 = vsel %vm2197_vm10, %v4380_v17, %v11146_v43 }
 0x6bc   : > { %5587 = vmatmul.mubr.msk.f32.gmra.mxu1 %vm4789_vm4, %v4737_v40  ;;  %v4477_v28 = vsel %vm4449_vm13, %v4428_v6, %v3724_v29 }
 0x6bd   : > { %3892 = vrot.lane.b32.xlu1 %v11218_v7, %s5822_s14  ;;  %v3873_v50 = vpop.permute.xlu0 %3872  ;;  %v4526_v54 = vsel %vm4498_vm14, %v4477_v28, %v3871_v60  ;;  %v13190_v60 = vld [vmem:[#allocation51_spill] sm:$0xff] }
 0x6be   : > { %v4527_v30 = vsel %vm4498_vm14, %v4478_v48, %v3873_v50  ;;  %v4334_v40 = vsel %vm2001_vm6, %v4286_v61, %v13190_v60 }
 0x6bf   : > { %v11222_v53 = vpop.permute.xlu1 %3432  ;;  %4035 = vrot.lane.b32.xlu0 %v13179_v35, %s5823_s29  ;;  %v4382_v50 = vsel %vm2099_vm8, %v4334_v40, %v11141_v4 }
 0x6c1   : > { %4037 = vrot.lane.b32.xlu1 %v13180_v33, %s5823_s29  ;;  %v11228_v58 = vpop.permute.xlu0 %3434 }
 0x6c3   : > { %v3875_v5 = vpop.permute.xlu1 %3874  ;;  %3454 = vrot.lane.b32.xlu0 %v11218_v7, %s5818_s23 }
 0x6c5   : > { %3597 = vrot.lane.b32.xlu1 %v13179_v35, %s5820_s8  ;;  %v4018_v46 = vpop.permute.xlu0 %4017 }
 0x6c6   : > { %v4575_v52 = vsel %vm4547_vm15, %v4526_v54, %v4018_v46  ;;  %v4430_v46 = vsel %vm2197_vm10, %v4382_v50, %v11188_v23  ;;  %v13194_v54 = vld [vmem:[#allocation251_spill] sm:$0xff] }
 0x6c7   : > { %v4020_v13 = vpop.permute.xlu1 %4019  ;;  %3599 = vrot.lane.b32.xlu0 %v13180_v33, %s5820_s8  ;;  %v4287_v48 = vsel %vm1903_vm2, %v10810_v47, %v13194_v54  ;;  %v13199_v47 = vld [vmem:[#allocation214_spill] sm:$0xff] }
 0x6c8   : > { %v4576_v11 = vsel %vm4547_vm15, %v4527_v30, %v4020_v13  ;;  %v4479_v13 = vsel %vm4449_vm13, %v4430_v46, %v3728_v56  ;;  %v13196_v30 = vld [vmem:[#allocation181_spill] sm:$0xff] }
 0x6c9   : > { %4039 = vrot.lane.b32.xlu1 %v13181_v49, %s5823_s29  ;;  %v11238_v18 = vpop.permute.xlu0 %3436  ;;  %v4528_v4 = vsel %vm4498_vm14, %v4479_v13, %v3875_v5 }
 0x6cb   : > { %v11243_v59 = vpop.permute.xlu1 %3579  ;;  %4185 = vrot.lane.b32.xlu0 %v13183_v22, %s5824_s21 }
 0x6cd   : > { %4187 = vrot.lane.b32.xlu1 %v13186_v62, %s5824_s21  ;;  %v11256_v16 = vpop.permute.xlu0 %3581 }
 0x6cf   : > { %v4022_v34 = vpop.permute.xlu1 %4021  ;;  %3601 = vrot.lane.b32.xlu0 %v13181_v49, %s5820_s8 }
 0x6d0   : > { %v4577_v57 = vsel %vm4547_vm15, %v4528_v4, %v4022_v34  ;;  %v13193_v34 = vld [vmem:[#allocation113_spill] sm:$0xff]  ;;  %v13200_v4 = vld [vmem:[#allocation172_spill] sm:$0xff] }
 0x6d1   : > { %3747 = vrot.lane.b32.xlu1 %v13183_v22, %s5821_s19  ;;  %v4168_v43 = vpop.permute.xlu0 %4167  ;;  %v11304_v22 = vld [vmem:[#allocation3 + $0x1e8] sm:$0xff] }
 0x6d2   : > { %v4624_v29 = vsel %vm4596_vm0, %v4575_v52, %v4168_v43  ;;  %v13195_v43 = vld [vmem:[#allocation207_spill] sm:$0xff] }
 0x6d3   : > { %v4170_v39 = vpop.permute.xlu1 %4169  ;;  %3749 = vrot.lane.b32.xlu0 %v13186_v62, %s5821_s19  ;;  %v4738_v14 = vrot.slane %v4624_v29, 7  ;;  %v13191_v62 = vld [vmem:[#allocation282_spill] sm:$0xff]  ;;  %v4335_v29 = vsel %vm2001_vm6, %v4287_v48, %v13196_v30  ;;  %v2883_v48 = vld [vmem:[#allocation3 + $0x208] sm:$0xff] }
 0x6d4   : > { %v4625_v15 = vsel %vm4596_vm0, %v4576_v11, %v4170_v39  ;;  %v13197_v11 = vld [vmem:[#allocation158_spill] sm:$0xff] }
 0x6d5   : > { %v4739_v42 = vrot.slane %v4625_v15, 7  ;;  %4189 = vrot.lane.b32.xlu1 %v13189_v63, %s5824_s21  ;;  %v11285_v3 = vpop.permute.xlu0 %3583  ;;  %v4288_v39 = vsel %vm1903_vm2, %v10820_v24, %v13197_v11  ;;  %v4383_v15 = vsel %vm2099_vm8, %v4335_v29, %v11222_v53 }
 0x6d7   : > { %v3730_v35 = vpop.permute.xlu1 %3729  ;;  %3751 = vrot.lane.b32.xlu0 %v13189_v63, %s5821_s19  ;;  %v4740_v33 = vsel %vm2294_vm11, %v4738_v14, %v4739_v42  ;;  %v4336_v14 = vsel %vm2001_vm6, %v4288_v39, %v13199_v47  ;;  %v2884_v39 = vld [vmem:[#allocation3 + $0x210] sm:$0xff] }
 0x6d8   : > { %5589 = vmatprep.mubr.msk.f32.mxu1 %vm4789_vm4, %v4740_v33  ;;  %v4384_v63 = vsel %vm2099_vm8, %v4336_v14, %v11228_v58 }
 0x6d9   : > { %3894 = vrot.lane.b32.xlu1 %v11294_v9, %s5822_s14  ;;  %v3732_v49 = vpop.permute.xlu0 %3731  ;;  %v4432_v53 = vsel %vm2197_vm10, %v4384_v63, %v11256_v16 }
 0x6da   : > { %v4481_v50 = vsel %vm4449_vm13, %v4432_v53, %v3732_v49  ;;  %v4289_v49 = vsel %vm1903_vm2, %v10831_v36, %v13200_v4  ;;  %v3664_v53 = vrot.slane %v2883_v48, 2 }
 0x6db   : > { %v4172_v41 = vpop.permute.xlu1 %4171  ;;  %3896 = vrot.lane.b32.xlu0 %v11304_v22, %s5822_s14 }
 0x6dc   : > { %v4626_v23 = vsel %vm4596_vm0, %v4577_v57, %v4172_v41 }
 0x6dd   : > { %v4741_v2 = vrot.slane %v4626_v23, 7  ;;  %3456 = vrot.lane.b32.xlu1 %v11294_v9, %s5818_s23  ;;  %v3734_v56 = vpop.permute.xlu0 %3733  ;;  %v13201_v23 = vld [vmem:[#allocation256_spill] sm:$0xff] }
 0x6df   : > { %v3877_v0 = vpop.permute.xlu1 %3876  ;;  %3458 = vrot.lane.b32.xlu0 %v11304_v22, %s5818_s23  ;;  %v4742_v5 = vsel %vm2294_vm11, %v4739_v42, %v4741_v2  ;;  %v4431_v42 = vsel %vm2197_vm10, %v4383_v15, %v11243_v59 }
 0x6e0   : > { %5590 = vmatmul.mubr.msk.f32.gmra.mxu1 %vm4789_vm4, %v4742_v5  ;;  %v4480_v60 = vsel %vm4449_vm13, %v4431_v42, %v3730_v35 }
 0x6e1   : > { %3898 = vrot.lane.b32.xlu1 %v11315_v27, %s5822_s14  ;;  %v3879_v55 = vpop.permute.xlu0 %3878  ;;  %v4529_v40 = vsel %vm4498_vm14, %v4480_v60, %v3877_v0  ;;  %v13202_v0 = vld [vmem:[#allocation314_spill] sm:$0xff] }
 0x6e2   : > { %v4530_v58 = vsel %vm4498_vm14, %v4481_v50, %v3879_v55  ;;  %v4337_v5 = vsel %vm2001_vm6, %v4289_v49, %v13202_v0  ;;  %v2882_v55 = vld [vmem:[#allocation3 + $0x200] sm:$0xff]  ;;  %v3665_v50 = vrot.slane %v2884_v39, 2 }
 0x6e3   : > { %v11319_v17 = vpop.permute.xlu1 %3438  ;;  %4041 = vrot.lane.b32.xlu0 %v13191_v62, %s5823_s29 }
 0x6e5   : > { %4043 = vrot.lane.b32.xlu1 %v13192_v19, %s5823_s29  ;;  %v11325_v1 = vpop.permute.xlu0 %3440 }
 0x6e7   : > { %v3881_v6 = vpop.permute.xlu1 %3880  ;;  %3460 = vrot.lane.b32.xlu0 %v11315_v27, %s5818_s23 }
 0x6e9   : > { %3603 = vrot.lane.b32.xlu1 %v13191_v62, %s5820_s8  ;;  %v4024_v21 = vpop.permute.xlu0 %4023  ;;  %v4385_v62 = vsel %vm2099_vm8, %v4337_v5, %v11238_v18 }
 0x6ea   : > { %v4578_v33 = vsel %vm4547_vm15, %v4529_v40, %v4024_v21  ;;  %v4433_v21 = vsel %vm2197_vm10, %v4385_v62, %v11285_v3 }
 0x6eb   : > { %v4026_v28 = vpop.permute.xlu1 %4025  ;;  %3605 = vrot.lane.b32.xlu0 %v13192_v19, %s5820_s8 }
 0x6ec   : > { %v4579_v46 = vsel %vm4547_vm15, %v4530_v58, %v4026_v28  ;;  %v4482_v28 = vsel %vm4449_vm13, %v4433_v21, %v3734_v56 }
 0x6ed   : > { %4045 = vrot.lane.b32.xlu1 %v13193_v34, %s5823_s29  ;;  %v11335_v25 = vpop.permute.xlu0 %3442  ;;  %v4531_v54 = vsel %vm4498_vm14, %v4482_v28, %v3881_v6  ;;  %v3516_v6 = vrot.slane %v2883_v48, 1 }
 0x6ef   : > { %v11340_v52 = vpop.permute.xlu1 %3585  ;;  %4191 = vrot.lane.b32.xlu0 %v13195_v43, %s5824_s21 }
 0x6f1   : > { %4193 = vrot.lane.b32.xlu1 %v13198_v32, %s5824_s21  ;;  %v11353_v61 = vpop.permute.xlu0 %3587 }
 0x6f3   : > { %v4028_v24 = vpop.permute.xlu1 %4027  ;;  %3607 = vrot.lane.b32.xlu0 %v13193_v34, %s5820_s8 }
 0x6f4   : > { %v4580_v18 = vsel %vm4547_vm15, %v4531_v54, %v4028_v24 }
 0x6f5   : > { %3753 = vrot.lane.b32.xlu1 %v13195_v43, %s5821_s19  ;;  %v4174_v59 = vpop.permute.xlu0 %4173 }
 0x6f6   : > { %v4627_v35 = vsel %vm4596_vm0, %v4578_v33, %v4174_v59  ;;  %v13203_v33 = vld [vmem:[#allocation252_spill] sm:$0xff] }
 0x6f7   : > { %v4176_v13 = vpop.permute.xlu1 %4175  ;;  %3755 = vrot.lane.b32.xlu0 %v13198_v32, %s5821_s19  ;;  %v4743_v57 = vrot.slane %v4627_v35, 7  ;;  %v3517_v32 = vrot.slane %v2884_v39, 1  ;;  %v4290_v59 = vsel %vm1903_vm2, %v10907_v10, %v13203_v33  ;;  %v13204_v35 = vld [vmem:[#allocation264_spill] sm:$0xff]  ;;  %v2885_v10 = vld [vmem:[#allocation3 + $0x218] sm:$0xff] }
 0x6f8   : > { %v4628_v16 = vsel %vm4596_vm0, %v4579_v46, %v4176_v13  ;;  %v4338_v46 = vsel %vm2001_vm6, %v4290_v59, %v13204_v35  ;;  %v3666_v13 = vsel %vm727_vm3, %v3664_v53, %v3665_v50 }
 0x6f9   : > { %v4744_v41 = vrot.slane %v4628_v16, 7  ;;  %4195 = vrot.lane.b32.xlu1 %v13201_v23, %s5824_s21  ;;  %v11382_v2 = vpop.permute.xlu0 %3589  ;;  %v3518_v14 = vsel %vm518_vm1, %v3516_v6, %v3517_v32  ;;  %v13205_v16 = vld [vmem:[#allocation206_spill] sm:$0xff]  ;;  %v4386_v49 = vsel %vm2099_vm8, %v4338_v46, %v11319_v17 }
 0x6fa   : > { %v4291_v4 = vsel %vm1903_vm2, %v10917_v12, %v13205_v16  ;;  %v4434_v0 = vsel %vm2197_vm10, %v4386_v49, %v11340_v52  ;;  %v2889_v49 = vld [vmem:[#allocation3 + $0x238] sm:$0xff] }
 0x6fb   : > { %v3736_v19 = vpop.permute.xlu1 %3735  ;;  %3757 = vrot.lane.b32.xlu0 %v13201_v23, %s5821_s19  ;;  %v4745_v36 = vsel %vm2294_vm11, %v4743_v57, %v4744_v41 }
 0x6fc   : > { %5592 = vmatprep.mubr.msk.f32.mxu1 %vm4789_vm4, %v4745_v36  ;;  %v3667_v36 = vrot.slane %v2885_v10, 2 }
 0x6fd   : > { %3900 = vrot.lane.b32.xlu1 %v2882_v55, %s5822_s14  ;;  %v3738_v34 = vpop.permute.xlu0 %3737 }
 0x6ff   : > { %v4178_v43 = vpop.permute.xlu1 %4177  ;;  %3902 = vrot.lane.b32.xlu0 %v2883_v48, %s5822_s14 }
 0x700   : > { %v4629_v30 = vsel %vm4596_vm0, %v4580_v18, %v4178_v43  ;;  %v3668_v18 = vsel %vm727_vm3, %v3665_v50, %v3667_v36  ;;  %v13207_v43 = vld [vmem:[#allocation254_spill] sm:$0xff] }
 0x701   : > { %v4746_v29 = vrot.slane %v4629_v30, 7  ;;  %3462 = vrot.lane.b32.xlu1 %v2882_v55, %s5818_s23  ;;  %v11401_v3 = vpop.permute.xlu0 %3739  ;;  %v4483_v55 = vsel %vm4449_vm13, %v4434_v0, %v3736_v19  ;;  %v4111_v0 = vrot.slane %v2889_v49, 2 }
 0x703   : > { %v3883_v11 = vpop.permute.xlu1 %3882  ;;  %3464 = vrot.lane.b32.xlu0 %v2883_v48, %s5818_s23  ;;  %v4747_v56 = vsel %vm2294_vm11, %v4744_v41, %v4746_v29  ;;  %v13206_v41 = vld [vmem:[#allocation52_spill] sm:$0xff] }
 0x704   : > { %5593 = vmatmul.mubr.msk.f32.gmra.mxu1 %vm4789_vm4, %v4747_v56  ;;  %v4339_v23 = vsel %vm2001_vm6, %v4291_v4, %v13206_v41  ;;  %v4532_v62 = vsel %vm4498_vm14, %v4483_v55, %v3883_v11  ;;  %v13208_v56 = vld [vmem:[#allocation162_spill] sm:$0xff] }
 0x705   : > { %3904 = vrot.lane.b32.xlu1 %v2884_v39, %s5822_s14  ;;  %v3885_v15 = vpop.permute.xlu0 %3884  ;;  %v4387_v5 = vsel %vm2099_vm8, %v4339_v23, %v11325_v1 }
 0x706   : > { %v4435_v17 = vsel %vm2197_vm10, %v4387_v5, %v11353_v61 }
 0x707   : > { %v11407_v47 = vpop.permute.xlu1 %3444  ;;  %4047 = vrot.lane.b32.xlu0 %v3516_v6, %s5823_s29  ;;  %v4484_v21 = vsel %vm4449_vm13, %v4435_v17, %v3738_v34  ;;  %v4292_v34 = vsel %vm1903_vm2, %v10928_v37, %v13207_v43 }
 0x708   : > { %v4533_v1 = vsel %vm4498_vm14, %v4484_v21, %v3885_v15 }
 0x709   : > { %4049 = vrot.lane.b32.xlu1 %v3518_v14, %s5823_s29  ;;  %v11412_v42 = vpop.permute.xlu0 %3446 }
 0x70b   : > { %v3887_v63 = vpop.permute.xlu1 %3886  ;;  %3466 = vrot.lane.b32.xlu0 %v2884_v39, %s5818_s23  ;;  %v4340_v39 = vsel %vm2001_vm6, %v4292_v34, %v13208_v56  ;;  %s11746_s23 = scalar_lea.hbm %s11788_s7, %s5401_s18 }
 0x70c   : > { %v4388_v15 = vsel %vm2099_vm8, %v4340_v39, %v11335_v25 }
 0x70d   : > { %3609 = vrot.lane.b32.xlu1 %v3516_v6, %s5820_s8  ;;  %v4030_v60 = vpop.permute.xlu0 %4029  ;;  %v2886_v6 = vld [vmem:[#allocation3 + $0x220] sm:$0xff]  ;;  %v4436_v37 = vsel %vm2197_vm10, %v4388_v15, %v11382_v2 }
 0x70e   : > { %v4581_v28 = vsel %vm4547_vm15, %v4532_v62, %v4030_v60  ;;  %v2888_v60 = vld [vmem:[#allocation3 + $0x230] sm:$0xff] }
 0x70f   : > { %v4032_v24 = vpop.permute.xlu1 %4031  ;;  %3611 = vrot.lane.b32.xlu0 %v3518_v14, %s5820_s8  ;;  %v3961_v59 = vrot.slane %v2888_v60, 1  ;;  %v4109_v41 = vrot.slane %v2888_v60, 2 }
 0x710   : > { %v4582_v54 = vsel %vm4547_vm15, %v4533_v1, %v4032_v24  ;;  %v2887_v24 = vld [vmem:[#allocation3 + $0x228] sm:$0xff] }
 0x711   : > { %4051 = vrot.lane.b32.xlu1 %v3517_v32, %s5823_s29  ;;  %v11418_v40 = vpop.permute.xlu0 %3448  ;;  %v3960_v33 = vrot.slane %v2887_v24, 1  ;;  %v4108_v10 = vrot.slane %v2887_v24, 2  ;;  %v4112_v17 = vsel %vm727_vm3, %v4109_v41, %v4111_v0 }
 0x713   : > { %v11423_v58 = vpop.permute.xlu1 %3591  ;;  %4197 = vrot.lane.b32.xlu0 %v3664_v53, %s5824_s21  ;;  %v4110_v55 = vsel %vm727_vm3, %v4108_v10, %v4109_v41 }
 0x715   : > { %4199 = vrot.lane.b32.xlu1 %v3666_v13, %s5824_s21  ;;  %v11435_v57 = vpop.permute.xlu0 %3593 }
 0x717   : > { %v4034_v12 = vpop.permute.xlu1 %4033  ;;  %3613 = vrot.lane.b32.xlu0 %v3517_v32, %s5820_s8  ;;  %s5260_s8 = scalar_lea.sflag [#allocation5], %s269_s15 }
 0x719   : > { %3759 = vrot.lane.b32.xlu1 %v3664_v53, %s5821_s19  ;;  %v4180_v52 = vpop.permute.xlu0 %4179  ;;  %v4485_v53 = vsel %vm4449_vm13, %v4436_v37, %v11401_v3  ;;  %v3962_v3 = vsel %vm518_vm1, %v3960_v33, %v3961_v59  ;;  %vm5825_vm1 = vmmov 0  }
 0x71a   : > { %v4630_v19 = vsel %vm4596_vm0, %v4581_v28, %v4180_v52  ;;  %v4534_v25 = vsel %vm4498_vm14, %v4485_v53, %v3887_v63  ;;  %v13209_v52 = vld [vmem:[#allocation255_spill] sm:$0xff]  ;;  %v13213_v53 = vld [vmem:[#allocation160_spill] sm:$0xff] }
 0x71b   : > { %v4182_v48 = vpop.permute.xlu1 %4181  ;;  %3761 = vrot.lane.b32.xlu0 %v3666_v13, %s5821_s19  ;;  %v4748_v30 = vrot.slane %v4630_v19, 7  ;;  %v4583_v35 = vsel %vm4547_vm15, %v4534_v25, %v4034_v12  ;;  %v4293_v1 = vsel %vm1903_vm2, %v11003_v45, %v13209_v52 }
 0x71c   : > { %v4631_v61 = vsel %vm4596_vm0, %v4582_v54, %v4182_v48  ;;  %v13210_v54 = vld [vmem:[#allocation50_spill] sm:$0xff] }
 0x71d   : > { %v4749_v29 = vrot.slane %v4631_v61, 7  ;;  %4201 = vrot.lane.b32.xlu1 %v3668_v18, %s5824_s21  ;;  %v11461_v11 = vpop.permute.xlu0 %3595  ;;  %v4341_v48 = vsel %vm2001_vm6, %v4293_v1, %v13210_v54  ;;  %v13211_v61 = vld [vmem:[#allocation208_spill] sm:$0xff]  ;;  %v13215_v1 = vld [vmem:[#allocation209_spill] sm:$0xff] }
 0x71e   : > { %v4389_v43 = vsel %vm2099_vm8, %v4341_v48, %v11407_v47  ;;  %v4296_v54 = vsel %vm1903_vm2, %v11100_v51, %v13215_v1 }
 0x71f   : > { %v3742_v32 = vpop.permute.xlu1 %3741  ;;  %3763 = vrot.lane.b32.xlu0 %v3668_v18, %s5821_s19  ;;  %v4750_v14 = vsel %vm2294_vm11, %v4748_v30, %v4749_v29  ;;  %v4294_v18 = vsel %vm1903_vm2, %v11013_v20, %v13211_v61  ;;  %v13212_v30 = vld [vmem:[#allocation215_spill] sm:$0xff]  ;;  %v4437_v56 = vsel %vm2197_vm10, %v4389_v43, %v11423_v58  ;;  %v13216_v61 = vld [vmem:[#allocation182_spill] sm:$0xff]  ;;  %v13217_v43 = vld [vmem:[#allocation176_spill] sm:$0xff]  ;;  %s5750_s19 = scalar_lea.vmem %s5273_s22, 16 }
 0x720   : > { %5595 = vmatprep.mubr.msk.f32.mxu1 %vm4789_vm4, %v4750_v14  ;;  %v4486_v39 = vsel %vm4449_vm13, %v4437_v56, %v3742_v32  ;;  %p5751_p11 = scmp.ne.s32.totalorder %s5273_s22, %s5750_s19 }
 0x721   : > { %3906 = vrot.lane.b32.xlu1 %v2886_v6, %s5822_s14  ;;  %v3744_v50 = vpop.permute.xlu0 %3743 }
 0x722   : > { %p5752_p12 = pnand %p5751_p11, %p5905_p5 }
 0x723   : > { %v4184_v46 = vpop.permute.xlu1 %4183  ;;  %3908 = vrot.lane.b32.xlu0 %v2887_v24, %s5822_s14 }
 0x724   : > { %v4632_v2 = vsel %vm4596_vm0, %v4583_v35, %v4184_v46  ;;  %p5753_p13 = pneg %p5752_p12 }
 0x725   : > { %v4751_v13 = vrot.slane %v4632_v2, 7  ;;  %3910 = vrot.lane.b32.xlu1 %v2888_v60, %s5822_s14  ;;  %v3746_v16 = vpop.permute.xlu0 %3745  ;;  %s5826_s14 = smov [#allocation4]  }
 0x726   : > { %s5754_s28 = sshll.u32 %s5826_s14, 4  ;;  %s5755_s28 = int_to_ptr.vmem [resolvable:$false] %s5754_s28 }
 0x727   : > { %v3889_v4 = vpop.permute.xlu1 %3888  ;;  %4053 = vrot.lane.b32.xlu0 %v3960_v33, %s5823_s29  ;;  %v4752_v63 = vsel %vm2294_vm11, %v4749_v29, %v4751_v13  ;;  %v4342_v29 = vsel %vm2001_vm6, %v4294_v18, %v13212_v30  ;;  %v4344_v18 = vsel %vm2001_vm6, %v4296_v54, %v13216_v61  ;;  %v4297_v30 = vsel %vm1903_vm2, %v11110_v8, %v13217_v43  ;;  %v13222_v54 = vld [vmem:[#allocation183_spill] sm:$0xff]  ;;  %p5757_p0 = scmp.lt.s32.totalorder %s5273_s22, %s5755_s28 }
 0x728   : > { %5596 = vmatmul.mubr.msk.f32.gmra.mxu1 %vm4789_vm4, %v4752_v63  ;;  %v4390_v45 = vsel %vm2099_vm8, %v4342_v29, %v11412_v42  ;;  %v4535_v20 = vsel %vm4498_vm14, %v4486_v39, %v3889_v4 }
 0x729   : > { %4055 = vrot.lane.b32.xlu1 %v3962_v3, %s5823_s29  ;;  %v3891_v23 = vpop.permute.xlu0 %3890  ;;  %v4438_v15 = vsel %vm2197_vm10, %v4390_v45, %v11435_v57  ;;  %v4295_v57 = vsel %vm1903_vm2, %v11024_v44, %v13213_v53  ;;  %v13218_v45 = vld [vmem:[#allocation265_spill] sm:$0xff] }
 0x72a   : > { %v4487_v47 = vsel %vm4449_vm13, %v4438_v15, %v3744_v50  ;;  %v13214_v50 = vld [vmem:[#allocation315_spill] sm:$0xff]  ;;  %v4345_v39 = vsel %vm2001_vm6, %v4297_v30, %v13218_v45  ;;  %v13224_v45 = vld [vmem:[#allocation216_spill] sm:$0xff] }
 0x72b   : > { %v11485_v5 = vpop.permute.xlu1 %3450  ;;  %4057 = vrot.lane.b32.xlu0 %v3961_v59, %s5823_s29  ;;  %v4536_v37 = vsel %vm4498_vm14, %v4487_v47, %v3891_v23  ;;  %v4343_v35 = vsel %vm2001_vm6, %v4295_v57, %v13214_v50  ;;  %s5756_s29 = scalar_lea.vmem %s5755_s28, 32 }
 0x72c   : > { %v4391_v46 = vsel %vm2099_vm8, %v4343_v35, %v11418_v40  ;;  %v4392_v29 = vsel %vm2099_vm8, %v4344_v18, %v11485_v5  ;;  %v13223_v18 = vld [vmem:[#allocation210_spill] sm:$0xff]  ;;  %p5758_p1 = scmp.lt.s32.totalorder %s5756_s29, %s5750_s19 }
 0x72d   : > { %4203 = vrot.lane.b32.xlu1 %v4108_v10, %s5824_s21  ;;  %v11490_v12 = vpop.permute.xlu0 %3452  ;;  %v4439_v3 = vsel %vm2197_vm10, %v4391_v46, %v11461_v11  ;;  %v4300_v43 = vsel %vm1903_vm2, %v11207_v26, %v13223_v18 }
 0x72e   : > { %v4488_v4 = vsel %vm4449_vm13, %v4439_v3, %v3746_v16  ;;  %v4393_v51 = vsel %vm2099_vm8, %v4345_v39, %v11490_v12  ;;  %v4348_v39 = vsel %vm2001_vm6, %v4300_v43, %v13224_v45  ;;  %p5759_p2 = por %p5758_p1, %p5757_p0 }
 0x72f   : > { %v3893_v62 = vpop.permute.xlu1 %3892  ;;  %4205 = vrot.lane.b32.xlu0 %v4110_v55, %s5824_s21 }
 0x730   : > { %v4537_v63 = vsel %vm4498_vm14, %v4488_v4, %v3893_v62  ;;  %p5760_p3 = pnand %p5759_p2, %p5753_p13 }
 0x731   : > { %4207 = vrot.lane.b32.xlu1 %v4112_v17, %s5824_s21  ;;  %v4036_v36 = vpop.permute.xlu0 %4035 }
 0x732   : > { %v4584_v14 = vsel %vm4547_vm15, %v4535_v20, %v4036_v36 }
 0x733   : > { %v4038_v21 = vpop.permute.xlu1 %4037 }
 0x734   : > { %v4585_v24 = vsel %vm4547_vm15, %v4536_v37, %v4038_v21 }
 0x735   : > { %v11495_v28 = vpop.permute.xlu0 %3454 }
 0x737   : > { %v3598_v19 = vpop.permute.xlu1 %3597 }
 0x739   : > { %v3600_v34 = vpop.permute.xlu0 %3599 }
 0x73a   : > { %v4441_v47 = vsel %vm2197_vm10, %v4393_v51, %v3600_v34 }
 0x73b   : > { %v4040_v6 = vpop.permute.xlu1 %4039 }
 0x73c   : > { %v4586_v49 = vsel %vm4547_vm15, %v4537_v63, %v4040_v6  ;;  %v4440_v6 = vsel %vm2197_vm10, %v4392_v29, %v3598_v19 }
 0x73d   : > { %v4186_v60 = vpop.permute.xlu0 %4185 }
 0x73e   : > { %v4633_v58 = vsel %vm4596_vm0, %v4584_v14, %v4186_v60 }
 0x73f   : > { %v4188_v42 = vpop.permute.xlu1 %4187  ;;  %v4753_v25 = vrot.slane %v4633_v58, 7 }
 0x740   : > { %v4634_v32 = vsel %vm4596_vm0, %v4585_v24, %v4188_v42  ;;  %v13219_v42 = vld [vmem:[#allocation257_spill] sm:$0xff] }
 0x741   : > { %v4754_v33 = vrot.slane %v4634_v32, 7  ;;  %v3602_v59 = vpop.permute.xlu0 %3601  ;;  %v4298_v34 = vsel %vm1903_vm2, %v11121_v31, %v13219_v42 }
 0x743   : > { %v3748_v2 = vpop.permute.xlu1 %3747  ;;  %v4755_v13 = vsel %vm2294_vm11, %v4753_v25, %v4754_v33  ;;  %v13220_v25 = vld [vmem:[#allocation55_spill] sm:$0xff] }
 0x744   : > { %5598 = vmatprep.mubr.msk.f32.mxu1 %vm4789_vm4, %v4755_v13  ;;  %v4489_v15 = vsel %vm4449_vm13, %v4440_v6, %v3748_v2 }
 0x745   : > { %v3750_v44 = vpop.permute.xlu0 %3749 }
 0x746   : > { %v4490_v8 = vsel %vm4449_vm13, %v4441_v47, %v3750_v44 }
 0x747   : > { %v4190_v10 = vpop.permute.xlu1 %4189 }
 0x748   : > { %v4635_v41 = vsel %vm4596_vm0, %v4586_v49, %v4190_v10 }
 0x749   : > { %v4756_v23 = vrot.slane %v4635_v41, 7  ;;  %v3752_v40 = vpop.permute.xlu0 %3751 }
 0x74b   : > { %v3895_v0 = vpop.permute.xlu1 %3894  ;;  %v4757_v55 = vsel %vm2294_vm11, %v4754_v33, %v4756_v23  ;;  %v4346_v33 = vsel %vm2001_vm6, %v4298_v34, %v13220_v25 }
 0x74c   : > { %5599 = vmatmul.mubr.msk.f32.gmra.mxu1 %vm4789_vm4, %v4757_v55  ;;  %v4538_v14 = vsel %vm4498_vm14, %v4489_v15, %v3895_v0  ;;  %v4394_v50 = vsel %vm2099_vm8, %v4346_v33, %v11495_v28 }
 0x74d   : > { %v3897_v11 = vpop.permute.xlu0 %3896  ;;  %v4442_v2 = vsel %vm2197_vm10, %v4394_v50, %v3602_v59 }
 0x74e   : > { %v4539_v37 = vsel %vm4498_vm14, %v4490_v8, %v3897_v11  ;;  %v4491_v13 = vsel %vm4449_vm13, %v4442_v2, %v3752_v40 }
 0x74f   : > { %v3457_v17 = vpop.permute.xlu1 %3456 }
 0x751   : > { %v11540_v36 = vpop.permute.xlu0 %3458 }
 0x752   : > { %v4396_v51 = vsel %vm2099_vm8, %v4348_v39, %v11540_v36 }
 0x753   : > { %v3899_v16 = vpop.permute.xlu1 %3898 }
 0x754   : > { %v4540_v31 = vsel %vm4498_vm14, %v4491_v13, %v3899_v16  ;;  %v13221_v16 = vld [vmem:[#allocation177_spill] sm:$0xff] }
 0x755   : > { %v4042_v21 = vpop.permute.xlu0 %4041 }
 0x756   : > { %v4587_v5 = vsel %vm4547_vm15, %v4538_v14, %v4042_v21 }
 0x757   : > { %v4044_v52 = vpop.permute.xlu1 %4043 }
 0x758   : > { %v4588_v19 = vsel %vm4547_vm15, %v4539_v37, %v4044_v52  ;;  %v4299_v52 = vsel %vm1903_vm2, %v11197_v38, %v13221_v16  ;;  %v13225_v37 = vld [vmem:[#allocation310_spill] sm:$0xff] }
 0x759   : > { %v11542_v62 = vpop.permute.xlu0 %3460  ;;  %v4347_v61 = vsel %vm2001_vm6, %v4299_v52, %v13222_v54  ;;  %v13231_v54 = vld [vmem:[#allocation178_spill] sm:$0xff] }
 0x75a   : > { %v4395_v30 = vsel %vm2099_vm8, %v4347_v61, %v3457_v17 }
 0x75b   : > { %v3604_v48 = vpop.permute.xlu1 %3603 }
 0x75c   : > { %v4443_v6 = vsel %vm2197_vm10, %v4395_v30, %v3604_v48  ;;  %v13232_v30 = vld [vmem:[#allocation8_spill] sm:$0xff] }
 0x75d   : > { %v3606_v56 = vpop.permute.xlu0 %3605 }
 0x75f   : > { %v4046_v20 = vpop.permute.xlu1 %4045 }
 0x760   : > { %v4589_v4 = vsel %vm4547_vm15, %v4540_v31, %v4046_v20  ;;  %v4444_v20 = vsel %vm2197_vm10, %v4396_v51, %v3606_v56  ;;  %v4301_v56 = vsel %vm1903_vm2, %v11218_v7, %v13225_v37  ;;  %v5183_v37 = vld [vmem:[%s11786_s5 + $0x8] sm:$0xff] }
 0x761   : > { %v4192_v60 = vpop.permute.xlu0 %4191  ;;  %5611 = vmatpush3.msra.mxu0 %v5183_v37 }
 0x762   : > { %v4636_v58 = vsel %vm4596_vm0, %v4587_v5, %v4192_v60 }
 0x763   : > { %v4194_v24 = vpop.permute.xlu1 %4193  ;;  %v4758_v32 = vrot.slane %v4636_v58, 7 }
 0x764   : > { %v4637_v12 = vsel %vm4596_vm0, %v4588_v19, %v4194_v24 }
 0x765   : > { %v4759_v53 = vrot.slane %v4637_v12, 7  ;;  %v3608_v57 = vpop.permute.xlu0 %3607  ;;  %v13226_v12 = vld [vmem:[#allocation316_spill] sm:$0xff] }
 0x766   : > { %v4349_v42 = vsel %vm2001_vm6, %v4301_v56, %v13226_v12  ;;  %v13233_v56 = vmov 0.0  }
 0x767   : > { %v3754_v35 = vpop.permute.xlu1 %3753  ;;  %v4760_v46 = vsel %vm2294_vm11, %v4758_v32, %v4759_v53  ;;  %v4397_v34 = vsel %vm2099_vm8, %v4349_v42, %v11542_v62  ;;  %5612 = vmatprep.subr.mxu0 %v13233_v56  ;;  %5614 = vmatprep.mubr.msk.f32.mxu0 %vm5825_vm1, %v13233_v56  ;;  %v11671_v42 = vld [vmem:[%s11785_s4] ss:$0 sm:$0xff] }
 0x768   : > { %5601 = vmatprep.mubr.msk.f32.mxu1 %vm4789_vm4, %v4760_v46  ;;  %v4492_v38 = vsel %vm4449_vm13, %v4443_v6, %v3754_v35  ;;  %v4445_v25 = vsel %vm2197_vm10, %v4397_v34, %v3608_v57 }
 0x769   : > { %v3756_v3 = vpop.permute.xlu0 %3755 }
 0x76a   : > { %v4493_v26 = vsel %vm4449_vm13, %v4444_v20, %v3756_v3 }
 0x76b   : > { %v4196_v44 = vpop.permute.xlu1 %4195 }
 0x76c   : > { %v4638_v63 = vsel %vm4596_vm0, %v4589_v4, %v4196_v44  ;;  %v13227_v44 = vld [vmem:[#allocation259_spill] sm:$0xff] }
 0x76d   : > { %v4761_v49 = vrot.slane %v4638_v63, 7  ;;  %v3758_v10 = vpop.permute.xlu0 %3757  ;;  %v4302_v63 = vsel %vm1903_vm2, %v11294_v9, %v13227_v44  ;;  %v4304_v9 = vsel %vm1903_vm2, %v11315_v27, %v13231_v54 }
 0x76e   : > { %v4494_v33 = vsel %vm4449_vm13, %v4445_v25, %v3758_v10  ;;  %v13228_v10 = vld [vmem:[#allocation267_spill] sm:$0xff] }
 0x76f   : > { %v3901_v28 = vpop.permute.xlu1 %3900  ;;  %v4762_v41 = vsel %vm2294_vm11, %v4759_v53, %v4761_v49 }
 0x770   : > { %5602 = vmatmul.mubr.msk.f32.gmra.mxu1 %vm4789_vm4, %v4762_v41  ;;  %v4541_v47 = vsel %vm4498_vm14, %v4492_v38, %v3901_v28  ;;  %v4350_v28 = vsel %vm2001_vm6, %v4302_v63, %v13228_v10  ;;  %v13229_v41 = vld [vmem:[#allocation45_spill] sm:$0xff] }
 0x771   : > { %v3903_v59 = vpop.permute.xlu0 %3902 }
 0x772   : > { %v4542_v8 = vsel %vm4498_vm14, %v4493_v26, %v3903_v59  ;;  %v4303_v59 = vsel %vm1903_vm2, %v11304_v22, %v13229_v41  ;;  %v4352_v22 = vsel %vm2001_vm6, %v4304_v9, %v13232_v30 }
 0x773   : > { %v3463_v23 = vpop.permute.xlu1 %3462 }
 0x775   : > { %v3465_v0 = vpop.permute.xlu0 %3464 }
 0x777   : > { %v3905_v55 = vpop.permute.xlu1 %3904 }
 0x778   : > { %v4543_v7 = vsel %vm4498_vm14, %v4494_v33, %v3905_v55  ;;  %v4398_v55 = vsel %vm2099_vm8, %v4350_v28, %v3463_v23 }
 0x779   : > { %v4048_v40 = vpop.permute.xlu0 %4047 }
 0x77a   : > { %v4590_v17 = vsel %vm4547_vm15, %v4541_v47, %v4048_v40 }
 0x77b   : > { %v4050_v11 = vpop.permute.xlu1 %4049 }
 0x77c   : > { %v4591_v48 = vsel %vm4547_vm15, %v4542_v8, %v4050_v11  ;;  %v13230_v11 = vld [vmem:[#allocation57_spill] sm:$0xff] }
 0x77d   : > { %v3467_v21 = vpop.permute.xlu0 %3466  ;;  %v4351_v16 = vsel %vm2001_vm6, %v4303_v59, %v13230_v11 }
 0x77e   : > { %v4399_v61 = vsel %vm2099_vm8, %v4351_v16, %v3465_v0  ;;  %v4400_v39 = vsel %vm2099_vm8, %v4352_v22, %v3467_v21 }
 0x77f   : > { %v3610_v1 = vpop.permute.xlu1 %3609 }
 0x780   : > { %v4446_v52 = vsel %vm2197_vm10, %v4398_v55, %v3610_v1 }
 0x781   : > { %v3612_v29 = vpop.permute.xlu0 %3611 }
 0x782   : > { %v4447_v23 = vsel %vm2197_vm10, %v4399_v61, %v3612_v29 }
 0x783   : > { %v4052_v15 = vpop.permute.xlu1 %4051 }
 0x784   : > { %v4592_v35 = vsel %vm4547_vm15, %v4543_v7, %v4052_v15 }
 0x785   : > { %v4198_v14 = vpop.permute.xlu0 %4197 }
 0x786   : > { %v4639_v5 = vsel %vm4596_vm0, %v4590_v17, %v4198_v14 }
 0x787   : > { %v4200_v60 = vpop.permute.xlu1 %4199  ;;  %v4763_v58 = vrot.slane %v4639_v5, 7 }
 0x788   : > { %v4640_v36 = vsel %vm4596_vm0, %v4591_v48, %v4200_v60 }
 0x789   : > { %v4764_v19 = vrot.slane %v4640_v36, 7  ;;  %v3614_v24 = vpop.permute.xlu0 %3613 }
 0x78a   : > { %v4448_v27 = vsel %vm2197_vm10, %v4400_v39, %v3614_v24 }
 0x78b   : > { %v3760_v32 = vpop.permute.xlu1 %3759  ;;  %v4765_v53 = vsel %vm2294_vm11, %v4763_v58, %v4764_v19  ;;  %v5182_v58 = vld [vmem:[%s11786_s5] sm:$0xff] }
 0x78c   : > { %5604 = vmatprep.mubr.msk.f32.mxu1 %vm4789_vm4, %v4765_v53  ;;  %v4495_v18 = vsel %vm4449_vm13, %v4446_v52, %v3760_v32  ;;  %5613 = vmatpush3.msra.mxu0 %v5182_v58 }
 0x78d   : > { %v3762_v50 = vpop.permute.xlu0 %3761 }
 0x78e   : > { %v4496_v1 = vsel %vm4449_vm13, %v4447_v23, %v3762_v50 }
 0x78f   : > { %v4202_v46 = vpop.permute.xlu1 %4201 }
 0x790   : > { %v4641_v2 = vsel %vm4596_vm0, %v4592_v35, %v4202_v46 }
 0x791   : > { %v4766_v13 = vrot.slane %v4641_v2, 7  ;;  %v3764_v3 = vpop.permute.xlu0 %3763 }
 0x792   : > { %v4497_v15 = vsel %vm4449_vm13, %v4448_v27, %v3764_v3 }
 0x793   : > { %v3907_v62 = vpop.permute.xlu1 %3906  ;;  %v4767_v31 = vsel %vm2294_vm11, %v4764_v19, %v4766_v13  ;;  %v5564_v19 = vpop.f32.mrf.mxu1 }
 0x794   : > { %5605 = vmatmul.mubr.msk.f32.gmra.mxu1 %vm4789_vm4, %v4767_v31  ;;  %v4544_v45 = vsel %vm4498_vm14, %v4495_v18, %v3907_v62  ;;  %v4926_v25 = vadd.f32 %v5564_v19, %v11671_v42 }
 0x795   : > { %v3909_v57 = vpop.permute.xlu0 %3908  ;;  %v4920_v24 = vpop.f32.mrf.mxu1 }
 0x796   : > { %v4545_v0 = vsel %vm4498_vm14, %v4496_v1, %v3909_v57  ;;  %v4921_v32 = vadd.f32 %v11671_v42, %v4920_v24  ;;  %v5080_v35 = vmax.f32 %v4926_v25, 0.0 }
 0x797   : > { %v3911_v4 = vpop.permute.xlu1 %3910  ;;  %v5567_v12 = vpop.f32.mrf.mxu1 }
 0x798   : > { %v4546_v47 = vsel %vm4498_vm14, %v4497_v15, %v3911_v4  ;;  %v5079_v50 = vmax.f32 %v4921_v32, 0.0  ;;  %v4936_v3 = vadd.f32 %v5567_v12, %v11671_v42  ;;  %v5112_v31 = vsel %vm2001_vm6, %v5080_v35, 0.0 }
 0x799   : > { %v4054_v49 = vpop.permute.xlu0 %4053  ;;  %v4930_v34 = vpop.f32.mrf.mxu1 }
 0x79a   : > { %v4593_v6 = vsel %vm4547_vm15, %v4544_v45, %v4054_v49  ;;  %v4931_v33 = vadd.f32 %v11671_v42, %v4930_v34  ;;  %v5111_v13 = vsel %vm2001_vm6, %v5079_v50, 0.0  ;;  %v5082_v63 = vmax.f32 %v4936_v3, 0.0 }
 0x79b   : > { %v4056_v40 = vpop.permute.xlu1 %4055  ;;  %v5570_v53 = vpop.f32.mrf.mxu1  ;;  %v5113_v4 = vadd.f32 %v5112_v31, %v5111_v13 }
 0x79c   : > { %v4594_v20 = vsel %vm4547_vm15, %v4545_v0, %v4056_v40  ;;  %v5081_v46 = vmax.f32 %v4931_v33, 0.0  ;;  %v4946_v41 = vadd.f32 %v5570_v53, %v11671_v42  ;;  %v5116_v55 = vsel %vm2001_vm6, %v5082_v63, 0.0 }
 0x79d   : > { %v4058_v43 = vpop.permute.xlu0 %4057  ;;  %v4940_v7 = vpop.f32.mrf.mxu1 }
 0x79e   : > { %v4595_v26 = vsel %vm4547_vm15, %v4546_v47, %v4058_v43  ;;  %v4941_v62 = vadd.f32 %v11671_v42, %v4940_v7  ;;  %v5114_v57 = vsel %vm2001_vm6, %v5081_v46, 0.0  ;;  %v5084_v52 = vmax.f32 %v4946_v41, 0.0 }
 0x79f   : > { %v4204_v51 = vpop.permute.xlu1 %4203  ;;  %v5573_v2 = vpop.f32.mrf.mxu1  ;;  %v5115_v10 = vadd.f32 %v5114_v57, %v5113_v4 }
 0x7a0   : > { %v4642_v38 = vsel %vm4596_vm0, %v4593_v6, %v4204_v51  ;;  %v5083_v49 = vmax.f32 %v4941_v62, 0.0  ;;  %v4956_v18 = vadd.f32 %v5573_v2, %v11671_v42  ;;  %v5120_v30 = vsel %vm2001_vm6, %v5084_v52, 0.0 }
 0x7a1   : > { %v4206_v29 = vpop.permute.xlu0 %4205  ;;  %v4768_v17 = vrot.slane %v4642_v38, 7  ;;  %v4950_v44 = vpop.f32.mrf.mxu1  ;;  %v5117_v11 = vadd.f32 %v5116_v55, %v5115_v10 }
 0x7a2   : > { %v4643_v21 = vsel %vm4596_vm0, %v4594_v20, %v4206_v29  ;;  %v4951_v59 = vadd.f32 %v11671_v42, %v4950_v44  ;;  %v5118_v40 = vsel %vm2001_vm6, %v5083_v49, 0.0  ;;  %v5086_v39 = vmax.f32 %v4956_v18, 0.0 }
 0x7a3   : > { %v4769_v14 = vrot.slane %v4643_v21, 7  ;;  %v4208_v8 = vpop.permute.xlu1 %4207  ;;  %v5576_v28 = vpop.f32.mrf.mxu1  ;;  %v5119_v9 = vadd.f32 %v5118_v40, %v5117_v11 }
 0x7a4   : > { %v4644_v5 = vsel %vm4596_vm0, %v4595_v26, %v4208_v8  ;;  %v5085_v54 = vmax.f32 %v4951_v59, 0.0  ;;  %v4966_v27 = vadd.f32 %v5576_v28, %v11671_v42  ;;  %v5124_v38 = vsel %vm2001_vm6, %v5086_v39, 0.0 }
 0x7a5   : > { %v4771_v48 = vrot.slane %v4644_v5, 7  ;;  %v4770_v60 = vsel %vm2294_vm11, %v4768_v17, %v4769_v14  ;;  %v4960_v16 = vpop.f32.mrf.mxu1  ;;  %v5121_v23 = vadd.f32 %v5120_v30, %v5119_v9 }
 0x7a6   : > { %5607 = vmatprep.mubr.msk.f32.mxu1 %vm4789_vm4, %v4770_v60  ;;  %v4961_v43 = vadd.f32 %v11671_v42, %v4960_v16  ;;  %v5122_v22 = vsel %vm2001_vm6, %v5085_v54, 0.0  ;;  %v5088_v47 = vmax.f32 %v4966_v27, 0.0 }
 0x7a7   : > { %v4772_v36 = vsel %vm2294_vm11, %v4769_v14, %v4771_v48  ;;  %v5579_v61 = vpop.f32.mrf.mxu1  ;;  %v5123_v6 = vadd.f32 %v5122_v22, %v5121_v23 }
 0x7a8   : > { %5608 = vmatmul.mubr.msk.f32.gmra.mxu1 %vm4789_vm4, %v4772_v36  ;;  %v5087_v1 = vmax.f32 %v4961_v43, 0.0  ;;  %v4976_v14 = vadd.f32 %v5579_v61, %v11671_v42  ;;  %v5128_v5 = vsel %vm2001_vm6, %v5088_v47, 0.0 }
 0x7a9   : > { %v4970_v45 = vpop.f32.mrf.mxu1  ;;  %v5125_v20 = vadd.f32 %v5124_v38, %v5123_v6 }
 0x7aa   : > { %v4971_v0 = vadd.f32 %v11671_v42, %v4970_v45  ;;  %v5126_v15 = vsel %vm2001_vm6, %v5087_v1, 0.0  ;;  %v5090_v37 = vmax.f32 %v4976_v14, 0.0 }
 0x7ab   : > { %v5582_v51 = vpop.f32.mrf.mxu1  ;;  %v5127_v26 = vadd.f32 %v5126_v15, %v5125_v20 }
 0x7ac   : > { %v5089_v21 = vmax.f32 %v4971_v0, 0.0  ;;  %v4986_v24 = vadd.f32 %v5582_v51, %v11671_v42  ;;  %v5132_v34 = vsel %vm2001_vm6, %v5090_v37, 0.0 }
 0x7ad   : > { %v4980_v29 = vpop.f32.mrf.mxu1  ;;  %v5129_v60 = vadd.f32 %v5128_v5, %v5127_v26 }
 0x7ae   : > { %v4981_v8 = vadd.f32 %v11671_v42, %v4980_v29  ;;  %v5130_v48 = vsel %vm2001_vm6, %v5089_v21, 0.0  ;;  %v5092_v33 = vmax.f32 %v4986_v24, 0.0 }
 0x7af   : > { %v5585_v17 = vpop.f32.mrf.mxu1  ;;  %v5131_v58 = vadd.f32 %v5130_v48, %v5129_v60 }
 0x7b0   : > { %v5091_v56 = vmax.f32 %v4981_v8, 0.0  ;;  %v4996_v46 = vadd.f32 %v5585_v17, %v11671_v42  ;;  %v5136_v13 = vsel %vm2001_vm6, %v5092_v33, 0.0 }
 0x7b1   : > { %v4990_v36 = vpop.f32.mrf.mxu1  ;;  %v5133_v53 = vadd.f32 %v5132_v34, %v5131_v58 }
 0x7b2   : > { %v4991_v12 = vadd.f32 %v11671_v42, %v4990_v36  ;;  %v5134_v32 = vsel %vm2001_vm6, %v5091_v56, 0.0  ;;  %v5094_v57 = vmax.f32 %v4996_v46, 0.0 }
 0x7b3   : > { %v5588_v19 = vpop.f32.mrf.mxu1  ;;  %v5135_v7 = vadd.f32 %v5134_v32, %v5133_v53 }
 0x7b4   : > { %v5093_v50 = vmax.f32 %v4991_v12, 0.0  ;;  %v5006_v49 = vadd.f32 %v5588_v19, %v11671_v42  ;;  %v5140_v28 = vsel %vm2001_vm6, %v5094_v57, 0.0 }
 0x7b5   : > { %v5000_v25 = vpop.f32.mrf.mxu1  ;;  %v5137_v62 = vadd.f32 %v5136_v13, %v5135_v7 }
 0x7b6   : > { %v5001_v2 = vadd.f32 %v11671_v42, %v5000_v25  ;;  %v5138_v3 = vsel %vm2001_vm6, %v5093_v50, 0.0  ;;  %v5096_v40 = vmax.f32 %v5006_v49, 0.0 }
 0x7b7   : > { %v5591_v35 = vpop.f32.mrf.mxu1  ;;  %v5139_v44 = vadd.f32 %v5138_v3, %v5137_v62 }
 0x7b8   : > { %v5095_v4 = vmax.f32 %v5001_v2, 0.0  ;;  %v5016_v54 = vadd.f32 %v5591_v35, %v11671_v42  ;;  %v5144_v61 = vsel %vm2001_vm6, %v5096_v40, 0.0 }
 0x7b9   : > { %v5010_v31 = vpop.f32.mrf.mxu1  ;;  %v5141_v59 = vadd.f32 %v5140_v28, %v5139_v44 }
 0x7ba   : > { %v5011_v10 = vadd.f32 %v11671_v42, %v5010_v31  ;;  %v5142_v41 = vsel %vm2001_vm6, %v5095_v4, 0.0  ;;  %v5098_v22 = vmax.f32 %v5016_v54, 0.0 }
 0x7bb   : > { %v5143_v16 = vadd.f32 %v5142_v41, %v5141_v59 }
 0x7bc   : > { %v5097_v11 = vmax.f32 %v5011_v10, 0.0  ;;  %v5148_v51 = vsel %vm2001_vm6, %v5098_v22, 0.0 }
 0x7bd   : > { %v5145_v43 = vadd.f32 %v5144_v61, %v5143_v16 }
 0x7be   : > { %v5146_v18 = vsel %vm2001_vm6, %v5097_v11, 0.0 }
 0x7bf   : > { %v5147_v45 = vadd.f32 %v5146_v18, %v5145_v43 }
 0x7c1   : > { %v5149_v0 = vadd.f32 %v5148_v51, %v5147_v45  ;;  %v5184_v45 = vld [vmem:[%s11787_s6] sm:$0x1] }
 0x7c4   : > { %v5594_v63 = vpop.f32.mrf.mxu1 }
 0x7c5   : > { %v5026_v1 = vadd.f32 %v5594_v63, %v11671_v42 }
 0x7c6   : > { %v5020_v55 = vpop.f32.mrf.mxu1 }
 0x7c7   : > { %v5021_v9 = vadd.f32 %v11671_v42, %v5020_v55  ;;  %v5100_v15 = vmax.f32 %v5026_v1, 0.0 }
 0x7c9   : > { %v5099_v23 = vmax.f32 %v5021_v9, 0.0  ;;  %v5152_v17 = vsel %vm2001_vm6, %v5100_v15, 0.0 }
 0x7cb   : > { %v5150_v27 = vsel %vm2001_vm6, %v5099_v23, 0.0 }
 0x7cc   : > { %v5151_v29 = vadd.f32 %v5150_v27, %v5149_v0 }
 0x7ce   : > { %v5153_v8 = vadd.f32 %v5152_v17, %v5151_v29 }
 0x7e8   : > { %v5597_v52 = vpop.f32.mrf.mxu1 }
 0x7e9   : > { %v5036_v21 = vadd.f32 %v5597_v52, %v11671_v42 }
 0x7ea   : > { %v5030_v30 = vpop.f32.mrf.mxu1 }
 0x7eb   : > { %v5031_v6 = vadd.f32 %v11671_v42, %v5030_v30  ;;  %v5102_v48 = vmax.f32 %v5036_v21, 0.0 }
 0x7ed   : > { %v5101_v20 = vmax.f32 %v5031_v6, 0.0  ;;  %v5156_v19 = vsel %vm2001_vm6, %v5102_v48, 0.0 }
 0x7ef   : > { %v5154_v14 = vsel %vm2001_vm6, %v5101_v20, 0.0 }
 0x7f0   : > { %v5155_v36 = vadd.f32 %v5154_v14, %v5153_v8 }
 0x7f2   : > { %v5157_v12 = vadd.f32 %v5156_v19, %v5155_v36 }
 0x80c   : > { %v5600_v39 = vpop.f32.mrf.mxu1 }
 0x80d   : > { %v5046_v56 = vadd.f32 %v5600_v39, %v11671_v42 }
 0x80e   : > { %v5040_v38 = vpop.f32.mrf.mxu1 }
 0x80f   : > { %v5041_v26 = vadd.f32 %v11671_v42, %v5040_v38  ;;  %v5104_v32 = vmax.f32 %v5046_v56, 0.0 }
 0x811   : > { %v5103_v60 = vmax.f32 %v5041_v26, 0.0  ;;  %v5160_v7 = vsel %vm2001_vm6, %v5104_v32, 0.0 }
 0x813   : > { %v5158_v24 = vsel %vm2001_vm6, %v5103_v60, 0.0 }
 0x814   : > { %v5159_v25 = vadd.f32 %v5158_v24, %v5157_v12 }
 0x816   : > { %v5161_v46 = vadd.f32 %v5160_v7, %v5159_v25 }
 0x830   : > { %v5603_v47 = vpop.f32.mrf.mxu1 }
 0x831   : > { %v5056_v33 = vadd.f32 %v5603_v47, %v11671_v42 }
 0x832   : > { %v5050_v5 = vpop.f32.mrf.mxu1 }
 0x833   : > { %v5051_v58 = vadd.f32 %v11671_v42, %v5050_v5  ;;  %v5106_v2 = vmax.f32 %v5056_v33, 0.0 }
 0x835   : > { %v5105_v53 = vmax.f32 %v5051_v58, 0.0  ;;  %v5164_v31 = vsel %vm2001_vm6, %v5106_v2, 0.0 }
 0x837   : > { %v5162_v35 = vsel %vm2001_vm6, %v5105_v53, 0.0 }
 0x838   : > { %v5163_v3 = vadd.f32 %v5162_v35, %v5161_v46 }
 0x83a   : > { %v5165_v4 = vadd.f32 %v5164_v31, %v5163_v3 }
 0x854   : > { %v5606_v37 = vpop.f32.mrf.mxu1 }
 0x855   : > { %v5066_v62 = vadd.f32 %v5606_v37, %v11671_v42 }
 0x856   : > { %v5060_v34 = vpop.f32.mrf.mxu1 }
 0x857   : > { %v5061_v50 = vadd.f32 %v11671_v42, %v5060_v34  ;;  %v5108_v63 = vmax.f32 %v5066_v62, 0.0 }
 0x859   : > { %v5107_v13 = vmax.f32 %v5061_v50, 0.0  ;;  %v5168_v59 = vsel %vm2001_vm6, %v5108_v63, 0.0 }
 0x85b   : > { %v5166_v57 = vsel %vm2001_vm6, %v5107_v13, 0.0 }
 0x85c   : > { %v5167_v10 = vadd.f32 %v5166_v57, %v5165_v4 }
 0x85e   : > { %v5169_v11 = vadd.f32 %v5168_v59, %v5167_v10 }
 0x868   : > { %v5609_v44 = vpop.f32.mrf.mxu1 }
 0x869   : > { %v5076_v49 = vadd.f32 %v5609_v44, %v11671_v42 }
 0x86a   : > { %v5070_v28 = vpop.f32.mrf.mxu1 }
 0x86b   : > { %v5071_v41 = vadd.f32 %v11671_v42, %v5070_v28  ;;  %v5110_v55 = vmax.f32 %v5076_v49, 0.0 }
 0x86d   : > { %v5109_v40 = vmax.f32 %v5071_v41, 0.0  ;;  %v5172_v54 = vsel %vm2001_vm6, %v5110_v55, 0.0 }
 0x86f   : > { %v5170_v16 = vsel %vm2001_vm6, %v5109_v40, 0.0 }
 0x870   : > { %v5171_v52 = vadd.f32 %v5170_v16, %v5169_v11 }
 0x872   : > { %v5173_v9 = vadd.f32 %v5172_v54, %v5171_v52 }
 0x874   : > { %v5174_v61 = vrot.slane %v5173_v9, 4 }
 0x876   : > { %v5175_v18 = vadd.f32 %v5174_v61, %v5173_v9 }
 0x878   : > { %v5176_v43 = vrot.slane %v5175_v18, 2 }
 0x87a   : > { %v5177_v30 = vadd.f32 %v5176_v43, %v5175_v18 }
 0x87c   : > { %v5178_v22 = vrot.slane %v5177_v30, 1 }
 0x87e   : > { %v5179_v23 = vadd.f32 %v5178_v22, %v5177_v30 }
 0x880   : > { %v5181_v42 = vmul.f32 0.00390625, %v5179_v23 }
 0x882   : > { %5615 = vmatmul.mubr.msk.f32.vlgmr.msra.gmra.mxu0 %vm2001_vm6, %v5181_v42 }
 0x942   : > { %v5254_v39 = vpop.f32.mrf.mxu0 }
 0x943   : > { %v5255_v1 = vadd.f32 %v5254_v39, %v5184_v45 }
 0x944   : > { %v5616_v6 = vpop.f32.mrf.mxu0 }
 0x945   : > { %5258 = vst [vmem:[%s270_s20] sm:$0x1] %v5255_v1 }
 0x946   : > { %5763 = shalt.err (!%p5760_p3)
}
 0x947   : > { %s5764_s13 = scalar_lea.hbm %s11746_s23, 16  ;;  %s5768_s17 = scalar_lea.hbm %s11788_s7, 32 }
 0x948   : > { %p5765_p4 = scmp.ne.s32.totalorder %s11746_s23, %s5764_s13  ;;  %p5769_p9 = scmp.lt.s32.totalorder %s11746_s23, %s11788_s7 }
 0x949   : > { %p5770_p10 = scmp.lt.s32.totalorder %s5768_s17, %s5764_s13 }
 0x94a   : > { %p5766_p7 = pnand %p5765_p4, %p5905_p5 }
 0x94b   : > { %p5771_p11 = por %p5770_p10, %p5769_p9 }
 0x94c   : > { %p5767_p8 = pneg %p5766_p7 }
 0x94e   : > { %p5772_p12 = pnand %p5771_p11, %p5767_p8 }
 0x950   : > { %5775 = shalt.err (!%p5772_p12)
}
 0x951   : > { %5617 = dma.vmem_to_hbm [thread:$0]  (%p5905_p5), %s5273_s22, 16, %s11746_s23, %s5260_s8  }
 0x952 PF: > { %p5623_p13 = scmp.ge.s32.totalorder %s5810_s27, 2  ;;  %s5284_s9 = sand.u32 1, %s5798_s24  }
 0x953   : > { %s5285_s21 = scalar_lea.sflag [#allocation5], %s5284_s9 }
 0x954   : > { %p5620_p0 = pnand %p5623_p13, %p5909_p6 }
 0x956   : > { %p5621_p1 = pneg %p5620_p0 }
 0x958   : > { %5793 = dma.done.wait (%p5621_p1), %s5285_s21, 16  }
 0x959   : > { %5795 = vsyncadd (%p5621_p1), %s5285_s21, 4294967280  ;;  %p17_p2 = scmp.ge.s32.totalorder %s5892_s30, 4   ;;  %s13234_s24 = smov %s5802_s25 }
 0x95a   : > { %s13235_s25 = smov %s5806_s26  ;;  %s13236_s26 = smov %s5903_s10 }
 0x95b   : > { %s13237_s27 = smov %s5892_s30  ;;  %19 = sbr.rel (!%p17_p2) target bundleno = 3 (0x3), region = 85 }
 0x960   :  { %5289 = vsyncpa [#allocation5], 1 }
 0x961   :  { %5291 = vsyncpa [#allocation5 + $0x1], 1 }

</bundles_post_ra>
